<compile_context>
chip_gen: v5e
topology: v5e:2x2
jax: 0.10.0
libtpu: 0.0.40
codegen_flags: <defaults>
</compile_context>

<pallas_src>
import jax
import jax.numpy as jnp
from jax.experimental import pallas as pl
from jax.experimental.pallas import tpu as pltpu


def _autoencoder_kernel(x_ref, *refs):
    """Fused MLP forward.

    refs = (w0, b0, w1, b1, ..., w9, b9, out_ref)
      w_i: (D_in_i, D_out_i) bf16 -- already transposed + BN-folded, VMEM-resident
      b_i: (1, D_out_i)      f32
    ReLU after every layer except the last (matches the PyTorch module).
    """
    out_ref = refs[-1]
    params = refs[:-1]
    n_layers = len(params) // 2

    # bf16 operands into the MXU, f32 accumulation; wide intermediates kept in
    # bf16 between layers to relieve vld/vst + VMEM pressure.
    h = x_ref[...].astype(jnp.bfloat16)
    for i in range(n_layers):  # static Python loop -> unrolled at trace time
        w = params[2 * i][...]
        b = params[2 * i + 1][...]
        acc = jnp.dot(h, w, preferred_element_type=jnp.float32) + b
        if i < n_layers - 1:
            h = jnp.maximum(acc, 0.0).astype(jnp.bfloat16)
        else:
            out_ref[...] = acc.astype(out_ref.dtype)


def fold_autoencoder_params(layers):
    """Fold eval-mode BatchNorm into the preceding Linear and cast to bf16.

    Call ONCE per model (hoisted out of the per-forward path).
      BN(xW^T + b) = x (W^T * s) + ((b - mu) * s + beta),  s = gamma/sqrt(var+eps)
    Returns list of (weight_T_bf16 (in,out), bias_f32 (1,out)).
    """
    folded = []
    for layer in layers:
        wt = layer["weight"].T.astype(jnp.float32)      # (in, out)
        bb = layer["bias"].astype(jnp.float32)          # (out,)
        if layer.get("bn") is not None:
            gamma, beta, mean, var, eps = layer["bn"]
            s = gamma / jnp.sqrt(var + eps)
            wt = wt * s[None, :]
            bb = (bb - mean) * s + beta
        folded.append((wt.astype(jnp.bfloat16), bb.reshape(1, -1)))
    return folded


def _round_up(x, m):
    return ((x + m - 1) // m) * m


def autoencoder_forward(x, folded, *, tb_max=512, vmem_limit_bytes=48 * 1024 * 1024):
    """Run the fused autoencoder forward pass.

    x:      (B, D_in) float32
    folded: output of fold_autoencoder_params (precomputed once).
    """
    B, D_in = x.shape
    D_out = folded[-1][0].shape[1]

    # Batch tiling:
    #  * B < 16: one full-batch tile (full-extent block, no alignment needed).
    #  * otherwise: >= 2 tiles (so both v7x TensorCores get work), 8-aligned
    #    rows, capped at tb_max.  Partial last tile handled by Pallas.
    if B < 16:
        tb = B
    else:
        tb = min(tb_max, _round_up(pl.cdiv(B, 2), 8))
    grid = (pl.cdiv(B, tb),)

    in_specs = [pl.BlockSpec((tb, D_in), lambda i: (i, 0))]
    flat_params = []
    for wt, bb in folded:
        in_specs.append(pl.BlockSpec(wt.shape, lambda i: (0, 0)))  # VMEM-resident
        in_specs.append(pl.BlockSpec(bb.shape, lambda i: (0, 0)))  # VMEM-resident
        flat_params.append(wt)
        flat_params.append(bb)

    return pl.pallas_call(
        _autoencoder_kernel,
        out_shape=jax.ShapeDtypeStruct((B, D_out), x.dtype),
        grid_spec=pltpu.PrefetchScalarGridSpec(
            num_scalar_prefetch=0,
            grid=grid,
            in_specs=in_specs,
            out_specs=pl.BlockSpec((tb, D_out), lambda i: (i, 0)),
        ),
        compiler_params=pltpu.CompilerParams(
            dimension_semantics=("parallel",),
            vmem_limit_bytes=vmem_limit_bytes,
        ),
    )(x, *flat_params)


if __name__ == "__main__":
    key = jax.random.PRNGKey(0)

    # shape = (batch, channels, patch_size, patch_size) as the module implies.
    batch, channels, patch_size = 24, 64, 4
    dimension = channels * patch_size ** 2           # 1024
    d1 = dimension // patch_size                     # 256
    d2 = dimension // patch_size ** 2                # 64
    d3 = dimension // (patch_size ** 2 * 4)          # 16
    d4 = dimension // (patch_size ** 2 * 16)         # 4

    # (in, out, has_batchnorm) for every Linear, in module order.
    layer_dims = [
        # encoder
        (dimension, d1, False),
        (d1, d2, False),
        (d2, d3, False),
        (d3, d4, True),
        (d4, d4, True),
        # decoder
        (d4, d3, True),
        (d3, d2, True),
        (d2, d1, False),
        (d1, dimension, False),
        (dimension, dimension, False),   # final layer: no ReLU
    ]

    keys = jax.random.split(key, len(layer_dims) * 6 + 1)
    kx, keys = keys[0], keys[1:]
    layers = []
    ki = 0
    for din, dout, has_bn in layer_dims:
        bound = 1.0 / (din ** 0.5)
        w = jax.random.uniform(keys[ki], (dout, din), jnp.float32, -bound, bound); ki += 1
        b = jax.random.uniform(keys[ki], (dout,), jnp.float32, -bound, bound); ki += 1
        bn = None
        if has_bn:
            gamma = 1.0 + 0.1 * jax.random.normal(keys[ki], (dout,), jnp.float32); ki += 1
            beta = 0.1 * jax.random.normal(keys[ki], (dout,), jnp.float32); ki += 1
            mean = 0.1 * jax.random.normal(keys[ki], (dout,), jnp.float32); ki += 1
            var = jnp.abs(1.0 + 0.1 * jax.random.normal(keys[ki], (dout,), jnp.float32)); ki += 1
            bn = (gamma, beta, mean, var, 1e-5)
        layers.append({"weight": w, "bias": b, "bn": bn})

    x = jax.random.normal(kx, (batch, dimension), dtype=jnp.float32)

    # Fold once (hoisted out of the per-call path), then run the fused kernel.
    folded = jax.tree_util.tree_map(jax.block_until_ready, fold_autoencoder_params(layers))
    y = autoencoder_forward(x, folded)
    y = jax.block_until_ready(y)
    assert y.shape == (batch, dimension)

    # Reference 1 (tight): plain-JAX forward using the SAME folded bf16 params.
    # Any kernel / BlockSpec / partial-tile bug shows up here; remaining
    # differences are accumulation-order only.
    h = x
    for i, (wt, bb) in enumerate(folded):
        h = jnp.dot(h.astype(jnp.bfloat16), wt, preferred_element_type=jnp.float32) + bb
        if i < len(folded) - 1:
            h = jnp.maximum(h, 0.0)
    ref_folded = h

    # Reference 2 (loose): unfolded eval-mode BatchNorm applied in f32 (bf16
    # matmuls) -- independently validates the BN-fold algebra.
    h = x
    for i, layer in enumerate(layers):
        h = jnp.dot(h.astype(jnp.bfloat16), layer["weight"].T.astype(jnp.bfloat16),
                    preferred_element_type=jnp.float32) + layer["bias"]
        if layer["bn"] is not None:
            gamma, beta, mean, var, eps = layer["bn"]
            h = (h - mean) / jnp.sqrt(var + eps) * gamma + beta
        if i < len(layers) - 1:
            h = jnp.maximum(h, 0.0)
    ref_unfolded = h

    scale = float(jnp.max(jnp.abs(ref_folded))) + 1e-6
    err_tight = float(jnp.max(jnp.abs(y - ref_folded)))
    err_loose = float(jnp.max(jnp.abs(y - ref_unfolded)))
    assert err_tight <= 2e-3 * scale + 1e-4, ("tight check failed", err_tight, scale)
    assert err_loose <= 1e-1 * scale + 1e-2, ("loose check failed", err_loose, scale)

    print("KERNEL_OK")
</pallas_src>

<mosaic_0001>
module attributes {stable_mosaic.version = 11 : i64} {
  func.func @_autoencoder_kernel(%arg0: i32, %arg1: memref<16x1024xf32, #tpu.memory_space<vmem>>, %arg2: memref<1024x256xbf16, #tpu.memory_space<vmem>>, %arg3: memref<1x256xf32, #tpu.memory_space<vmem>>, %arg4: memref<256x64xbf16, #tpu.memory_space<vmem>>, %arg5: memref<1x64xf32, #tpu.memory_space<vmem>>, %arg6: memref<64x16xbf16, #tpu.memory_space<vmem>>, %arg7: memref<1x16xf32, #tpu.memory_space<vmem>>, %arg8: memref<16x4xbf16, #tpu.memory_space<vmem>>, %arg9: memref<1x4xf32, #tpu.memory_space<vmem>>, %arg10: memref<4x4xbf16, #tpu.memory_space<vmem>>, %arg11: memref<1x4xf32, #tpu.memory_space<vmem>>, %arg12: memref<4x16xbf16, #tpu.memory_space<vmem>>, %arg13: memref<1x16xf32, #tpu.memory_space<vmem>>, %arg14: memref<16x64xbf16, #tpu.memory_space<vmem>>, %arg15: memref<1x64xf32, #tpu.memory_space<vmem>>, %arg16: memref<64x256xbf16, #tpu.memory_space<vmem>>, %arg17: memref<1x256xf32, #tpu.memory_space<vmem>>, %arg18: memref<256x1024xbf16, #tpu.memory_space<vmem>>, %arg19: memref<1x1024xf32, #tpu.memory_space<vmem>>, %arg20: memref<1024x1024xbf16, #tpu.memory_space<vmem>>, %arg21: memref<1x1024xf32, #tpu.memory_space<vmem>>, %arg22: memref<16x1024xf32, #tpu.memory_space<vmem>>) attributes {dimension_semantics = [#tpu.dimension_semantics<parallel>], iteration_bounds = array<i64: 2>, scalar_prefetch = 0 : i64, scratch_operands = 0 : i64, tpu.core_type = #tpu.core_type<tc>, window_params = [{transform_indices = @transform_0, window_bounds = array<i64: 16, 1024>}, {pipeline_mode = #tpu.pipeline_mode<synchronous>, transform_indices = @transform_1, window_bounds = array<i64: 1024, 256>}, {pipeline_mode = #tpu.pipeline_mode<synchronous>, transform_indices = @transform_2, window_bounds = array<i64: 1, 256>}, {pipeline_mode = #tpu.pipeline_mode<synchronous>, transform_indices = @transform_3, window_bounds = array<i64: 256, 64>}, {pipeline_mode = #tpu.pipeline_mode<synchronous>, transform_indices = @transform_4, window_bounds = array<i64: 1, 64>}, {pipeline_mode = #tpu.pipeline_mode<synchronous>, transform_indices = @transform_5, window_bounds = array<i64: 64, 16>}, {pipeline_mode = #tpu.pipeline_mode<synchronous>, transform_indices = @transform_6, window_bounds = array<i64: 1, 16>}, {pipeline_mode = #tpu.pipeline_mode<synchronous>, transform_indices = @transform_7, window_bounds = array<i64: 16, 4>}, {pipeline_mode = #tpu.pipeline_mode<synchronous>, transform_indices = @transform_8, window_bounds = array<i64: 1, 4>}, {pipeline_mode = #tpu.pipeline_mode<synchronous>, transform_indices = @transform_9, window_bounds = array<i64: 4, 4>}, {pipeline_mode = #tpu.pipeline_mode<synchronous>, transform_indices = @transform_10, window_bounds = array<i64: 1, 4>}, {pipeline_mode = #tpu.pipeline_mode<synchronous>, transform_indices = @transform_11, window_bounds = array<i64: 4, 16>}, {pipeline_mode = #tpu.pipeline_mode<synchronous>, transform_indices = @transform_12, window_bounds = array<i64: 1, 16>}, {pipeline_mode = #tpu.pipeline_mode<synchronous>, transform_indices = @transform_13, window_bounds = array<i64: 16, 64>}, {pipeline_mode = #tpu.pipeline_mode<synchronous>, transform_indices = @transform_14, window_bounds = array<i64: 1, 64>}, {pipeline_mode = #tpu.pipeline_mode<synchronous>, transform_indices = @transform_15, window_bounds = array<i64: 64, 256>}, {pipeline_mode = #tpu.pipeline_mode<synchronous>, transform_indices = @transform_16, window_bounds = array<i64: 1, 256>}, {pipeline_mode = #tpu.pipeline_mode<synchronous>, transform_indices = @transform_17, window_bounds = array<i64: 256, 1024>}, {pipeline_mode = #tpu.pipeline_mode<synchronous>, transform_indices = @transform_18, window_bounds = array<i64: 1, 1024>}, {pipeline_mode = #tpu.pipeline_mode<synchronous>, transform_indices = @transform_19, window_bounds = array<i64: 1024, 1024>}, {pipeline_mode = #tpu.pipeline_mode<synchronous>, transform_indices = @transform_20, window_bounds = array<i64: 1, 1024>}, {transform_indices = @transform_21, window_bounds = array<i64: 16, 1024>}]} {
    %c0 = arith.constant 0 : index
    %c0_0 = arith.constant 0 : index
    %0 = vector.load %arg1[%c0, %c0_0] : memref<16x1024xf32, #tpu.memory_space<vmem>>, vector<16x1024xf32>
    %1 = arith.truncf %0 : vector<16x1024xf32> to vector<16x1024xbf16>
    %c0_1 = arith.constant 0 : index
    %c0_2 = arith.constant 0 : index
    %2 = vector.load %arg2[%c0_1, %c0_2] : memref<1024x256xbf16, #tpu.memory_space<vmem>>, vector<1024x256xbf16>
    %c0_3 = arith.constant 0 : index
    %c0_4 = arith.constant 0 : index
    %3 = vector.load %arg3[%c0_3, %c0_4] : memref<1x256xf32, #tpu.memory_space<vmem>>, vector<1x256xf32>
    %cst = arith.constant dense<0.000000e+00> : vector<16x256xf32>
    %4 = tpu.matmul %1, %2, %cst {dimension_numbers = #tpu.dot_dimension_numbers<[1], [0], [0], [1], [0, 0, 1, 1], [], []>} : vector<16x1024xbf16>, vector<1024x256xbf16>, vector<16x256xf32> -> vector<16x256xf32>
    %5 = vector.broadcast %3 : vector<1x256xf32> to vector<16x256xf32>
    %6 = arith.addf %4, %5 : vector<16x256xf32>
    %cst_5 = arith.constant 0.000000e+00 : f32
    %7 = vector.broadcast %cst_5 : f32 to vector<16x256xf32>
    %8 = arith.maximumf %6, %7 : vector<16x256xf32>
    %9 = arith.truncf %8 : vector<16x256xf32> to vector<16x256xbf16>
    %c0_6 = arith.constant 0 : index
    %c0_7 = arith.constant 0 : index
    %10 = vector.load %arg4[%c0_6, %c0_7] : memref<256x64xbf16, #tpu.memory_space<vmem>>, vector<256x64xbf16>
    %c0_8 = arith.constant 0 : index
    %c0_9 = arith.constant 0 : index
    %11 = vector.load %arg5[%c0_8, %c0_9] : memref<1x64xf32, #tpu.memory_space<vmem>>, vector<1x64xf32>
    %cst_10 = arith.constant dense<0.000000e+00> : vector<16x64xf32>
    %12 = tpu.matmul %9, %10, %cst_10 {dimension_numbers = #tpu.dot_dimension_numbers<[1], [0], [0], [1], [0, 0, 1, 1], [], []>} : vector<16x256xbf16>, vector<256x64xbf16>, vector<16x64xf32> -> vector<16x64xf32>
    %13 = vector.broadcast %11 : vector<1x64xf32> to vector<16x64xf32>
    %14 = arith.addf %12, %13 : vector<16x64xf32>
    %cst_11 = arith.constant 0.000000e+00 : f32
    %15 = vector.broadcast %cst_11 : f32 to vector<16x64xf32>
    %16 = arith.maximumf %14, %15 : vector<16x64xf32>
    %17 = arith.truncf %16 : vector<16x64xf32> to vector<16x64xbf16>
    %c0_12 = arith.constant 0 : index
    %c0_13 = arith.constant 0 : index
    %18 = vector.load %arg6[%c0_12, %c0_13] : memref<64x16xbf16, #tpu.memory_space<vmem>>, vector<64x16xbf16>
    %c0_14 = arith.constant 0 : index
    %c0_15 = arith.constant 0 : index
    %19 = vector.load %arg7[%c0_14, %c0_15] : memref<1x16xf32, #tpu.memory_space<vmem>>, vector<1x16xf32>
    %cst_16 = arith.constant dense<0.000000e+00> : vector<16x16xf32>
    %20 = tpu.matmul %17, %18, %cst_16 {dimension_numbers = #tpu.dot_dimension_numbers<[1], [0], [0], [1], [0, 0, 1, 1], [], []>} : vector<16x64xbf16>, vector<64x16xbf16>, vector<16x16xf32> -> vector<16x16xf32>
    %21 = vector.broadcast %19 : vector<1x16xf32> to vector<16x16xf32>
    %22 = arith.addf %20, %21 : vector<16x16xf32>
    %cst_17 = arith.constant 0.000000e+00 : f32
    %23 = vector.broadcast %cst_17 : f32 to vector<16x16xf32>
    %24 = arith.maximumf %22, %23 : vector<16x16xf32>
    %25 = arith.truncf %24 : vector<16x16xf32> to vector<16x16xbf16>
    %c0_18 = arith.constant 0 : index
    %c0_19 = arith.constant 0 : index
    %26 = vector.load %arg8[%c0_18, %c0_19] : memref<16x4xbf16, #tpu.memory_space<vmem>>, vector<16x4xbf16>
    %c0_20 = arith.constant 0 : index
    %c0_21 = arith.constant 0 : index
    %27 = vector.load %arg9[%c0_20, %c0_21] : memref<1x4xf32, #tpu.memory_space<vmem>>, vector<1x4xf32>
    %cst_22 = arith.constant dense<0.000000e+00> : vector<16x4xf32>
    %28 = tpu.matmul %25, %26, %cst_22 {dimension_numbers = #tpu.dot_dimension_numbers<[1], [0], [0], [1], [0, 0, 1, 1], [], []>} : vector<16x16xbf16>, vector<16x4xbf16>, vector<16x4xf32> -> vector<16x4xf32>
    %29 = vector.broadcast %27 : vector<1x4xf32> to vector<16x4xf32>
    %30 = arith.addf %28, %29 : vector<16x4xf32>
    %cst_23 = arith.constant 0.000000e+00 : f32
    %31 = vector.broadcast %cst_23 : f32 to vector<16x4xf32>
    %32 = arith.maximumf %30, %31 : vector<16x4xf32>
    %33 = arith.truncf %32 : vector<16x4xf32> to vector<16x4xbf16>
    %c0_24 = arith.constant 0 : index
    %c0_25 = arith.constant 0 : index
    %34 = vector.load %arg10[%c0_24, %c0_25] : memref<4x4xbf16, #tpu.memory_space<vmem>>, vector<4x4xbf16>
    %c0_26 = arith.constant 0 : index
    %c0_27 = arith.constant 0 : index
    %35 = vector.load %arg11[%c0_26, %c0_27] : memref<1x4xf32, #tpu.memory_space<vmem>>, vector<1x4xf32>
    %cst_28 = arith.constant dense<0.000000e+00> : vector<16x4xf32>
    %36 = tpu.matmul %33, %34, %cst_28 {dimension_numbers = #tpu.dot_dimension_numbers<[1], [0], [0], [1], [0, 0, 1, 1], [], []>} : vector<16x4xbf16>, vector<4x4xbf16>, vector<16x4xf32> -> vector<16x4xf32>
    %37 = vector.broadcast %35 : vector<1x4xf32> to vector<16x4xf32>
    %38 = arith.addf %36, %37 : vector<16x4xf32>
    %cst_29 = arith.constant 0.000000e+00 : f32
    %39 = vector.broadcast %cst_29 : f32 to vector<16x4xf32>
    %40 = arith.maximumf %38, %39 : vector<16x4xf32>
    %41 = arith.truncf %40 : vector<16x4xf32> to vector<16x4xbf16>
    %c0_30 = arith.constant 0 : index
    %c0_31 = arith.constant 0 : index
    %42 = vector.load %arg12[%c0_30, %c0_31] : memref<4x16xbf16, #tpu.memory_space<vmem>>, vector<4x16xbf16>
    %c0_32 = arith.constant 0 : index
    %c0_33 = arith.constant 0 : index
    %43 = vector.load %arg13[%c0_32, %c0_33] : memref<1x16xf32, #tpu.memory_space<vmem>>, vector<1x16xf32>
    %cst_34 = arith.constant dense<0.000000e+00> : vector<16x16xf32>
    %44 = tpu.matmul %41, %42, %cst_34 {dimension_numbers = #tpu.dot_dimension_numbers<[1], [0], [0], [1], [0, 0, 1, 1], [], []>} : vector<16x4xbf16>, vector<4x16xbf16>, vector<16x16xf32> -> vector<16x16xf32>
    %45 = vector.broadcast %43 : vector<1x16xf32> to vector<16x16xf32>
    %46 = arith.addf %44, %45 : vector<16x16xf32>
    %cst_35 = arith.constant 0.000000e+00 : f32
    %47 = vector.broadcast %cst_35 : f32 to vector<16x16xf32>
    %48 = arith.maximumf %46, %47 : vector<16x16xf32>
    %49 = arith.truncf %48 : vector<16x16xf32> to vector<16x16xbf16>
    %c0_36 = arith.constant 0 : index
    %c0_37 = arith.constant 0 : index
    %50 = vector.load %arg14[%c0_36, %c0_37] : memref<16x64xbf16, #tpu.memory_space<vmem>>, vector<16x64xbf16>
    %c0_38 = arith.constant 0 : index
    %c0_39 = arith.constant 0 : index
    %51 = vector.load %arg15[%c0_38, %c0_39] : memref<1x64xf32, #tpu.memory_space<vmem>>, vector<1x64xf32>
    %cst_40 = arith.constant dense<0.000000e+00> : vector<16x64xf32>
    %52 = tpu.matmul %49, %50, %cst_40 {dimension_numbers = #tpu.dot_dimension_numbers<[1], [0], [0], [1], [0, 0, 1, 1], [], []>} : vector<16x16xbf16>, vector<16x64xbf16>, vector<16x64xf32> -> vector<16x64xf32>
    %53 = vector.broadcast %51 : vector<1x64xf32> to vector<16x64xf32>
    %54 = arith.addf %52, %53 : vector<16x64xf32>
    %cst_41 = arith.constant 0.000000e+00 : f32
    %55 = vector.broadcast %cst_41 : f32 to vector<16x64xf32>
    %56 = arith.maximumf %54, %55 : vector<16x64xf32>
    %57 = arith.truncf %56 : vector<16x64xf32> to vector<16x64xbf16>
    %c0_42 = arith.constant 0 : index
    %c0_43 = arith.constant 0 : index
    %58 = vector.load %arg16[%c0_42, %c0_43] : memref<64x256xbf16, #tpu.memory_space<vmem>>, vector<64x256xbf16>
    %c0_44 = arith.constant 0 : index
    %c0_45 = arith.constant 0 : index
    %59 = vector.load %arg17[%c0_44, %c0_45] : memref<1x256xf32, #tpu.memory_space<vmem>>, vector<1x256xf32>
    %cst_46 = arith.constant dense<0.000000e+00> : vector<16x256xf32>
    %60 = tpu.matmul %57, %58, %cst_46 {dimension_numbers = #tpu.dot_dimension_numbers<[1], [0], [0], [1], [0, 0, 1, 1], [], []>} : vector<16x64xbf16>, vector<64x256xbf16>, vector<16x256xf32> -> vector<16x256xf32>
    %61 = vector.broadcast %59 : vector<1x256xf32> to vector<16x256xf32>
    %62 = arith.addf %60, %61 : vector<16x256xf32>
    %cst_47 = arith.constant 0.000000e+00 : f32
    %63 = vector.broadcast %cst_47 : f32 to vector<16x256xf32>
    %64 = arith.maximumf %62, %63 : vector<16x256xf32>
    %65 = arith.truncf %64 : vector<16x256xf32> to vector<16x256xbf16>
    %c0_48 = arith.constant 0 : index
    %c0_49 = arith.constant 0 : index
    %66 = vector.load %arg18[%c0_48, %c0_49] : memref<256x1024xbf16, #tpu.memory_space<vmem>>, vector<256x1024xbf16>
    %c0_50 = arith.constant 0 : index
    %c0_51 = arith.constant 0 : index
    %67 = vector.load %arg19[%c0_50, %c0_51] : memref<1x1024xf32, #tpu.memory_space<vmem>>, vector<1x1024xf32>
    %cst_52 = arith.constant dense<0.000000e+00> : vector<16x1024xf32>
    %68 = tpu.matmul %65, %66, %cst_52 {dimension_numbers = #tpu.dot_dimension_numbers<[1], [0], [0], [1], [0, 0, 1, 1], [], []>} : vector<16x256xbf16>, vector<256x1024xbf16>, vector<16x1024xf32> -> vector<16x1024xf32>
    %69 = vector.broadcast %67 : vector<1x1024xf32> to vector<16x1024xf32>
    %70 = arith.addf %68, %69 : vector<16x1024xf32>
    %cst_53 = arith.constant 0.000000e+00 : f32
    %71 = vector.broadcast %cst_53 : f32 to vector<16x1024xf32>
    %72 = arith.maximumf %70, %71 : vector<16x1024xf32>
    %73 = arith.truncf %72 : vector<16x1024xf32> to vector<16x1024xbf16>
    %c0_54 = arith.constant 0 : index
    %c0_55 = arith.constant 0 : index
    %74 = vector.load %arg20[%c0_54, %c0_55] : memref<1024x1024xbf16, #tpu.memory_space<vmem>>, vector<1024x1024xbf16>
    %c0_56 = arith.constant 0 : index
    %c0_57 = arith.constant 0 : index
    %75 = vector.load %arg21[%c0_56, %c0_57] : memref<1x1024xf32, #tpu.memory_space<vmem>>, vector<1x1024xf32>
    %cst_58 = arith.constant dense<0.000000e+00> : vector<16x1024xf32>
    %76 = tpu.matmul %73, %74, %cst_58 {dimension_numbers = #tpu.dot_dimension_numbers<[1], [0], [0], [1], [0, 0, 1, 1], [], []>} : vector<16x1024xbf16>, vector<1024x1024xbf16>, vector<16x1024xf32> -> vector<16x1024xf32>
    %77 = vector.broadcast %75 : vector<1x1024xf32> to vector<16x1024xf32>
    %78 = arith.addf %76, %77 : vector<16x1024xf32>
    %c0_59 = arith.constant 0 : index
    %c0_60 = arith.constant 0 : index
    %79 = vector.load %arg22[%c0_59, %c0_60] : memref<16x1024xf32, #tpu.memory_space<vmem>>, vector<16x1024xf32>
    tpu.vector_store %arg22[%c0_59, %c0_60], %78 {strides = array<i32>} : memref<16x1024xf32, #tpu.memory_space<vmem>>, vector<16x1024xf32>,
    return
  }
  func.func @transform_0(%arg0: i32) -> (i32, i32) {
    %c0_i32 = arith.constant 0 : i32
    %c0_i32_0 = arith.constant 0 : i32
    return %arg0, %c0_i32 : i32, i32
  }
  func.func @transform_1(%arg0: i32) -> (i32, i32) {
    %c0_i32 = arith.constant 0 : i32
    %c0_i32_0 = arith.constant 0 : i32
    %c0_i32_1 = arith.constant 0 : i32
    return %c0_i32, %c0_i32_0 : i32, i32
  }
  func.func @transform_2(%arg0: i32) -> (i32, i32) {
    %c0_i32 = arith.constant 0 : i32
    %c0_i32_0 = arith.constant 0 : i32
    %c0_i32_1 = arith.constant 0 : i32
    return %c0_i32, %c0_i32_0 : i32, i32
  }
  func.func @transform_3(%arg0: i32) -> (i32, i32) {
    %c0_i32 = arith.constant 0 : i32
    %c0_i32_0 = arith.constant 0 : i32
    %c0_i32_1 = arith.constant 0 : i32
    return %c0_i32, %c0_i32_0 : i32, i32
  }
  func.func @transform_4(%arg0: i32) -> (i32, i32) {
    %c0_i32 = arith.constant 0 : i32
    %c0_i32_0 = arith.constant 0 : i32
    %c0_i32_1 = arith.constant 0 : i32
    return %c0_i32, %c0_i32_0 : i32, i32
  }
  func.func @transform_5(%arg0: i32) -> (i32, i32) {
    %c0_i32 = arith.constant 0 : i32
    %c0_i32_0 = arith.constant 0 : i32
    %c0_i32_1 = arith.constant 0 : i32
    return %c0_i32, %c0_i32_0 : i32, i32
  }
  func.func @transform_6(%arg0: i32) -> (i32, i32) {
    %c0_i32 = arith.constant 0 : i32
    %c0_i32_0 = arith.constant 0 : i32
    %c0_i32_1 = arith.constant 0 : i32
    return %c0_i32, %c0_i32_0 : i32, i32
  }
  func.func @transform_7(%arg0: i32) -> (i32, i32) {
    %c0_i32 = arith.constant 0 : i32
    %c0_i32_0 = arith.constant 0 : i32
    %c0_i32_1 = arith.constant 0 : i32
    return %c0_i32, %c0_i32_0 : i32, i32
  }
  func.func @transform_8(%arg0: i32) -> (i32, i32) {
    %c0_i32 = arith.constant 0 : i32
    %c0_i32_0 = arith.constant 0 : i32
    %c0_i32_1 = arith.constant 0 : i32
    return %c0_i32, %c0_i32_0 : i32, i32
  }
  func.func @transform_9(%arg0: i32) -> (i32, i32) {
    %c0_i32 = arith.constant 0 : i32
    %c0_i32_0 = arith.constant 0 : i32
    %c0_i32_1 = arith.constant 0 : i32
    return %c0_i32, %c0_i32_0 : i32, i32
  }
  func.func @transform_10(%arg0: i32) -> (i32, i32) {
    %c0_i32 = arith.constant 0 : i32
    %c0_i32_0 = arith.constant 0 : i32
    %c0_i32_1 = arith.constant 0 : i32
    return %c0_i32, %c0_i32_0 : i32, i32
  }
  func.func @transform_11(%arg0: i32) -> (i32, i32) {
    %c0_i32 = arith.constant 0 : i32
    %c0_i32_0 = arith.constant 0 : i32
    %c0_i32_1 = arith.constant 0 : i32
    return %c0_i32, %c0_i32_0 : i32, i32
  }
  func.func @transform_12(%arg0: i32) -> (i32, i32) {
    %c0_i32 = arith.constant 0 : i32
    %c0_i32_0 = arith.constant 0 : i32
    %c0_i32_1 = arith.constant 0 : i32
    return %c0_i32, %c0_i32_0 : i32, i32
  }
  func.func @transform_13(%arg0: i32) -> (i32, i32) {
    %c0_i32 = arith.constant 0 : i32
    %c0_i32_0 = arith.constant 0 : i32
    %c0_i32_1 = arith.constant 0 : i32
    return %c0_i32, %c0_i32_0 : i32, i32
  }
  func.func @transform_14(%arg0: i32) -> (i32, i32) {
    %c0_i32 = arith.constant 0 : i32
    %c0_i32_0 = arith.constant 0 : i32
    %c0_i32_1 = arith.constant 0 : i32
    return %c0_i32, %c0_i32_0 : i32, i32
  }
  func.func @transform_15(%arg0: i32) -> (i32, i32) {
    %c0_i32 = arith.constant 0 : i32
    %c0_i32_0 = arith.constant 0 : i32
    %c0_i32_1 = arith.constant 0 : i32
    return %c0_i32, %c0_i32_0 : i32, i32
  }
  func.func @transform_16(%arg0: i32) -> (i32, i32) {
    %c0_i32 = arith.constant 0 : i32
    %c0_i32_0 = arith.constant 0 : i32
    %c0_i32_1 = arith.constant 0 : i32
    return %c0_i32, %c0_i32_0 : i32, i32
  }
  func.func @transform_17(%arg0: i32) -> (i32, i32) {
    %c0_i32 = arith.constant 0 : i32
    %c0_i32_0 = arith.constant 0 : i32
    %c0_i32_1 = arith.constant 0 : i32
    return %c0_i32, %c0_i32_0 : i32, i32
  }
  func.func @transform_18(%arg0: i32) -> (i32, i32) {
    %c0_i32 = arith.constant 0 : i32
    %c0_i32_0 = arith.constant 0 : i32
    %c0_i32_1 = arith.constant 0 : i32
    return %c0_i32, %c0_i32_0 : i32, i32
  }
  func.func @transform_19(%arg0: i32) -> (i32, i32) {
    %c0_i32 = arith.constant 0 : i32
    %c0_i32_0 = arith.constant 0 : i32
    %c0_i32_1 = arith.constant 0 : i32
    return %c0_i32, %c0_i32_0 : i32, i32
  }
  func.func @transform_20(%arg0: i32) -> (i32, i32) {
    %c0_i32 = arith.constant 0 : i32
    %c0_i32_0 = arith.constant 0 : i32
    %c0_i32_1 = arith.constant 0 : i32
    return %c0_i32, %c0_i32_0 : i32, i32
  }
  func.func @transform_21(%arg0: i32) -> (i32, i32) {
    %c0_i32 = arith.constant 0 : i32
    %c0_i32_0 = arith.constant 0 : i32
    return %arg0, %c0_i32 : i32, i32
  }
}

</mosaic_0001>

<bundles_post_ra>
// kernel: tpu_custom_call.1
= control target key start
LH: loop header
LB: loop body
LE: loop exit
PB: predicated region body
PF: predicated region fallthrough
CT: control target
= control target key end

     0   :  { %s13443_s0 = inlined_call_operand.hbm [shape: f32[24,1024], index: 0, kind: input, shape index: {}]   ;;  %s13444_s1 = inlined_call_operand.hbm [shape: bf16[1024,256], index: 1, kind: input, shape index: {}]   ;;  %s13445_s2 = inlined_call_operand.hbm [shape: f32[1,256], index: 2, kind: input, shape index: {}]   ;;  %s13446_s3 = inlined_call_operand.vmem [shape: bf16[256,64], index: 3, kind: input, shape index: {}]   ;;  %s13447_s4 = inlined_call_operand.hbm [shape: f32[1,64], index: 4, kind: input, shape index: {}]   ;;  %s13448_s5 = inlined_call_operand.vmem [shape: bf16[64,16], index: 5, kind: input, shape index: {}]   ;;  %s13449_s6 = inlined_call_operand.hbm [shape: f32[1,16], index: 6, kind: input, shape index: {}]   ;;  %s13450_s7 = inlined_call_operand.vmem [shape: bf16[16,4], index: 7, kind: input, shape index: {}]   ;;  %s13451_s8 = inlined_call_operand.hbm [shape: f32[1,4], index: 8, kind: input, shape index: {}]   ;;  %s13452_s9 = inlined_call_operand.hbm [shape: bf16[4,4], index: 9, kind: input, shape index: {}]   ;;  %s13453_s10 = inlined_call_operand.hbm [shape: f32[1,4], index: 10, kind: input, shape index: {}]   ;;  %s13454_s11 = inlined_call_operand.hbm [shape: bf16[4,16], index: 11, kind: input, shape index: {}]   ;;  %s13455_s12 = inlined_call_operand.hbm [shape: f32[1,16], index: 12, kind: input, shape index: {}]   ;;  %s13456_s13 = inlined_call_operand.hbm [shape: bf16[16,64], index: 13, kind: input, shape index: {}]   ;;  %s13457_s14 = inlined_call_operand.hbm [shape: f32[1,64], index: 14, kind: input, shape index: {}]   ;;  %s13458_s15 = inlined_call_operand.hbm [shape: bf16[64,256], index: 15, kind: input, shape index: {}]   ;;  %s13459_s16 = inlined_call_operand.hbm [shape: f32[1,256], index: 16, kind: input, shape index: {}]   ;;  %s13460_s17 = inlined_call_operand.hbm [shape: bf16[256,1024], index: 17, kind: input, shape index: {}]   ;;  %s13461_s18 = inlined_call_operand.hbm [shape: f32[1,1024], index: 18, kind: input, shape index: {}]   ;;  %s13462_s19 = inlined_call_operand.hbm [shape: bf16[1024,1024], index: 19, kind: input, shape index: {}]   ;;  %s13463_s20 = inlined_call_operand.hbm [shape: f32[1,1024], index: 20, kind: input, shape index: {}]   ;;  %s13464_s21 = inlined_call_operand.hbm [shape: f32[24,1024], index: 21, kind: output, shape index: {}]  }
   0x1   :  { %13490 = sst [smem:[#allocation54_spill]] %s13443_s0 }
   0x2   :  { %13491 = sst [smem:[#allocation55_spill]] %s13444_s1 }
   0x3   :  { %13492 = sst [smem:[#allocation56_spill]] %s13445_s2 }
   0x4   :  { %13493 = sst [smem:[#allocation57_spill]] %s13446_s3 }
   0x5   :  { %13494 = sst [smem:[#allocation58_spill]] %s13447_s4 }
   0x6   :  { %13495 = sst [smem:[#allocation59_spill]] %s13448_s5 }
   0x7   :  { %13496 = sst [smem:[#allocation60_spill]] %s13449_s6 }
   0x8   :  { %13497 = sst [smem:[#allocation61_spill]] %s13450_s7 }
   0x9   :  { %13498 = sst [smem:[#allocation62_spill]] %s13451_s8 }
   0xa   :  { %13499 = sst [smem:[#allocation63_spill]] %s13464_s21 }
   0xb   :  { %26 = vsyncpa [#allocation3], 0 }
   0xc   :  { %28 = vsyncpa [#allocation3 + $0x1], 0 }
   0xd   :  { %29 = vsyncpa [#allocation6], 0 }
   0xe   :  { %30 = vsyncpa [#allocation9], 0 }
   0xf   :  { %31 = vsyncpa [#allocation12], 0 }
  0x10   :  { %32 = vsyncpa [#allocation15], 0 }
  0x11   :  { %33 = vsyncpa [#allocation18], 0 }
  0x12   :  { %34 = vsyncpa [#allocation21], 0 }
  0x13   :  { %35 = vsyncpa [#allocation24], 0 }
  0x14   :  { %36 = vsyncpa [#allocation27], 0 }
  0x15   :  { %37 = vsyncpa [#allocation30], 0 }
  0x16   :  { %38 = vsyncpa [#allocation4], 0 }
  0x17   :  { %40 = vsyncpa [#allocation4 + $0x1], 0  ;;  %s12808_s2 = smov 0   ;;  %s12810_s25 = smov 0  }
  0x18   :  { %s12812_s26 = smov 0   ;;  %s12814_s27 = smov 0  }
  0x19 LB: > { %13500 = sst [smem:[#allocation43_spill]] %s12655_s2  ;;  %s12829_s3 = sadd.s32 4294967295, %s12667_s27   ;;  %s12667_s27 = sphi %s12814_s27, %s13562_s27   ;;  %s12663_s26 = sphi %s12812_s26, %s13565_s26   ;;  %s12659_s25 = sphi %s12810_s25, %s13564_s25   ;;  %s12655_s2 = sphi %s12808_s2, %s13563_s2  }
  0x1a   : > { %13501 = sst [smem:[#allocation44_spill]] %s12659_s25  ;;  %s7714_s28 = sadd.s32 4294967294, %s12667_s27  }
  0x1b   : > { %13502 = sst [smem:[#allocation45_spill]] %s12663_s26  ;;  %s12833_s29 = sadd.s32 1, %s12667_s27  }
  0x1c   : > { %13503 = sst [smem:[#allocation46_spill]] %s12829_s3  ;;  %s53_s0 = sadd.s32 1, %s12663_s26 }
  0x1d   : > { %13504 = sst [smem:[#allocation47_spill]] %s12833_s29  ;;  %s50_s4 = ssub.s32 %s12667_s27, %s12833_s29 }
  0x1e   : > { %p60_p0 = scmp.ne.s32.totalorder %s12663_s26, %s12659_s25  ;;  %p51_p1 = scmp.eq.s32.totalorder %s50_s4, 0 }
  0x1f   : > { %p61_p2 = scmp.eq.s32.totalorder %s12667_s27, 0  ;;  %p66_p3 = scmp.ne.s32.totalorder %s12659_s25, %s12655_s2 }
  0x20   : > { %p13485_p4 = scmp.eq.s32.totalorder %s12829_s3, 0  ;;  %p510_p7 = scmp.eq.s32.totalorder %s12829_s3, 1 }
  0x21   : > { %s12845_s30 = scalar_select %p51_p1, %s12663_s26, %s53_s0  }
  0x22   : > { %p12847_p5 = por %p61_p2, %p60_p0  ;;  %p12853_p6 = por %p13485_p4, %p66_p3 }
  0x23   : > { %13505 = sst [smem:[#allocation48_spill]] %s12845_s30  ;;  %p516_p8 = scmp.eq.s32.totalorder %s7714_s28, 1 }
  0x24   : > { %s13506_s5 = scalar_select %p12847_p5, 1, 0 }
  0x25   : > { %s13508_s22 = scalar_select %p12853_p6, 1, 0 }
  0x26   : > { %13507 = sst [smem:[#allocation49_spill]] %s13506_s5  ;;  %p7715_p9 = scmp.ge.s32.totalorder %s12667_s27, 1 }
  0x27   : > { %13509 = sst [smem:[#allocation50_spill]] %s13508_s22  ;;  %p523_p10 = scmp.lt.s32.totalorder %s12667_s27, 3 }
  0x28   : > { %p12860_p11 = por %p510_p7, %p60_p0  ;;  %p12864_p12 = por %p516_p8, %p66_p3 }
  0x29   : > { %p12868_p13 = pnand %p7715_p9, %p523_p10  ;;  %s13516_s30 = sld [smem:[#allocation55_spill]] }
  0x2a   : > { %s13510_s23 = scalar_select %p12860_p11, 1, 0 }
  0x2b   : > { %s13512_s1 = scalar_select %p12864_p12, 1, 0 }
  0x2c   : > { %13511 = sst [smem:[#allocation51_spill]] %s13510_s23  ;;  %p11847_p1 = pneg %p12868_p13 }
  0x2d   : > { %13513 = sst [smem:[#allocation52_spill]] %s13512_s1  ;;  %s12669_s28 = smov [#allocation5]  }
  0x2e   : > { %s13514_s24 = scalar_select %p12868_p13, 1, 0 }
  0x2f   : > { %s534_s29 = sshll.u32 %s13516_s30, 4  ;;  %s536_s2 = sshll.u32 %s12669_s28, 4  ;;  %s535_s29 = int_to_ptr.hbm [resolvable:$true] %s534_s29  ;;  %s537_s2 = int_to_ptr.vmem [resolvable:$true] %s536_s2 }
  0x30   : > { %13515 = sst [smem:[#allocation53_spill]] %s13514_s24  ;;  %p12879_p0 = pnand %p11847_p1, %p13485_p4 }
  0x31   : > { %s13518_s7 = sld [smem:[#allocation58_spill]]  ;;  %s13483_s30 = smov 128  }
  0x32   : > { %s12671_s0 = smov 8   ;;  %s13519_s8 = sld [smem:[#allocation62_spill]] }
  0x33   : > { %11850 = dma.hbm_to_vmem [thread:$0]  (!%p12879_p0), %s535_s29, 16384, %s537_s2, [#allocation6], %s13483_s30, %s13483_s30, %s12671_s0  }
  0x34   : > { %s12672_s25 = smov [#allocation8]   ;;  %s618_s5 = sshll.u32 %s13453_s10, 4  ;;  %s619_s5 = int_to_ptr.hbm [resolvable:$true] %s618_s5 }
  0x35   : > { %s566_s24 = sshll.u32 %s12672_s25, 4  ;;  %s642_s4 = sshll.u32 %s13455_s12, 4  ;;  %s567_s24 = int_to_ptr.vmem [resolvable:$true] %s566_s24  ;;  %s643_s4 = int_to_ptr.hbm [resolvable:$true] %s642_s4 }
  0x36   : > { %s12674_s25 = smov [#allocation14]   ;;  %s668_s1 = sshll.u32 %s13457_s14, 4  ;;  %s669_s1 = int_to_ptr.hbm [resolvable:$true] %s668_s1 }
  0x37   : > { %s564_s22 = sshll.u32 %s13518_s7, 4  ;;  %s12673_s7 = smov [#allocation11]   ;;  %s565_s22 = int_to_ptr.hbm [resolvable:$true] %s564_s22 }
  0x38   : > { %s594_s3 = sshll.u32 %s13519_s8, 4  ;;  %s596_s23 = sshll.u32 %s12673_s7, 4  ;;  %s595_s3 = int_to_ptr.hbm [resolvable:$true] %s594_s3  ;;  %s597_s23 = int_to_ptr.vmem [resolvable:$true] %s596_s23 }
  0x39   : > { %11856 = dma.hbm_to_vmem [thread:$0]  (!%p12879_p0), %s565_s22, 16, %s567_s24, [#allocation9]  }
  0x3a   : > { %11862 = dma.hbm_to_vmem [thread:$0]  (!%p12879_p0), %s595_s3, 16, %s597_s23, [#allocation12]  }
  0x3b   : > { %s620_s28 = sshll.u32 %s12674_s25, 4  ;;  %s12675_s22 = smov [#allocation17]   ;;  %s621_s28 = int_to_ptr.vmem [resolvable:$true] %s620_s28 }
  0x3c   : > { %11868 = dma.hbm_to_vmem [thread:$0]  (!%p12879_p0), %s619_s5, 16, %s621_s28, [#allocation15]  }
  0x3d   : > { %s644_s24 = sshll.u32 %s12675_s22, 4  ;;  %s694_s2 = sshll.u32 %s13459_s16, 4  ;;  %s645_s24 = int_to_ptr.vmem [resolvable:$true] %s644_s24  ;;  %s695_s2 = int_to_ptr.hbm [resolvable:$true] %s694_s2 }
  0x3e   : > { %11874 = dma.hbm_to_vmem [thread:$0]  (!%p12879_p0), %s643_s4, 16, %s645_s24, [#allocation18]  }
  0x3f   : > { %s12676_s29 = smov [#allocation20]   ;;  %s12677_s5 = smov [#allocation23]  }
  0x40   : > { %s670_s25 = sshll.u32 %s12676_s29, 4  ;;  %s696_s28 = sshll.u32 %s12677_s5, 4  ;;  %s671_s25 = int_to_ptr.vmem [resolvable:$true] %s670_s25  ;;  %s697_s28 = int_to_ptr.vmem [resolvable:$true] %s696_s28 }
  0x41   : > { %11880 = dma.hbm_to_vmem [thread:$0]  (!%p12879_p0), %s669_s1, 16, %s671_s25, [#allocation21]  }
  0x42   : > { %s720_s7 = sshll.u32 %s13461_s18, 4  ;;  %s13520_s3 = sld [smem:[#allocation56_spill]]  ;;  %s721_s7 = int_to_ptr.hbm [resolvable:$true] %s720_s7 }
  0x43   : > { %11886 = dma.hbm_to_vmem [thread:$0]  (!%p12879_p0), %s695_s2, 32, %s697_s28, [#allocation24]  }
  0x44   : > { %s12678_s29 = smov [#allocation26]   ;;  %s12679_s1 = smov [#allocation7]  }
  0x45   : > { %s722_s30 = sshll.u32 %s12678_s29, 4  ;;  %s551_s25 = sshll.u32 %s12679_s1, 4  ;;  %s723_s30 = int_to_ptr.vmem [resolvable:$true] %s722_s30  ;;  %s552_s25 = int_to_ptr.vmem [resolvable:$true] %s551_s25 }
  0x46   : > { %11892 = dma.hbm_to_vmem [thread:$0]  (!%p12879_p0), %s721_s7, 128, %s723_s30, [#allocation27]  }
  0x47   : > { %s13521_s6 = sld [smem:[#allocation60_spill]]  ;;  %s606_s4 = sshll.u32 %s13452_s9, 4  ;;  %s607_s4 = int_to_ptr.hbm [resolvable:$true] %s606_s4 }
  0x48   : > { %s549_s23 = sshll.u32 %s13520_s3, 4  ;;  %s12680_s24 = smov [#allocation10]   ;;  %s550_s23 = int_to_ptr.hbm [resolvable:$true] %s549_s23 }
  0x49   : > { %11853 = dma.hbm_to_vmem [thread:$0]  (!%p12879_p0), %s550_s23, 32, %s552_s25, [#allocation6]  }
  0x4a   : > { %s581_s3 = sshll.u32 %s12680_s24, 4  ;;  %s12681_s30 = smov [#allocation13]   ;;  %s582_s3 = int_to_ptr.vmem [resolvable:$true] %s581_s3 }
  0x4b   : > { %s608_s7 = sshll.u32 %s12681_s30, 4  ;;  %s630_s5 = sshll.u32 %s13454_s11, 4  ;;  %s609_s7 = int_to_ptr.vmem [resolvable:$true] %s608_s7  ;;  %s631_s5 = int_to_ptr.hbm [resolvable:$true] %s630_s5 }
  0x4c   : > { %11865 = dma.hbm_to_vmem [thread:$0]  (!%p12879_p0), %s607_s4, 32, %s609_s7, [#allocation12]  }
  0x4d   : > { %s579_s26 = sshll.u32 %s13521_s6, 4  ;;  %s653_s22 = sshll.u32 %s13456_s13, 4  ;;  %s580_s26 = int_to_ptr.hbm [resolvable:$true] %s579_s26  ;;  %s654_s22 = int_to_ptr.hbm [resolvable:$true] %s653_s22 }
  0x4e   : > { %11859 = dma.hbm_to_vmem [thread:$0]  (!%p12879_p0), %s580_s26, 16, %s582_s3, [#allocation9]  }
  0x4f   : > { %s12682_s2 = smov [#allocation16]   ;;  %s12683_s26 = smov [#allocation19]  }
  0x50   : > { %s632_s28 = sshll.u32 %s12682_s2, 4  ;;  %s655_s24 = sshll.u32 %s12683_s26, 4  ;;  %s633_s28 = int_to_ptr.vmem [resolvable:$true] %s632_s28  ;;  %s656_s24 = int_to_ptr.vmem [resolvable:$true] %s655_s24 }
  0x51   : > { %11871 = dma.hbm_to_vmem [thread:$0]  (!%p12879_p0), %s631_s5, 32, %s633_s28, [#allocation15]  }
  0x52   : > { %s12684_s3 = smov 64   ;;  %s12685_s30 = smov 4  }
  0x53   : > { %11877 = dma.hbm_to_vmem [thread:$0]  (!%p12879_p0), %s654_s22, 128, %s656_s24, [#allocation18], %s12684_s3, %s12684_s3, %s12685_s30  }
  0x54   : > { %s679_s29 = sshll.u32 %s13458_s15, 4  ;;  %s12686_s1 = smov [#allocation22]   ;;  %s680_s29 = int_to_ptr.hbm [resolvable:$true] %s679_s29 }
  0x55   : > { %s681_s23 = sshll.u32 %s12686_s1, 4  ;;  %s705_s5 = sshll.u32 %s13460_s17, 4  ;;  %s682_s23 = int_to_ptr.vmem [resolvable:$true] %s681_s23  ;;  %s706_s5 = int_to_ptr.hbm [resolvable:$true] %s705_s5 }
  0x56   : > { %s13522_s28 = smov 128   ;;  %s12687_s22 = smov [#allocation25]  }
  0x57   : > { %11883 = dma.hbm_to_vmem [thread:$0]  (!%p12879_p0), %s680_s29, 1024, %s682_s23, [#allocation21], %s13522_s28, %s13522_s28, %s12671_s0  }
  0x58   : > { %s707_s26 = sshll.u32 %s12687_s22, 4  ;;  %s12688_s24 = smov 512   ;;  %s708_s26 = int_to_ptr.vmem [resolvable:$true] %s707_s26 }
  0x59   : > { %s12689_s3 = smov 32   ;;  %s731_s7 = sshll.u32 %s13462_s19, 4  ;;  %s732_s7 = int_to_ptr.hbm [resolvable:$true] %s731_s7 }
  0x5a   : > { %11889 = dma.hbm_to_vmem [thread:$0]  (!%p12879_p0), %s706_s5, 16384, %s708_s26, [#allocation24], %s12688_s24, %s12688_s24, %s12689_s3  }
  0x5b   : > { %s12690_s1 = smov [#allocation28]   ;;  %s746_s0 = sshll.u32 %s13463_s20, 4  ;;  %s747_s0 = int_to_ptr.hbm [resolvable:$true] %s746_s0 }
  0x5c   : > { %s733_s25 = sshll.u32 %s12690_s1, 4  ;;  %s12691_s29 = smov [#allocation29]   ;;  %s734_s25 = int_to_ptr.vmem [resolvable:$true] %s733_s25 }
  0x5d   : > { %11895 = dma.hbm_to_vmem [thread:$0]  (!%p12879_p0), %s732_s7, 65536, %s734_s25, [#allocation27], %s12688_s24, %s12688_s24, %s12689_s3  }
  0x5e   : > { %s748_s23 = sshll.u32 %s12691_s29, 4  ;;  %p13484_p2 = scmp.ge.s32.totalorder %s12667_s27, 2  ;;  %s749_s23 = int_to_ptr.vmem [resolvable:$true] %s748_s23 }
  0x5f   : > { %11898 = dma.hbm_to_vmem [thread:$0]  (!%p12879_p0), %s747_s0, 128, %s749_s23, [#allocation30]  }
  0x60   : > { %755 = sbr.rel (%p13484_p2) target bundleno = 144 (0x90), region = 96 }
  0x65   : > { %758 = sbr.rel (!%p12847_p5) target bundleno = 144 (0x90), region = 100  ;;  %s13524_s28 = sld [smem:[#allocation45_spill]] (%p12847_p5) }
  0x66   : > { %s7735_s22 = sshll.u32 (%p12847_p5), %s12667_s27, 1 }
  0x67   : > { %s765_s24 = ssub.s32 (%p12847_p5), 3, %s7735_s22 }
  0x68   : > { %p766_p3 = scmp.lt.s32.totalorder (%p12847_p5), %s765_s24, 2 }
  0x6a   : > { %s13567_s24 = smov (!%p766_p3, %s765_s24), 2 }
  0x6b   : > { %s759_s6 = sand.u32 1, %s13524_s28   ;;  %s10973_s21 = sshll.u32 %s13567_s24, 6 }
  0x6c   : > { %s7734_s26 = sshll.u32 %s759_s6, 7  ;;  %s770_s3 = ssub.s32 128, %s10973_s21 }
  0x6d   : > { %s771_s30 = sshll.u32 %s770_s3, 4  ;;  %s12981_s4 = scalar_lea.sflag [#allocation3], %s759_s6 }
  0x6e   : > { %s763_s7 = scalar_lea.vmem [#allocation2], %s7734_s26 }
  0x6f   : > { %772 = vsyncadd %s12981_s4, %s771_s30  ;;  %p12984_p5 = scmp.ne.s32.totalorder %s10973_s21, 0  ;;  %s10975_s25 = sshll.u32 %s12667_s27, 7 }
  0x70   : > { %s13526_s29 = sld [smem:[#allocation54_spill]]  ;;  %s12992_s5 = sshll.u32 %s763_s7, 4  ;;  %s781_s5 = int_to_ptr.vmem [resolvable:$true] %s12992_s5 }
  0x71   : > { %s7742_s6 = sshll.u32 %s13567_s24, 10 }
  0x72   : > { %s12517_s26 = sshrl.u32 %s7742_s6, 4 }
  0x76   : > { %s776_s23 = scalar_lea.hbm %s13526_s29, %s10975_s25  ;;  %s12526_s7 = scalar_lea.hbm %s13526_s29, 192 }
  0x77   : > { %s778_s28 = sshll.u32 %s776_s23, 4  ;;  %s12995_s28 = int_to_ptr.hbm [resolvable:$true] %s778_s28 }
  0x78   : > { %s12515_s22 = sshra.s32 %s12995_s28, 4  ;;  %s12516_s22 = int_to_ptr.hbm [resolvable:$true] %s12515_s22 }
  0x79   : > { %s12522_s21 = scalar_lea.hbm %s12516_s22, %s12517_s26  ;;  %p12527_p10 = scmp.lt.s32.totalorder %s12516_s22, %s13526_s29 }
  0x7a   : > { %p12523_p7 = scmp.ne.s32.totalorder %s12516_s22, %s12522_s21  ;;  %p12528_p1 = scmp.lt.s32.totalorder %s12526_s7, %s12522_s21 }
  0x7c   : > { %p12524_p8 = pnand %p12523_p7, %p12984_p5  ;;  %p12529_p0 = por %p12528_p1, %p12527_p10 }
  0x7e   : > { %p12525_p9 = pneg %p12524_p8 }
  0x80   : > { %p12530_p3 = pnand %p12529_p0, %p12525_p9 }
  0x82   : > { %12533 = shalt.err (!%p12530_p3)
}
  0x83   : > { %s12534_s0 = sshra.s32 %s781_s5, 4  ;;  %s12692_s3 = smov [#allocation2]   ;;  %s12535_s0 = int_to_ptr.vmem [resolvable:$true] %s12534_s0 }
  0x84   : > { %s12541_s23 = scalar_lea.vmem %s12535_s0, %s12517_s26  ;;  %s12545_s30 = scalar_lea.vmem %s12692_s3, 256 }
  0x85   : > { %p12542_p7 = scmp.ne.s32.totalorder %s12535_s0, %s12541_s23  ;;  %p12547_p4 = scmp.lt.s32.totalorder %s12545_s30, %s12541_s23 }
  0x87   : > { %p12543_p8 = pnand %p12542_p7, %p12984_p5 }
  0x89   : > { %p12544_p2 = pneg %p12543_p8 }
  0x8b   : > { %p12549_p12 = pnand %p12547_p4, %p12544_p2 }
  0x8d   : > { %12552 = shalt.err (!%p12549_p12)
}
  0x8e   : > { %s12693_s22 = smov 1024   ;;  %s12694_s21 = smov 64  }
  0x8f   : > { %786 = dma.hbm_to_vmem [thread:$0]  (%p12984_p5), %s12995_s28, %s7742_s6, %s781_s5, %s12981_s4, %s12693_s22, %s12693_s22, %s12694_s21  }
  0x90 PF: > { %792 = sbr.rel (%p12868_p13) target bundleno = 2372 (0x944), region = 104  ;;  %s13528_s7 = sld [smem:[#allocation44_spill]] (!%p12868_p13) }
  0x96   : > { %s13024_s2 = sand.u32 1, %s13528_s7  }
  0x97   : > { %s7744_s0 = sshll.u32 %s13024_s2, 7  ;;  %s795_s23 = scalar_lea.sflag [#allocation3], %s13024_s2 }
  0x98   : > { %s13030_s3 = scalar_lea.vmem [#allocation2], %s7744_s0 }
  0x99   : > { %12610 = dma.done.wait (%p12853_p6), %s795_s23, 2048  }
  0x9a   : > { %12612 = vsyncadd (%p12853_p6), %s795_s23, 4294965248  ;;  %s13530_s24 = sld [smem:[#allocation46_spill]] }
  0xa0   : > { %p13531_p4 = scmp.eq.s32.totalorder %s13530_s24, 0 }
  0xa2   : > { %12614 = dma.done.wait (%p13531_p4), [#allocation6], 16416   ;;  %p13532_p12 = pmov %p13531_p4 }
  0xa3   : > { %p13533_p13 = pmov %p13531_p4 }
  0xa4   : > { %12616 = vsyncadd (%p13532_p12), [#allocation6], 4294950880 }
  0xa5   : > { %12618 = dma.done.wait (%p13533_p13), [#allocation9], 32   ;;  %p13534_p2 = pmov %p13531_p4 }
  0xa7   : > { %12620 = vsyncadd (%p13534_p2), [#allocation9], 4294967264  ;;  %p13535_p5 = pmov %p13534_p2 }
  0xa8   : > { %p13536_p9 = pmov %p13534_p2 }
  0xa9   : > { %12622 = dma.done.wait (%p13535_p5), [#allocation12], 48  }
  0xaa   : > { %12624 = vsyncadd (%p13536_p9), [#allocation12], 4294967248  ;;  %p13537_p6 = pmov %p13534_p2 }
  0xab   : > { %p13538_p10 = pmov %p13534_p2 }
  0xac   : > { %12626 = dma.done.wait (%p13537_p6), [#allocation15], 48  }
  0xad   : > { %12628 = vsyncadd (%p13538_p10), [#allocation15], 4294967248  ;;  %p13539_p1 = pmov %p13534_p2 }
  0xaf   : > { %12630 = dma.done.wait (%p13539_p1), [#allocation18], 144   ;;  %p13540_p0 = pmov %p13539_p1 }
  0xb1   : > { %12632 = vsyncadd (%p13540_p0), [#allocation18], 4294967152  ;;  %p13541_p3 = pmov %p13540_p0 }
  0xb2   : > { %p13542_p7 = pmov %p13540_p0 }
  0xb3   : > { %12634 = dma.done.wait (%p13541_p3), [#allocation21], 1040  }
  0xb4   : > { %12636 = vsyncadd (%p13542_p7), [#allocation21], 4294966256  ;;  %p13543_p8 = pmov %p13540_p0 }
  0xb5   : > { %p13544_p4 = pmov %p13540_p0 }
  0xb6   : > { %12638 = dma.done.wait (%p13543_p8), [#allocation24], 16416  }
  0xb7   : > { %12640 = vsyncadd (%p13544_p4), [#allocation24], 4294950880  ;;  %p13545_p12 = pmov %p13540_p0 }
  0xb8   : > { %p13546_p13 = pmov %p13540_p0 }
  0xb9   : > { %12642 = dma.done.wait (%p13545_p12), [#allocation27], 65664  }
  0xba   : > { %12644 = vsyncadd (%p13546_p13), [#allocation27], 4294901632  ;;  %p13547_p2 = pmov %p13540_p0 }
  0xbb   : > { %p13548_p5 = pmov %p13540_p0 }
  0xbc   : > { %12646 = dma.done.wait (%p13547_p2), [#allocation30], 128  }
  0xbd   : > { %12648 = vsyncadd (%p13548_p5), [#allocation30], 4294967168  ;;  %v7821_v0 = vld [vmem:[#allocation5 + $0x70] sm:$0xf]  ;;  %v10991_v1 = vld [vmem:[#allocation5 + $0x74] sm:$0xf0] }
  0xbe   : > { %v7885_v2 = vld [vmem:[#allocation5 + $0xf0] sm:$0xf]  ;;  %v7822_v3 = vor.u32 %v10991_v1, %v7821_v0  ;;  %v11007_v4 = vld [vmem:[#allocation5 + $0xf4] sm:$0xf0]  ;;  %v7813_v11 = vld [vmem:[#allocation5 + $0x60] sm:$0xf] }
  0xbf   : > { %v7949_v5 = vld [vmem:[#allocation5 + $0x170] sm:$0xf]  ;;  %v11023_v6 = vld [vmem:[#allocation5 + $0x174] sm:$0xf0]  ;;  %v7886_v7 = vor.u32 %v11007_v4, %v7885_v2  ;;  %v10989_v13 = vld [vmem:[#allocation5 + $0x64] sm:$0xf0] }
  0xc0   : > { %v7950_v8 = vor.u32 %v11023_v6, %v7949_v5  ;;  %v8013_v9 = vld [vmem:[#allocation5 + $0x1f0] sm:$0xf]  ;;  %v11039_v10 = vld [vmem:[#allocation5 + $0x1f4] sm:$0xf0]  ;;  %1754 = vmatpush.bf16.msra.mxu0 %v7822_v3  ;;  %v7877_v14 = vld [vmem:[#allocation5 + $0xe0] sm:$0xf]  ;;  %v7814_v16 = vor.u32 %v10989_v13, %v7813_v11 }
  0xc1   : > { %v8014_v12 = vor.u32 %v11039_v10, %v8013_v9  ;;  %v11005_v15 = vld [vmem:[#allocation5 + $0xe4] sm:$0xf0]  ;;  %1768 = vmatpush.bf16.msra.mxu1 %v7886_v7  ;;  %v7941_v18 = vld [vmem:[#allocation5 + $0x160] sm:$0xf]  ;;  %v7805_v23 = vld [vmem:[#allocation5 + $0x50] sm:$0xf] }
  0xc2   : > { %1782 = vmatpush.bf16.msra.mxu2 %v7950_v8  ;;  %v7878_v17 = vor.u32 %v11005_v15, %v7877_v14  ;;  %v11021_v19 = vld [vmem:[#allocation5 + $0x164] sm:$0xf0]  ;;  %v8005_v20 = vld [vmem:[#allocation5 + $0x1e0] sm:$0xf]  ;;  %v10987_v24 = vld [vmem:[#allocation5 + $0x54] sm:$0xf0] }
  0xc3   : > { %1796 = vmatpush.bf16.msra.mxu3 %v8014_v12  ;;  %v7942_v21 = vor.u32 %v11021_v19, %v7941_v18  ;;  %v11037_v22 = vld [vmem:[#allocation5 + $0x1e4] sm:$0xf0]  ;;  %v7869_v26 = vld [vmem:[#allocation5 + $0xd0] sm:$0xf]  ;;  %v11003_v27 = vld [vmem:[#allocation5 + $0xd4] sm:$0xf0]  ;;  %v7806_v29 = vor.u32 %v10987_v24, %v7805_v23 }
  0xc4   : > { %v8006_v25 = vor.u32 %v11037_v22, %v8005_v20  ;;  %v7933_v28 = vld [vmem:[#allocation5 + $0x150] sm:$0xf]  ;;  %1755 = vmatpush.bf16.msra.mxu0 %v7814_v16  ;;  %v11019_v30 = vld [vmem:[#allocation5 + $0x154] sm:$0xf0]  ;;  %v7870_v33 = vor.u32 %v11003_v27, %v7869_v26  ;;  %v7797_v35 = vld [vmem:[#allocation5 + $0x40] sm:$0xf] }
  0xc5   : > { %v7997_v31 = vld [vmem:[#allocation5 + $0x1d0] sm:$0xf]  ;;  %v11035_v32 = vld [vmem:[#allocation5 + $0x1d4] sm:$0xf0]  ;;  %1769 = vmatpush.bf16.msra.mxu1 %v7878_v17  ;;  %v7934_v34 = vor.u32 %v11019_v30, %v7933_v28  ;;  %v10985_v36 = vld [vmem:[#allocation5 + $0x44] sm:$0xf0] }
  0xc6   : > { %1783 = vmatpush.bf16.msra.mxu2 %v7942_v21  ;;  %v7861_v37 = vld [vmem:[#allocation5 + $0xc0] sm:$0xf]  ;;  %v7998_v38 = vor.u32 %v11035_v32, %v7997_v31  ;;  %v11001_v39 = vld [vmem:[#allocation5 + $0xc4] sm:$0xf0]  ;;  %v7798_v44 = vor.u32 %v10985_v36, %v7797_v35  ;;  %v7789_v47 = vld [vmem:[#allocation5 + $0x30] sm:$0xf] }
  0xc7   : > { %1797 = vmatpush.bf16.msra.mxu3 %v8006_v25  ;;  %v7925_v40 = vld [vmem:[#allocation5 + $0x140] sm:$0xf]  ;;  %v11017_v41 = vld [vmem:[#allocation5 + $0x144] sm:$0xf0]  ;;  %v7862_v45 = vor.u32 %v11001_v39, %v7861_v37  ;;  %v10983_v48 = vld [vmem:[#allocation5 + $0x34] sm:$0xf0] }
  0xc8   : > { %v7989_v42 = vld [vmem:[#allocation5 + $0x1c0] sm:$0xf]  ;;  %v11033_v43 = vld [vmem:[#allocation5 + $0x1c4] sm:$0xf0]  ;;  %1756 = vmatpush.bf16.msra.mxu0 %v7806_v29  ;;  %v7926_v46 = vor.u32 %v11017_v41, %v7925_v40  ;;  %v7853_v49 = vld [vmem:[#allocation5 + $0xb0] sm:$0xf]  ;;  %v7790_v56 = vor.u32 %v10983_v48, %v7789_v47 }
  0xc9   : > { %1770 = vmatpush.bf16.msra.mxu1 %v7870_v33  ;;  %v7990_v50 = vor.u32 %v11033_v43, %v7989_v42  ;;  %v10999_v51 = vld [vmem:[#allocation5 + $0xb4] sm:$0xf0]  ;;  %v7917_v52 = vld [vmem:[#allocation5 + $0x130] sm:$0xf]  ;;  %v7781_v59 = vld [vmem:[#allocation5 + $0x20] sm:$0xf] }
  0xca   : > { %1784 = vmatpush.bf16.msra.mxu2 %v7934_v34  ;;  %v11015_v53 = vld [vmem:[#allocation5 + $0x134] sm:$0xf0]  ;;  %v7981_v54 = vld [vmem:[#allocation5 + $0x1b0] sm:$0xf]  ;;  %v7854_v57 = vor.u32 %v10999_v51, %v7853_v49  ;;  %v10981_v60 = vld [vmem:[#allocation5 + $0x24] sm:$0xf0] }
  0xcb   : > { %1798 = vmatpush.bf16.msra.mxu3 %v7998_v38  ;;  %v11031_v55 = vld [vmem:[#allocation5 + $0x1b4] sm:$0xf0]  ;;  %v7918_v58 = vor.u32 %v11015_v53, %v7917_v52  ;;  %v7845_v61 = vld [vmem:[#allocation5 + $0xa0] sm:$0xf]  ;;  %v10997_v63 = vld [vmem:[#allocation5 + $0xa4] sm:$0xf0]  ;;  %v7782_v4 = vor.u32 %v10981_v60, %v7781_v59 }
  0xcc   : > { %1757 = vmatpush.bf16.msra.mxu0 %v7798_v44  ;;  %v7982_v62 = vor.u32 %v11031_v55, %v7981_v54  ;;  %v7909_v0 = vld [vmem:[#allocation5 + $0x120] sm:$0xf]  ;;  %v11013_v1 = vld [vmem:[#allocation5 + $0x124] sm:$0xf0]  ;;  %v7846_v5 = vor.u32 %v10997_v63, %v7845_v61  ;;  %v7773_v7 = vld [vmem:[#allocation5 + $0x10] sm:$0xf] }
  0xcd   : > { %1771 = vmatpush.bf16.msra.mxu1 %v7862_v45  ;;  %v7973_v2 = vld [vmem:[#allocation5 + $0x1a0] sm:$0xf]  ;;  %v11029_v3 = vld [vmem:[#allocation5 + $0x1a4] sm:$0xf0]  ;;  %v7910_v6 = vor.u32 %v11013_v1, %v7909_v0  ;;  %v10979_v8 = vld [vmem:[#allocation5 + $0x14] sm:$0xf0] }
  0xce   : > { %1785 = vmatpush.bf16.msra.mxu2 %v7926_v46  ;;  %v7837_v9 = vld [vmem:[#allocation5 + $0x90] sm:$0xf]  ;;  %v7974_v10 = vor.u32 %v11029_v3, %v7973_v2  ;;  %v10995_v11 = vld [vmem:[#allocation5 + $0x94] sm:$0xf0]  ;;  %v7774_v16 = vor.u32 %v10979_v8, %v7773_v7  ;;  %v7765_v17 = vld [vmem:[#allocation5] sm:$0xf] }
  0xcf   : > { %1799 = vmatpush.bf16.msra.mxu3 %v7990_v50  ;;  %v7901_v12 = vld [vmem:[#allocation5 + $0x110] sm:$0xf]  ;;  %v11011_v13 = vld [vmem:[#allocation5 + $0x114] sm:$0xf0]  ;;  %v10977_v18 = vld [vmem:[#allocation5 + $0x4] sm:$0xf0]  ;;  %v7838_v19 = vor.u32 %v10995_v11, %v7837_v9 }
  0xd0   : > { %1758 = vmatpush.bf16.msra.mxu0 %v7790_v56  ;;  %v7965_v14 = vld [vmem:[#allocation5 + $0x190] sm:$0xf]  ;;  %v11027_v15 = vld [vmem:[#allocation5 + $0x194] sm:$0xf0]  ;;  %v7902_v20 = vor.u32 %v11011_v13, %v7901_v12  ;;  %v7829_v21 = vld [vmem:[#allocation5 + $0x80] sm:$0xf]  ;;  %v7766_v31 = vor.u32 %v10977_v18, %v7765_v17 }
  0xd1   : > { %1772 = vmatpush.bf16.msra.mxu1 %v7854_v57  ;;  %v10993_v22 = vld [vmem:[#allocation5 + $0x84] sm:$0xf0]  ;;  %v7893_v23 = vld [vmem:[#allocation5 + $0x100] sm:$0xf]  ;;  %v7966_v24 = vor.u32 %v11027_v15, %v7965_v14  ;;  %v8077_v28 = vld [vmem:[#allocation5 + $0x270] sm:$0xf] }
  0xd2   : > { %1786 = vmatpush.bf16.msra.mxu2 %v7918_v58  ;;  %v11009_v25 = vld [vmem:[#allocation5 + $0x104] sm:$0xf0]  ;;  %v7957_v26 = vld [vmem:[#allocation5 + $0x180] sm:$0xf]  ;;  %v11055_v29 = vld [vmem:[#allocation5 + $0x274] sm:$0xf0]  ;;  %v7830_v35 = vor.u32 %v10993_v22, %v7829_v21 }
  0xd3   : > { %1800 = vmatpush.bf16.msra.mxu3 %v7982_v62  ;;  %v11025_v27 = vld [vmem:[#allocation5 + $0x184] sm:$0xf0]  ;;  %v8141_v30 = vld [vmem:[#allocation5 + $0x2f0] sm:$0xf]  ;;  %v11071_v32 = vld [vmem:[#allocation5 + $0x2f4] sm:$0xf0]  ;;  %v7894_v36 = vor.u32 %v11009_v25, %v7893_v23  ;;  %v8078_v40 = vor.u32 %v11055_v29, %v8077_v28 }
  0xd4   : > { %1759 = vmatpush.bf16.msra.mxu0 %v7782_v4  ;;  %v8205_v33 = vld [vmem:[#allocation5 + $0x370] sm:$0xf]  ;;  %v11087_v34 = vld [vmem:[#allocation5 + $0x374] sm:$0xf0]  ;;  %v7958_v39 = vor.u32 %v11025_v27, %v7957_v26  ;;  %v8069_v41 = vld [vmem:[#allocation5 + $0x260] sm:$0xf]  ;;  %v8142_v43 = vor.u32 %v11071_v32, %v8141_v30 }
  0xd5   : > { %1773 = vmatpush.bf16.msra.mxu1 %v7846_v5  ;;  %v8269_v37 = vld [vmem:[#allocation5 + $0x3f0] sm:$0xf]  ;;  %v11103_v38 = vld [vmem:[#allocation5 + $0x3f4] sm:$0xf0]  ;;  %v11053_v42 = vld [vmem:[#allocation5 + $0x264] sm:$0xf0]  ;;  %v8206_v44 = vor.u32 %v11087_v34, %v8205_v33 }
  0xd6   : > { %1787 = vmatpush.bf16.msra.mxu2 %v7910_v6  ;;  %v8133_v45 = vld [vmem:[#allocation5 + $0x2e0] sm:$0xf]  ;;  %v11069_v46 = vld [vmem:[#allocation5 + $0x2e4] sm:$0xf0]  ;;  %v8270_v48 = vor.u32 %v11103_v38, %v8269_v37  ;;  %v958_v54 = vld [vmem:[%s13030_s3 + $0x10] sm:$0xff]  ;;  %v8070_v55 = vor.u32 %v11053_v42, %v8069_v41  ;;  %s13549_s5 = sld [smem:[#allocation57_spill]] }
  0xd7   : > { %1801 = vmatpush.bf16.msra.mxu3 %v7974_v10  ;;  %v8197_v47 = vld [vmem:[#allocation5 + $0x360] sm:$0xf]  ;;  %v11085_v49 = vld [vmem:[#allocation5 + $0x364] sm:$0xf0]  ;;  %v8061_v56 = vld [vmem:[#allocation5 + $0x250] sm:$0xf]  ;;  %v8134_v60 = vor.u32 %v11069_v46, %v8133_v45 }
  0xd8   : > { %1760 = vmatpush.bf16.msra.mxu0 %v7774_v16  ;;  %v8261_v50 = vld [vmem:[#allocation5 + $0x3e0] sm:$0xf]  ;;  %v11101_v51 = vld [vmem:[#allocation5 + $0x3e4] sm:$0xf0]  ;;  %v11051_v57 = vld [vmem:[#allocation5 + $0x254] sm:$0xf0]  ;;  %v8198_v61 = vor.u32 %v11085_v49, %v8197_v47 }
  0xd9   : > { %1774 = vmatpush.bf16.msra.mxu1 %v7838_v19  ;;  %v956_v52 = vld [vmem:[%s13030_s3] sm:$0xff]  ;;  %v966_v59 = vld [vmem:[%s13030_s3 + $0x50] sm:$0xff]  ;;  %v11067_v63 = vld [vmem:[#allocation5 + $0x2d4] sm:$0xf0]  ;;  %v8262_v2 = vor.u32 %v11101_v51, %v8261_v50  ;;  %v8062_v9 = vor.u32 %v11051_v57, %v8061_v56  ;;  %s13550_s7 = sld [smem:[#allocation59_spill]]  ;;  %vm2183_vm0 = vcmask 523264  }
  0xda   : > { %1788 = vmatpush.bf16.msra.mxu2 %v7902_v20  ;;  %v964_v53 = vld [vmem:[%s13030_s3 + $0x40] sm:$0xff]  ;;  %v8125_v62 = vld [vmem:[#allocation5 + $0x2d0] sm:$0xf]  ;;  %v13078_v1 = vpack.c.bf16 %v966_v59, %v958_v54  ;;  %v11083_v3 = vld [vmem:[#allocation5 + $0x354] sm:$0xf0]  ;;  %s13551_s30 = sld [smem:[#allocation61_spill]] }
  0xdb   : > { %1802 = vmatpush.bf16.msra.mxu3 %v7966_v24  ;;  %v13075_v58 = vpack.c.bf16 %v964_v53, %v956_v52  ;;  %v8189_v0 = vld [vmem:[#allocation5 + $0x350] sm:$0xf]  ;;  %v11099_v5 = vld [vmem:[#allocation5 + $0x3d4] sm:$0xf0]  ;;  %v957_v6 = vld [vmem:[%s13030_s3 + $0x8] sm:$0xff]  ;;  %v8126_v12 = vor.u32 %v11067_v63, %v8125_v62  ;;  %vm2216_vm1 = vcmask 130048  }
  0xdc   : > { %1761 = vmatpush.bf16.msra.mxu0 %v7766_v31  ;;  %v8253_v4 = vld [vmem:[#allocation5 + $0x3d0] sm:$0xf]  ;;  %v965_v7 = vld [vmem:[%s13030_s3 + $0x48] sm:$0xff]  ;;  %v959_v8 = vld [vmem:[%s13030_s3 + $0x18] sm:$0xff]  ;;  %v8190_v13 = vor.u32 %v11083_v3, %v8189_v0  ;;  %vm2246_vm2 = vcmask 1041408   ;;  %vm2242_vm3 = vcmask 31744  }
  0xdd   : > { %1775 = vmatpush.bf16.msra.mxu1 %v7830_v35  ;;  %v13085_v10 = vpack.c.bf16 %v965_v7, %v957_v6  ;;  %v967_v11 = vld [vmem:[%s13030_s3 + $0x58] sm:$0xff]  ;;  %v8053_v14 = vld [vmem:[#allocation5 + $0x240] sm:$0xf]  ;;  %v11049_v15 = vld [vmem:[#allocation5 + $0x244] sm:$0xf0]  ;;  %v8254_v18 = vor.u32 %v11099_v5, %v8253_v4  ;;  %s13301_s22 = scalar_lea.vmem [#allocation31], %s7744_s0 }
  0xde   : > { %1789 = vmatpush.bf16.msra.mxu2 %v7894_v36  ;;  %v8117_v16 = vld [vmem:[#allocation5 + $0x2c0] sm:$0xf]  ;;  %v13088_v17 = vpack.c.bf16 %v967_v11, %v959_v8  ;;  %v11065_v19 = vld [vmem:[#allocation5 + $0x2c4] sm:$0xf0]  ;;  %v8054_v24 = vor.u32 %v11049_v15, %v8053_v14  ;;  %v8045_v27 = vld [vmem:[#allocation5 + $0x230] sm:$0xf] }
  0xdf   : > { %1803 = vmatpush.bf16.msra.mxu3 %v7958_v39  ;;  %1762 = vmatmul.bf16.vlgmr.msra.gmra.mxu0 %v13075_v58  ;;  %v8181_v20 = vld [vmem:[#allocation5 + $0x340] sm:$0xf]  ;;  %v11081_v21 = vld [vmem:[#allocation5 + $0x344] sm:$0xf0]  ;;  %v8118_v25 = vor.u32 %v11065_v19, %v8117_v16  ;;  %v11047_v28 = vld [vmem:[#allocation5 + $0x234] sm:$0xf0] }
  0xe0   : > { %1810 = vmatpush.bf16.msrb.mxu0 %v8078_v40  ;;  %1776 = vmatmul.bf16.vlgmr.msra.gmra.mxu1 %v13085_v10  ;;  %v8245_v22 = vld [vmem:[#allocation5 + $0x3c0] sm:$0xf]  ;;  %v11097_v23 = vld [vmem:[#allocation5 + $0x3c4] sm:$0xf0]  ;;  %v8182_v26 = vor.u32 %v11081_v21, %v8181_v20  ;;  %v8109_v29 = vld [vmem:[#allocation5 + $0x2b0] sm:$0xf]  ;;  %v8046_v36 = vor.u32 %v11047_v28, %v8045_v27 }
  0xe1   : > { %1824 = vmatpush.bf16.msrb.mxu1 %v8142_v43  ;;  %1790 = vmatmul.bf16.vlgmr.msra.gmra.mxu2 %v13078_v1  ;;  %v8246_v30 = vor.u32 %v11097_v23, %v8245_v22  ;;  %v11063_v31 = vld [vmem:[#allocation5 + $0x2b4] sm:$0xf0]  ;;  %v8173_v32 = vld [vmem:[#allocation5 + $0x330] sm:$0xf]  ;;  %v8037_v39 = vld [vmem:[#allocation5 + $0x220] sm:$0xf] }
  0xe2   : > { %1838 = vmatpush.bf16.msrb.mxu2 %v8206_v44  ;;  %1804 = vmatmul.bf16.vlgmr.msra.gmra.mxu3 %v13088_v17  ;;  %v11079_v33 = vld [vmem:[#allocation5 + $0x334] sm:$0xf0]  ;;  %v8237_v34 = vld [vmem:[#allocation5 + $0x3b0] sm:$0xf]  ;;  %v8110_v37 = vor.u32 %v11063_v31, %v8109_v29  ;;  %v11045_v40 = vld [vmem:[#allocation5 + $0x224] sm:$0xf0] }
  0xe3   : > { %1852 = vmatpush.bf16.msrb.mxu3 %v8270_v48  ;;  %v11095_v35 = vld [vmem:[#allocation5 + $0x3b4] sm:$0xf0]  ;;  %v8174_v38 = vor.u32 %v11079_v33, %v8173_v32  ;;  %v8101_v41 = vld [vmem:[#allocation5 + $0x2a0] sm:$0xf]  ;;  %v11061_v43 = vld [vmem:[#allocation5 + $0x2a4] sm:$0xf0]  ;;  %v8038_v48 = vor.u32 %v11045_v40, %v8037_v39 }
  0xe4   : > { %1811 = vmatpush.bf16.msrb.mxu0 %v8070_v55  ;;  %v8238_v42 = vor.u32 %v11095_v35, %v8237_v34  ;;  %v8165_v44 = vld [vmem:[#allocation5 + $0x320] sm:$0xf]  ;;  %v11077_v45 = vld [vmem:[#allocation5 + $0x324] sm:$0xf0]  ;;  %v8029_v49 = vld [vmem:[#allocation5 + $0x210] sm:$0xf]  ;;  %v8102_v50 = vor.u32 %v11061_v43, %v8101_v41 }
  0xe5   : > { %1825 = vmatpush.bf16.msrb.mxu1 %v8134_v60  ;;  %v8229_v46 = vld [vmem:[#allocation5 + $0x3a0] sm:$0xf]  ;;  %v11093_v47 = vld [vmem:[#allocation5 + $0x3a4] sm:$0xf0]  ;;  %v8166_v51 = vor.u32 %v11077_v45, %v8165_v44  ;;  %v11043_v52 = vld [vmem:[#allocation5 + $0x214] sm:$0xf0] }
  0xe6   : > { %1839 = vmatpush.bf16.msrb.mxu2 %v8198_v61  ;;  %v8093_v53 = vld [vmem:[#allocation5 + $0x290] sm:$0xf]  ;;  %v11059_v54 = vld [vmem:[#allocation5 + $0x294] sm:$0xf0]  ;;  %v8230_v55 = vor.u32 %v11093_v47, %v8229_v46  ;;  %v8021_v61 = vld [vmem:[#allocation5 + $0x200] sm:$0xf]  ;;  %v8030_v63 = vor.u32 %v11043_v52, %v8029_v49 }
  0xe7   : > { %1853 = vmatpush.bf16.msrb.mxu3 %v8262_v2  ;;  %v8157_v56 = vld [vmem:[#allocation5 + $0x310] sm:$0xf]  ;;  %v11075_v57 = vld [vmem:[#allocation5 + $0x314] sm:$0xf0]  ;;  %v11041_v62 = vld [vmem:[#allocation5 + $0x204] sm:$0xf0]  ;;  %v8094_v5 = vor.u32 %v11059_v54, %v8093_v53 }
  0xe8   : > { %1812 = vmatpush.bf16.msrb.mxu0 %v8062_v9  ;;  %v8221_v59 = vld [vmem:[#allocation5 + $0x390] sm:$0xf]  ;;  %v11091_v60 = vld [vmem:[#allocation5 + $0x394] sm:$0xf0]  ;;  %v8085_v0 = vld [vmem:[#allocation5 + $0x280] sm:$0xf]  ;;  %v8158_v6 = vor.u32 %v11075_v57, %v8157_v56  ;;  %v8022_v19 = vor.u32 %v11041_v62, %v8021_v61 }
  0xe9   : > { %1826 = vmatpush.bf16.msrb.mxu1 %v8126_v12  ;;  %v11057_v2 = vld [vmem:[#allocation5 + $0x284] sm:$0xf0]  ;;  %v8149_v3 = vld [vmem:[#allocation5 + $0x300] sm:$0xf]  ;;  %v10990_v9 = vld [vmem:[#allocation5 + $0x74] sm:$0xf]  ;;  %v8222_v11 = vor.u32 %v11091_v60, %v8221_v59 }
  0xea   : > { %1840 = vmatpush.bf16.msrb.mxu2 %v8190_v13  ;;  %v11073_v4 = vld [vmem:[#allocation5 + $0x304] sm:$0xf0]  ;;  %v8213_v7 = vld [vmem:[#allocation5 + $0x380] sm:$0xf]  ;;  %v7823_v12 = vld [vmem:[#allocation5 + $0x78] sm:$0xf0]  ;;  %v8086_v23 = vor.u32 %v11057_v2, %v8085_v0 }
  0xeb   : > { %1854 = vmatpush.bf16.msrb.mxu3 %v8254_v18  ;;  %v11089_v8 = vld [vmem:[#allocation5 + $0x384] sm:$0xf0]  ;;  %v11006_v13 = vld [vmem:[#allocation5 + $0xf4] sm:$0xf]  ;;  %v7887_v14 = vld [vmem:[#allocation5 + $0xf8] sm:$0xf0]  ;;  %v7826_v29 = vor.u32 %v10990_v9, %v7823_v12 }
  0xec   : > { %1813 = vmatpush.bf16.msrb.mxu0 %v8054_v24  ;;  %v11022_v15 = vld [vmem:[#allocation5 + $0x174] sm:$0xf]  ;;  %v7951_v16 = vld [vmem:[#allocation5 + $0x178] sm:$0xf0]  ;;  %v960_v21 = vld [vmem:[%s13030_s3 + $0x20] sm:$0xff]  ;;  %v8150_v24 = vor.u32 %v11073_v4, %v8149_v3  ;;  %v8214_v28 = vor.u32 %v11089_v8, %v8213_v7  ;;  %v7890_v33 = vor.u32 %v11006_v13, %v7887_v14  ;;  %s13487_s0 = scalar_lea.sflag [#allocation4], %s13024_s2 }
  0xed   : > { %1827 = vmatpush.bf16.msrb.mxu1 %v8118_v25  ;;  %v11038_v18 = vld [vmem:[#allocation5 + $0x1f4] sm:$0xf]  ;;  %v8015_v20 = vld [vmem:[#allocation5 + $0x1f8] sm:$0xf0]  ;;  %v968_v22 = vld [vmem:[%s13030_s3 + $0x60] sm:$0xff]  ;;  %v7954_v34 = vor.u32 %v11022_v15, %v7951_v16  ;;  %s13553_s26 = sld [smem:[#allocation46_spill]] (%p12860_p11) }
  0xee   : > { %1841 = vmatpush.bf16.msrb.mxu2 %v8182_v26  ;;  %v962_v25 = vld [vmem:[%s13030_s3 + $0x30] sm:$0xff]  ;;  %v961_v27 = vld [vmem:[%s13030_s3 + $0x28] sm:$0xff]  ;;  %v963_v31 = vld [vmem:[%s13030_s3 + $0x38] sm:$0xff]  ;;  %v13100_v39 = vpack.c.bf16 %v968_v22, %v960_v21 }
  0xef   : > { %1855 = vmatpush.bf16.msrb.mxu3 %v8246_v30  ;;  %v970_v26 = vld [vmem:[%s13030_s3 + $0x70] sm:$0xff]  ;;  %v969_v30 = vld [vmem:[%s13030_s3 + $0x68] sm:$0xff]  ;;  %v971_v32 = vld [vmem:[%s13030_s3 + $0x78] sm:$0xff] }
  0xf0   : > { %1814 = vmatpush.bf16.msrb.mxu0 %v8046_v36  ;;  %v10988_v35 = vld [vmem:[#allocation5 + $0x64] sm:$0xf]  ;;  %v7815_v36 = vld [vmem:[#allocation5 + $0x68] sm:$0xf0]  ;;  %v13102_v43 = vpack.c.bf16 %v970_v26, %v962_v25  ;;  %v13104_v44 = vpack.c.bf16 %v969_v30, %v961_v27  ;;  %v13106_v47 = vpack.c.bf16 %v971_v32, %v963_v31  ;;  %v7807_v52 = vld [vmem:[#allocation5 + $0x58] sm:$0xf0] }
  0xf1   : > { %1828 = vmatpush.bf16.msrb.mxu1 %v8110_v37  ;;  %v11004_v37 = vld [vmem:[#allocation5 + $0xe4] sm:$0xf]  ;;  %v7879_v40 = vld [vmem:[#allocation5 + $0xe8] sm:$0xf0]  ;;  %v11002_v53 = vld [vmem:[#allocation5 + $0xd4] sm:$0xf] }
  0xf2   : > { %1842 = vmatpush.bf16.msrb.mxu2 %v8174_v38  ;;  %v8018_v38 = vor.u32 %v11038_v18, %v8015_v20  ;;  %v11020_v41 = vld [vmem:[#allocation5 + $0x164] sm:$0xf]  ;;  %v8007_v46 = vld [vmem:[#allocation5 + $0x1e8] sm:$0xf0]  ;;  %v7882_v49 = vor.u32 %v11004_v37, %v7879_v40  ;;  %v11018_v56 = vld [vmem:[#allocation5 + $0x154] sm:$0xf] }
  0xf3   : > { %1856 = vmatpush.bf16.msrb.mxu3 %v8238_v42  ;;  %v7943_v42 = vld [vmem:[#allocation5 + $0x168] sm:$0xf0]  ;;  %v11036_v45 = vld [vmem:[#allocation5 + $0x1e4] sm:$0xf]  ;;  %v7935_v57 = vld [vmem:[#allocation5 + $0x158] sm:$0xf0] }
  0xf4   : > { %1815 = vmatpush.bf16.msrb.mxu0 %v8038_v48  ;;  %v7818_v48 = vor.u32 %v10988_v35, %v7815_v36  ;;  %v8010_v54 = vor.u32 %v11036_v45, %v8007_v46  ;;  %v11034_v59 = vld [vmem:[#allocation5 + $0x1d4] sm:$0xf]  ;;  %v7999_v60 = vld [vmem:[#allocation5 + $0x1d8] sm:$0xf0]  ;;  %v10984_v0 = vld [vmem:[#allocation5 + $0x44] sm:$0xf] }
  0xf5   : > { %1829 = vmatpush.bf16.msrb.mxu1 %v8102_v50  ;;  %v7946_v50 = vor.u32 %v11020_v41, %v7943_v42  ;;  %v7799_v2 = vld [vmem:[#allocation5 + $0x48] sm:$0xf0]  ;;  %v11000_v3 = vld [vmem:[#allocation5 + $0xc4] sm:$0xf]  ;;  %v8002_v4 = vor.u32 %v11034_v59, %v7999_v60  ;;  %v10982_v14 = vld [vmem:[#allocation5 + $0x34] sm:$0xf] }
  0xf6   : > { %1843 = vmatpush.bf16.msrb.mxu2 %v8166_v51  ;;  %v10986_v51 = vld [vmem:[#allocation5 + $0x54] sm:$0xf]  ;;  %v7927_v7 = vld [vmem:[#allocation5 + $0x148] sm:$0xf0]  ;;  %v11032_v8 = vld [vmem:[#allocation5 + $0x1c4] sm:$0xf] }
  0xf7   : > { %1857 = vmatpush.bf16.msrb.mxu3 %v8230_v55  ;;  %v7871_v55 = vld [vmem:[#allocation5 + $0xd8] sm:$0xf0]  ;;  %v7810_v61 = vor.u32 %v10986_v51, %v7807_v52  ;;  %v7991_v9 = vld [vmem:[#allocation5 + $0x1c8] sm:$0xf0]  ;;  %v10998_v16 = vld [vmem:[#allocation5 + $0xb4] sm:$0xf] }
  0xf8   : > { %1816 = vmatpush.bf16.msrb.mxu0 %v8030_v63  ;;  %v7874_v62 = vor.u32 %v11002_v53, %v7871_v55  ;;  %v7938_v63 = vor.u32 %v11018_v56, %v7935_v57  ;;  %v7791_v15 = vld [vmem:[#allocation5 + $0x38] sm:$0xf0]  ;;  %v7994_v18 = vor.u32 %v11032_v8, %v7991_v9  ;;  %v11014_v20 = vld [vmem:[#allocation5 + $0x134] sm:$0xf]  ;;  %v10980_v27 = vld [vmem:[#allocation5 + $0x24] sm:$0xf] }
  0xf9   : > { %1830 = vmatpush.bf16.msrb.mxu1 %v8094_v5  ;;  %v7863_v5 = vld [vmem:[#allocation5 + $0xc8] sm:$0xf0]  ;;  %v7919_v21 = vld [vmem:[#allocation5 + $0x138] sm:$0xf0]  ;;  %v11030_v22 = vld [vmem:[#allocation5 + $0x1b4] sm:$0xf] }
  0xfa   : > { %1844 = vmatpush.bf16.msrb.mxu2 %v8158_v6  ;;  %v11016_v6 = vld [vmem:[#allocation5 + $0x144] sm:$0xf]  ;;  %v7866_v12 = vor.u32 %v11000_v3, %v7863_v5  ;;  %v7922_v26 = vor.u32 %v11014_v20, %v7919_v21  ;;  %v7847_v31 = vld [vmem:[#allocation5 + $0xa8] sm:$0xf0]  ;;  %v10978_v40 = vld [vmem:[#allocation5 + $0x14] sm:$0xf] }
  0xfb   : > { %1858 = vmatpush.bf16.msrb.mxu3 %v8222_v11  ;;  %v7802_v11 = vor.u32 %v10984_v0, %v7799_v2  ;;  %v7930_v13 = vor.u32 %v11016_v6, %v7927_v7  ;;  %v11012_v32 = vld [vmem:[#allocation5 + $0x124] sm:$0xf]  ;;  %v7975_v35 = vld [vmem:[#allocation5 + $0x1a8] sm:$0xf0]  ;;  %v7775_v41 = vld [vmem:[#allocation5 + $0x18] sm:$0xf0] }
  0xfc   : > { %1817 = vmatpush.bf16.msrb.mxu0 %v8022_v19  ;;  %v7855_v19 = vld [vmem:[#allocation5 + $0xb8] sm:$0xf0]  ;;  %v10994_v42 = vld [vmem:[#allocation5 + $0x94] sm:$0xf]  ;;  %v7778_v52 = vor.u32 %v10978_v40, %v7775_v41  ;;  %v10976_v53 = vld [vmem:[#allocation5 + $0x4] sm:$0xf] }
  0xfd   : > { %1831 = vmatpush.bf16.msrb.mxu1 %v8086_v23  ;;  %v7983_v23 = vld [vmem:[#allocation5 + $0x1b8] sm:$0xf0]  ;;  %v7858_v25 = vor.u32 %v10998_v16, %v7855_v19  ;;  %v10992_v55 = vld [vmem:[#allocation5 + $0x84] sm:$0xf]  ;;  %v7831_v59 = vld [vmem:[#allocation5 + $0x88] sm:$0xf0] }
  0xfe   : > { %1845 = vmatpush.bf16.msrb.mxu2 %v8150_v24  ;;  %v7794_v24 = vor.u32 %v10982_v14, %v7791_v15  ;;  %v7986_v30 = vor.u32 %v11030_v22, %v7983_v23  ;;  %v7839_v46 = vld [vmem:[#allocation5 + $0x98] sm:$0xf0]  ;;  %v11008_v60 = vld [vmem:[#allocation5 + $0x104] sm:$0xf]  ;;  %v7959_v0 = vld [vmem:[#allocation5 + $0x188] sm:$0xf0] }
  0xff   : > { %1859 = vmatpush.bf16.msrb.mxu3 %v8214_v28  ;;  %1818 = vmatmul.bf16.vlgmr.msrb.gmra.mxu0 %v13100_v39  ;;  %v7783_v28 = vld [vmem:[#allocation5 + $0x28] sm:$0xf0]  ;;  %v7967_v51 = vld [vmem:[#allocation5 + $0x198] sm:$0xf0]  ;;  %v7842_v56 = vor.u32 %v10994_v42, %v7839_v46  ;;  %v11054_v2 = vld [vmem:[#allocation5 + $0x274] sm:$0xf] }
 0x100   : > { %1866 = vmatpush.bf16.msra.mxu0 %v7826_v29  ;;  %1832 = vmatmul.bf16.vlgmr.msrb.gmra.mxu1 %v13104_v44  ;;  %v10996_v29 = vld [vmem:[#allocation5 + $0xa4] sm:$0xf]  ;;  %v7786_v36 = vor.u32 %v10980_v27, %v7783_v28  ;;  %v8079_v3 = vld [vmem:[#allocation5 + $0x278] sm:$0xf0]  ;;  %v11086_v7 = vld [vmem:[#allocation5 + $0x374] sm:$0xf] }
 0x101   : > { %1880 = vmatpush.bf16.msra.mxu1 %v7890_v33  ;;  %1846 = vmatmul.bf16.vlgmr.msrb.gmra.mxu2 %v13102_v43  ;;  %v7911_v33 = vld [vmem:[#allocation5 + $0x128] sm:$0xf0]  ;;  %v7850_v37 = vor.u32 %v10996_v29, %v7847_v31  ;;  %v8143_v5 = vld [vmem:[#allocation5 + $0x2f8] sm:$0xf0]  ;;  %v11102_v9 = vld [vmem:[#allocation5 + $0x3f4] sm:$0xf] }
 0x102   : > { %1894 = vmatpush.bf16.msra.mxu2 %v7954_v34  ;;  %1860 = vmatmul.bf16.vlgmr.msrb.gmra.mxu3 %v13106_v47  ;;  %v11028_v34 = vld [vmem:[#allocation5 + $0x1a4] sm:$0xf]  ;;  %v8207_v8 = vld [vmem:[#allocation5 + $0x378] sm:$0xf0]  ;;  %v8071_v15 = vld [vmem:[#allocation5 + $0x268] sm:$0xf0] }
 0x103   : > { %1908 = vmatpush.bf16.msra.mxu3 %v8018_v38  ;;  %v7914_v38 = vor.u32 %v11012_v32, %v7911_v33  ;;  %v7978_v45 = vor.u32 %v11028_v34, %v7975_v35  ;;  %v11052_v14 = vld [vmem:[#allocation5 + $0x264] sm:$0xf]  ;;  %v8135_v20 = vld [vmem:[#allocation5 + $0x2e8] sm:$0xf0]  ;;  %v8210_v23 = vor.u32 %v11086_v7, %v8207_v8  ;;  %v11050_v31 = vld [vmem:[#allocation5 + $0x254] sm:$0xf] }
 0x104   : > { %1867 = vmatpush.bf16.msra.mxu0 %v7818_v48  ;;  %v11010_v48 = vld [vmem:[#allocation5 + $0x114] sm:$0xf]  ;;  %v11068_v19 = vld [vmem:[#allocation5 + $0x2e4] sm:$0xf]  ;;  %v8263_v27 = vld [vmem:[#allocation5 + $0x3e8] sm:$0xf0]  ;;  %v8074_v28 = vor.u32 %v11052_v14, %v8071_v15 }
 0x105   : > { %1881 = vmatpush.bf16.msra.mxu1 %v7882_v49  ;;  %v7903_v49 = vld [vmem:[#allocation5 + $0x118] sm:$0xf0]  ;;  %v11084_v21 = vld [vmem:[#allocation5 + $0x364] sm:$0xf]  ;;  %v8138_v29 = vor.u32 %v11068_v19, %v8135_v20  ;;  %v11066_v33 = vld [vmem:[#allocation5 + $0x2d4] sm:$0xf] }
 0x106   : > { %1895 = vmatpush.bf16.msra.mxu2 %v7946_v50  ;;  %v11026_v50 = vld [vmem:[#allocation5 + $0x194] sm:$0xf]  ;;  %v7906_v57 = vor.u32 %v11010_v48, %v7903_v49  ;;  %v8063_v32 = vld [vmem:[#allocation5 + $0x258] sm:$0xf0]  ;;  %v11048_v46 = vld [vmem:[#allocation5 + $0x244] sm:$0xf] }
 0x107   : > { %1909 = vmatpush.bf16.msra.mxu3 %v8010_v54  ;;  %v7767_v54 = vld [vmem:[#allocation5 + $0x8] sm:$0xf0]  ;;  %v8127_v35 = vld [vmem:[#allocation5 + $0x2d8] sm:$0xf0]  ;;  %v8066_v41 = vor.u32 %v11050_v31, %v8063_v32  ;;  %v11060_v7 = vld [vmem:[#allocation5 + $0x2a4] sm:$0xf] }
 0x108   : > { %1868 = vmatpush.bf16.msra.mxu0 %v7810_v61  ;;  %v7895_v61 = vld [vmem:[#allocation5 + $0x108] sm:$0xf0]  ;;  %v7770_v6 = vor.u32 %v10976_v53, %v7767_v54  ;;  %v8255_v40 = vld [vmem:[#allocation5 + $0x3d8] sm:$0xf0]  ;;  %v8130_v42 = vor.u32 %v11066_v33, %v8127_v35  ;;  %v11096_v53 = vld [vmem:[#allocation5 + $0x3c4] sm:$0xf] }
 0x109   : > { %1882 = vmatpush.bf16.msra.mxu1 %v7874_v62  ;;  %v7970_v62 = vor.u32 %v11026_v50, %v7967_v51  ;;  %v8055_v48 = vld [vmem:[#allocation5 + $0x248] sm:$0xf0]  ;;  %v11080_v51 = vld [vmem:[#allocation5 + $0x344] sm:$0xf]  ;;  %v11042_v19 = vld [vmem:[#allocation5 + $0x214] sm:$0xf] }
 0x10a   : > { %1896 = vmatpush.bf16.msra.mxu2 %v7938_v63  ;;  %v11024_v63 = vld [vmem:[#allocation5 + $0x184] sm:$0xf]  ;;  %v8119_v50 = vld [vmem:[#allocation5 + $0x2c8] sm:$0xf0]  ;;  %v8031_v20 = vld [vmem:[#allocation5 + $0x218] sm:$0xf0] }
 0x10b   : > { %1910 = vmatpush.bf16.msra.mxu3 %v8002_v4  ;;  %v11070_v4 = vld [vmem:[#allocation5 + $0x2f4] sm:$0xf]  ;;  %v7962_v16 = vor.u32 %v11024_v63, %v7959_v0  ;;  %v8239_v0 = vld [vmem:[#allocation5 + $0x3b8] sm:$0xf0]  ;;  %v8231_v14 = vld [vmem:[#allocation5 + $0x3a8] sm:$0xf0] }
 0x10c   : > { %1869 = vmatpush.bf16.msra.mxu0 %v7802_v11  ;;  %v7834_v11 = vor.u32 %v10992_v55, %v7831_v59  ;;  %v8146_v22 = vor.u32 %v11070_v4, %v8143_v5  ;;  %v11046_v55 = vld [vmem:[#allocation5 + $0x234] sm:$0xf]  ;;  %v11044_v5 = vld [vmem:[#allocation5 + $0x224] sm:$0xf]  ;;  %v8023_v32 = vld [vmem:[#allocation5 + $0x208] sm:$0xf0] }
 0x10d   : > { %1883 = vmatpush.bf16.msra.mxu1 %v7866_v12  ;;  %v7898_v12 = vor.u32 %v11008_v60, %v7895_v61  ;;  %v8111_v60 = vld [vmem:[#allocation5 + $0x2b8] sm:$0xf0]  ;;  %v11078_v61 = vld [vmem:[#allocation5 + $0x334] sm:$0xf]  ;;  %v11040_v31 = vld [vmem:[#allocation5 + $0x204] sm:$0xf] }
 0x10e   : > { %1897 = vmatpush.bf16.msra.mxu2 %v7930_v13  ;;  %v8271_v13 = vld [vmem:[#allocation5 + $0x3f8] sm:$0xf0]  ;;  %v11094_v63 = vld [vmem:[#allocation5 + $0x3b4] sm:$0xf]  ;;  %v11056_v33 = vld [vmem:[#allocation5 + $0x284] sm:$0xf] }
 0x10f   : > { %1911 = vmatpush.bf16.msra.mxu3 %v7994_v18  ;;  %v8082_v18 = vor.u32 %v11054_v2, %v8079_v3  ;;  %v8242_v8 = vor.u32 %v11094_v63, %v8239_v0  ;;  %v8087_v35 = vld [vmem:[#allocation5 + $0x288] sm:$0xf0]  ;;  %s10963_s25 = sshll.u32 (%p12860_p11), %s13553_s26, 1 }
 0x110   : > { %1870 = vmatpush.bf16.msra.mxu0 %v7794_v24  ;;  %v8199_v24 = vld [vmem:[#allocation5 + $0x368] sm:$0xf0]  ;;  %s7463_s23 = ssub.s32 (%p12860_p11), 3, %s10963_s25 }
 0x111   : > { %1884 = vmatpush.bf16.msra.mxu1 %v7858_v25  ;;  %v11100_v25 = vld [vmem:[#allocation5 + $0x3e4] sm:$0xf]  ;;  %p7464_p9 = scmp.lt.s32.totalorder (%p12860_p11), %s7463_s23, 2 }
 0x112   : > { %1898 = vmatpush.bf16.msra.mxu2 %v7922_v26  ;;  %v8274_v26 = vor.u32 %v11102_v9, %v8271_v13  ;;  %v8266_v34 = vor.u32 %v11100_v25, %v8263_v27  ;;  %v8103_v9 = vld [vmem:[#allocation5 + $0x2a8] sm:$0xf0]  ;;  %v11092_v13 = vld [vmem:[#allocation5 + $0x3a4] sm:$0xf]  ;;  %v8159_v25 = vld [vmem:[#allocation5 + $0x318] sm:$0xf0] }
 0x113   : > { %1912 = vmatpush.bf16.msra.mxu3 %v7986_v30  ;;  %v8202_v30 = vor.u32 %v11084_v21, %v8199_v24  ;;  %v11058_v21 = vld [vmem:[#allocation5 + $0x294] sm:$0xf]  ;;  %v8223_v27 = vld [vmem:[#allocation5 + $0x398] sm:$0xf0] }
 0x114   : > { %1871 = vmatpush.bf16.msra.mxu0 %v7786_v36  ;;  %v11082_v36 = vld [vmem:[#allocation5 + $0x354] sm:$0xf] }
 0x115   : > { %1885 = vmatpush.bf16.msra.mxu1 %v7850_v37  ;;  %v8191_v37 = vld [vmem:[#allocation5 + $0x358] sm:$0xf0]  ;;  %v11074_v24 = vld [vmem:[#allocation5 + $0x314] sm:$0xf] }
 0x116   : > { %1899 = vmatpush.bf16.msra.mxu2 %v7914_v38  ;;  %v11098_v38 = vld [vmem:[#allocation5 + $0x3d4] sm:$0xf] }
 0x117   : > { %1913 = vmatpush.bf16.msra.mxu3 %v7978_v45  ;;  %v8194_v45 = vor.u32 %v11082_v36, %v8191_v37  ;;  %v8258_v49 = vor.u32 %v11098_v38, %v8255_v40  ;;  %v11072_v36 = vld [vmem:[#allocation5 + $0x304] sm:$0xf]  ;;  %v8151_v37 = vld [vmem:[#allocation5 + $0x308] sm:$0xf0] }
 0x118   : > { %1872 = vmatpush.bf16.msra.mxu0 %v7778_v52  ;;  %v8183_v52 = vld [vmem:[#allocation5 + $0x348] sm:$0xf0]  ;;  %v11088_v38 = vld [vmem:[#allocation5 + $0x384] sm:$0xf] }
 0x119   : > { %1886 = vmatpush.bf16.msra.mxu1 %v7842_v56  ;;  %v8047_v56 = vld [vmem:[#allocation5 + $0x238] sm:$0xf0]  ;;  %v8215_v40 = vld [vmem:[#allocation5 + $0x388] sm:$0xf0] }
 0x11a   : > { %1900 = vmatpush.bf16.msra.mxu2 %v7906_v57  ;;  %v11062_v57 = vld [vmem:[#allocation5 + $0x2b4] sm:$0xf]  ;;  %v8050_v2 = vor.u32 %v11046_v55, %v8047_v56 }
 0x11b   : > { %1914 = vmatpush.bf16.msra.mxu3 %v7970_v62  ;;  %v8175_v62 = vld [vmem:[#allocation5 + $0x338] sm:$0xf0]  ;;  %v8114_v3 = vor.u32 %v11062_v57, %v8111_v60 }
 0x11c   : > { %1873 = vmatpush.bf16.msra.mxu0 %v7770_v6  ;;  %v8178_v4 = vor.u32 %v11078_v61, %v8175_v62  ;;  %v8039_v6 = vld [vmem:[#allocation5 + $0x228] sm:$0xf0] }
 0x11d   : > { %1887 = vmatpush.bf16.msra.mxu1 %v7834_v11  ;;  %v11076_v11 = vld [vmem:[#allocation5 + $0x324] sm:$0xf]  ;;  %v8042_v15 = vor.u32 %v11044_v5, %v8039_v6 }
 0x11e   : > { %1901 = vmatpush.bf16.msra.mxu2 %v7898_v12  ;;  %v8167_v12 = vld [vmem:[#allocation5 + $0x328] sm:$0xf0] }
 0x11f   : > { %1915 = vmatpush.bf16.msra.mxu3 %v7962_v16  ;;  %1874 = vmatmul.bf16.vlgmr.msra.gmra.mxu0 %v13075_v58  ;;  %v8247_v58 = vld [vmem:[#allocation5 + $0x3c8] sm:$0xf0]  ;;  %v8106_v16 = vor.u32 %v11060_v7, %v8103_v9 }
 0x120   : > { %1922 = vmatpush.bf16.msrb.mxu0 %v8082_v18  ;;  %1888 = vmatmul.bf16.vlgmr.msra.gmra.mxu1 %v13085_v10  ;;  %v8186_v10 = vor.u32 %v11080_v51, %v8183_v52  ;;  %v8250_v59 = vor.u32 %v11096_v53, %v8247_v58  ;;  %v8170_v18 = vor.u32 %v11076_v11, %v8167_v12  ;;  %v11105_v53 = vld [vmem:[%s13549_s5 + $0x8] sm:$0xff] }
 0x121   : > { %1936 = vmatpush.bf16.msrb.mxu1 %v8146_v22  ;;  %1902 = vmatmul.bf16.vlgmr.msra.gmra.mxu2 %v13078_v1  ;;  %v11064_v1 = vld [vmem:[#allocation5 + $0x2c4] sm:$0xf]  ;;  %v8234_v22 = vor.u32 %v11092_v13, %v8231_v14 }
 0x122   : > { %1950 = vmatpush.bf16.msrb.mxu2 %v8210_v23  ;;  %1916 = vmatmul.bf16.vlgmr.msra.gmra.mxu3 %v13088_v17  ;;  %v8058_v17 = vor.u32 %v11048_v46, %v8055_v48  ;;  %v8122_v54 = vor.u32 %v11064_v1, %v8119_v50  ;;  %v8095_v23 = vld [vmem:[#allocation5 + $0x298] sm:$0xf0]  ;;  %v8218_v46 = vor.u32 %v11088_v38, %v8215_v40  ;;  %v11110_v1 = vld [vmem:[%s13549_s5 + $0x30] sm:$0xff]  ;;  %v13138_v50 = vld [vmem:[#allocation7] sm:$0x3] }
 0x123   : > { %1964 = vmatpush.bf16.msrb.mxu3 %v8274_v26  ;;  %v11090_v26 = vld [vmem:[#allocation5 + $0x394] sm:$0xf]  ;;  %v11111_v48 = vld [vmem:[%s13549_s5 + $0x38] sm:$0xff]  ;;  %v1110_v52 = vperm.slane %v13138_v50, 0 }
 0x124   : > { %1923 = vmatpush.bf16.msrb.mxu0 %v8074_v28  ;;  %v8034_v28 = vor.u32 %v11042_v19, %v8031_v20 }
 0x125   : > { %1937 = vmatpush.bf16.msrb.mxu1 %v8138_v29  ;;  %v8098_v29 = vor.u32 %v11058_v21, %v8095_v23 }
 0x126   : > { %1951 = vmatpush.bf16.msrb.mxu2 %v8202_v30  ;;  %v8162_v30 = vor.u32 %v11074_v24, %v8159_v25 }
 0x127   : > { %1965 = vmatpush.bf16.msrb.mxu3 %v8266_v34  ;;  %v8226_v34 = vor.u32 %v11090_v26, %v8223_v27  ;;  %v11117_v27 = vld [vmem:[%s13549_s5 + $0x68] sm:$0xff] }
 0x128   : > { %1924 = vmatpush.bf16.msrb.mxu0 %v8066_v41  ;;  %v8026_v41 = vor.u32 %v11040_v31, %v8023_v32  ;;  %v11113_v32 = vld [vmem:[%s13549_s5 + $0x48] sm:$0xff] }
 0x129   : > { %1938 = vmatpush.bf16.msrb.mxu1 %v8130_v42  ;;  %v8090_v42 = vor.u32 %v11056_v33, %v8087_v35  ;;  %v11112_v35 = vld [vmem:[%s13549_s5 + $0x40] sm:$0xff] }
 0x12a   : > { %1952 = vmatpush.bf16.msrb.mxu2 %v8194_v45  ;;  %v8154_v45 = vor.u32 %v11072_v36, %v8151_v37 }
 0x12b   : > { %1966 = vmatpush.bf16.msrb.mxu3 %v8258_v49  ;;  %v11106_v49 = vld [vmem:[%s13549_s5 + $0x10] sm:$0xff] }
 0x12c   : > { %1925 = vmatpush.bf16.msrb.mxu0 %v8058_v17 }
 0x12d   : > { %1939 = vmatpush.bf16.msrb.mxu1 %v8122_v54 }
 0x12e   : > { %1953 = vmatpush.bf16.msrb.mxu2 %v8186_v10  ;;  %v11104_v10 = vld [vmem:[%s13549_s5] sm:$0xff] }
 0x12f   : > { %1967 = vmatpush.bf16.msrb.mxu3 %v8250_v59 }
 0x130   : > { %1926 = vmatpush.bf16.msrb.mxu0 %v8050_v2 }
 0x131   : > { %1940 = vmatpush.bf16.msrb.mxu1 %v8114_v3 }
 0x132   : > { %1954 = vmatpush.bf16.msrb.mxu2 %v8178_v4 }
 0x133   : > { %1968 = vmatpush.bf16.msrb.mxu3 %v8242_v8 }
 0x134   : > { %1927 = vmatpush.bf16.msrb.mxu0 %v8042_v15 }
 0x135   : > { %1941 = vmatpush.bf16.msrb.mxu1 %v8106_v16 }
 0x136   : > { %1955 = vmatpush.bf16.msrb.mxu2 %v8170_v18  ;;  %v11119_v18 = vld [vmem:[%s13549_s5 + $0x78] sm:$0xff] }
 0x137   : > { %1969 = vmatpush.bf16.msrb.mxu3 %v8234_v22  ;;  %v11118_v22 = vld [vmem:[%s13549_s5 + $0x70] sm:$0xff] }
 0x138   : > { %1928 = vmatpush.bf16.msrb.mxu0 %v8034_v28  ;;  %v11116_v28 = vld [vmem:[%s13549_s5 + $0x60] sm:$0xff] }
 0x139   : > { %1942 = vmatpush.bf16.msrb.mxu1 %v8098_v29  ;;  %v11115_v29 = vld [vmem:[%s13549_s5 + $0x58] sm:$0xff] }
 0x13a   : > { %1956 = vmatpush.bf16.msrb.mxu2 %v8162_v30  ;;  %v11114_v30 = vld [vmem:[%s13549_s5 + $0x50] sm:$0xff] }
 0x13b   : > { %1970 = vmatpush.bf16.msrb.mxu3 %v8226_v34  ;;  %v1111_v34 = vperm.slane %v13138_v50, 1 }
 0x13c   : > { %1929 = vmatpush.bf16.msrb.mxu0 %v8026_v41 }
 0x13d   : > { %1943 = vmatpush.bf16.msrb.mxu1 %v8090_v42 }
 0x13e   : > { %1957 = vmatpush.bf16.msrb.mxu2 %v8154_v45 }
 0x13f   : > { %1971 = vmatpush.bf16.msrb.mxu3 %v8218_v46  ;;  %1930 = vmatmul.bf16.vlgmr.msrb.gmra.mxu0 %v13100_v39  ;;  %v11109_v39 = vld [vmem:[%s13549_s5 + $0x28] sm:$0xff] }
 0x140   : > { %1944 = vmatmul.bf16.vlgmr.msrb.gmra.mxu1 %v13104_v44  ;;  %2116 = vmatpush.bf16.msra.mxu0 %v11111_v48  ;;  %v11107_v44 = vld [vmem:[%s13549_s5 + $0x18] sm:$0xff] }
 0x141   : > { %1958 = vmatmul.bf16.vlgmr.msrb.gmra.mxu2 %v13102_v43  ;;  %v11108_v43 = vld [vmem:[%s13549_s5 + $0x20] sm:$0xff]  ;;  %2130 = vmatpush.bf16.msra.mxu1 %v11119_v18 }
 0x142   : > { %1972 = vmatmul.bf16.vlgmr.msrb.gmra.mxu3 %v13106_v47 }
 0x144   : > { %2117 = vmatpush.bf16.msra.mxu0 %v11110_v1 }
 0x145   : > { %2131 = vmatpush.bf16.msra.mxu1 %v11118_v22 }
 0x148   : > { %2118 = vmatpush.bf16.msra.mxu0 %v11109_v39 }
 0x149   : > { %2132 = vmatpush.bf16.msra.mxu1 %v11117_v27 }
 0x14c   : > { %2119 = vmatpush.bf16.msra.mxu0 %v11108_v43 }
 0x14d   : > { %2133 = vmatpush.bf16.msra.mxu1 %v11116_v28 }
 0x150   : > { %2120 = vmatpush.bf16.msra.mxu0 %v11107_v44 }
 0x151   : > { %2134 = vmatpush.bf16.msra.mxu1 %v11115_v29 }
 0x154   : > { %2121 = vmatpush.bf16.msra.mxu0 %v11106_v49 }
 0x155   : > { %2135 = vmatpush.bf16.msra.mxu1 %v11114_v30  ;;  %v2237_v30 = vld [vmem:[#allocation13] sm:$0x3] }
 0x158   : > { %2122 = vmatpush.bf16.msra.mxu0 %v11105_v53 }
 0x159   : > { %2136 = vmatpush.bf16.msra.mxu1 %v11113_v32 }
 0x15c   : > { %v1763_v47 = vpop.f32.mrf.mxu0  ;;  %2123 = vmatpush.bf16.msra.mxu0 %v11104_v10 }
 0x15d   : > { %v1777_v51 = vpop.f32.mrf.mxu1  ;;  %v1764_v17 = vadd.f32 %v1763_v47, %v1110_v52  ;;  %2137 = vmatpush.bf16.msra.mxu1 %v11112_v35 }
 0x15f   : > { %v1778_v57 = vadd.f32 %v1777_v51, %v1764_v17 }
 0x164   : > { %v1791_v58 = vpop.f32.mrf.mxu2  ;;  %v1765_v55 = vpop.f32.mrf.mxu0 }
 0x165   : > { %v1805_v54 = vpop.f32.mrf.mxu3  ;;  %v1779_v56 = vpop.f32.mrf.mxu1  ;;  %v1766_v59 = vadd.f32 %v1765_v55, %v1110_v52  ;;  %v1792_v60 = vadd.f32 %v1791_v58, %v1778_v57 }
 0x167   : > { %v1780_v62 = vadd.f32 %v1779_v56, %v1766_v59  ;;  %v1806_v0 = vadd.f32 %v1805_v54, %v1792_v60 }
 0x16c   : > { %v1793_v61 = vpop.f32.mrf.mxu2 }
 0x16d   : > { %v1807_v63 = vpop.f32.mrf.mxu3  ;;  %v1794_v4 = vadd.f32 %v1793_v61, %v1780_v62 }
 0x16f   : > { %v1808_v6 = vadd.f32 %v1807_v63, %v1794_v4  ;;  %v11122_v4 = vld [vmem:[%s13550_s7 + $0x10] sm:$0xff] }
 0x17c   : > { %v1819_v2 = vpop.f32.mrf.mxu0 }
 0x17d   : > { %v1833_v3 = vpop.f32.mrf.mxu1  ;;  %v1820_v5 = vadd.f32 %v1819_v2, %v1806_v0 }
 0x17f   : > { %v1834_v8 = vadd.f32 %v1833_v3, %v1820_v5  ;;  %v11123_v3 = vld [vmem:[%s13550_s7 + $0x18] sm:$0xff]  ;;  %v11121_v5 = vld [vmem:[%s13550_s7 + $0x8] sm:$0xff] }
 0x180   : > { %2191 = vmatpush.bf16.msra.mxu2 %v11123_v3  ;;  %v8388_v3 = vld [vmem:[#allocation22 + $0x28] sm:$0xf0] }
 0x184   : > { %v1847_v7 = vpop.f32.mrf.mxu2  ;;  %v1821_v9 = vpop.f32.mrf.mxu0  ;;  %2192 = vmatpush.bf16.msra.mxu2 %v11122_v4 }
 0x185   : > { %v1861_v11 = vpop.f32.mrf.mxu3  ;;  %v1822_v12 = vadd.f32 %v1821_v9, %v1808_v6  ;;  %v1835_v13 = vpop.f32.mrf.mxu1  ;;  %v1848_v14 = vadd.f32 %v1847_v7, %v1834_v8  ;;  %v11120_v6 = vld [vmem:[%s13550_s7] sm:$0xff] }
 0x186   : > { %v11997_v9 = vld [vmem:[#allocation8] ss:$0 sm:$0xff] }
 0x187   : > { %v1836_v15 = vadd.f32 %v1835_v13, %v1822_v12  ;;  %v1862_v19 = vadd.f32 %v1861_v11, %v1848_v14 }
 0x188   : > { %2193 = vmatpush.bf16.msra.mxu2 %v11121_v5  ;;  %v8378_v5 = vld [vmem:[#allocation22 + $0x10] sm:$0xf] }
 0x189   : > { %v1978_v24 = vmax.f32 %v1862_v19, 0.0 }
 0x18c   : > { %v1849_v16 = vpop.f32.mrf.mxu2  ;;  %2194 = vmatpush.bf16.msra.mxu2 %v11120_v6  ;;  %v11129_v6 = vld [vmem:[#allocation22 + $0x14] sm:$0xf0] }
 0x18d   : > { %v1850_v20 = vadd.f32 %v1849_v16, %v1836_v15  ;;  %v1863_v21 = vpop.f32.mrf.mxu3 }
 0x18f   : > { %v1864_v23 = vadd.f32 %v1863_v21, %v1850_v20  ;;  %v11124_v21 = vld [vmem:[%s13551_s30] sm:$0xff] }
 0x190   : > { %2227 = vmatpush.bf16.msra.mxu3 %v11124_v21  ;;  %v11190_v21 = vld [vmem:[#allocation25 + $0x1c4] sm:$0xf] }
 0x191   : > { %v1980_v25 = vmax.f32 %v1864_v23, 0.0  ;;  %v11998_v23 = vld [vmem:[#allocation10] ss:$0 sm:$0xff] }
 0x193   : > { %v1982_v26 = vpack.c.bf16 %v1980_v25, %v1978_v24 }
 0x195   : > { %2124 = vmatmul.bf16.vlgmr.msra.gmra.mxu0 %v1982_v26 }
 0x19c   : > { %v1875_v31 = vpop.f32.mrf.mxu0 }
 0x19d   : > { %v1889_v33 = vpop.f32.mrf.mxu1  ;;  %v1876_v38 = vadd.f32 %v1875_v31, %v1111_v34  ;;  %v2248_v31 = vsel %vm2246_vm2, %v2237_v30, 0 }
 0x19e   : > { %2257 = vmatpush.bf16.msrb.mxu2 %v2248_v31  ;;  %v11258_v31 = vld [vmem:[#allocation25 + $0x3dc] sm:$0xf0] }
 0x19f   : > { %v1890_v42 = vadd.f32 %v1889_v33, %v1876_v38  ;;  %v11999_v33 = vld [vmem:[#allocation11] ss:$0 sm:$0xff] }
 0x1a4   : > { %v1903_v36 = vpop.f32.mrf.mxu2  ;;  %v1877_v40 = vpop.f32.mrf.mxu0 }
 0x1a5   : > { %v1917_v37 = vpop.f32.mrf.mxu3  ;;  %v1891_v41 = vpop.f32.mrf.mxu1  ;;  %v1878_v45 = vadd.f32 %v1877_v40, %v1111_v34  ;;  %v1904_v48 = vadd.f32 %v1903_v36, %v1890_v42 }
 0x1a7   : > { %v1892_v1 = vadd.f32 %v1891_v41, %v1878_v45  ;;  %v1918_v47 = vadd.f32 %v1917_v37, %v1904_v48  ;;  %v2267_v41 = vld [vmem:[#allocation16] sm:$0x3] }
 0x1a8   : > { %v2276_v42 = vsel %vm2246_vm2, %v2267_v41, 0  ;;  %v8566_v41 = vld [vmem:[#allocation25 + $0x160] sm:$0xf0] }
 0x1a9   : > { %2285 = vmatpush.bf16.msrb.mxu3 %v2276_v42  ;;  %v8852_v42 = vld [vmem:[#allocation25 + $0x380] sm:$0xf] }
 0x1ac   : > { %v1905_v46 = vpop.f32.mrf.mxu2 }
 0x1ad   : > { %v1919_v39 = vpop.f32.mrf.mxu3  ;;  %v1906_v49 = vadd.f32 %v1905_v46, %v1892_v1  ;;  %v12000_v46 = vld [vmem:[#allocation14] ss:$0 sm:$0xff] }
 0x1af   : > { %v1920_v52 = vadd.f32 %v1919_v39, %v1906_v49  ;;  %v11125_v49 = vld [vmem:[#allocation19] sm:$0xff] }
 0x1b0   : > { %2317 = vmatpush.bf16.msrb.mxu0 %v11125_v49 }
 0x1bc   : > { %v1931_v43 = vpop.f32.mrf.mxu0 }
 0x1bd   : > { %v1945_v44 = vpop.f32.mrf.mxu1  ;;  %v1932_v50 = vadd.f32 %v1931_v43, %v1918_v47 }
 0x1bf   : > { %v1946_v17 = vadd.f32 %v1945_v44, %v1932_v50 }
 0x1c4   : > { %v1959_v51 = vpop.f32.mrf.mxu2  ;;  %v1933_v58 = vpop.f32.mrf.mxu0 }
 0x1c5   : > { %v1973_v53 = vpop.f32.mrf.mxu3  ;;  %v1934_v54 = vadd.f32 %v1933_v58, %v1920_v52  ;;  %v1960_v10 = vadd.f32 %v1959_v51, %v1946_v17  ;;  %v1947_v55 = vpop.f32.mrf.mxu1  ;;  %v12001_v51 = vld [vmem:[#allocation17] ss:$0 sm:$0xff] }
 0x1c7   : > { %v1948_v56 = vadd.f32 %v1947_v55, %v1934_v54  ;;  %v1974_v59 = vadd.f32 %v1973_v53, %v1960_v10  ;;  %v8394_v55 = vld [vmem:[#allocation22 + $0x30] sm:$0xf] }
 0x1c9   : > { %v1979_v63 = vmax.f32 %v1974_v59, 0.0 }
 0x1cc   : > { %v1961_v57 = vpop.f32.mrf.mxu2 }
 0x1cd   : > { %v1962_v60 = vadd.f32 %v1961_v57, %v1948_v56  ;;  %v1975_v61 = vpop.f32.mrf.mxu3  ;;  %v11133_v56 = vld [vmem:[#allocation22 + $0x34] sm:$0xf0]  ;;  %v11132_v57 = vld [vmem:[#allocation22 + $0x34] sm:$0xf] }
 0x1ce   : > { %v8395_v59 = vor.u32 %v11133_v56, %v8394_v55  ;;  %v8788_v55 = vld [vmem:[#allocation25 + $0x300] sm:$0xf] }
 0x1cf   : > { %v1976_v62 = vadd.f32 %v1975_v61, %v1962_v60  ;;  %v8396_v60 = vld [vmem:[#allocation22 + $0x38] sm:$0xf0] }
 0x1d0   : > { %v8399_v61 = vor.u32 %v11132_v57, %v8396_v60  ;;  %2388 = vmatpush.bf16.msrb.mxu1 %v8395_v59  ;;  %v11234_v57 = vld [vmem:[#allocation25 + $0x31c] sm:$0xf0]  ;;  %v11230_v59 = vld [vmem:[#allocation25 + $0x304] sm:$0xf] }
 0x1d1   : > { %v1981_v0 = vmax.f32 %v1976_v62, 0.0  ;;  %v8386_v62 = vld [vmem:[#allocation22 + $0x20] sm:$0xf]  ;;  %v8790_v60 = vld [vmem:[#allocation25 + $0x320] sm:$0xf0] }
 0x1d3   : > { %v1983_v2 = vpack.c.bf16 %v1981_v0, %v1979_v63  ;;  %v11131_v63 = vld [vmem:[#allocation22 + $0x24] sm:$0xf0]  ;;  %v11130_v0 = vld [vmem:[#allocation22 + $0x24] sm:$0xf] }
 0x1d4   : > { %v8391_v4 = vor.u32 %v11130_v0, %v8388_v3  ;;  %v11158_v0 = vld [vmem:[#allocation25 + $0xc4] sm:$0xf]  ;;  %v8789_v3 = vor.u32 %v11234_v57, %v8788_v55  ;;  %v8892_v55 = vld [vmem:[#allocation25 + $0x3c8] sm:$0xf] }
 0x1d5   : > { %2138 = vmatmul.bf16.vlgmr.msra.gmra.mxu1 %v1983_v2  ;;  %v8387_v2 = vor.u32 %v11131_v63, %v8386_v62  ;;  %v8500_v62 = vld [vmem:[#allocation25 + $0xc0] sm:$0xf] }
 0x1d6   : > { %v11162_v63 = vld [vmem:[#allocation25 + $0xdc] sm:$0xf0] }
 0x1d7   : > { %2389 = vmatpush.bf16.msrb.mxu1 %v8387_v2  ;;  %v8502_v2 = vld [vmem:[#allocation25 + $0xe0] sm:$0xf0] }
 0x212   : > { %v2125_v7 = vpop.f32.mrf.mxu0 }
 0x213   : > { %v2126_v12 = vadd.f32 %v11997_v9, %v2125_v7  ;;  %v11128_v7 = vld [vmem:[#allocation22 + $0x14] sm:$0xf] }
 0x21a   : > { %v2127_v11 = vpop.f32.mrf.mxu0 }
 0x21b   : > { %v2128_v13 = vadd.f32 %v11997_v9, %v2127_v11  ;;  %v8380_v9 = vld [vmem:[#allocation22 + $0x18] sm:$0xf0] }
 0x21c   : > { %v8383_v11 = vor.u32 %v11128_v7, %v8380_v9  ;;  %v11226_v7 = vld [vmem:[#allocation25 + $0x2dc] sm:$0xf0]  ;;  %v8758_v9 = vld [vmem:[#allocation25 + $0x2e0] sm:$0xf0] }
 0x252   : > { %v2139_v8 = vpop.f32.mrf.mxu1 }
 0x253   : > { %v2140_v14 = vadd.f32 %v2139_v8, %v2126_v12  ;;  %v8379_v8 = vor.u32 %v11129_v6, %v8378_v5  ;;  %v8370_v12 = vld [vmem:[#allocation22] sm:$0xf]  ;;  %v8501_v6 = vor.u32 %v11162_v63, %v8500_v62 }
 0x254   : > { %v8756_v5 = vld [vmem:[#allocation25 + $0x2c0] sm:$0xf] }
 0x255   : > { %v2144_v18 = vmax.f32 %v2140_v14, 0.0  ;;  %2390 = vmatpush.bf16.msrb.mxu1 %v8379_v8  ;;  %v11126_v14 = vld [vmem:[#allocation22 + $0x4] sm:$0xf] }
 0x256   : > { %v11222_v8 = vld [vmem:[#allocation25 + $0x2c4] sm:$0xf] }
 0x25a   : > { %v2141_v15 = vpop.f32.mrf.mxu1 }
 0x25b   : > { %v2142_v16 = vadd.f32 %v2141_v15, %v2128_v13  ;;  %v11127_v13 = vld [vmem:[#allocation22 + $0x4] sm:$0xf0] }
 0x25c   : > { %v8371_v15 = vor.u32 %v11127_v13, %v8370_v12  ;;  %v8468_v12 = vld [vmem:[#allocation25 + $0x80] sm:$0xf] }
 0x25d   : > { %v2145_v19 = vmax.f32 %v2142_v16, 0.0  ;;  %v8372_v16 = vld [vmem:[#allocation22 + $0x8] sm:$0xf0]  ;;  %v11154_v13 = vld [vmem:[#allocation25 + $0x9c] sm:$0xf0] }
 0x25e   : > { %2391 = vmatpush.bf16.msrb.mxu1 %v8371_v15  ;;  %v11150_v15 = vld [vmem:[#allocation25 + $0x84] sm:$0xf] }
 0x25f   : > { %v2146_v20 = vpack.c.bf16 %v2145_v19, %v2144_v18  ;;  %v8375_v18 = vor.u32 %v11126_v14, %v8372_v16  ;;  %v8628_v19 = vld [vmem:[#allocation25 + $0x1c0] sm:$0xf]  ;;  %v8470_v16 = vld [vmem:[#allocation25 + $0xa0] sm:$0xf0] }
 0x261   : > { %8355 = vmatmul.msk.bf16.vlgmr.msra.gmra.mxu2 %vm2183_vm0, %v2146_v20  ;;  %v11194_v20 = vld [vmem:[#allocation25 + $0x1dc] sm:$0xf0] }
 0x262   : > { %2402 = vmatpush.bf16.msra.mxu2 %v8399_v61 }
 0x266   : > { %2403 = vmatpush.bf16.msra.mxu2 %v8391_v4  ;;  %v8793_v4 = vor.u32 %v11230_v59, %v8790_v60  ;;  %v11255_v60 = vld [vmem:[#allocation25 + $0x3cc] sm:$0xf] }
 0x26a   : > { %2404 = vmatpush.bf16.msra.mxu2 %v8383_v11  ;;  %v8505_v11 = vor.u32 %v11158_v0, %v8502_v2  ;;  %v8604_v0 = vld [vmem:[#allocation25 + $0x188] sm:$0xf] }
 0x26b   : > { %v11187_v2 = vld [vmem:[#allocation25 + $0x1a4] sm:$0xf0] }
 0x26e   : > { %2405 = vmatpush.bf16.msra.mxu2 %v8375_v18  ;;  %v8757_v18 = vor.u32 %v11226_v7, %v8756_v5  ;;  %v8606_v5 = vld [vmem:[#allocation25 + $0x1a8] sm:$0xf0] }
 0x2e4   : > { %v2196_v22 = vpop.f32.mrf.mxu2 }
 0x2e5   : > { %v2197_v24 = vadd.f32 %v11998_v23, %v2196_v22  ;;  %v8629_v22 = vor.u32 %v11194_v20, %v8628_v19  ;;  %v8761_v19 = vor.u32 %v11222_v8, %v8758_v9  ;;  %v8724_v20 = vld [vmem:[#allocation25 + $0x280] sm:$0xf]  ;;  %v8860_v9 = vld [vmem:[#allocation25 + $0x388] sm:$0xf] }
 0x2e7   : > { %v2201_v27 = vmax.f32 %v2197_v24, 0.0  ;;  %v8596_v24 = vld [vmem:[#allocation25 + $0x180] sm:$0xf] }
 0x2ec   : > { %v2198_v25 = vpop.f32.mrf.mxu2 }
 0x2ed   : > { %v2199_v26 = vadd.f32 %v11998_v23, %v2198_v25  ;;  %v8630_v23 = vld [vmem:[#allocation25 + $0x1e0] sm:$0xf0]  ;;  %v11186_v25 = vld [vmem:[#allocation25 + $0x19c] sm:$0xf0] }
 0x2ee   : > { %v8597_v30 = vor.u32 %v11186_v25, %v8596_v24  ;;  %v8726_v24 = vld [vmem:[#allocation25 + $0x2a0] sm:$0xf0]  ;;  %v12002_v25 = vld [vmem:[#allocation20] ss:$0 sm:$0xff] }
 0x2ef   : > { %v2202_v28 = vmax.f32 %v2199_v26, 0.0  ;;  %v8633_v26 = vor.u32 %v11190_v21, %v8630_v23  ;;  %v8469_v21 = vor.u32 %v11154_v13, %v8468_v12  ;;  %v11214_v23 = vld [vmem:[#allocation25 + $0x284] sm:$0xf]  ;;  %v8605_v12 = vor.u32 %v11187_v2, %v8604_v0  ;;  %v11247_v13 = vld [vmem:[#allocation25 + $0x38c] sm:$0xf] }
 0x2f0   : > { %v8732_v0 = vld [vmem:[#allocation25 + $0x288] sm:$0xf] }
 0x2f1   : > { %v2203_v29 = vpack.c.bf16 %v2202_v28, %v2201_v27  ;;  %v11182_v27 = vld [vmem:[#allocation25 + $0x184] sm:$0xf]  ;;  %3232 = vmatpush.bf16.msra.mxu1 %v8633_v26  ;;  %v8473_v26 = vor.u32 %v11150_v15, %v8470_v16  ;;  %v8572_v16 = vld [vmem:[#allocation25 + $0x148] sm:$0xf] }
 0x2f2   : > { %v8598_v28 = vld [vmem:[#allocation25 + $0x1a0] sm:$0xf0]  ;;  %v11219_v2 = vld [vmem:[#allocation25 + $0x2a4] sm:$0xf0] }
 0x2f3   : > { %8360 = vmatmul.msk.bf16.vlgmr.msra.gmra.mxu3 %vm2216_vm1, %v2203_v29  ;;  %v8884_v29 = vld [vmem:[#allocation25 + $0x3c0] sm:$0xf] }
 0x2f4   : > { %3204 = vmatpush.bf16.msra.mxu3 %v8629_v22  ;;  %v11218_v22 = vld [vmem:[#allocation25 + $0x29c] sm:$0xf0] }
 0x2f8   : > { %3205 = vmatpush.bf16.msra.mxu3 %v8597_v30  ;;  %v8438_v30 = vld [vmem:[#allocation25 + $0x60] sm:$0xf0] }
 0x376   : > { %v2229_v32 = vpop.f32.mrf.mxu3 }
 0x377   : > { %v2230_v34 = vadd.f32 %v11999_v33, %v2229_v32  ;;  %v11254_v32 = vld [vmem:[#allocation25 + $0x3c4] sm:$0xf] }
 0x379   : > { %v2234_v37 = vmax.f32 %v2230_v34, 0.0  ;;  %v8601_v34 = vor.u32 %v11182_v27, %v8598_v28  ;;  %v8436_v27 = vld [vmem:[#allocation25 + $0x40] sm:$0xf] }
 0x37a   : > { %v11146_v28 = vld [vmem:[#allocation25 + $0x5c] sm:$0xf0] }
 0x37b   : > { %3233 = vmatpush.bf16.msra.mxu1 %v8601_v34  ;;  %v8437_v34 = vor.u32 %v11146_v28, %v8436_v27  ;;  %v11167_v27 = vld [vmem:[#allocation25 + $0x10c] sm:$0xf] }
 0x37c   : > { %v8542_v28 = vld [vmem:[#allocation25 + $0x128] sm:$0xf0] }
 0x37e   : > { %v2231_v35 = vpop.f32.mrf.mxu3 }
 0x37f   : > { %v2232_v36 = vadd.f32 %v11999_v33, %v2231_v35  ;;  %v8886_v33 = vld [vmem:[#allocation25 + $0x3e0] sm:$0xf0]  ;;  %v8885_v35 = vor.u32 %v11258_v31, %v8884_v29  ;;  %v8725_v31 = vor.u32 %v11218_v22, %v8724_v20  ;;  %v8574_v20 = vld [vmem:[#allocation25 + $0x168] sm:$0xf0] }
 0x380   : > { %v11142_v29 = vld [vmem:[#allocation25 + $0x44] sm:$0xf] }
 0x381   : > { %v2235_v38 = vmax.f32 %v2232_v36, 0.0  ;;  %v8889_v36 = vor.u32 %v11254_v32, %v8886_v33  ;;  %3218 = vmatpush.bf16.msra.mxu0 %v8885_v35  ;;  %v8729_v32 = vor.u32 %v11214_v23, %v8726_v24  ;;  %v8692_v33 = vld [vmem:[#allocation25 + $0x240] sm:$0xf] }
 0x382   : > { %v11210_v35 = vld [vmem:[#allocation25 + $0x25c] sm:$0xf0] }
 0x383   : > { %v2236_v40 = vpack.c.bf16 %v2235_v38, %v2234_v37  ;;  %v8564_v37 = vld [vmem:[#allocation25 + $0x140] sm:$0xf] }
 0x384   : > { %v11178_v38 = vld [vmem:[#allocation25 + $0x15c] sm:$0xf0] }
 0x385   : > { %8361 = vmatmul.msk.bf16.vlgmr.msrb.gmra.mxu2 %vm2242_vm3, %v2236_v40  ;;  %v11174_v40 = vld [vmem:[#allocation25 + $0x144] sm:$0xf] }
 0x386   : > { %3246 = vmatpush.bf16.msrb.mxu2 %v8889_v36  ;;  %v8569_v49 = vor.u32 %v11174_v40, %v8566_v41  ;;  %v11206_v36 = vld [vmem:[#allocation25 + $0x244] sm:$0xf]  ;;  %v8441_v40 = vor.u32 %v11142_v29, %v8438_v30  ;;  %v8404_v41 = vld [vmem:[#allocation25] sm:$0xf]  ;;  %v8545_v30 = vor.u32 %v11167_v27, %v8542_v28  ;;  %v2335_v27 = vld [vmem:[#allocation23] sm:$0x3] }
 0x388   : > { %3234 = vmatpush.bf16.msra.mxu1 %v8569_v49  ;;  %v8693_v49 = vor.u32 %v11210_v35, %v8692_v33  ;;  %v11239_v33 = vld [vmem:[#allocation25 + $0x34c] sm:$0xf] }
 0x389   : > { %v8830_v35 = vld [vmem:[#allocation25 + $0x368] sm:$0xf0] }
 0x408   : > { %v2259_v45 = vpop.f32.mrf.mxu2 }
 0x409   : > { %v2260_v48 = vadd.f32 %v12000_v46, %v2259_v45  ;;  %v11250_v45 = vld [vmem:[#allocation25 + $0x39c] sm:$0xf0] }
 0x40b   : > { %v2264_v43 = vmax.f32 %v2260_v48, 0.0  ;;  %v11246_v48 = vld [vmem:[#allocation25 + $0x384] sm:$0xf] }
 0x410   : > { %v2261_v1 = vpop.f32.mrf.mxu2 }
 0x411   : > { %v2262_v39 = vadd.f32 %v12000_v46, %v2261_v1  ;;  %v8853_v46 = vor.u32 %v11250_v45, %v8852_v42  ;;  %v8854_v1 = vld [vmem:[#allocation25 + $0x3a0] sm:$0xf0]  ;;  %v11138_v42 = vld [vmem:[#allocation25 + $0x1c] sm:$0xf0] }
 0x412   : > { %v11134_v45 = vld [vmem:[#allocation25 + $0x4] sm:$0xf] }
 0x413   : > { %v2265_v44 = vmax.f32 %v2262_v39, 0.0  ;;  %v8565_v39 = vor.u32 %v11178_v38, %v8564_v37  ;;  %3219 = vmatpush.bf16.msra.mxu0 %v8853_v46  ;;  %v8694_v37 = vld [vmem:[#allocation25 + $0x260] sm:$0xf0] }
 0x415   : > { %v2266_v47 = vpack.c.bf16 %v2265_v44, %v2264_v43  ;;  %v8857_v43 = vor.u32 %v11246_v48, %v8854_v1  ;;  %v8532_v44 = vld [vmem:[#allocation25 + $0x100] sm:$0xf]  ;;  %3206 = vmatpush.bf16.msra.mxu3 %v8565_v39  ;;  %v8406_v48 = vld [vmem:[#allocation25 + $0x20] sm:$0xf0]  ;;  %v8636_v1 = vld [vmem:[#allocation25 + $0x1c8] sm:$0xf] }
 0x416   : > { %v11195_v39 = vld [vmem:[#allocation25 + $0x1e4] sm:$0xf0]  ;;  %v8409_v57 = vor.u32 %v11134_v45, %v8406_v48 }
 0x417   : > { %8362 = vmatmul.msk.bf16.vlgmr.msrb.gmra.mxu3 %vm2242_vm3, %v2266_v47  ;;  %v11170_v47 = vld [vmem:[#allocation25 + $0x11c] sm:$0xf0]  ;;  %3247 = vmatpush.bf16.msrb.mxu2 %v8857_v43  ;;  %v8637_v59 = vor.u32 %v11195_v39, %v8636_v1  ;;  %v11235_v48 = vld [vmem:[#allocation25 + $0x324] sm:$0xf0]  ;;  %v11231_v1 = vld [vmem:[#allocation25 + $0x30c] sm:$0xf] }
 0x418   : > { %v8533_v56 = vor.u32 %v11170_v47, %v8532_v44  ;;  %v11191_v44 = vld [vmem:[#allocation25 + $0x1cc] sm:$0xf] }
 0x419   : > { %v8638_v47 = vld [vmem:[#allocation25 + $0x1e8] sm:$0xf0] }
 0x41a   : > { %3207 = vmatpush.bf16.msra.mxu3 %v8533_v56  ;;  %v11259_v56 = vld [vmem:[#allocation25 + $0x3e4] sm:$0xf0]  ;;  %v8641_v63 = vor.u32 %v11191_v44, %v8638_v47 }
 0x41b   : > { %v8893_v7 = vor.u32 %v11259_v56, %v8892_v55  ;;  %v8476_v47 = vld [vmem:[#allocation25 + $0x88] sm:$0xf]  ;;  %v8766_v55 = vld [vmem:[#allocation25 + $0x2e8] sm:$0xf0] }
 0x41e   : > { %3208 = vmatpush.bf16.msra.mxu3 %v8501_v6 }
 0x422   : > { %3209 = vmatpush.bf16.msra.mxu3 %v8469_v21 }
 0x426   : > { %3210 = vmatpush.bf16.msra.mxu3 %v8437_v34 }
 0x49a   : > { %v2287_v50 = vpop.f32.mrf.mxu3 }
 0x49b   : > { %v2288_v52 = vadd.f32 %v12001_v51, %v2287_v50  ;;  %v8820_v50 = vld [vmem:[#allocation25 + $0x340] sm:$0xf] }
 0x49d   : > { %v2292_v17 = vmax.f32 %v2288_v52, 0.0  ;;  %v11238_v52 = vld [vmem:[#allocation25 + $0x344] sm:$0xf] }
 0x4a2   : > { %v2289_v53 = vpop.f32.mrf.mxu3 }
 0x4a3   : > { %v2290_v58 = vadd.f32 %v12001_v51, %v2289_v53  ;;  %v11242_v51 = vld [vmem:[#allocation25 + $0x35c] sm:$0xf0]  ;;  %v11166_v53 = vld [vmem:[#allocation25 + $0x104] sm:$0xf] }
 0x4a5   : > { %v2293_v54 = vmax.f32 %v2290_v58, 0.0  ;;  %v8534_v58 = vld [vmem:[#allocation25 + $0x120] sm:$0xf0] }
 0x4a6   : > { %v8537_v61 = vor.u32 %v11166_v53, %v8534_v58  ;;  %v11202_v53 = vld [vmem:[#allocation25 + $0x21c] sm:$0xf0]  ;;  %v11198_v58 = vld [vmem:[#allocation25 + $0x204] sm:$0xf] }
 0x4a7   : > { %v2294_v10 = vpack.c.bf16 %v2293_v54, %v2292_v17  ;;  %v8822_v17 = vld [vmem:[#allocation25 + $0x360] sm:$0xf0]  ;;  %v8821_v54 = vor.u32 %v11242_v51, %v8820_v50  ;;  %v8697_v50 = vor.u32 %v11206_v36, %v8694_v37  ;;  %v8660_v51 = vld [vmem:[#allocation25 + $0x200] sm:$0xf]  ;;  %v8833_v36 = vor.u32 %v11239_v33, %v8830_v35  ;;  %v8508_v37 = vld [vmem:[#allocation25 + $0xc8] sm:$0xf] }
 0x4a8   : > { %3235 = vmatpush.bf16.msra.mxu1 %v8537_v61  ;;  %v8894_v61 = vld [vmem:[#allocation25 + $0x3e8] sm:$0xf0] }
 0x4a9   : > { %8367 = vmatmul.msk.bf16.vlgmr.msrb.gmra.mxu0 %vm2216_vm1, %v2294_v10  ;;  %v8825_v10 = vor.u32 %v11238_v52, %v8822_v17  ;;  %v8405_v52 = vor.u32 %v11138_v42, %v8404_v41  ;;  %v8662_v17 = vld [vmem:[#allocation25 + $0x220] sm:$0xf0]  ;;  %v8897_v8 = vor.u32 %v11255_v60, %v8894_v61  ;;  %v8510_v42 = vld [vmem:[#allocation25 + $0xe8] sm:$0xf0] }
 0x4aa   : > { %3220 = vmatpush.bf16.msra.mxu0 %v8821_v54  ;;  %v8665_v6 = vor.u32 %v11198_v58, %v8662_v17  ;;  %v8764_v58 = vld [vmem:[#allocation25 + $0x2c8] sm:$0xf]  ;;  %v11143_v60 = vld [vmem:[#allocation25 + $0x4c] sm:$0xf] }
 0x4ab   : > { %3248 = vmatpush.bf16.msrb.mxu2 %v8825_v10  ;;  %3211 = vmatpush.bf16.msra.mxu3 %v8405_v52  ;;  %v8478_v52 = vld [vmem:[#allocation25 + $0xa8] sm:$0xf0]  ;;  %v11227_v17 = vld [vmem:[#allocation25 + $0x2e4] sm:$0xf0] }
 0x4ac   : > { %3236 = vmatpush.bf16.msra.mxu1 %v8505_v11  ;;  %v11251_v11 = vld [vmem:[#allocation25 + $0x3a4] sm:$0xf0] }
 0x4ad   : > { %v8861_v21 = vor.u32 %v11251_v11, %v8860_v9  ;;  %v11135_v9 = vld [vmem:[#allocation25 + $0xc] sm:$0xf] }
 0x4ae   : > { %3221 = vmatpush.bf16.msra.mxu0 %v8789_v3  ;;  %v8661_v3 = vor.u32 %v11202_v53, %v8660_v51 }
 0x4af   : > { %3249 = vmatpush.bf16.msrb.mxu2 %v8793_v4  ;;  %v11183_v4 = vld [vmem:[#allocation25 + $0x18c] sm:$0xf]  ;;  %3260 = vmatpush.bf16.msrb.mxu3 %v8637_v59  ;;  %v11147_v59 = vld [vmem:[#allocation25 + $0x64] sm:$0xf0] }
 0x4b0   : > { %3237 = vmatpush.bf16.msra.mxu1 %v8473_v26  ;;  %v8609_v15 = vor.u32 %v11183_v4, %v8606_v5  ;;  %v11171_v26 = vld [vmem:[#allocation25 + $0x124] sm:$0xf0]  ;;  %v8733_v4 = vor.u32 %v11219_v2, %v8732_v0  ;;  %v8734_v5 = vld [vmem:[#allocation25 + $0x2a8] sm:$0xf0]  ;;  %v11252_v0 = vld [vmem:[#allocation25 + $0x3ac] sm:$0xf0] }
 0x4b1   : > { %v11248_v2 = vld [vmem:[#allocation25 + $0x394] sm:$0xf] }
 0x4b2   : > { %3222 = vmatpush.bf16.msra.mxu0 %v8757_v18  ;;  %v11179_v18 = vld [vmem:[#allocation25 + $0x164] sm:$0xf0] }
 0x4b3   : > { %3250 = vmatpush.bf16.msrb.mxu2 %v8761_v19  ;;  %v11175_v19 = vld [vmem:[#allocation25 + $0x14c] sm:$0xf]  ;;  %3261 = vmatpush.bf16.msrb.mxu3 %v8605_v12  ;;  %v8573_v23 = vor.u32 %v11179_v18, %v8572_v16 }
 0x4b4   : > { %3238 = vmatpush.bf16.msra.mxu1 %v8441_v40  ;;  %v8577_v24 = vor.u32 %v11175_v19, %v8574_v20  ;;  %v11159_v40 = vld [vmem:[#allocation25 + $0xcc] sm:$0xf] }
 0x4b5   : > { %v8513_v45 = vor.u32 %v11159_v40, %v8510_v42  ;;  %v8414_v12 = vld [vmem:[#allocation25 + $0x28] sm:$0xf0] }
 0x4b6   : > { %3223 = vmatpush.bf16.msra.mxu0 %v8725_v31  ;;  %v8828_v31 = vld [vmem:[#allocation25 + $0x348] sm:$0xf]  ;;  %v11207_v16 = vld [vmem:[#allocation25 + $0x24c] sm:$0xf] }
 0x4b7   : > { %3251 = vmatpush.bf16.msrb.mxu2 %v8729_v32  ;;  %3262 = vmatpush.bf16.msrb.mxu3 %v8573_v23  ;;  %v11243_v32 = vld [vmem:[#allocation25 + $0x364] sm:$0xf0]  ;;  %v8702_v18 = vld [vmem:[#allocation25 + $0x268] sm:$0xf0] }
 0x4b8   : > { %3239 = vmatpush.bf16.msra.mxu1 %v8409_v57  ;;  %v8829_v34 = vor.u32 %v11243_v32, %v8828_v31  ;;  %v8444_v57 = vld [vmem:[#allocation25 + $0x48] sm:$0xf]  ;;  %v8705_v20 = vor.u32 %v11207_v16, %v8702_v18  ;;  %v2338_v32 = vperm.slane %v2335_v27, 1  ;;  %v8838_v16 = vld [vmem:[#allocation25 + $0x370] sm:$0xf0] }
 0x4b9   : > { %v8445_v61 = vor.u32 %v11147_v59, %v8444_v57  ;;  %v11176_v57 = vld [vmem:[#allocation25 + $0x154] sm:$0xf] }
 0x4ba   : > { %3224 = vmatpush.bf16.msra.mxu0 %v8693_v49  ;;  %v11155_v49 = vld [vmem:[#allocation25 + $0xa4] sm:$0xf0]  ;;  %v8582_v59 = vld [vmem:[#allocation25 + $0x170] sm:$0xf0] }
 0x4bb   : > { %3252 = vmatpush.bf16.msrb.mxu2 %v8697_v50  ;;  %v11151_v50 = vld [vmem:[#allocation25 + $0x8c] sm:$0xf]  ;;  %v8477_v51 = vor.u32 %v11155_v49, %v8476_v47  ;;  %v8900_v49 = vld [vmem:[#allocation25 + $0x3d0] sm:$0xf] }
 0x4bc   : > { %v8481_v53 = vor.u32 %v11151_v50, %v8478_v52  ;;  %v11256_v52 = vld [vmem:[#allocation25 + $0x3d4] sm:$0xf] }
 0x4be   : > { %3225 = vmatpush.bf16.msra.mxu0 %v8661_v3  ;;  %v11215_v3 = vld [vmem:[#allocation25 + $0x28c] sm:$0xf] }
 0x4bf   : > { %3253 = vmatpush.bf16.msrb.mxu2 %v8665_v6  ;;  %v8737_v6 = vor.u32 %v11215_v3, %v8734_v5  ;;  %v8870_v3 = vld [vmem:[#allocation25 + $0x3b0] sm:$0xf0]  ;;  %v8585_v5 = vor.u32 %v11176_v57, %v8582_v59  ;;  %v8652_v57 = vld [vmem:[#allocation25 + $0x1d8] sm:$0xf] }
 0x4c0   : > { %v11197_v59 = vld [vmem:[#allocation25 + $0x1f4] sm:$0xf0] }
 0x4c2   : > { %3274 = vmatpush.bf16.msrb.mxu0 %v8893_v7  ;;  %v8412_v7 = vld [vmem:[#allocation25 + $0x8] sm:$0xf] }
 0x4c6   : > { %3275 = vmatpush.bf16.msrb.mxu0 %v8861_v21  ;;  %v8668_v21 = vld [vmem:[#allocation25 + $0x208] sm:$0xf] }
 0x4ca   : > { %3276 = vmatpush.bf16.msrb.mxu0 %v8829_v34  ;;  %v8644_v34 = vld [vmem:[#allocation25 + $0x1d0] sm:$0xf] }
 0x526   : > { %v2319_v14 = vpop.f32.mrf.mxu0 }
 0x527   : > { %v2320_v38 = vadd.f32 %v12002_v25, %v2319_v14  ;;  %v8862_v14 = vld [vmem:[#allocation25 + $0x3a8] sm:$0xf0] }
 0x528   : > { %v8865_v22 = vor.u32 %v11247_v13, %v8862_v14  ;;  %v8417_v13 = vor.u32 %v11135_v9, %v8414_v12  ;;  %v8700_v14 = vld [vmem:[#allocation25 + $0x248] sm:$0xf]  ;;  %v8550_v9 = vld [vmem:[#allocation25 + $0x130] sm:$0xf0]  ;;  %v8873_v12 = vor.u32 %v11248_v2, %v8870_v3  ;;  %v8708_v2 = vld [vmem:[#allocation25 + $0x250] sm:$0xf] }
 0x529   : > { %v2324_v54 = vmax.f32 %v2320_v38, 0.0  ;;  %v11163_v38 = vld [vmem:[#allocation25 + $0xe4] sm:$0xf0]  ;;  %v11212_v3 = vld [vmem:[#allocation25 + $0x26c] sm:$0xf0] }
 0x52a   : > { %v8509_v41 = vor.u32 %v11163_v38, %v8508_v37  ;;  %v11192_v37 = vld [vmem:[#allocation25 + $0x1d4] sm:$0xf] }
 0x52b   : > { %v8646_v38 = vld [vmem:[#allocation25 + $0x1f0] sm:$0xf0] }
 0x52e   : > { %v2321_v46 = vpop.f32.mrf.mxu0 }
 0x52f   : > { %v2322_v43 = vadd.f32 %v12002_v25, %v2321_v46  ;;  %v8540_v25 = vld [vmem:[#allocation25 + $0x108] sm:$0xf] }
 0x530   : > { %v8541_v29 = vor.u32 %v11171_v26, %v8540_v25  ;;  %v8796_v46 = vld [vmem:[#allocation25 + $0x308] sm:$0xf]  ;;  %v8670_v25 = vld [vmem:[#allocation25 + $0x228] sm:$0xf0] }
 0x531   : > { %v2325_v10 = vmax.f32 %v2322_v43, 0.0  ;;  %v8797_v39 = vor.u32 %v11235_v48, %v8796_v46  ;;  %v8798_v43 = vld [vmem:[#allocation25 + $0x328] sm:$0xf0]  ;;  %v8612_v46 = vld [vmem:[#allocation25 + $0x190] sm:$0xf] }
 0x532   : > { %3263 = vmatpush.bf16.msrb.mxu3 %v8541_v29  ;;  %v8801_v44 = vor.u32 %v11231_v1, %v8798_v43  ;;  %v2337_v29 = vperm.slane %v2335_v27, 0  ;;  %v11184_v43 = vld [vmem:[#allocation25 + $0x194] sm:$0xf]  ;;  %v11236_v27 = vld [vmem:[#allocation25 + $0x32c] sm:$0xf0] }
 0x533   : > { %v2326_v62 = vpack.c.bf16 %v2325_v10, %v2324_v54  ;;  %3277 = vmatpush.bf16.msrb.mxu0 %v8797_v39  ;;  %v11223_v54 = vld [vmem:[#allocation25 + $0x2cc] sm:$0xf]  ;;  %v8765_v10 = vor.u32 %v11227_v17, %v8764_v58  ;;  %v11188_v39 = vld [vmem:[#allocation25 + $0x1ac] sm:$0xf0] }
 0x534   : > { %v8769_v56 = vor.u32 %v11223_v54, %v8766_v55  ;;  %v8613_v58 = vor.u32 %v11188_v39, %v8612_v46  ;;  %v8580_v54 = vld [vmem:[#allocation25 + $0x150] sm:$0xf] }
 0x535   : > { %8400 = vmatmul.msk.bf16.vlgmr.msrb.gmra.mxu1 %vm2183_vm0, %v2326_v62  ;;  %8401 = vmatmul.msk.bf16.vlgmr.msra.gmra.mxu2 %vm2183_vm0, %v2326_v62  ;;  %v8446_v62 = vld [vmem:[#allocation25 + $0x68] sm:$0xf0]  ;;  %v11148_v39 = vld [vmem:[#allocation25 + $0x6c] sm:$0xf0] }
 0x536   : > { %3288 = vmatpush.bf16.msrb.mxu1 %v8641_v63  ;;  %3302 = vmatpush.bf16.msra.mxu2 %v8897_v8  ;;  %v8449_v63 = vor.u32 %v11143_v60, %v8446_v62  ;;  %v11139_v8 = vld [vmem:[#allocation25 + $0x24] sm:$0xf0]  ;;  %v8868_v62 = vld [vmem:[#allocation25 + $0x390] sm:$0xf] }
 0x537   : > { %3264 = vmatpush.bf16.msrb.mxu3 %v8509_v41  ;;  %3278 = vmatpush.bf16.msrb.mxu0 %v8765_v10  ;;  %v8413_v11 = vor.u32 %v11139_v8, %v8412_v7  ;;  %v11180_v10 = vld [vmem:[#allocation25 + $0x16c] sm:$0xf0]  ;;  %v11168_v8 = vld [vmem:[#allocation25 + $0x114] sm:$0xf] }
 0x538   : > { %v11172_v7 = vld [vmem:[#allocation25 + $0x12c] sm:$0xf0] }
 0x53a   : > { %3289 = vmatpush.bf16.msrb.mxu1 %v8609_v15  ;;  %3303 = vmatpush.bf16.msra.mxu2 %v8865_v22  ;;  %v11211_v15 = vld [vmem:[#allocation25 + $0x264] sm:$0xf0] }
 0x53b   : > { %3265 = vmatpush.bf16.msrb.mxu3 %v8477_v51  ;;  %3279 = vmatpush.bf16.msrb.mxu0 %v8733_v4  ;;  %v8701_v19 = vor.u32 %v11211_v15, %v8700_v14  ;;  %v11203_v22 = vld [vmem:[#allocation25 + $0x224] sm:$0xf0]  ;;  %v11260_v51 = vld [vmem:[#allocation25 + $0x3ec] sm:$0xf0]  ;;  %v8581_v4 = vor.u32 %v11180_v10, %v8580_v54  ;;  %v11240_v15 = vld [vmem:[#allocation25 + $0x354] sm:$0xf] }
 0x53c   : > { %v8669_v23 = vor.u32 %v11203_v22, %v8668_v21  ;;  %v8901_v60 = vor.u32 %v11260_v51, %v8900_v49  ;;  %v11244_v14 = vld [vmem:[#allocation25 + $0x36c] sm:$0xf0]  ;;  %v11160_v22 = vld [vmem:[#allocation25 + $0xd4] sm:$0xf] }
 0x53d   : > { %v11164_v21 = vld [vmem:[#allocation25 + $0xec] sm:$0xf0] }
 0x53e   : > { %3290 = vmatpush.bf16.msrb.mxu1 %v8577_v24  ;;  %3304 = vmatpush.bf16.msra.mxu2 %v8833_v36  ;;  %v11199_v24 = vld [vmem:[#allocation25 + $0x20c] sm:$0xf]  ;;  %v11196_v36 = vld [vmem:[#allocation25 + $0x1ec] sm:$0xf0] }
 0x53f   : > { %3266 = vmatpush.bf16.msrb.mxu3 %v8445_v61  ;;  %3280 = vmatpush.bf16.msrb.mxu0 %v8701_v19  ;;  %v8673_v26 = vor.u32 %v11199_v24, %v8670_v25  ;;  %v8645_v42 = vor.u32 %v11196_v36, %v8644_v34  ;;  %v8553_v19 = vor.u32 %v11168_v8, %v8550_v9  ;;  %v11152_v34 = vld [vmem:[#allocation25 + $0x94] sm:$0xf]  ;;  %v11220_v51 = vld [vmem:[#allocation25 + $0x2ac] sm:$0xf0] }
 0x540   : > { %v8841_v25 = vor.u32 %v11240_v15, %v8838_v16  ;;  %v8420_v54 = vld [vmem:[#allocation25 + $0x10] sm:$0xf]  ;;  %v8653_v8 = vor.u32 %v11197_v59, %v8652_v57  ;;  %v8622_v16 = vld [vmem:[#allocation25 + $0x1b8] sm:$0xf0]  ;;  %v8812_v57 = vld [vmem:[#allocation25 + $0x318] sm:$0xf] }
 0x541   : > { %v11140_v10 = vld [vmem:[#allocation25 + $0x2c] sm:$0xf0]  ;;  %v11237_v59 = vld [vmem:[#allocation25 + $0x334] sm:$0xf0] }
 0x542   : > { %3291 = vmatpush.bf16.msrb.mxu1 %v8545_v30  ;;  %3305 = vmatpush.bf16.msra.mxu2 %v8801_v44  ;;  %v8614_v44 = vld [vmem:[#allocation25 + $0x1b0] sm:$0xf0] }
 0x543   : > { %3267 = vmatpush.bf16.msrb.mxu3 %v8413_v11  ;;  %3281 = vmatpush.bf16.msrb.mxu0 %v8669_v23  ;;  %v8617_v17 = vor.u32 %v11184_v43, %v8614_v44  ;;  %v8869_v11 = vor.u32 %v11252_v0, %v8868_v62  ;;  %v8518_v23 = vld [vmem:[#allocation25 + $0xf0] sm:$0xf0]  ;;  %v11193_v62 = vld [vmem:[#allocation25 + $0x1dc] sm:$0xf] }
 0x544   : > { %v11144_v43 = vld [vmem:[#allocation25 + $0x54] sm:$0xf]  ;;  %v8654_v0 = vld [vmem:[#allocation25 + $0x1f8] sm:$0xf0] }
 0x545   : > { %v8454_v44 = vld [vmem:[#allocation25 + $0x70] sm:$0xf0]  ;;  %v8657_v9 = vor.u32 %v11193_v62, %v8654_v0 }
 0x546   : > { %3292 = vmatpush.bf16.msrb.mxu1 %v8513_v45  ;;  %3306 = vmatpush.bf16.msra.mxu2 %v8769_v56  ;;  %v8649_v45 = vor.u32 %v11192_v37, %v8646_v38  ;;  %v8772_v38 = vld [vmem:[#allocation25 + $0x2d0] sm:$0xf] }
 0x54a   : > { %3293 = vmatpush.bf16.msrb.mxu1 %v8481_v53  ;;  %3307 = vmatpush.bf16.msra.mxu2 %v8737_v6  ;;  %v8902_v53 = vld [vmem:[#allocation25 + $0x3f0] sm:$0xf0]  ;;  %v8548_v6 = vld [vmem:[#allocation25 + $0x110] sm:$0xf] }
 0x54b   : > { %v8905_v61 = vor.u32 %v11256_v52, %v8902_v53  ;;  %v8549_v18 = vor.u32 %v11172_v7, %v8548_v6  ;;  %v11216_v52 = vld [vmem:[#allocation25 + $0x294] sm:$0xf]  ;;  %v8421_v6 = vor.u32 %v11140_v10, %v8420_v54  ;;  %v11161_v54 = vld [vmem:[#allocation25 + $0xdc] sm:$0xf] }
 0x54c   : > { %v8742_v53 = vld [vmem:[#allocation25 + $0x2b0] sm:$0xf0]  ;;  %v8526_v10 = vld [vmem:[#allocation25 + $0xf8] sm:$0xf0] }
 0x54d   : > { %v8529_v0 = vor.u32 %v11161_v54, %v8526_v10 }
 0x54e   : > { %3294 = vmatpush.bf16.msrb.mxu1 %v8449_v63  ;;  %3308 = vmatpush.bf16.msra.mxu2 %v8705_v20  ;;  %v8516_v20 = vld [vmem:[#allocation25 + $0xd0] sm:$0xf] }
 0x552   : > { %3295 = vmatpush.bf16.msrb.mxu1 %v8417_v13  ;;  %3309 = vmatpush.bf16.msra.mxu2 %v8673_v26  ;;  %v8836_v13 = vld [vmem:[#allocation25 + $0x350] sm:$0xf] }
 0x553   : > { %v8837_v24 = vor.u32 %v11244_v14, %v8836_v13  ;;  %v8804_v26 = vld [vmem:[#allocation25 + $0x310] sm:$0xf]  ;;  %v11185_v13 = vld [vmem:[#allocation25 + $0x19c] sm:$0xf]  ;;  %v8709_v14 = vor.u32 %v11212_v3, %v8708_v2  ;;  %v8492_v2 = vld [vmem:[#allocation25 + $0x98] sm:$0xf] }
 0x554   : > { %v8805_v36 = vor.u32 %v11236_v27, %v8804_v26  ;;  %v8625_v27 = vor.u32 %v11185_v13, %v8622_v16  ;;  %v11157_v3 = vld [vmem:[#allocation25 + $0xb4] sm:$0xf0] }
 0x555   : > { %v8493_v13 = vor.u32 %v11157_v3, %v8492_v2  ;;  %v11149_v16 = vld [vmem:[#allocation25 + $0x74] sm:$0xf0]  ;;  %v9044_v2 = vld [vmem:[#allocation28 + $0x100] sm:$0xf] }
 0x556   : > { %v11298_v3 = vld [vmem:[#allocation28 + $0x11c] sm:$0xf0] }
 0x5b2   : > { %v2393_v28 = vpop.f32.mrf.mxu1 }
 0x5b3   : > { %v2394_v31 = vadd.f32 %v2393_v28, %v2337_v29  ;;  %v11232_v28 = vld [vmem:[#allocation25 + $0x314] sm:$0xf] }
 0x5b5   : > { %v2412_v40 = vmax.f32 %v2394_v31, 0.0  ;;  %v8521_v31 = vor.u32 %v11160_v22, %v8518_v23  ;;  %v8908_v22 = vld [vmem:[#allocation25 + $0x3d8] sm:$0xf] }
 0x5b6   : > { %v11261_v23 = vld [vmem:[#allocation25 + $0x3f4] sm:$0xf0] }
 0x5b8   : > { %v2407_v30 = vpop.f32.mrf.mxu2 }
 0x5b9   : > { %v2408_v48 = vadd.f32 %v2407_v30, %v2338_v32  ;;  %v8517_v30 = vor.u32 %v11164_v21, %v8516_v20  ;;  %v11200_v20 = vld [vmem:[#allocation25 + $0x214] sm:$0xf] }
 0x5ba   : > { %v2395_v33 = vpop.f32.mrf.mxu1  ;;  %v8678_v21 = vld [vmem:[#allocation25 + $0x230] sm:$0xf0] }
 0x5bb   : > { %v2396_v35 = vadd.f32 %v2395_v33, %v2337_v29  ;;  %v2413_v55 = vmax.f32 %v2408_v48, 0.0  ;;  %v8806_v29 = vld [vmem:[#allocation25 + $0x330] sm:$0xf0]  ;;  %v11156_v33 = vld [vmem:[#allocation25 + $0xac] sm:$0xf0] }
 0x5bc   : > { %v8809_v37 = vor.u32 %v11232_v28, %v8806_v29  ;;  %v8452_v48 = vld [vmem:[#allocation25 + $0x50] sm:$0xf]  ;;  %v8588_v28 = vld [vmem:[#allocation25 + $0x158] sm:$0xf] }
 0x5bd   : > { %v2414_v41 = vmax.f32 %v2396_v35, 0.0  ;;  %v8486_v35 = vld [vmem:[#allocation25 + $0xb0] sm:$0xf0] }
 0x5be   : > { %v8489_v46 = vor.u32 %v11152_v34, %v8486_v35  ;;  %v8909_v34 = vor.u32 %v11261_v23, %v8908_v22  ;;  %v8748_v22 = vld [vmem:[#allocation25 + $0x298] sm:$0xf] }
 0x5bf   : > { %v13192_v1 = vpack.c.bf16 %v2414_v41, %v2412_v40  ;;  %v11228_v40 = vld [vmem:[#allocation25 + $0x2ec] sm:$0xf0]  ;;  %v11224_v41 = vld [vmem:[#allocation25 + $0x2d4] sm:$0xf]  ;;  %v11221_v23 = vld [vmem:[#allocation25 + $0x2b4] sm:$0xf0] }
 0x5c0   : > { %v2409_v47 = vpop.f32.mrf.mxu2 }
 0x5c1   : > { %v2410_v50 = vadd.f32 %v2409_v47, %v2338_v32  ;;  %3212 = vmatmul.bf16.vlgmr.msra.gmra.mxu3 %v13192_v1  ;;  %3240 = vmatmul.bf16.vlgmr.msra.gmra.mxu1 %v13192_v1  ;;  %v8484_v32 = vld [vmem:[#allocation25 + $0x90] sm:$0xf]  ;;  %v8773_v47 = vor.u32 %v11228_v40, %v8772_v38  ;;  %v11249_v38 = vld [vmem:[#allocation25 + $0x39c] sm:$0xf] }
 0x5c2   : > { %3316 = vmatpush.bf16.msra.mxu3 %v8645_v42  ;;  %3344 = vmatpush.bf16.msra.mxu1 %v8649_v45  ;;  %v8774_v42 = vld [vmem:[#allocation25 + $0x2f0] sm:$0xf0]  ;;  %v8485_v45 = vor.u32 %v11156_v33, %v8484_v32  ;;  %v11177_v32 = vld [vmem:[#allocation25 + $0x15c] sm:$0xf] }
 0x5c3   : > { %v2415_v56 = vmax.f32 %v2410_v50, 0.0  ;;  %v8777_v49 = vor.u32 %v11224_v41, %v8774_v42  ;;  %v8740_v50 = vld [vmem:[#allocation25 + $0x290] sm:$0xf]  ;;  %v8590_v33 = vld [vmem:[#allocation25 + $0x178] sm:$0xf0] }
 0x5c4   : > { %v8878_v40 = vld [vmem:[#allocation25 + $0x3b8] sm:$0xf0]  ;;  %v8593_v42 = vor.u32 %v11177_v32, %v8590_v33  ;;  %v8749_v32 = vor.u32 %v11221_v23, %v8748_v22  ;;  %v9236_v22 = vld [vmem:[#allocation28 + $0x280] sm:$0xf] }
 0x5c5   : > { %v13196_v63 = vpack.c.bf16 %v2415_v56, %v2413_v55  ;;  %v11136_v55 = vld [vmem:[#allocation25 + $0x14] sm:$0xf]  ;;  %v11346_v23 = vld [vmem:[#allocation28 + $0x29c] sm:$0xf0] }
 0x5c6   : > { %3317 = vmatpush.bf16.msra.mxu3 %v8613_v58  ;;  %3345 = vmatpush.bf16.msra.mxu1 %v8617_v17  ;;  %v8453_v58 = vor.u32 %v11148_v39, %v8452_v48  ;;  %v8457_v17 = vor.u32 %v11144_v43, %v8454_v44  ;;  %v8422_v56 = vld [vmem:[#allocation25 + $0x30] sm:$0xf0]  ;;  %v11169_v48 = vld [vmem:[#allocation25 + $0x11c] sm:$0xf]  ;;  %v8881_v44 = vor.u32 %v11249_v38, %v8878_v40 }
 0x5c7   : > { %3226 = vmatmul.bf16.vlgmr.msra.gmra.mxu0 %v13196_v63  ;;  %3254 = vmatmul.bf16.vlgmr.msrb.gmra.mxu2 %v13196_v63  ;;  %v8425_v7 = vor.u32 %v11136_v55, %v8422_v56  ;;  %v8558_v39 = vld [vmem:[#allocation25 + $0x138] sm:$0xf0] }
 0x5c8   : > { %3330 = vmatpush.bf16.msra.mxu0 %v8901_v60  ;;  %3358 = vmatpush.bf16.msrb.mxu2 %v8905_v61  ;;  %v8741_v60 = vor.u32 %v11220_v51, %v8740_v50  ;;  %v8745_v61 = vor.u32 %v11216_v52, %v8742_v53  ;;  %v11241_v50 = vld [vmem:[#allocation25 + $0x35c] sm:$0xf]  ;;  %v8561_v53 = vor.u32 %v11169_v48, %v8558_v39 }
 0x5c9   : > { %v8846_v51 = vld [vmem:[#allocation25 + $0x378] sm:$0xf0] }
 0x5ca   : > { %3318 = vmatpush.bf16.msra.mxu3 %v8581_v4  ;;  %3346 = vmatpush.bf16.msra.mxu1 %v8585_v5  ;;  %v11208_v4 = vld [vmem:[#allocation25 + $0x254] sm:$0xf]  ;;  %v8849_v56 = vor.u32 %v11241_v50, %v8846_v51  ;;  %v11209_v38 = vld [vmem:[#allocation25 + $0x25c] sm:$0xf]  ;;  %v9652_v51 = vld [vmem:[#allocation28 + $0x5c0] sm:$0xf] }
 0x5cb   : > { %v8710_v5 = vld [vmem:[#allocation25 + $0x270] sm:$0xf0]  ;;  %v8718_v40 = vld [vmem:[#allocation25 + $0x278] sm:$0xf0] }
 0x5cc   : > { %3331 = vmatpush.bf16.msra.mxu0 %v8869_v11  ;;  %3359 = vmatpush.bf16.msrb.mxu2 %v8873_v12  ;;  %v8620_v11 = vld [vmem:[#allocation25 + $0x198] sm:$0xf]  ;;  %v8713_v15 = vor.u32 %v11208_v4, %v8710_v5  ;;  %v11153_v4 = vld [vmem:[#allocation25 + $0x9c] sm:$0xf] }
 0x5cd   : > { %v11189_v12 = vld [vmem:[#allocation25 + $0x1b4] sm:$0xf0]  ;;  %v8494_v5 = vld [vmem:[#allocation25 + $0xb8] sm:$0xf0] }
 0x5ce   : > { %3319 = vmatpush.bf16.msra.mxu3 %v8549_v18  ;;  %3347 = vmatpush.bf16.msra.mxu1 %v8553_v19  ;;  %v8676_v18 = vld [vmem:[#allocation25 + $0x210] sm:$0xf]  ;;  %v8621_v26 = vor.u32 %v11189_v12, %v8620_v11  ;;  %v11225_v11 = vld [vmem:[#allocation25 + $0x2dc] sm:$0xf] }
 0x5cf   : > { %v11204_v19 = vld [vmem:[#allocation25 + $0x22c] sm:$0xf0]  ;;  %v8782_v12 = vld [vmem:[#allocation25 + $0x2f8] sm:$0xf0] }
 0x5d0   : > { %3332 = vmatpush.bf16.msra.mxu0 %v8837_v24  ;;  %3360 = vmatpush.bf16.msrb.mxu2 %v8841_v25  ;;  %v11257_v24 = vld [vmem:[#allocation25 + $0x3dc] sm:$0xf]  ;;  %v8677_v29 = vor.u32 %v11204_v19, %v8676_v18 }
 0x5d1   : > { %3268 = vmatmul.bf16.vlgmr.msrb.gmra.mxu3 %v13192_v1  ;;  %3296 = vmatmul.bf16.vlgmr.msrb.gmra.mxu1 %v13192_v1  ;;  %v8910_v25 = vld [vmem:[#allocation25 + $0x3f8] sm:$0xf0] }
 0x5d2   : > { %3320 = vmatpush.bf16.msra.mxu3 %v8517_v30  ;;  %3348 = vmatpush.bf16.msra.mxu1 %v8521_v31  ;;  %v8681_v30 = vor.u32 %v11200_v20, %v8678_v21  ;;  %v11181_v31 = vld [vmem:[#allocation25 + $0x174] sm:$0xf0]  ;;  %v8913_v35 = vor.u32 %v11257_v24, %v8910_v25  ;;  %v11145_v18 = vld [vmem:[#allocation25 + $0x5c] sm:$0xf]  ;;  %v8785_v21 = vor.u32 %v11225_v11, %v8782_v12  ;;  %v11362_v11 = vld [vmem:[#allocation28 + $0x31c] sm:$0xf0] }
 0x5d3   : > { %v8589_v41 = vor.u32 %v11181_v31, %v8588_v28  ;;  %v8462_v19 = vld [vmem:[#allocation25 + $0x78] sm:$0xf0]  ;;  %v8428_v28 = vld [vmem:[#allocation25 + $0x18] sm:$0xf] }
 0x5d4   : > { %3333 = vmatpush.bf16.msra.mxu0 %v8805_v36  ;;  %3361 = vmatpush.bf16.msrb.mxu2 %v8809_v37  ;;  %v8876_v36 = vld [vmem:[#allocation25 + $0x398] sm:$0xf]  ;;  %v11217_v24 = vld [vmem:[#allocation25 + $0x29c] sm:$0xf] }
 0x5d5   : > { %v11253_v37 = vld [vmem:[#allocation25 + $0x3b4] sm:$0xf0]  ;;  %v8750_v25 = vld [vmem:[#allocation25 + $0x2b8] sm:$0xf0] }
 0x5d6   : > { %3321 = vmatpush.bf16.msra.mxu3 %v8485_v45  ;;  %3349 = vmatpush.bf16.msra.mxu1 %v8489_v46  ;;  %v8556_v45 = vld [vmem:[#allocation25 + $0x118] sm:$0xf]  ;;  %v8877_v43 = vor.u32 %v11253_v37, %v8876_v36  ;;  %v8430_v31 = vld [vmem:[#allocation25 + $0x38] sm:$0xf0]  ;;  %v8753_v33 = vor.u32 %v11217_v24, %v8750_v25  ;;  %v11322_v36 = vld [vmem:[#allocation28 + $0x1dc] sm:$0xf0]  ;;  %v9237_v25 = vor.u32 %v11346_v23, %v9236_v22 }
 0x5d7   : > { %3282 = vmatmul.bf16.vlgmr.msrb.gmra.mxu0 %v13196_v63  ;;  %3310 = vmatmul.bf16.vlgmr.msra.gmra.mxu2 %v13196_v63  ;;  %v11173_v46 = vld [vmem:[#allocation25 + $0x134] sm:$0xf0]  ;;  %v8686_v50 = vld [vmem:[#allocation25 + $0x238] sm:$0xf0]  ;;  %v9492_v22 = vld [vmem:[#allocation28 + $0x480] sm:$0xf] }
 0x5d8   : > { %3334 = vmatpush.bf16.msra.mxu0 %v8773_v47  ;;  %3362 = vmatpush.bf16.msrb.mxu2 %v8777_v49  ;;  %v8844_v47 = vld [vmem:[#allocation25 + $0x358] sm:$0xf]  ;;  %v8557_v52 = vor.u32 %v11173_v46, %v8556_v45  ;;  %v11410_v23 = vld [vmem:[#allocation28 + $0x49c] sm:$0xf0] }
 0x5d9   : > { %v11245_v49 = vld [vmem:[#allocation25 + $0x374] sm:$0xf0] }
 0x5da   : > { %3322 = vmatpush.bf16.msra.mxu3 %v8453_v58  ;;  %3350 = vmatpush.bf16.msra.mxu1 %v8457_v17  ;;  %v8524_v58 = vld [vmem:[#allocation25 + $0xd8] sm:$0xf]  ;;  %v8845_v55 = vor.u32 %v11245_v49, %v8844_v47  ;;  %v9108_v47 = vld [vmem:[#allocation28 + $0x180] sm:$0xf] }
 0x5db   : > { %v11165_v17 = vld [vmem:[#allocation25 + $0xf4] sm:$0xf0]  ;;  %v11314_v49 = vld [vmem:[#allocation28 + $0x19c] sm:$0xf0] }
 0x5dc   : > { %3335 = vmatpush.bf16.msra.mxu0 %v8741_v60  ;;  %3363 = vmatpush.bf16.msrb.mxu2 %v8745_v61  ;;  %v11233_v60 = vld [vmem:[#allocation25 + $0x31c] sm:$0xf]  ;;  %v8525_v62 = vor.u32 %v11165_v17, %v8524_v58  ;;  %v11213_v37 = vld [vmem:[#allocation25 + $0x274] sm:$0xf0]  ;;  %v11386_v58 = vld [vmem:[#allocation28 + $0x3dc] sm:$0xf0]  ;;  %v9109_v54 = vor.u32 %v11314_v49, %v9108_v47 }
 0x5dd   : > { %v8814_v61 = vld [vmem:[#allocation25 + $0x338] sm:$0xf0]  ;;  %v8684_v45 = vld [vmem:[#allocation25 + $0x218] sm:$0xf]  ;;  %v11642_v47 = vld [vmem:[#allocation28 + $0xbdc] sm:$0xf0] }
 0x5de   : > { %3323 = vmatpush.bf16.msra.mxu3 %v8421_v6  ;;  %3351 = vmatpush.bf16.msra.mxu1 %v8425_v7  ;;  %v8813_v6 = vor.u32 %v11237_v59, %v8812_v57  ;;  %v8817_v7 = vor.u32 %v11233_v60, %v8814_v61  ;;  %v11205_v46 = vld [vmem:[#allocation25 + $0x234] sm:$0xf0]  ;;  %v9076_v57 = vld [vmem:[#allocation28 + $0x140] sm:$0xf] }
 0x5df   : > { %v8685_v10 = vor.u32 %v11205_v46, %v8684_v45  ;;  %v11306_v59 = vld [vmem:[#allocation28 + $0x15c] sm:$0xf0] }
 0x5e0   : > { %3336 = vmatpush.bf16.msra.mxu0 %v8709_v14  ;;  %3364 = vmatpush.bf16.msrb.mxu2 %v8713_v15  ;;  %v8497_v14 = vor.u32 %v11153_v4, %v8494_v5  ;;  %v8460_v15 = vld [vmem:[#allocation25 + $0x58] sm:$0xf]  ;;  %v9364_v60 = vld [vmem:[#allocation28 + $0x380] sm:$0xf] }
 0x5e1   : > { %3324 = vmatmul.bf16.vlgmr.msra.gmra.mxu3 %v13192_v1  ;;  %3352 = vmatmul.bf16.vlgmr.msra.gmra.mxu1 %v13192_v1  ;;  %v11378_v61 = vld [vmem:[#allocation28 + $0x39c] sm:$0xf0] }
 0x5e2   : > { %3372 = vmatpush.bf16.msrb.mxu3 %v8653_v8  ;;  %3400 = vmatpush.bf16.msrb.mxu1 %v8657_v9  ;;  %v8780_v8 = vld [vmem:[#allocation25 + $0x2d8] sm:$0xf]  ;;  %v9332_v4 = vld [vmem:[#allocation28 + $0x340] sm:$0xf] }
 0x5e3   : > { %v11229_v9 = vld [vmem:[#allocation25 + $0x2f4] sm:$0xf0]  ;;  %v11370_v5 = vld [vmem:[#allocation28 + $0x35c] sm:$0xf0] }
 0x5e4   : > { %3337 = vmatpush.bf16.msra.mxu0 %v8677_v29  ;;  %3365 = vmatpush.bf16.msrb.mxu2 %v8681_v30  ;;  %v8781_v20 = vor.u32 %v11229_v9, %v8780_v8  ;;  %v11141_v29 = vld [vmem:[#allocation25 + $0x34] sm:$0xf0]  ;;  %v11137_v30 = vld [vmem:[#allocation25 + $0x1c] sm:$0xf]  ;;  %v11290_v8 = vld [vmem:[#allocation28 + $0xdc] sm:$0xf0] }
 0x5e5   : > { %v9300_v9 = vld [vmem:[#allocation28 + $0x300] sm:$0xf] }
 0x5e6   : > { %3373 = vmatpush.bf16.msrb.mxu3 %v8621_v26  ;;  %3401 = vmatpush.bf16.msrb.mxu1 %v8625_v27  ;;  %v8461_v26 = vor.u32 %v11149_v16, %v8460_v15  ;;  %v8465_v27 = vor.u32 %v11145_v18, %v8462_v19  ;;  %v11282_v15 = vld [vmem:[#allocation28 + $0x9c] sm:$0xf0] }
 0x5e7   : > { %3338 = vmatmul.bf16.vlgmr.msra.gmra.mxu0 %v13196_v63  ;;  %3366 = vmatmul.bf16.vlgmr.msrb.gmra.mxu2 %v13196_v63  ;;  %v9268_v16 = vld [vmem:[#allocation28 + $0x2c0] sm:$0xf] }
 0x5e8   : > { %3386 = vmatpush.bf16.msrb.mxu0 %v8909_v34  ;;  %3414 = vmatpush.bf16.msra.mxu2 %v8913_v35  ;;  %v8716_v34 = vld [vmem:[#allocation25 + $0x258] sm:$0xf]  ;;  %v9140_v35 = vld [vmem:[#allocation28 + $0x1c0] sm:$0xf] }
 0x5e9   : > { %v9141_v48 = vor.u32 %v11322_v36, %v9140_v35  ;;  %v8717_v39 = vor.u32 %v11213_v37, %v8716_v34  ;;  %v11354_v18 = vld [vmem:[#allocation28 + $0x2dc] sm:$0xf0] }
 0x5ea   : > { %3374 = vmatpush.bf16.msrb.mxu3 %v8589_v41  ;;  %3402 = vmatpush.bf16.msrb.mxu1 %v8593_v42  ;;  %v8429_v41 = vor.u32 %v11141_v29, %v8428_v28  ;;  %v8433_v42 = vor.u32 %v11137_v30, %v8430_v31  ;;  %v9204_v28 = vld [vmem:[#allocation28 + $0x240] sm:$0xf] }
 0x5eb   : > { %v11338_v29 = vld [vmem:[#allocation28 + $0x25c] sm:$0xf0] }
 0x5ec   : > { %3387 = vmatpush.bf16.msrb.mxu0 %v8877_v43  ;;  %3415 = vmatpush.bf16.msra.mxu2 %v8881_v44  ;;  %v8721_v43 = vor.u32 %v11209_v38, %v8718_v40  ;;  %v11201_v44 = vld [vmem:[#allocation25 + $0x21c] sm:$0xf]  ;;  %v10164_v30 = vld [vmem:[#allocation28 + $0x9c0] sm:$0xf] }
 0x5ed   : > { %v11578_v31 = vld [vmem:[#allocation28 + $0x9dc] sm:$0xf0] }
 0x5ee   : > { %3375 = vmatpush.bf16.msrb.mxu3 %v8557_v52  ;;  %3403 = vmatpush.bf16.msrb.mxu1 %v8561_v53  ;;  %v11450_v52 = vld [vmem:[#allocation28 + $0x5dc] sm:$0xf0]  ;;  %v10165_v34 = vor.u32 %v11578_v31, %v10164_v30 }
 0x5ef   : > { %v9396_v53 = vld [vmem:[#allocation28 + $0x3c0] sm:$0xf]  ;;  %v9653_v17 = vor.u32 %v11450_v52, %v9652_v51 }
 0x5f0   : > { %3388 = vmatpush.bf16.msrb.mxu0 %v8845_v55  ;;  %3416 = vmatpush.bf16.msra.mxu2 %v8849_v56  ;;  %v8689_v55 = vor.u32 %v11201_v44, %v8686_v50  ;;  %v9397_v56 = vor.u32 %v11386_v58, %v9396_v53  ;;  %v9172_v35 = vld [vmem:[#allocation28 + $0x200] sm:$0xf] }
 0x5f1   : > { %v11330_v36 = vld [vmem:[#allocation28 + $0x21c] sm:$0xf0] }
 0x5f2   : > { %3376 = vmatpush.bf16.msrb.mxu3 %v8525_v62  ;;  %3404 = vmatpush.bf16.msrb.mxu1 %v8529_v0  ;;  %v9077_v62 = vor.u32 %v11306_v59, %v9076_v57  ;;  %v9365_v0 = vor.u32 %v11378_v61, %v9364_v60  ;;  %v9620_v37 = vld [vmem:[#allocation28 + $0x580] sm:$0xf]  ;;  %v9173_v38 = vor.u32 %v11330_v36, %v9172_v35 }
 0x5f3   : > { %v11442_v40 = vld [vmem:[#allocation28 + $0x59c] sm:$0xf0] }
 0x5f4   : > { %3389 = vmatpush.bf16.msrb.mxu0 %v8813_v6  ;;  %3417 = vmatpush.bf16.msra.mxu2 %v8817_v7  ;;  %v9333_v6 = vor.u32 %v11370_v5, %v9332_v4  ;;  %v9012_v7 = vld [vmem:[#allocation28 + $0xc0] sm:$0xf]  ;;  %v9621_v45 = vor.u32 %v11442_v40, %v9620_v37 }
 0x5f5   : > { %v9013_v12 = vor.u32 %v11290_v8, %v9012_v7  ;;  %v9588_v49 = vld [vmem:[#allocation28 + $0x540] sm:$0xf] }
 0x5f6   : > { %3377 = vmatpush.bf16.msrb.mxu3 %v8493_v13  ;;  %3405 = vmatpush.bf16.msrb.mxu1 %v8497_v14  ;;  %v9301_v13 = vor.u32 %v11362_v11, %v9300_v9  ;;  %v8980_v14 = vld [vmem:[#allocation28 + $0x80] sm:$0xf] }
 0x5f7   : > { %v8981_v19 = vor.u32 %v11282_v15, %v8980_v14  ;;  %v11434_v50 = vld [vmem:[#allocation28 + $0x55c] sm:$0xf0] }
 0x5f8   : > { %3390 = vmatpush.bf16.msrb.mxu0 %v8781_v20  ;;  %3418 = vmatpush.bf16.msra.mxu2 %v8785_v21  ;;  %v8948_v20 = vld [vmem:[#allocation28 + $0x40] sm:$0xf]  ;;  %v9589_v52 = vor.u32 %v11434_v50, %v9588_v49 }
 0x5f9   : > { %v11274_v21 = vld [vmem:[#allocation28 + $0x5c] sm:$0xf0] }
 0x5fa   : > { %3378 = vmatpush.bf16.msrb.mxu3 %v8461_v26  ;;  %3406 = vmatpush.bf16.msrb.mxu1 %v8465_v27  ;;  %v8949_v24 = vor.u32 %v11274_v21, %v8948_v20  ;;  %v8916_v26 = vld [vmem:[#allocation28] sm:$0xf] }
 0x5fb   : > { %v11266_v27 = vld [vmem:[#allocation28 + $0x1c] sm:$0xf0] }
 0x5fc   : > { %3391 = vmatpush.bf16.msrb.mxu0 %v8749_v32  ;;  %3419 = vmatpush.bf16.msra.mxu2 %v8753_v33  ;;  %v8917_v32 = vor.u32 %v11266_v27, %v8916_v26  ;;  %v9205_v33 = vor.u32 %v11338_v29, %v9204_v28  ;;  %v9876_v53 = vld [vmem:[#allocation28 + $0x780] sm:$0xf] }
 0x5fd   : > { %v11506_v58 = vld [vmem:[#allocation28 + $0x79c] sm:$0xf0] }
 0x5fe   : > { %3379 = vmatpush.bf16.msrb.mxu3 %v8429_v41  ;;  %3407 = vmatpush.bf16.msrb.mxu1 %v8433_v42  ;;  %v9908_v41 = vld [vmem:[#allocation28 + $0x7c0] sm:$0xf] }
 0x5ff   : > { %v11514_v42 = vld [vmem:[#allocation28 + $0x7dc] sm:$0xf0] }
 0x600   : > { %3392 = vmatpush.bf16.msrb.mxu0 %v8717_v39  ;;  %3420 = vmatpush.bf16.msra.mxu2 %v8721_v43  ;;  %v9909_v46 = vor.u32 %v11514_v42, %v9908_v41  ;;  %v11570_v39 = vld [vmem:[#allocation28 + $0x99c] sm:$0xf0] }
 0x601   : > { %3380 = vmatmul.bf16.vlgmr.msrb.gmra.mxu3 %v13192_v1  ;;  %3408 = vmatmul.bf16.vlgmr.msrb.gmra.mxu1 %v13192_v1  ;;  %v9045_v1 = vor.u32 %v11298_v3, %v9044_v2  ;;  %v10420_v43 = vld [vmem:[#allocation28 + $0xbc0] sm:$0xf] }
 0x602   : > { %6542 = vmatpush.bf16.msra.mxu3 %v9141_v48  ;;  %6570 = vmatpush.bf16.msra.mxu1 %v9653_v17  ;;  %v10132_v48 = vld [vmem:[#allocation28 + $0x980] sm:$0xf]  ;;  %v10421_v51 = vor.u32 %v11642_v47, %v10420_v43 }
 0x603   : > { %v10133_v44 = vor.u32 %v11570_v39, %v10132_v48  ;;  %v10100_v17 = vld [vmem:[#allocation28 + $0x940] sm:$0xf] }
 0x604   : > { %3393 = vmatpush.bf16.msrb.mxu0 %v8685_v10  ;;  %3421 = vmatpush.bf16.msra.mxu2 %v8689_v55  ;;  %v11562_v10 = vld [vmem:[#allocation28 + $0x95c] sm:$0xf0] }
 0x605   : > { %v10388_v55 = vld [vmem:[#allocation28 + $0xb80] sm:$0xf]  ;;  %v10101_v57 = vor.u32 %v11562_v10, %v10100_v17 }
 0x606   : > { %6543 = vmatpush.bf16.msra.mxu3 %v9109_v54  ;;  %6571 = vmatpush.bf16.msra.mxu1 %v9621_v45  ;;  %v9877_v54 = vor.u32 %v11506_v58, %v9876_v53  ;;  %v9556_v60 = vld [vmem:[#allocation28 + $0x500] sm:$0xf] }
 0x607   : > { %3394 = vmatmul.bf16.vlgmr.msrb.gmra.mxu0 %v13196_v63  ;;  %3422 = vmatmul.bf16.vlgmr.msra.gmra.mxu2 %v13196_v63  ;;  %v9269_v63 = vor.u32 %v11354_v18, %v9268_v16  ;;  %v11426_v61 = vld [vmem:[#allocation28 + $0x51c] sm:$0xf0] }
 0x608   : > { %6556 = vmatpush.bf16.msra.mxu0 %v9397_v56  ;;  %6584 = vmatpush.bf16.msrb.mxu2 %v9909_v46  ;;  %v11634_v56 = vld [vmem:[#allocation28 + $0xb9c] sm:$0xf0] }
 0x609   : > { %v10389_v59 = vor.u32 %v11634_v56, %v10388_v55  ;;  %v11498_v2 = vld [vmem:[#allocation28 + $0x75c] sm:$0xf0] }
 0x60a   : > { %6544 = vmatpush.bf16.msra.mxu3 %v9077_v62  ;;  %6572 = vmatpush.bf16.msra.mxu1 %v9589_v52  ;;  %v9844_v62 = vld [vmem:[#allocation28 + $0x740] sm:$0xf] }
 0x60b   : > { %v10068_v3 = vld [vmem:[#allocation28 + $0x900] sm:$0xf]  ;;  %v9845_v5 = vor.u32 %v11498_v2, %v9844_v62 }
 0x60c   : > { %6557 = vmatpush.bf16.msra.mxu0 %v9365_v0  ;;  %6585 = vmatpush.bf16.msrb.mxu2 %v9877_v54  ;;  %v9557_v0 = vor.u32 %v11426_v61, %v9556_v60  ;;  %v11554_v4 = vld [vmem:[#allocation28 + $0x91c] sm:$0xf0] }
 0x60d   : > { %v11626_v7 = vld [vmem:[#allocation28 + $0xb5c] sm:$0xf0] }
 0x60e   : > { %6545 = vmatpush.bf16.msra.mxu3 %v9045_v1  ;;  %v10069_v1 = vor.u32 %v11554_v4, %v10068_v3  ;;  %6573 = vmatpush.bf16.msra.mxu1 %v9557_v0  ;;  %v9524_v9 = vld [vmem:[#allocation28 + $0x4c0] sm:$0xf] }
 0x60f   : > { %v11418_v11 = vld [vmem:[#allocation28 + $0x4dc] sm:$0xf0] }
 0x610   : > { %6558 = vmatpush.bf16.msra.mxu0 %v9333_v6  ;;  %v10356_v6 = vld [vmem:[#allocation28 + $0xb40] sm:$0xf]  ;;  %6586 = vmatpush.bf16.msrb.mxu2 %v9845_v5 }
 0x611   : > { %v10357_v8 = vor.u32 %v11626_v7, %v10356_v6  ;;  %v11490_v14 = vld [vmem:[#allocation28 + $0x71c] sm:$0xf0] }
 0x612   : > { %6546 = vmatpush.bf16.msra.mxu3 %v9013_v12  ;;  %v9812_v12 = vld [vmem:[#allocation28 + $0x700] sm:$0xf] }
 0x613   : > { %v10036_v15 = vld [vmem:[#allocation28 + $0x8c0] sm:$0xf]  ;;  %v9813_v18 = vor.u32 %v11490_v14, %v9812_v12 }
 0x614   : > { %6559 = vmatpush.bf16.msra.mxu0 %v9301_v13  ;;  %v9525_v13 = vor.u32 %v11418_v11, %v9524_v9  ;;  %v11546_v16 = vld [vmem:[#allocation28 + $0x8dc] sm:$0xf0] }
 0x615   : > { %v11618_v20 = vld [vmem:[#allocation28 + $0xb1c] sm:$0xf0]  ;;  %6587 = vmatpush.bf16.msrb.mxu2 %v9813_v18 }
 0x616   : > { %6547 = vmatpush.bf16.msra.mxu3 %v8981_v19  ;;  %v10037_v19 = vor.u32 %v11546_v16, %v10036_v15  ;;  %6574 = vmatpush.bf16.msra.mxu1 %v9525_v13  ;;  %v11482_v26 = vld [vmem:[#allocation28 + $0x6dc] sm:$0xf0] }
 0x617   : > { %v10004_v27 = vld [vmem:[#allocation28 + $0x880] sm:$0xf] }
 0x618   : > { %6560 = vmatpush.bf16.msra.mxu0 %v9269_v63  ;;  %v10324_v63 = vld [vmem:[#allocation28 + $0xb00] sm:$0xf] }
 0x619   : > { %v10325_v21 = vor.u32 %v11618_v20, %v10324_v63  ;;  %v11538_v28 = vld [vmem:[#allocation28 + $0x89c] sm:$0xf0] }
 0x61a   : > { %6548 = vmatpush.bf16.msra.mxu3 %v8949_v24  ;;  %v9780_v24 = vld [vmem:[#allocation28 + $0x6c0] sm:$0xf]  ;;  %v10005_v30 = vor.u32 %v11538_v28, %v10004_v27 }
 0x61b   : > { %v9781_v29 = vor.u32 %v11482_v26, %v9780_v24  ;;  %v10292_v31 = vld [vmem:[#allocation28 + $0xac0] sm:$0xf] }
 0x61c   : > { %6561 = vmatpush.bf16.msra.mxu0 %v9237_v25  ;;  %v9493_v25 = vor.u32 %v11410_v23, %v9492_v22  ;;  %v11402_v35 = vld [vmem:[#allocation28 + $0x45c] sm:$0xf0] }
 0x61d   : > { %6588 = vmatpush.bf16.msrb.mxu2 %v9781_v29  ;;  %v9748_v36 = vld [vmem:[#allocation28 + $0x680] sm:$0xf] }
 0x61e   : > { %6549 = vmatpush.bf16.msra.mxu3 %v8917_v32  ;;  %v11610_v32 = vld [vmem:[#allocation28 + $0xadc] sm:$0xf0]  ;;  %6575 = vmatpush.bf16.msra.mxu1 %v9493_v25 }
 0x61f   : > { %v9972_v40 = vld [vmem:[#allocation28 + $0x840] sm:$0xf] }
 0x620   : > { %6562 = vmatpush.bf16.msra.mxu0 %v9205_v33  ;;  %v10293_v33 = vor.u32 %v11610_v32, %v10292_v31  ;;  %v11530_v41 = vld [vmem:[#allocation28 + $0x85c] sm:$0xf0] }
 0x621   : > { %v9973_v45 = vor.u32 %v11530_v41, %v9972_v40  ;;  %v10260_v46 = vld [vmem:[#allocation28 + $0xa80] sm:$0xf] }
 0x622   : > { %6598 = vmatpush.bf16.msrb.mxu3 %v10165_v34  ;;  %v9460_v34 = vld [vmem:[#allocation28 + $0x440] sm:$0xf] }
 0x623   : > { %v9461_v37 = vor.u32 %v11402_v35, %v9460_v34  ;;  %v11602_v48 = vld [vmem:[#allocation28 + $0xa9c] sm:$0xf0] }
 0x624   : > { %6563 = vmatpush.bf16.msra.mxu0 %v9173_v38  ;;  %v11474_v38 = vld [vmem:[#allocation28 + $0x69c] sm:$0xf0]  ;;  %v10261_v39 = vor.u32 %v11602_v48, %v10260_v46 }
 0x625   : > { %v9749_v42 = vor.u32 %v11474_v38, %v9748_v36  ;;  %6576 = vmatpush.bf16.msra.mxu1 %v9461_v37  ;;  %v9428_v43 = vld [vmem:[#allocation28 + $0x400] sm:$0xf] }
 0x626   : > { %6599 = vmatpush.bf16.msrb.mxu3 %v10133_v44  ;;  %v11394_v44 = vld [vmem:[#allocation28 + $0x41c] sm:$0xf0] }
 0x627   : > { %6589 = vmatpush.bf16.msrb.mxu2 %v9749_v42  ;;  %v9429_v47 = vor.u32 %v11394_v44, %v9428_v43  ;;  %v9716_v49 = vld [vmem:[#allocation28 + $0x640] sm:$0xf] }
 0x628   : > { %6612 = vmatpush.bf16.msrb.mxu0 %v10421_v51  ;;  %v11466_v50 = vld [vmem:[#allocation28 + $0x65c] sm:$0xf0] }
 0x629   : > { %v9940_v51 = vld [vmem:[#allocation28 + $0x800] sm:$0xf]  ;;  %v9717_v52 = vor.u32 %v11466_v50, %v9716_v49  ;;  %6577 = vmatpush.bf16.msra.mxu1 %v9429_v47 }
 0x62a   : > { %6600 = vmatpush.bf16.msrb.mxu3 %v10101_v57  ;;  %v11522_v53 = vld [vmem:[#allocation28 + $0x81c] sm:$0xf0] }
 0x62b   : > { %v10228_v58 = vld [vmem:[#allocation28 + $0xa40] sm:$0xf]  ;;  %v9941_v54 = vor.u32 %v11522_v53, %v9940_v51  ;;  %6590 = vmatpush.bf16.msrb.mxu2 %v9717_v52  ;;  %v11318_v53 = vld [vmem:[#allocation28 + $0x1c4] sm:$0xf] }
 0x62c   : > { %6613 = vmatpush.bf16.msrb.mxu0 %v10389_v59  ;;  %v11594_v17 = vld [vmem:[#allocation28 + $0xa5c] sm:$0xf0] }
 0x62d   : > { %v10229_v10 = vor.u32 %v11594_v17, %v10228_v58  ;;  %v10676_v55 = vld [vmem:[#allocation28 + $0xdc0] sm:$0xf]  ;;  %v9142_v58 = vld [vmem:[#allocation28 + $0x1e0] sm:$0xf0] }
 0x62e   : > { %6601 = vmatpush.bf16.msrb.mxu3 %v10069_v1  ;;  %v11706_v56 = vld [vmem:[#allocation28 + $0xddc] sm:$0xf0] }
 0x62f   : > { %v10677_v57 = vor.u32 %v11706_v56, %v10676_v55  ;;  %v9684_v59 = vld [vmem:[#allocation28 + $0x600] sm:$0xf] }
 0x630   : > { %6614 = vmatpush.bf16.msrb.mxu0 %v10357_v8  ;;  %v11458_v60 = vld [vmem:[#allocation28 + $0x61c] sm:$0xf0] }
 0x631   : > { %v9685_v61 = vor.u32 %v11458_v60, %v9684_v59  ;;  %v10196_v62 = vld [vmem:[#allocation28 + $0xa00] sm:$0xf]  ;;  %6626 = vmatpush.bf16.msrb.mxu1 %v10677_v57 }
 0x632   : > { %6602 = vmatpush.bf16.msrb.mxu3 %v10037_v19  ;;  %v11586_v0 = vld [vmem:[#allocation28 + $0xa1c] sm:$0xf0] }
 0x633   : > { %v10644_v2 = vld [vmem:[#allocation28 + $0xd80] sm:$0xf]  ;;  %v10197_v3 = vor.u32 %v11586_v0, %v10196_v62  ;;  %6591 = vmatpush.bf16.msrb.mxu2 %v9685_v61  ;;  %v9145_v62 = vor.u32 %v11318_v53, %v9142_v58  ;;  %v11310_v0 = vld [vmem:[#allocation28 + $0x184] sm:$0xf] }
 0x634   : > { %6615 = vmatpush.bf16.msrb.mxu0 %v10325_v21  ;;  %v11698_v4 = vld [vmem:[#allocation28 + $0xd9c] sm:$0xf0]  ;;  %v13212_v21 = vld [vmem:[#allocation26] sm:$0xff] }
 0x635   : > { %v10932_v5 = vld [vmem:[#allocation28 + $0xfc0] sm:$0xf]  ;;  %v10645_v6 = vor.u32 %v11698_v4, %v10644_v2  ;;  %v2548_v23 = vperm.slane %v13212_v21, 0  ;;  %v2549_v41 = vperm.slane %v13212_v21, 1 }
 0x636   : > { %6603 = vmatpush.bf16.msrb.mxu3 %v10005_v30  ;;  %v11770_v1 = vld [vmem:[#allocation28 + $0xfdc] sm:$0xf0] }
 0x637   : > { %v10933_v7 = vor.u32 %v11770_v1, %v10932_v5  ;;  %v10612_v8 = vld [vmem:[#allocation28 + $0xd40] sm:$0xf]  ;;  %6627 = vmatpush.bf16.msrb.mxu1 %v10645_v6  ;;  %v9110_v6 = vld [vmem:[#allocation28 + $0x1a0] sm:$0xf0] }
 0x638   : > { %6616 = vmatpush.bf16.msrb.mxu0 %v10293_v33  ;;  %v11690_v9 = vld [vmem:[#allocation28 + $0xd5c] sm:$0xf0] }
 0x639   : > { %6640 = vmatpush.bf16.msra.mxu2 %v10933_v7  ;;  %v10900_v11 = vld [vmem:[#allocation28 + $0xf80] sm:$0xf]  ;;  %v10613_v13 = vor.u32 %v11690_v9, %v10612_v8  ;;  %v11382_v7 = vld [vmem:[#allocation28 + $0x3c4] sm:$0xf] }
 0x63a   : > { %6604 = vmatpush.bf16.msrb.mxu3 %v9973_v45  ;;  %v11762_v14 = vld [vmem:[#allocation28 + $0xf9c] sm:$0xf0]  ;;  %v9398_v8 = vld [vmem:[#allocation28 + $0x3e0] sm:$0xf0] }
 0x63b   : > { %v10901_v15 = vor.u32 %v11762_v14, %v10900_v11  ;;  %v10580_v16 = vld [vmem:[#allocation28 + $0xd00] sm:$0xf]  ;;  %6628 = vmatpush.bf16.msrb.mxu1 %v10613_v13 }
 0x63c   : > { %6617 = vmatpush.bf16.msrb.mxu0 %v10261_v39  ;;  %v11682_v18 = vld [vmem:[#allocation28 + $0xd1c] sm:$0xf0] }
 0x63d   : > { %6641 = vmatpush.bf16.msra.mxu2 %v10901_v15  ;;  %v10868_v19 = vld [vmem:[#allocation28 + $0xf40] sm:$0xf]  ;;  %v10581_v63 = vor.u32 %v11682_v18, %v10580_v16  ;;  %v2550_v15 = vperm.slane %v13212_v21, 2  ;;  %v9113_v18 = vor.u32 %v11310_v0, %v9110_v6  ;;  %v11438_v0 = vld [vmem:[#allocation28 + $0x584] sm:$0xf] }
 0x63e   : > { %6605 = vmatpush.bf16.msrb.mxu3 %v9941_v54  ;;  %v3241_v12 = vpop.f32.mrf.mxu1  ;;  %v11754_v20 = vld [vmem:[#allocation28 + $0xf5c] sm:$0xf0] }
 0x63f   : > { %v10869_v22 = vor.u32 %v11754_v20, %v10868_v19  ;;  %v10548_v26 = vld [vmem:[#allocation28 + $0xcc0] sm:$0xf]  ;;  %6629 = vmatpush.bf16.msrb.mxu1 %v10581_v63  ;;  %v3242_v51 = vadd.f32 %v3241_v12, %v2549_v41  ;;  %v9401_v19 = vor.u32 %v11382_v7, %v9398_v8  ;;  %v11302_v63 = vld [vmem:[#allocation28 + $0x144] sm:$0xf] }
 0x640   : > { %6618 = vmatpush.bf16.msrb.mxu0 %v10229_v10  ;;  %v11674_v27 = vld [vmem:[#allocation28 + $0xcdc] sm:$0xf0] }
 0x641   : > { %6642 = vmatpush.bf16.msra.mxu2 %v10869_v22  ;;  %v10836_v28 = vld [vmem:[#allocation28 + $0xf00] sm:$0xf]  ;;  %v10549_v29 = vor.u32 %v11674_v27, %v10548_v26 }
 0x642   : > { %v11746_v30 = vld [vmem:[#allocation28 + $0xf1c] sm:$0xf0] }
 0x643   : > { %v10837_v32 = vor.u32 %v11746_v30, %v10836_v28  ;;  %v10516_v34 = vld [vmem:[#allocation28 + $0xc80] sm:$0xf]  ;;  %6630 = vmatpush.bf16.msrb.mxu1 %v10549_v29  ;;  %v2551_v28 = vperm.slane %v13212_v21, 3 }
 0x644   : > { %6619 = vmatpush.bf16.msrb.mxu0 %v10197_v3  ;;  %v3213_v24 = vpop.f32.mrf.mxu3  ;;  %v3227_v25 = vpop.f32.mrf.mxu0  ;;  %v11666_v35 = vld [vmem:[#allocation28 + $0xc9c] sm:$0xf0] }
 0x645   : > { %v3214_v33 = vadd.f32 %v3213_v24, %v2548_v23  ;;  %6643 = vmatpush.bf16.msra.mxu2 %v10837_v32  ;;  %v10517_v37 = vor.u32 %v11666_v35, %v10516_v34  ;;  %v10804_v38 = vld [vmem:[#allocation28 + $0xec0] sm:$0xf]  ;;  %v11374_v24 = vld [vmem:[#allocation28 + $0x384] sm:$0xf] }
 0x646   : > { %v3243_v31 = vpop.f32.mrf.mxu1  ;;  %v11738_v40 = vld [vmem:[#allocation28 + $0xedc] sm:$0xf0]  ;;  %v11294_v32 = vld [vmem:[#allocation28 + $0x104] sm:$0xf] }
 0x647   : > { %v10805_v42 = vor.u32 %v11738_v40, %v10804_v38  ;;  %v3228_v48 = vadd.f32 %v3227_v25, %v3214_v33  ;;  %v10484_v43 = vld [vmem:[#allocation28 + $0xc40] sm:$0xf]  ;;  %6631 = vmatpush.bf16.msrb.mxu1 %v10517_v37  ;;  %v3244_v10 = vadd.f32 %v3243_v31, %v2549_v41  ;;  %v9366_v25 = vld [vmem:[#allocation28 + $0x3a0] sm:$0xf0] }
 0x648   : > { %v11658_v44 = vld [vmem:[#allocation28 + $0xc5c] sm:$0xf0]  ;;  %v9369_v31 = vor.u32 %v11374_v24, %v9366_v25  ;;  %v9046_v34 = vld [vmem:[#allocation28 + $0x120] sm:$0xf0] }
 0x649   : > { %6644 = vmatpush.bf16.msra.mxu2 %v10805_v42  ;;  %v10485_v47 = vor.u32 %v11658_v44, %v10484_v43  ;;  %v10772_v49 = vld [vmem:[#allocation28 + $0xe80] sm:$0xf]  ;;  %v3428_v54 = vmax.f32 %v3228_v48, 0.0  ;;  %v11366_v35 = vld [vmem:[#allocation28 + $0x344] sm:$0xf]  ;;  %v9049_v42 = vor.u32 %v11294_v32, %v9046_v34 }
 0x64a   : > { %v3255_v36 = vpop.f32.mrf.mxu2  ;;  %v11730_v50 = vld [vmem:[#allocation28 + $0xe9c] sm:$0xf0]  ;;  %v9014_v43 = vld [vmem:[#allocation28 + $0xe0] sm:$0xf0] }
 0x64b   : > { %v10773_v17 = vor.u32 %v11730_v50, %v10772_v49  ;;  %v3256_v55 = vadd.f32 %v3255_v36, %v3242_v51  ;;  %v10452_v59 = vld [vmem:[#allocation28 + $0xc00] sm:$0xf]  ;;  %6632 = vmatpush.bf16.msrb.mxu1 %v10485_v47  ;;  %v9334_v36 = vld [vmem:[#allocation28 + $0x360] sm:$0xf0] }
 0x64c   : > { %v3215_v45 = vpop.f32.mrf.mxu3  ;;  %v3229_v46 = vpop.f32.mrf.mxu0  ;;  %v11650_v60 = vld [vmem:[#allocation28 + $0xc1c] sm:$0xf0]  ;;  %v11358_v44 = vld [vmem:[#allocation28 + $0x304] sm:$0xf] }
 0x64d   : > { %v3216_v39 = vadd.f32 %v3215_v45, %v2548_v23  ;;  %6645 = vmatpush.bf16.msra.mxu2 %v10773_v17  ;;  %v10453_v2 = vor.u32 %v11650_v60, %v10452_v59  ;;  %v10740_v3 = vld [vmem:[#allocation28 + $0xe40] sm:$0xf]  ;;  %v3429_v13 = vmax.f32 %v3256_v55, 0.0  ;;  %v9078_v23 = vld [vmem:[#allocation28 + $0x160] sm:$0xf0]  ;;  %v9337_v45 = vor.u32 %v11366_v35, %v9334_v36 }
 0x64e   : > { %v3297_v57 = vpop.f32.mrf.mxu1  ;;  %v11722_v4 = vld [vmem:[#allocation28 + $0xe5c] sm:$0xf0]  ;;  %v9081_v30 = vor.u32 %v11302_v63, %v9078_v23  ;;  %v9302_v47 = vld [vmem:[#allocation28 + $0x320] sm:$0xf0] }
 0x64f   : > { %v3230_v52 = vadd.f32 %v3229_v46, %v3216_v39  ;;  %v10741_v9 = vor.u32 %v11722_v4, %v10740_v3  ;;  %v10708_v16 = vld [vmem:[#allocation28 + $0xe00] sm:$0xf]  ;;  %6633 = vmatpush.bf16.msrb.mxu1 %v10453_v2  ;;  %v11286_v46 = vld [vmem:[#allocation28 + $0xc4] sm:$0xf]  ;;  %v3298_v48 = vadd.f32 %v3297_v57, %v2551_v28 }
 0x650   : > { %v11714_v20 = vld [vmem:[#allocation28 + $0xe1c] sm:$0xf0]  ;;  %v11446_v49 = vld [vmem:[#allocation28 + $0x5c4] sm:$0xf] }
 0x651   : > { %v3436_v56 = vmax.f32 %v3230_v52, 0.0  ;;  %6646 = vmatpush.bf16.msra.mxu2 %v10741_v9  ;;  %v10709_v26 = vor.u32 %v11714_v20, %v10708_v16  ;;  %v9654_v50 = vld [vmem:[#allocation28 + $0x5e0] sm:$0xf0]  ;;  %v2552_v9 = vperm.slane %v13212_v21, 4 }
 0x652   : > { %v3257_v61 = vpop.f32.mrf.mxu2  ;;  %v11278_v55 = vld [vmem:[#allocation28 + $0x84] sm:$0xf] }
 0x653   : > { %v13216_v5 = vpack.c.bf16 %v3436_v56, %v3428_v54  ;;  %v3258_v1 = vadd.f32 %v3257_v61, %v3244_v10  ;;  %v9017_v54 = vor.u32 %v11286_v46, %v9014_v43  ;;  %v9305_v10 = vor.u32 %v11358_v44, %v9302_v47  ;;  %v8982_v56 = vld [vmem:[#allocation28 + $0xa0] sm:$0xf0] }
 0x654   : > { %v3269_v11 = vpop.f32.mrf.mxu3  ;;  %v3283_v12 = vpop.f32.mrf.mxu0  ;;  %v11350_v60 = vld [vmem:[#allocation28 + $0x2c4] sm:$0xf] }
 0x655   : > { %v3437_v14 = vmax.f32 %v3258_v1, 0.0  ;;  %6550 = vmatmul.bf16.vlgmr.msra.gmra.mxu3 %v13216_v5  ;;  %v3270_v27 = vadd.f32 %v3269_v11, %v2550_v15  ;;  %6647 = vmatpush.bf16.msra.mxu2 %v10709_v26  ;;  %v9270_v61 = vld [vmem:[#allocation28 + $0x2e0] sm:$0xf0] }
 0x656   : > { %6654 = vmatpush.bf16.msra.mxu3 %v9145_v62  ;;  %v3299_v33 = vpop.f32.mrf.mxu1  ;;  %v9657_v62 = vor.u32 %v11446_v49, %v9654_v50  ;;  %v9622_v3 = vld [vmem:[#allocation28 + $0x5a0] sm:$0xf0] }
 0x657   : > { %v13220_v22 = vpack.c.bf16 %v3437_v14, %v3429_v13  ;;  %v3284_v40 = vadd.f32 %v3283_v12, %v3270_v27  ;;  %v3300_v52 = vadd.f32 %v3299_v33, %v2551_v28  ;;  %v11510_v4 = vld [vmem:[#allocation28 + $0x7c4] sm:$0xf]  ;;  %v8985_v12 = vor.u32 %v11278_v55, %v8982_v56 }
 0x658   : > { %v9910_v1 = vld [vmem:[#allocation28 + $0x7e0] sm:$0xf0]  ;;  %v9273_v13 = vor.u32 %v11350_v60, %v9270_v61  ;;  %v9625_v63 = vor.u32 %v11438_v0, %v9622_v3  ;;  %v2553_v28 = vperm.slane %v13212_v21, 5 }
 0x659   : > { %6564 = vmatmul.bf16.vlgmr.msra.gmra.mxu0 %v13220_v22  ;;  %v3430_v51 = vmax.f32 %v3284_v40, 0.0  ;;  %v11270_v14 = vld [vmem:[#allocation28 + $0x44] sm:$0xf]  ;;  %v9913_v20 = vor.u32 %v11510_v4, %v9910_v1 }
 0x65a   : > { %v3311_v29 = vpop.f32.mrf.mxu2  ;;  %6655 = vmatpush.bf16.msra.mxu3 %v9113_v18  ;;  %6668 = vmatpush.bf16.msra.mxu0 %v9401_v19  ;;  %v11342_v18 = vld [vmem:[#allocation28 + $0x284] sm:$0xf] }
 0x65b   : > { %v3312_v53 = vadd.f32 %v3311_v29, %v3298_v48  ;;  %v9238_v19 = vld [vmem:[#allocation28 + $0x2a0] sm:$0xf0] }
 0x65c   : > { %v3271_v37 = vpop.f32.mrf.mxu3  ;;  %v3285_v38 = vpop.f32.mrf.mxu0  ;;  %v11430_v23 = vld [vmem:[#allocation28 + $0x544] sm:$0xf] }
 0x65d   : > { %v3272_v41 = vadd.f32 %v3271_v37, %v2550_v15  ;;  %v3431_v6 = vmax.f32 %v3312_v53, 0.0  ;;  %v8950_v15 = vld [vmem:[#allocation28 + $0x60] sm:$0xf0] }
 0x65e   : > { %6656 = vmatpush.bf16.msra.mxu3 %v9081_v30  ;;  %6669 = vmatpush.bf16.msra.mxu0 %v9369_v31  ;;  %v3353_v7 = vpop.f32.mrf.mxu1  ;;  %v9590_v24 = vld [vmem:[#allocation28 + $0x560] sm:$0xf0]  ;;  %v8953_v29 = vor.u32 %v11270_v14, %v8950_v15  ;;  %v9241_v30 = vor.u32 %v11342_v18, %v9238_v19 }
 0x65f   : > { %v3286_v39 = vadd.f32 %v3285_v38, %v3272_v41  ;;  %v11502_v25 = vld [vmem:[#allocation28 + $0x784] sm:$0xf]  ;;  %v9593_v36 = vor.u32 %v11430_v23, %v9590_v24 }
 0x660   : > { %v9878_v26 = vld [vmem:[#allocation28 + $0x7a0] sm:$0xf0] }
 0x661   : > { %v3438_v58 = vmax.f32 %v3286_v39, 0.0  ;;  %v11262_v31 = vld [vmem:[#allocation28 + $0x4] sm:$0xf]  ;;  %v9881_v37 = vor.u32 %v11502_v25, %v9878_v26 }
 0x662   : > { %v3313_v17 = vpop.f32.mrf.mxu2  ;;  %6657 = vmatpush.bf16.msra.mxu3 %v9049_v42  ;;  %6670 = vmatpush.bf16.msra.mxu0 %v9337_v45  ;;  %v8918_v32 = vld [vmem:[#allocation28 + $0x20] sm:$0xf0] }
 0x663   : > { %v13224_v59 = vpack.c.bf16 %v3438_v58, %v3430_v51  ;;  %v3314_v57 = vadd.f32 %v3313_v17, %v3300_v52  ;;  %v11334_v34 = vld [vmem:[#allocation28 + $0x244] sm:$0xf]  ;;  %v8921_v43 = vor.u32 %v11262_v31, %v8918_v32 }
 0x664   : > { %v3325_v2 = vpop.f32.mrf.mxu3  ;;  %v3339_v11 = vpop.f32.mrf.mxu0  ;;  %v9206_v35 = vld [vmem:[#allocation28 + $0x260] sm:$0xf0] }
 0x665   : > { %v3439_v8 = vmax.f32 %v3314_v57, 0.0  ;;  %6578 = vmatmul.bf16.vlgmr.msra.gmra.mxu1 %v13224_v59  ;;  %v3326_v27 = vadd.f32 %v3325_v2, %v2552_v9  ;;  %v11422_v38 = vld [vmem:[#allocation28 + $0x504] sm:$0xf]  ;;  %v9209_v44 = vor.u32 %v11334_v34, %v9206_v35 }
 0x666   : > { %6658 = vmatpush.bf16.msra.mxu3 %v9017_v54  ;;  %6671 = vmatpush.bf16.msra.mxu0 %v9305_v10  ;;  %v9558_v41 = vld [vmem:[#allocation28 + $0x520] sm:$0xf0]  ;;  %v3355_v50 = vpop.f32.mrf.mxu1  ;;  %v3354_v10 = vadd.f32 %v3353_v7, %v2553_v28 }
 0x667   : > { %v13228_v16 = vpack.c.bf16 %v3439_v8, %v3431_v6  ;;  %6682 = vmatpush.bf16.msra.mxu1 %v9657_v62  ;;  %v11494_v42 = vld [vmem:[#allocation28 + $0x744] sm:$0xf]  ;;  %v3340_v46 = vadd.f32 %v3339_v11, %v3326_v27  ;;  %v9561_v58 = vor.u32 %v11422_v38, %v9558_v41  ;;  %v3356_v0 = vadd.f32 %v3355_v50, %v2553_v28 }
 0x668   : > { %v9846_v45 = vld [vmem:[#allocation28 + $0x760] sm:$0xf0] }
 0x669   : > { %6592 = vmatmul.bf16.vlgmr.msrb.gmra.mxu2 %v13228_v16  ;;  %v11574_v47 = vld [vmem:[#allocation28 + $0x9c4] sm:$0xf]  ;;  %v9849_v17 = vor.u32 %v11494_v42, %v9846_v45  ;;  %v3432_v60 = vmax.f32 %v3340_v46, 0.0 }
 0x66a   : > { %6659 = vmatpush.bf16.msra.mxu3 %v8985_v12  ;;  %6672 = vmatpush.bf16.msra.mxu0 %v9273_v13  ;;  %v3367_v33 = vpop.f32.mrf.mxu2  ;;  %v10166_v49 = vld [vmem:[#allocation28 + $0x9e0] sm:$0xf0] }
 0x66b   : > { %6683 = vmatpush.bf16.msra.mxu1 %v9625_v63  ;;  %6696 = vmatpush.bf16.msrb.mxu2 %v9913_v20  ;;  %v11326_v52 = vld [vmem:[#allocation28 + $0x204] sm:$0xf]  ;;  %v10169_v62 = vor.u32 %v11574_v47, %v10166_v49  ;;  %v3368_v2 = vadd.f32 %v3367_v33, %v3354_v10 }
 0x66c   : > { %v3327_v40 = vpop.f32.mrf.mxu3  ;;  %v3341_v39 = vpop.f32.mrf.mxu0  ;;  %v9174_v53 = vld [vmem:[#allocation28 + $0x220] sm:$0xf0] }
 0x66d   : > { %v3328_v48 = vadd.f32 %v3327_v40, %v2552_v9  ;;  %v11414_v54 = vld [vmem:[#allocation28 + $0x4c4] sm:$0xf]  ;;  %v9177_v3 = vor.u32 %v11326_v52, %v9174_v53  ;;  %v3433_v63 = vmax.f32 %v3368_v2, 0.0 }
 0x66e   : > { %6660 = vmatpush.bf16.msra.mxu3 %v8953_v29  ;;  %6673 = vmatpush.bf16.msra.mxu0 %v9241_v30  ;;  %v9526_v55 = vld [vmem:[#allocation28 + $0x4e0] sm:$0xf0] }
 0x66f   : > { %v3342_v51 = vadd.f32 %v3341_v39, %v3328_v48  ;;  %6684 = vmatpush.bf16.msra.mxu1 %v9593_v36  ;;  %6697 = vmatpush.bf16.msrb.mxu2 %v9881_v37  ;;  %v11486_v56 = vld [vmem:[#allocation28 + $0x704] sm:$0xf]  ;;  %v9529_v7 = vor.u32 %v11414_v54, %v9526_v55 }
 0x670   : > { %v9814_v57 = vld [vmem:[#allocation28 + $0x720] sm:$0xf0] }
 0x671   : > { %v3440_v61 = vmax.f32 %v3342_v51, 0.0  ;;  %v11566_v6 = vld [vmem:[#allocation28 + $0x984] sm:$0xf]  ;;  %v9817_v11 = vor.u32 %v11486_v56, %v9814_v57 }
 0x672   : > { %6661 = vmatpush.bf16.msra.mxu3 %v8921_v43  ;;  %6674 = vmatpush.bf16.msra.mxu0 %v9209_v44  ;;  %v3369_v1 = vpop.f32.mrf.mxu2  ;;  %v10134_v8 = vld [vmem:[#allocation28 + $0x9a0] sm:$0xf0] }
 0x673   : > { %v13232_v4 = vpack.c.bf16 %v3440_v61, %v3432_v60  ;;  %v11638_v9 = vld [vmem:[#allocation28 + $0xbc4] sm:$0xf]  ;;  %6685 = vmatpush.bf16.msra.mxu1 %v9561_v58  ;;  %6698 = vmatpush.bf16.msrb.mxu2 %v9849_v17  ;;  %v3370_v12 = vadd.f32 %v3369_v1, %v3356_v0  ;;  %v10137_v23 = vor.u32 %v11566_v6, %v10134_v8  ;;  %v2554_v60 = vperm.slane %v13212_v21, 6 }
 0x674   : > { %v10422_v13 = vld [vmem:[#allocation28 + $0xbe0] sm:$0xf0] }
 0x675   : > { %v11406_v14 = vld [vmem:[#allocation28 + $0x484] sm:$0xf]  ;;  %6606 = vmatmul.bf16.vlgmr.msrb.gmra.mxu3 %v13232_v4  ;;  %v3441_v20 = vmax.f32 %v3370_v12, 0.0  ;;  %v10425_v24 = vor.u32 %v11638_v9, %v10422_v13 }
 0x676   : > { %v9494_v15 = vld [vmem:[#allocation28 + $0x4a0] sm:$0xf0]  ;;  %6710 = vmatpush.bf16.msrb.mxu3 %v10169_v62  ;;  %6675 = vmatpush.bf16.msra.mxu0 %v9177_v3 }
 0x677   : > { %v11478_v18 = vld [vmem:[#allocation28 + $0x6c4] sm:$0xf]  ;;  %6686 = vmatpush.bf16.msra.mxu1 %v9529_v7  ;;  %6699 = vmatpush.bf16.msrb.mxu2 %v9817_v11  ;;  %v9497_v28 = vor.u32 %v11406_v14, %v9494_v15  ;;  %v13235_v29 = vpack.c.bf16 %v3441_v20, %v3433_v63  ;;  %v2555_v14 = vperm.slane %v13212_v21, 7 }
 0x678   : > { %v9782_v19 = vld [vmem:[#allocation28 + $0x6e0] sm:$0xf0] }
 0x679   : > { %v11558_v25 = vld [vmem:[#allocation28 + $0x944] sm:$0xf]  ;;  %v9785_v31 = vor.u32 %v11478_v18, %v9782_v19  ;;  %6620 = vmatmul.bf16.vlgmr.msrb.gmra.mxu0 %v13235_v29 }
 0x67a   : > { %v10102_v26 = vld [vmem:[#allocation28 + $0x960] sm:$0xf0]  ;;  %6711 = vmatpush.bf16.msrb.mxu3 %v10137_v23  ;;  %6724 = vmatpush.bf16.msrb.mxu0 %v10425_v24 }
 0x67b   : > { %v11630_v27 = vld [vmem:[#allocation28 + $0xb84] sm:$0xf]  ;;  %v10105_v36 = vor.u32 %v11558_v25, %v10102_v26  ;;  %6687 = vmatpush.bf16.msra.mxu1 %v9497_v28  ;;  %6700 = vmatpush.bf16.msrb.mxu2 %v9785_v31 }
 0x67c   : > { %v10390_v30 = vld [vmem:[#allocation28 + $0xba0] sm:$0xf0] }
 0x67d   : > { %v11398_v32 = vld [vmem:[#allocation28 + $0x444] sm:$0xf]  ;;  %v10393_v37 = vor.u32 %v11630_v27, %v10390_v30 }
 0x67e   : > { %v9462_v33 = vld [vmem:[#allocation28 + $0x460] sm:$0xf0]  ;;  %6712 = vmatpush.bf16.msrb.mxu3 %v10105_v36  ;;  %v3409_v53 = vpop.f32.mrf.mxu1  ;;  %v9148_v36 = vld [vmem:[#allocation28 + $0x1c8] sm:$0xf] }
 0x67f   : > { %v11470_v34 = vld [vmem:[#allocation28 + $0x684] sm:$0xf]  ;;  %v9465_v42 = vor.u32 %v11398_v32, %v9462_v33  ;;  %6725 = vmatpush.bf16.msrb.mxu0 %v10393_v37  ;;  %v3410_v31 = vadd.f32 %v3409_v53, %v2555_v14  ;;  %v11323_v37 = vld [vmem:[#allocation28 + $0x1e4] sm:$0xf0] }
 0x680   : > { %v9750_v35 = vld [vmem:[#allocation28 + $0x6a0] sm:$0xf0] }
 0x681   : > { %v11550_v38 = vld [vmem:[#allocation28 + $0x904] sm:$0xf]  ;;  %v9753_v46 = vor.u32 %v11470_v34, %v9750_v35  ;;  %6688 = vmatpush.bf16.msra.mxu1 %v9465_v42 }
 0x682   : > { %v10070_v40 = vld [vmem:[#allocation28 + $0x920] sm:$0xf0] }
 0x683   : > { %v11622_v41 = vld [vmem:[#allocation28 + $0xb44] sm:$0xf]  ;;  %v10073_v47 = vor.u32 %v11550_v38, %v10070_v40  ;;  %6701 = vmatpush.bf16.msrb.mxu2 %v9753_v46 }
 0x684   : > { %v10358_v45 = vld [vmem:[#allocation28 + $0xb60] sm:$0xf0]  ;;  %v3381_v10 = vpop.f32.mrf.mxu3  ;;  %v3395_v55 = vpop.f32.mrf.mxu0 }
 0x685   : > { %v11390_v48 = vld [vmem:[#allocation28 + $0x404] sm:$0xf]  ;;  %v10361_v49 = vor.u32 %v11622_v41, %v10358_v45  ;;  %6713 = vmatpush.bf16.msrb.mxu3 %v10073_v47  ;;  %v3382_v8 = vadd.f32 %v3381_v10, %v2554_v60 }
 0x686   : > { %v9430_v39 = vld [vmem:[#allocation28 + $0x420] sm:$0xf0]  ;;  %6662 = vmatmul.bf16.vlgmr.msra.gmra.mxu3 %v13216_v5  ;;  %v3411_v26 = vpop.f32.mrf.mxu1 }
 0x687   : > { %v11462_v43 = vld [vmem:[#allocation28 + $0x644] sm:$0xf]  ;;  %v9433_v52 = vor.u32 %v11390_v48, %v9430_v39  ;;  %6726 = vmatpush.bf16.msrb.mxu0 %v10361_v49  ;;  %v3396_v63 = vadd.f32 %v3395_v55, %v3382_v8  ;;  %v3412_v40 = vadd.f32 %v3411_v26, %v2555_v14  ;;  %v9149_v49 = vor.u32 %v11323_v37, %v9148_v36  ;;  %v9404_v55 = vld [vmem:[#allocation28 + $0x3c8] sm:$0xf] }
 0x688   : > { %v9718_v44 = vld [vmem:[#allocation28 + $0x660] sm:$0xf0]  ;;  %v9340_v26 = vld [vmem:[#allocation28 + $0x348] sm:$0xf] }
 0x689   : > { %v11542_v50 = vld [vmem:[#allocation28 + $0x8c4] sm:$0xf]  ;;  %v9721_v54 = vor.u32 %v11462_v43, %v9718_v44  ;;  %6689 = vmatpush.bf16.msra.mxu1 %v9433_v52  ;;  %6676 = vmatmul.bf16.vlgmr.msra.gmra.mxu0 %v13220_v22  ;;  %v3434_v38 = vmax.f32 %v3396_v63, 0.0  ;;  %v9020_v36 = vld [vmem:[#allocation28 + $0xc8] sm:$0xf] }
 0x68a   : > { %v10038_v51 = vld [vmem:[#allocation28 + $0x8e0] sm:$0xf0]  ;;  %v3423_v7 = vpop.f32.mrf.mxu2  ;;  %v11291_v37 = vld [vmem:[#allocation28 + $0xe4] sm:$0xf0] }
 0x68b   : > { %v11614_v58 = vld [vmem:[#allocation28 + $0xb04] sm:$0xf]  ;;  %v10041_v61 = vor.u32 %v11542_v50, %v10038_v51  ;;  %6702 = vmatpush.bf16.msrb.mxu2 %v9721_v54  ;;  %v3424_v41 = vadd.f32 %v3423_v7, %v3410_v31  ;;  %v11307_v7 = vld [vmem:[#allocation28 + $0x164] sm:$0xf0] }
 0x68c   : > { %v10326_v17 = vld [vmem:[#allocation28 + $0xb20] sm:$0xf0]  ;;  %v3383_v19 = vpop.f32.mrf.mxu3  ;;  %v3397_v27 = vpop.f32.mrf.mxu0 }
 0x68d   : > { %v11454_v56 = vld [vmem:[#allocation28 + $0x604] sm:$0xf]  ;;  %v10329_v62 = vor.u32 %v11614_v58, %v10326_v17  ;;  %6714 = vmatpush.bf16.msrb.mxu3 %v10041_v61  ;;  %v3384_v20 = vadd.f32 %v3383_v19, %v2554_v60  ;;  %v9116_v58 = vld [vmem:[#allocation28 + $0x188] sm:$0xf]  ;;  %v3435_v54 = vmax.f32 %v3424_v41, 0.0 }
 0x68e   : > { %v9686_v57 = vld [vmem:[#allocation28 + $0x620] sm:$0xf0]  ;;  %v11315_v17 = vld [vmem:[#allocation28 + $0x1a4] sm:$0xf0] }
 0x68f   : > { %v11534_v0 = vld [vmem:[#allocation28 + $0x884] sm:$0xf]  ;;  %v9689_v6 = vor.u32 %v11454_v56, %v9686_v57  ;;  %6727 = vmatpush.bf16.msrb.mxu0 %v10329_v62  ;;  %v3398_v32 = vadd.f32 %v3397_v27, %v3384_v20  ;;  %v11387_v56 = vld [vmem:[#allocation28 + $0x3e4] sm:$0xf0] }
 0x690   : > { %v10006_v2 = vld [vmem:[#allocation28 + $0x8a0] sm:$0xf0]  ;;  %v11371_v27 = vld [vmem:[#allocation28 + $0x364] sm:$0xf0] }
 0x691   : > { %v11606_v3 = vld [vmem:[#allocation28 + $0xac4] sm:$0xf]  ;;  %v10009_v9 = vor.u32 %v11534_v0, %v10006_v2  ;;  %6703 = vmatpush.bf16.msrb.mxu2 %v9689_v6  ;;  %v3442_v42 = vmax.f32 %v3398_v32, 0.0  ;;  %v9117_v0 = vor.u32 %v11315_v17, %v9116_v58  ;;  %v9405_v6 = vor.u32 %v11387_v56, %v9404_v55 }
 0x692   : > { %v10294_v1 = vld [vmem:[#allocation28 + $0xae0] sm:$0xf0]  ;;  %v3425_v45 = vpop.f32.mrf.mxu2 }
 0x693   : > { %v10297_v11 = vor.u32 %v11606_v3, %v10294_v1  ;;  %v11526_v12 = vld [vmem:[#allocation28 + $0x844] sm:$0xf]  ;;  %6715 = vmatpush.bf16.msrb.mxu3 %v10009_v9  ;;  %v13242_v44 = vpack.c.bf16 %v3442_v42, %v3434_v38  ;;  %v3426_v47 = vadd.f32 %v3425_v45, %v3412_v40  ;;  %v9084_v9 = vld [vmem:[#allocation28 + $0x148] sm:$0xf]  ;;  %v9021_v45 = vor.u32 %v11291_v37, %v9020_v36 }
 0x694   : > { %v9974_v13 = vld [vmem:[#allocation28 + $0x860] sm:$0xf0]  ;;  %v9308_v38 = vld [vmem:[#allocation28 + $0x308] sm:$0xf] }
 0x695   : > { %v11598_v15 = vld [vmem:[#allocation28 + $0xa84] sm:$0xf]  ;;  %v9977_v23 = vor.u32 %v11526_v12, %v9974_v13  ;;  %6728 = vmatpush.bf16.msrb.mxu0 %v10297_v11  ;;  %v3443_v10 = vmax.f32 %v3426_v47, 0.0  ;;  %6634 = vmatmul.bf16.vlgmr.msrb.gmra.mxu1 %v13242_v44  ;;  %v9372_v11 = vld [vmem:[#allocation28 + $0x388] sm:$0xf] }
 0x696   : > { %v10262_v18 = vld [vmem:[#allocation28 + $0xaa0] sm:$0xf0]  ;;  %v11379_v12 = vld [vmem:[#allocation28 + $0x3a4] sm:$0xf0] }
 0x697   : > { %v11518_v24 = vld [vmem:[#allocation28 + $0x804] sm:$0xf]  ;;  %v10265_v28 = vor.u32 %v11598_v15, %v10262_v18  ;;  %6716 = vmatpush.bf16.msrb.mxu3 %v9977_v23  ;;  %v13245_v61 = vpack.c.bf16 %v3443_v10, %v3435_v54  ;;  %v9085_v15 = vor.u32 %v11307_v7, %v9084_v9  ;;  %v9373_v20 = vor.u32 %v11379_v12, %v9372_v11  ;;  %v11363_v40 = vld [vmem:[#allocation28 + $0x324] sm:$0xf0] }
 0x698   : > { %v9942_v25 = vld [vmem:[#allocation28 + $0x820] sm:$0xf0]  ;;  %v9916_v36 = vld [vmem:[#allocation28 + $0x7c8] sm:$0xf] }
 0x699   : > { %v11590_v30 = vld [vmem:[#allocation28 + $0xa44] sm:$0xf]  ;;  %v9945_v35 = vor.u32 %v11518_v24, %v9942_v25  ;;  %6729 = vmatpush.bf16.msrb.mxu0 %v10265_v28  ;;  %6648 = vmatmul.bf16.vlgmr.msra.gmra.mxu2 %v13245_v61  ;;  %v9052_v24 = vld [vmem:[#allocation28 + $0x108] sm:$0xf] }
 0x69a   : > { %v10230_v21 = vld [vmem:[#allocation28 + $0xa60] sm:$0xf0]  ;;  %v11299_v25 = vld [vmem:[#allocation28 + $0x124] sm:$0xf0] }
 0x69b   : > { %v11702_v33 = vld [vmem:[#allocation28 + $0xdc4] sm:$0xf]  ;;  %v10233_v46 = vor.u32 %v11590_v30, %v10230_v21  ;;  %6717 = vmatpush.bf16.msrb.mxu3 %v9945_v35  ;;  %v9053_v31 = vor.u32 %v11299_v25, %v9052_v24  ;;  %v11579_v24 = vld [vmem:[#allocation28 + $0x9e4] sm:$0xf0] }
 0x69c   : > { %v10678_v34 = vld [vmem:[#allocation28 + $0xde0] sm:$0xf0]  ;;  %v11515_v37 = vld [vmem:[#allocation28 + $0x7e4] sm:$0xf0] }
 0x69d   : > { %v10681_v48 = vor.u32 %v11702_v33, %v10678_v34  ;;  %v11582_v39 = vld [vmem:[#allocation28 + $0xa04] sm:$0xf]  ;;  %6730 = vmatpush.bf16.msrb.mxu0 %v10233_v46  ;;  %v9341_v34 = vor.u32 %v11371_v27, %v9340_v26 }
 0x69e   : > { %v10198_v43 = vld [vmem:[#allocation28 + $0xa20] sm:$0xf0]  ;;  %6718 = vmatmul.bf16.vlgmr.msrb.gmra.mxu3 %v13232_v4 }
 0x69f   : > { %v11694_v50 = vld [vmem:[#allocation28 + $0xd84] sm:$0xf]  ;;  %6738 = vmatpush.bf16.msrb.mxu1 %v10681_v48  ;;  %v10201_v57 = vor.u32 %v11582_v39, %v10198_v43  ;;  %6766 = vmatpush.bf16.msra.mxu3 %v9149_v49  ;;  %v9309_v43 = vor.u32 %v11363_v40, %v9308_v38  ;;  %v8988_v49 = vld [vmem:[#allocation28 + $0x88] sm:$0xf] }
 0x6a0   : > { %v10646_v51 = vld [vmem:[#allocation28 + $0xda0] sm:$0xf0]  ;;  %v10140_v38 = vld [vmem:[#allocation28 + $0x988] sm:$0xf] }
 0x6a1   : > { %v11766_v52 = vld [vmem:[#allocation28 + $0xfc4] sm:$0xf]  ;;  %v10649_v60 = vor.u32 %v11694_v50, %v10646_v51  ;;  %6731 = vmatpush.bf16.msrb.mxu0 %v10201_v57  ;;  %v11283_v50 = vld [vmem:[#allocation28 + $0xa4] sm:$0xf0] }
 0x6a2   : > { %v10934_v53 = vld [vmem:[#allocation28 + $0xfe0] sm:$0xf0]  ;;  %v9276_v51 = vld [vmem:[#allocation28 + $0x2c8] sm:$0xf]  ;;  %v8989_v17 = vor.u32 %v11283_v50, %v8988_v49 }
 0x6a3   : > { %v10937_v62 = vor.u32 %v11766_v52, %v10934_v53  ;;  %v11686_v2 = vld [vmem:[#allocation28 + $0xd44] sm:$0xf]  ;;  %6739 = vmatpush.bf16.msrb.mxu1 %v10649_v60  ;;  %6767 = vmatpush.bf16.msra.mxu3 %v9117_v0  ;;  %v11355_v52 = vld [vmem:[#allocation28 + $0x2e4] sm:$0xf0] }
 0x6a4   : > { %v10614_v3 = vld [vmem:[#allocation28 + $0xd60] sm:$0xf0]  ;;  %6732 = vmatmul.bf16.vlgmr.msrb.gmra.mxu0 %v13235_v29  ;;  %v9277_v56 = vor.u32 %v11355_v52, %v9276_v51  ;;  %v8956_v60 = vld [vmem:[#allocation28 + $0x48] sm:$0xf] }
 0x6a5   : > { %v11758_v1 = vld [vmem:[#allocation28 + $0xf84] sm:$0xf]  ;;  %v10617_v13 = vor.u32 %v11686_v2, %v10614_v3  ;;  %6752 = vmatpush.bf16.msra.mxu2 %v10937_v62  ;;  %6780 = vmatpush.bf16.msra.mxu0 %v9405_v6  ;;  %v11275_v62 = vld [vmem:[#allocation28 + $0x64] sm:$0xf0] }
 0x6a6   : > { %v10902_v8 = vld [vmem:[#allocation28 + $0xfa0] sm:$0xf0]  ;;  %6690 = vmatmul.bf16.vlgmr.msra.gmra.mxu1 %v13224_v59  ;;  %v9244_v0 = vld [vmem:[#allocation28 + $0x288] sm:$0xf] }
 0x6a7   : > { %v10905_v14 = vor.u32 %v11758_v1, %v10902_v8  ;;  %v11678_v18 = vld [vmem:[#allocation28 + $0xd04] sm:$0xf]  ;;  %6740 = vmatpush.bf16.msrb.mxu1 %v10617_v13  ;;  %6768 = vmatpush.bf16.msra.mxu3 %v9085_v15  ;;  %v11347_v2 = vld [vmem:[#allocation28 + $0x2a4] sm:$0xf0]  ;;  %v8957_v8 = vor.u32 %v11275_v62, %v8956_v60 }
 0x6a8   : > { %v10582_v19 = vld [vmem:[#allocation28 + $0xd20] sm:$0xf0]  ;;  %v9245_v12 = vor.u32 %v11347_v2, %v9244_v0  ;;  %v8924_v13 = vld [vmem:[#allocation28 + $0x8] sm:$0xf] }
 0x6a9   : > { %v11750_v63 = vld [vmem:[#allocation28 + $0xf44] sm:$0xf]  ;;  %v10585_v28 = vor.u32 %v11678_v18, %v10582_v19  ;;  %6753 = vmatpush.bf16.msra.mxu2 %v10905_v14  ;;  %6781 = vmatpush.bf16.msra.mxu0 %v9373_v20  ;;  %v11267_v14 = vld [vmem:[#allocation28 + $0x24] sm:$0xf0] }
 0x6aa   : > { %v10870_v23 = vld [vmem:[#allocation28 + $0xf60] sm:$0xf0]  ;;  %6704 = vmatmul.bf16.vlgmr.msrb.gmra.mxu2 %v13228_v16  ;;  %v9212_v15 = vld [vmem:[#allocation28 + $0x248] sm:$0xf]  ;;  %v8925_v26 = vor.u32 %v11267_v14, %v8924_v13 }
 0x6ab   : > { %v10873_v30 = vor.u32 %v11750_v63, %v10870_v23  ;;  %v11670_v32 = vld [vmem:[#allocation28 + $0xcc4] sm:$0xf]  ;;  %6741 = vmatpush.bf16.msrb.mxu1 %v10585_v28  ;;  %6769 = vmatpush.bf16.msra.mxu3 %v9053_v31  ;;  %v11339_v18 = vld [vmem:[#allocation28 + $0x264] sm:$0xf0] }
 0x6ac   : > { %v10550_v21 = vld [vmem:[#allocation28 + $0xce0] sm:$0xf0]  ;;  %v9660_v19 = vld [vmem:[#allocation28 + $0x5c8] sm:$0xf]  ;;  %v9213_v28 = vor.u32 %v11339_v18, %v9212_v15 }
 0x6ad   : > { %v11742_v33 = vld [vmem:[#allocation28 + $0xf04] sm:$0xf]  ;;  %v10553_v41 = vor.u32 %v11670_v32, %v10550_v21  ;;  %6754 = vmatpush.bf16.msra.mxu2 %v10873_v30  ;;  %6782 = vmatpush.bf16.msra.mxu0 %v9341_v34  ;;  %v11451_v63 = vld [vmem:[#allocation28 + $0x5e4] sm:$0xf0] }
 0x6ae   : > { %v10838_v35 = vld [vmem:[#allocation28 + $0xf20] sm:$0xf0]  ;;  %v10172_v23 = vld [vmem:[#allocation28 + $0x9c8] sm:$0xf]  ;;  %v9661_v30 = vor.u32 %v11451_v63, %v9660_v19 }
 0x6af   : > { %v10841_v42 = vor.u32 %v11742_v33, %v10838_v35  ;;  %v11662_v46 = vld [vmem:[#allocation28 + $0xc84] sm:$0xf]  ;;  %6742 = vmatpush.bf16.msrb.mxu1 %v10553_v41  ;;  %6770 = vmatpush.bf16.msra.mxu3 %v9021_v45  ;;  %v9180_v32 = vld [vmem:[#allocation28 + $0x208] sm:$0xf]  ;;  %v10173_v33 = vor.u32 %v11579_v24, %v10172_v23 }
 0x6b0   : > { %v10518_v48 = vld [vmem:[#allocation28 + $0xca0] sm:$0xf0]  ;;  %v11331_v21 = vld [vmem:[#allocation28 + $0x224] sm:$0xf0] }
 0x6b1   : > { %v11734_v39 = vld [vmem:[#allocation28 + $0xec4] sm:$0xf]  ;;  %v10521_v53 = vor.u32 %v11662_v46, %v10518_v48  ;;  %6755 = vmatpush.bf16.msra.mxu2 %v10841_v42  ;;  %6783 = vmatpush.bf16.msra.mxu0 %v9309_v43  ;;  %v9628_v34 = vld [vmem:[#allocation28 + $0x588] sm:$0xf]  ;;  %v9181_v46 = vor.u32 %v11331_v21, %v9180_v32 }
 0x6b2   : > { %v10806_v47 = vld [vmem:[#allocation28 + $0xee0] sm:$0xf0]  ;;  %v11443_v35 = vld [vmem:[#allocation28 + $0x5a4] sm:$0xf0] }
 0x6b3   : > { %v10809_v58 = vor.u32 %v11734_v39, %v10806_v47  ;;  %v11654_v54 = vld [vmem:[#allocation28 + $0xc44] sm:$0xf]  ;;  %6743 = vmatpush.bf16.msrb.mxu1 %v10521_v53  ;;  %6771 = vmatpush.bf16.msra.mxu3 %v8989_v17  ;;  %v11571_v40 = vld [vmem:[#allocation28 + $0x9a4] sm:$0xf0]  ;;  %v9629_v48 = vor.u32 %v11443_v35, %v9628_v34  ;;  %v9917_v39 = vor.u32 %v11515_v37, %v9916_v36 }
 0x6b4   : > { %v10486_v10 = vld [vmem:[#allocation28 + $0xc60] sm:$0xf0]  ;;  %v10428_v42 = vld [vmem:[#allocation28 + $0xbc8] sm:$0xf]  ;;  %v10141_v43 = vor.u32 %v11571_v40, %v10140_v38 }
 0x6b5   : > { %v11726_v55 = vld [vmem:[#allocation28 + $0xe84] sm:$0xf]  ;;  %v10489_v3 = vor.u32 %v11654_v54, %v10486_v10  ;;  %6756 = vmatpush.bf16.msra.mxu2 %v10809_v58  ;;  %6784 = vmatpush.bf16.msra.mxu0 %v9277_v56  ;;  %v11643_v45 = vld [vmem:[#allocation28 + $0xbe4] sm:$0xf0] }
 0x6b6   : > { %v10774_v57 = vld [vmem:[#allocation28 + $0xea0] sm:$0xf0]  ;;  %v9596_v47 = vld [vmem:[#allocation28 + $0x548] sm:$0xf]  ;;  %v10429_v51 = vor.u32 %v11643_v45, %v10428_v42 }
 0x6b7   : > { %v11646_v1 = vld [vmem:[#allocation28 + $0xc04] sm:$0xf]  ;;  %v10777_v6 = vor.u32 %v11726_v55, %v10774_v57  ;;  %6744 = vmatpush.bf16.msrb.mxu1 %v10489_v3  ;;  %6772 = vmatpush.bf16.msra.mxu3 %v8957_v8  ;;  %v11435_v49 = vld [vmem:[#allocation28 + $0x564] sm:$0xf0] }
 0x6b8   : > { %v10454_v9 = vld [vmem:[#allocation28 + $0xc20] sm:$0xf0]  ;;  %v9884_v50 = vld [vmem:[#allocation28 + $0x788] sm:$0xf]  ;;  %v9597_v10 = vor.u32 %v11435_v49, %v9596_v47 }
 0x6b9   : > { %v11718_v7 = vld [vmem:[#allocation28 + $0xe44] sm:$0xf]  ;;  %v10457_v20 = vor.u32 %v11646_v1, %v10454_v9  ;;  %6757 = vmatpush.bf16.msra.mxu2 %v10777_v6  ;;  %6785 = vmatpush.bf16.msra.mxu0 %v9245_v12  ;;  %v11507_v52 = vld [vmem:[#allocation28 + $0x7a4] sm:$0xf0] }
 0x6ba   : > { %v10742_v11 = vld [vmem:[#allocation28 + $0xe60] sm:$0xf0]  ;;  %v10108_v53 = vld [vmem:[#allocation28 + $0x948] sm:$0xf]  ;;  %v9885_v55 = vor.u32 %v11507_v52, %v9884_v50 }
 0x6bb   : > { %v10745_v25 = vor.u32 %v11718_v7, %v10742_v11  ;;  %v11710_v27 = vld [vmem:[#allocation28 + $0xe04] sm:$0xf]  ;;  %6745 = vmatpush.bf16.msrb.mxu1 %v10457_v20  ;;  %6773 = vmatpush.bf16.msra.mxu3 %v8925_v26  ;;  %v11563_v58 = vld [vmem:[#allocation28 + $0x964] sm:$0xf0] }
 0x6bc   : > { %v10710_v31 = vld [vmem:[#allocation28 + $0xe20] sm:$0xf0]  ;;  %v10396_v17 = vld [vmem:[#allocation28 + $0xb88] sm:$0xf]  ;;  %v10109_v56 = vor.u32 %v11563_v58, %v10108_v53 }
 0x6bd   : > { %6758 = vmatpush.bf16.msra.mxu2 %v10745_v25  ;;  %v10713_v41 = vor.u32 %v11710_v27, %v10710_v31  ;;  %6786 = vmatpush.bf16.msra.mxu0 %v9213_v28  ;;  %v11635_v54 = vld [vmem:[#allocation28 + $0xba4] sm:$0xf0] }
 0x6be   : > { %6746 = vmatmul.bf16.vlgmr.msrb.gmra.mxu1 %v13242_v44  ;;  %6774 = vmatmul.bf16.vlgmr.msra.gmra.mxu3 %v13216_v5  ;;  %v9564_v57 = vld [vmem:[#allocation28 + $0x508] sm:$0xf]  ;;  %v10397_v0 = vor.u32 %v11635_v54, %v10396_v17 }
 0x6bf   : > { %6794 = vmatpush.bf16.msra.mxu1 %v9661_v30  ;;  %6822 = vmatpush.bf16.msrb.mxu3 %v10173_v33  ;;  %v11427_v60 = vld [vmem:[#allocation28 + $0x524] sm:$0xf0] }
 0x6c0   : > { %v9852_v62 = vld [vmem:[#allocation28 + $0x748] sm:$0xf]  ;;  %v9565_v9 = vor.u32 %v11427_v60, %v9564_v57 }
 0x6c1   : > { %6759 = vmatpush.bf16.msra.mxu2 %v10713_v41  ;;  %6787 = vmatpush.bf16.msra.mxu0 %v9181_v46  ;;  %v11499_v2 = vld [vmem:[#allocation28 + $0x764] sm:$0xf0] }
 0x6c2   : > { %v10076_v3 = vld [vmem:[#allocation28 + $0x908] sm:$0xf]  ;;  %v9853_v7 = vor.u32 %v11499_v2, %v9852_v62  ;;  %v11319_v2 = vld [vmem:[#allocation28 + $0x1cc] sm:$0xf] }
 0x6c3   : > { %6795 = vmatpush.bf16.msra.mxu1 %v9629_v48  ;;  %6823 = vmatpush.bf16.msrb.mxu3 %v10141_v43  ;;  %v11555_v1 = vld [vmem:[#allocation28 + $0x924] sm:$0xf0] }
 0x6c4   : > { %6760 = vmatmul.bf16.vlgmr.msra.gmra.mxu2 %v13245_v61  ;;  %6788 = vmatmul.bf16.vlgmr.msra.gmra.mxu0 %v13220_v22  ;;  %v10364_v6 = vld [vmem:[#allocation28 + $0xb48] sm:$0xf]  ;;  %v10077_v11 = vor.u32 %v11555_v1, %v10076_v3  ;;  %v9150_v3 = vld [vmem:[#allocation28 + $0x1e8] sm:$0xf0] }
 0x6c5   : > { %6808 = vmatpush.bf16.msrb.mxu2 %v9917_v39  ;;  %6836 = vmatpush.bf16.msrb.mxu0 %v10429_v51  ;;  %v11627_v8 = vld [vmem:[#allocation28 + $0xb64] sm:$0xf0] }
 0x6c6   : > { %v9532_v12 = vld [vmem:[#allocation28 + $0x4c8] sm:$0xf]  ;;  %v10365_v15 = vor.u32 %v11627_v8, %v10364_v6 }
 0x6c7   : > { %6796 = vmatpush.bf16.msra.mxu1 %v9597_v10  ;;  %6824 = vmatpush.bf16.msrb.mxu3 %v10109_v56  ;;  %v11419_v13 = vld [vmem:[#allocation28 + $0x4e4] sm:$0xf0] }
 0x6c8   : > { %v9820_v14 = vld [vmem:[#allocation28 + $0x708] sm:$0xf]  ;;  %v9533_v24 = vor.u32 %v11419_v13, %v9532_v12 }
 0x6c9   : > { %6809 = vmatpush.bf16.msrb.mxu2 %v9885_v55  ;;  %6837 = vmatpush.bf16.msrb.mxu0 %v10397_v0  ;;  %v11491_v18 = vld [vmem:[#allocation28 + $0x724] sm:$0xf0] }
 0x6ca   : > { %v10044_v19 = vld [vmem:[#allocation28 + $0x8c8] sm:$0xf]  ;;  %v9821_v25 = vor.u32 %v11491_v18, %v9820_v14  ;;  %v9153_v14 = vor.u32 %v11319_v2, %v9150_v3  ;;  %v9310_v2 = vld [vmem:[#allocation28 + $0x328] sm:$0xf0] }
 0x6cb   : > { %v11547_v63 = vld [vmem:[#allocation28 + $0x8e4] sm:$0xf0]  ;;  %6797 = vmatpush.bf16.msra.mxu1 %v9565_v9  ;;  %6825 = vmatpush.bf16.msrb.mxu3 %v10077_v11 }
 0x6cc   : > { %v10332_v20 = vld [vmem:[#allocation28 + $0xb08] sm:$0xf]  ;;  %v10045_v26 = vor.u32 %v11547_v63, %v10044_v19 }
 0x6cd   : > { %v11619_v23 = vld [vmem:[#allocation28 + $0xb24] sm:$0xf0]  ;;  %6810 = vmatpush.bf16.msrb.mxu2 %v9853_v7  ;;  %6838 = vmatpush.bf16.msrb.mxu0 %v10365_v15 }
 0x6ce   : > { %v9500_v27 = vld [vmem:[#allocation28 + $0x488] sm:$0xf]  ;;  %v10333_v31 = vor.u32 %v11619_v23, %v10332_v20  ;;  %v11311_v20 = vld [vmem:[#allocation28 + $0x18c] sm:$0xf] }
 0x6cf   : > { %v11411_v28 = vld [vmem:[#allocation28 + $0x4a4] sm:$0xf0]  ;;  %6798 = vmatpush.bf16.msra.mxu1 %v9533_v24  ;;  %6826 = vmatpush.bf16.msrb.mxu3 %v10045_v26  ;;  %v9118_v23 = vld [vmem:[#allocation28 + $0x1a8] sm:$0xf0] }
 0x6d0   : > { %v9788_v30 = vld [vmem:[#allocation28 + $0x6c8] sm:$0xf]  ;;  %v9501_v36 = vor.u32 %v11411_v28, %v9500_v27  ;;  %v9406_v26 = vld [vmem:[#allocation28 + $0x3e8] sm:$0xf0] }
 0x6d1   : > { %v11483_v32 = vld [vmem:[#allocation28 + $0x6e4] sm:$0xf0]  ;;  %6811 = vmatpush.bf16.msrb.mxu2 %v9821_v25  ;;  %6839 = vmatpush.bf16.msrb.mxu0 %v10333_v31  ;;  %v11383_v25 = vld [vmem:[#allocation28 + $0x3cc] sm:$0xf]  ;;  %v9121_v31 = vor.u32 %v11311_v20, %v9118_v23 }
 0x6d2   : > { %v10012_v21 = vld [vmem:[#allocation28 + $0x888] sm:$0xf]  ;;  %v9789_v37 = vor.u32 %v11483_v32, %v9788_v30 }
 0x6d3   : > { %v11539_v33 = vld [vmem:[#allocation28 + $0x8a4] sm:$0xf0]  ;;  %6799 = vmatpush.bf16.msra.mxu1 %v9501_v36  ;;  %v11303_v36 = vld [vmem:[#allocation28 + $0x14c] sm:$0xf] }
 0x6d4   : > { %v10300_v34 = vld [vmem:[#allocation28 + $0xac8] sm:$0xf]  ;;  %v10013_v38 = vor.u32 %v11539_v33, %v10012_v21 }
 0x6d5   : > { %v11611_v35 = vld [vmem:[#allocation28 + $0xae4] sm:$0xf0]  ;;  %6812 = vmatpush.bf16.msrb.mxu2 %v9789_v37  ;;  %v9086_v37 = vld [vmem:[#allocation28 + $0x168] sm:$0xf0] }
 0x6d6   : > { %v9468_v40 = vld [vmem:[#allocation28 + $0x448] sm:$0xf]  ;;  %v10301_v45 = vor.u32 %v11611_v35, %v10300_v34  ;;  %6827 = vmatpush.bf16.msrb.mxu3 %v10013_v38  ;;  %v9409_v34 = vor.u32 %v11383_v25, %v9406_v26  ;;  %v11375_v38 = vld [vmem:[#allocation28 + $0x38c] sm:$0xf] }
 0x6d7   : > { %v11403_v41 = vld [vmem:[#allocation28 + $0x464] sm:$0xf0] }
 0x6d8   : > { %v9756_v42 = vld [vmem:[#allocation28 + $0x688] sm:$0xf]  ;;  %v9469_v49 = vor.u32 %v11403_v41, %v9468_v40  ;;  %6840 = vmatpush.bf16.msrb.mxu0 %v10301_v45  ;;  %v9374_v40 = vld [vmem:[#allocation28 + $0x3a8] sm:$0xf0]  ;;  %v9089_v45 = vor.u32 %v11303_v36, %v9086_v37 }
 0x6d9   : > { %v11475_v46 = vld [vmem:[#allocation28 + $0x6a4] sm:$0xf0] }
 0x6da   : > { %v9980_v48 = vld [vmem:[#allocation28 + $0x848] sm:$0xf]  ;;  %v9757_v51 = vor.u32 %v11475_v46, %v9756_v42  ;;  %6800 = vmatpush.bf16.msra.mxu1 %v9469_v49  ;;  %v11295_v49 = vld [vmem:[#allocation28 + $0x10c] sm:$0xf] }
 0x6db   : > { %v11531_v39 = vld [vmem:[#allocation28 + $0x864] sm:$0xf0] }
 0x6dc   : > { %v10268_v43 = vld [vmem:[#allocation28 + $0xa88] sm:$0xf]  ;;  %v9981_v52 = vor.u32 %v11531_v39, %v9980_v48  ;;  %6813 = vmatpush.bf16.msrb.mxu2 %v9757_v51  ;;  %v11367_v51 = vld [vmem:[#allocation28 + $0x34c] sm:$0xf] }
 0x6dd   : > { %v11603_v47 = vld [vmem:[#allocation28 + $0xaa4] sm:$0xf0] }
 0x6de   : > { %v9436_v50 = vld [vmem:[#allocation28 + $0x408] sm:$0xf]  ;;  %v10269_v54 = vor.u32 %v11603_v47, %v10268_v43  ;;  %6828 = vmatpush.bf16.msrb.mxu3 %v9981_v52  ;;  %v9377_v43 = vor.u32 %v11375_v38, %v9374_v40  ;;  %v9342_v52 = vld [vmem:[#allocation28 + $0x368] sm:$0xf0] }
 0x6df   : > { %v11395_v53 = vld [vmem:[#allocation28 + $0x424] sm:$0xf0] }
 0x6e0   : > { %v9724_v58 = vld [vmem:[#allocation28 + $0x648] sm:$0xf]  ;;  %v9437_v0 = vor.u32 %v11395_v53, %v9436_v50  ;;  %6841 = vmatpush.bf16.msrb.mxu0 %v10269_v54  ;;  %v9054_v50 = vld [vmem:[#allocation28 + $0x128] sm:$0xf0] }
 0x6e1   : > { %v11467_v17 = vld [vmem:[#allocation28 + $0x664] sm:$0xf0] }
 0x6e2   : > { %v9948_v10 = vld [vmem:[#allocation28 + $0x808] sm:$0xf]  ;;  %v9725_v1 = vor.u32 %v11467_v17, %v9724_v58  ;;  %6801 = vmatpush.bf16.msra.mxu1 %v9437_v0  ;;  %v9057_v17 = vor.u32 %v11295_v49, %v9054_v50  ;;  %v11359_v0 = vld [vmem:[#allocation28 + $0x30c] sm:$0xf] }
 0x6e3   : > { %v11523_v55 = vld [vmem:[#allocation28 + $0x824] sm:$0xf0]  ;;  %v10174_v49 = vld [vmem:[#allocation28 + $0x9e8] sm:$0xf0] }
 0x6e4   : > { %v10236_v56 = vld [vmem:[#allocation28 + $0xa48] sm:$0xf]  ;;  %v9949_v6 = vor.u32 %v11523_v55, %v9948_v10  ;;  %6814 = vmatpush.bf16.msrb.mxu2 %v9725_v1 }
 0x6e5   : > { %v11595_v57 = vld [vmem:[#allocation28 + $0xa64] sm:$0xf0]  ;;  %6802 = vmatmul.bf16.vlgmr.msra.gmra.mxu1 %v13224_v59 }
 0x6e6   : > { %v10684_v60 = vld [vmem:[#allocation28 + $0xdc8] sm:$0xf]  ;;  %v10237_v9 = vor.u32 %v11595_v57, %v10236_v56  ;;  %6829 = vmatpush.bf16.msrb.mxu3 %v9949_v6  ;;  %v9345_v56 = vor.u32 %v11367_v51, %v9342_v52 }
 0x6e7   : > { %v11707_v62 = vld [vmem:[#allocation28 + $0xde4] sm:$0xf0] }
 0x6e8   : > { %v9692_v8 = vld [vmem:[#allocation28 + $0x608] sm:$0xf]  ;;  %v10685_v7 = vor.u32 %v11707_v62, %v10684_v60  ;;  %6842 = vmatpush.bf16.msrb.mxu0 %v10237_v9  ;;  %v11287_v60 = vld [vmem:[#allocation28 + $0xcc] sm:$0xf] }
 0x6e9   : > { %v11459_v11 = vld [vmem:[#allocation28 + $0x624] sm:$0xf0]  ;;  %6830 = vmatmul.bf16.vlgmr.msrb.gmra.mxu3 %v13232_v4  ;;  %v9022_v62 = vld [vmem:[#allocation28 + $0xe8] sm:$0xf0] }
 0x6ea   : > { %v10204_v12 = vld [vmem:[#allocation28 + $0xa08] sm:$0xf]  ;;  %v9693_v24 = vor.u32 %v11459_v11, %v9692_v8  ;;  %6850 = vmatpush.bf16.msrb.mxu1 %v10685_v7  ;;  %6878 = vmatpush.bf16.msra.mxu3 %v9153_v14  ;;  %v9025_v6 = vor.u32 %v11287_v60, %v9022_v62  ;;  %v9313_v11 = vor.u32 %v11359_v0, %v9310_v2  ;;  %v8990_v14 = vld [vmem:[#allocation28 + $0xa8] sm:$0xf0] }
 0x6eb   : > { %v11587_v13 = vld [vmem:[#allocation28 + $0xa24] sm:$0xf0]  ;;  %v11511_v60 = vld [vmem:[#allocation28 + $0x7cc] sm:$0xf] }
 0x6ec   : > { %v10652_v15 = vld [vmem:[#allocation28 + $0xd88] sm:$0xf]  ;;  %v10205_v27 = vor.u32 %v11587_v13, %v10204_v12  ;;  %6815 = vmatpush.bf16.msrb.mxu2 %v9693_v24  ;;  %v11279_v13 = vld [vmem:[#allocation28 + $0x8c] sm:$0xf] }
 0x6ed   : > { %v11699_v18 = vld [vmem:[#allocation28 + $0xda4] sm:$0xf0]  ;;  %v8993_v20 = vor.u32 %v11279_v13, %v8990_v14  ;;  %v9918_v62 = vld [vmem:[#allocation28 + $0x7e8] sm:$0xf0] }
 0x6ee   : > { %v10940_v19 = vld [vmem:[#allocation28 + $0xfc8] sm:$0xf]  ;;  %v10653_v28 = vor.u32 %v11699_v18, %v10652_v15  ;;  %6843 = vmatpush.bf16.msrb.mxu0 %v10205_v27  ;;  %6879 = vmatpush.bf16.msra.mxu3 %v9121_v31  ;;  %v11351_v15 = vld [vmem:[#allocation28 + $0x2cc] sm:$0xf] }
 0x6ef   : > { %v11771_v63 = vld [vmem:[#allocation28 + $0xfe4] sm:$0xf0]  ;;  %6816 = vmatmul.bf16.vlgmr.msrb.gmra.mxu2 %v13228_v16  ;;  %v9278_v18 = vld [vmem:[#allocation28 + $0x2e8] sm:$0xf0] }
 0x6f0   : > { %v10941_v30 = vor.u32 %v11771_v63, %v10940_v19  ;;  %v10620_v32 = vld [vmem:[#allocation28 + $0xd48] sm:$0xf]  ;;  %6851 = vmatpush.bf16.msrb.mxu1 %v10653_v28  ;;  %v9281_v26 = vor.u32 %v11351_v15, %v9278_v18  ;;  %v11271_v28 = vld [vmem:[#allocation28 + $0x4c] sm:$0xf] }
 0x6f1   : > { %v11691_v21 = vld [vmem:[#allocation28 + $0xd64] sm:$0xf0]  ;;  %6844 = vmatmul.bf16.vlgmr.msrb.gmra.mxu0 %v13235_v29  ;;  %v11343_v31 = vld [vmem:[#allocation28 + $0x28c] sm:$0xf] }
 0x6f2   : > { %v10908_v33 = vld [vmem:[#allocation28 + $0xf88] sm:$0xf]  ;;  %v10621_v41 = vor.u32 %v11691_v21, %v10620_v32  ;;  %6864 = vmatpush.bf16.msra.mxu2 %v10941_v30  ;;  %6892 = vmatpush.bf16.msra.mxu0 %v9409_v34  ;;  %v8958_v30 = vld [vmem:[#allocation28 + $0x68] sm:$0xf0] }
 0x6f3   : > { %v11763_v35 = vld [vmem:[#allocation28 + $0xfa4] sm:$0xf0]  ;;  %6880 = vmatpush.bf16.msra.mxu3 %v9089_v45  ;;  %v9246_v32 = vld [vmem:[#allocation28 + $0x2a8] sm:$0xf0] }
 0x6f4   : > { %v10909_v42 = vor.u32 %v11763_v35, %v10908_v33  ;;  %v10588_v46 = vld [vmem:[#allocation28 + $0xd08] sm:$0xf]  ;;  %6852 = vmatpush.bf16.msrb.mxu1 %v10621_v41  ;;  %v8961_v35 = vor.u32 %v11271_v28, %v8958_v30  ;;  %v9249_v40 = vor.u32 %v11343_v31, %v9246_v32  ;;  %v11263_v41 = vld [vmem:[#allocation28 + $0xc] sm:$0xf] }
 0x6f5   : > { %v11683_v48 = vld [vmem:[#allocation28 + $0xd24] sm:$0xf0]  ;;  %v11335_v45 = vld [vmem:[#allocation28 + $0x24c] sm:$0xf] }
 0x6f6   : > { %v10876_v39 = vld [vmem:[#allocation28 + $0xf48] sm:$0xf]  ;;  %v10589_v53 = vor.u32 %v11683_v48, %v10588_v46  ;;  %6865 = vmatpush.bf16.msra.mxu2 %v10909_v42  ;;  %6893 = vmatpush.bf16.msra.mxu0 %v9377_v43  ;;  %v8926_v42 = vld [vmem:[#allocation28 + $0x28] sm:$0xf0] }
 0x6f7   : > { %v11755_v47 = vld [vmem:[#allocation28 + $0xf64] sm:$0xf0]  ;;  %6881 = vmatpush.bf16.msra.mxu3 %v9057_v17  ;;  %v9214_v46 = vld [vmem:[#allocation28 + $0x268] sm:$0xf0]  ;;  %v8929_v51 = vor.u32 %v11263_v41, %v8926_v42 }
 0x6f8   : > { %v10877_v58 = vor.u32 %v11755_v47, %v10876_v39  ;;  %v10556_v54 = vld [vmem:[#allocation28 + $0xcc8] sm:$0xf]  ;;  %6853 = vmatpush.bf16.msrb.mxu1 %v10589_v53  ;;  %v11447_v48 = vld [vmem:[#allocation28 + $0x5cc] sm:$0xf]  ;;  %v9217_v53 = vor.u32 %v11335_v45, %v9214_v46 }
 0x6f9   : > { %v11675_v10 = vld [vmem:[#allocation28 + $0xce4] sm:$0xf0]  ;;  %v9662_v39 = vld [vmem:[#allocation28 + $0x5e8] sm:$0xf0] }
 0x6fa   : > { %v10844_v55 = vld [vmem:[#allocation28 + $0xf08] sm:$0xf]  ;;  %v10557_v3 = vor.u32 %v11675_v10, %v10556_v54  ;;  %6866 = vmatpush.bf16.msra.mxu2 %v10877_v58  ;;  %6894 = vmatpush.bf16.msra.mxu0 %v9345_v56  ;;  %v11575_v47 = vld [vmem:[#allocation28 + $0x9cc] sm:$0xf]  ;;  %v9665_v58 = vor.u32 %v11447_v48, %v9662_v39 }
 0x6fb   : > { %v11747_v57 = vld [vmem:[#allocation28 + $0xf24] sm:$0xf0]  ;;  %6882 = vmatpush.bf16.msra.mxu3 %v9025_v6  ;;  %v11327_v54 = vld [vmem:[#allocation28 + $0x20c] sm:$0xf] }
 0x6fc   : > { %v10845_v1 = vor.u32 %v11747_v57, %v10844_v55  ;;  %v10524_v8 = vld [vmem:[#allocation28 + $0xc88] sm:$0xf]  ;;  %6854 = vmatpush.bf16.msrb.mxu1 %v10557_v3  ;;  %v9182_v10 = vld [vmem:[#allocation28 + $0x228] sm:$0xf0]  ;;  %v10177_v55 = vor.u32 %v11575_v47, %v10174_v49  ;;  %v13266_v47 = vpop.f32.mrf.mxu0 }
 0x6fd   : > { %v11667_v9 = vld [vmem:[#allocation28 + $0xca4] sm:$0xf0]  ;;  %v11439_v56 = vld [vmem:[#allocation28 + $0x58c] sm:$0xf] }
 0x6fe   : > { %v10812_v7 = vld [vmem:[#allocation28 + $0xec8] sm:$0xf]  ;;  %v10525_v19 = vor.u32 %v11667_v9, %v10524_v8  ;;  %6867 = vmatpush.bf16.msra.mxu2 %v10845_v1  ;;  %6895 = vmatpush.bf16.msra.mxu0 %v9313_v11  ;;  %v9630_v57 = vld [vmem:[#allocation28 + $0x5a8] sm:$0xf0]  ;;  %v9185_v8 = vor.u32 %v11327_v54, %v9182_v10 }
 0x6ff   : > { %v11739_v12 = vld [vmem:[#allocation28 + $0xee4] sm:$0xf0]  ;;  %6883 = vmatpush.bf16.msra.mxu3 %v8993_v20  ;;  %v11567_v0 = vld [vmem:[#allocation28 + $0x98c] sm:$0xf]  ;;  %v9633_v9 = vor.u32 %v11439_v56, %v9630_v57 }
 0x700   : > { %v10813_v63 = vor.u32 %v11739_v12, %v10812_v7  ;;  %v10492_v23 = vld [vmem:[#allocation28 + $0xc48] sm:$0xf]  ;;  %6855 = vmatpush.bf16.msrb.mxu1 %v10525_v19  ;;  %v10142_v2 = vld [vmem:[#allocation28 + $0x9a8] sm:$0xf0]  ;;  %v9921_v7 = vor.u32 %v11511_v60, %v9918_v62 }
 0x701   : > { %v11659_v24 = vld [vmem:[#allocation28 + $0xc64] sm:$0xf0]  ;;  %v11639_v1 = vld [vmem:[#allocation28 + $0xbcc] sm:$0xf]  ;;  %v10145_v11 = vor.u32 %v11567_v0, %v10142_v2  ;;  %v13268_v0 = vld [vmem:[#allocation29] sm:$0xff]  ;;  %v13270_v2 = vpop.f32.mrf.mxu1 }
 0x702   : > { %v10780_v25 = vld [vmem:[#allocation28 + $0xe88] sm:$0xf]  ;;  %v10493_v21 = vor.u32 %v11659_v24, %v10492_v23  ;;  %6868 = vmatpush.bf16.msra.mxu2 %v10813_v63  ;;  %6896 = vmatpush.bf16.msra.mxu0 %v9281_v26  ;;  %v10430_v6 = vld [vmem:[#allocation28 + $0xbe8] sm:$0xf0] }
 0x703   : > { %v11731_v27 = vld [vmem:[#allocation28 + $0xea4] sm:$0xf0]  ;;  %6884 = vmatpush.bf16.msra.mxu3 %v8961_v35  ;;  %v11431_v12 = vld [vmem:[#allocation28 + $0x54c] sm:$0xf]  ;;  %v10433_v15 = vor.u32 %v11639_v1, %v10430_v6 }
 0x704   : > { %v10460_v33 = vld [vmem:[#allocation28 + $0xc08] sm:$0xf]  ;;  %v10781_v34 = vor.u32 %v11731_v27, %v10780_v25  ;;  %6856 = vmatpush.bf16.msrb.mxu1 %v10493_v21  ;;  %v9598_v13 = vld [vmem:[#allocation28 + $0x568] sm:$0xf0] }
 0x705   : > { %v11651_v36 = vld [vmem:[#allocation28 + $0xc24] sm:$0xf0]  ;;  %v11503_v14 = vld [vmem:[#allocation28 + $0x78c] sm:$0xf]  ;;  %v9601_v24 = vor.u32 %v11431_v12, %v9598_v13 }
 0x706   : > { %v10748_v37 = vld [vmem:[#allocation28 + $0xe48] sm:$0xf]  ;;  %v10461_v43 = vor.u32 %v11651_v36, %v10460_v33  ;;  %6869 = vmatpush.bf16.msra.mxu2 %v10781_v34  ;;  %6897 = vmatpush.bf16.msra.mxu0 %v9249_v40  ;;  %v9886_v18 = vld [vmem:[#allocation28 + $0x7a8] sm:$0xf0]  ;;  %v13263_v34 = vpop.f32.mrf.mxu3 }
 0x707   : > { %v11723_v38 = vld [vmem:[#allocation28 + $0xe64] sm:$0xf0]  ;;  %6885 = vmatpush.bf16.msra.mxu3 %v8929_v51  ;;  %v11559_v19 = vld [vmem:[#allocation28 + $0x94c] sm:$0xf]  ;;  %v9889_v25 = vor.u32 %v11503_v14, %v9886_v18 }
 0x708   : > { %v10749_v50 = vor.u32 %v11723_v38, %v10748_v37  ;;  %v10716_v52 = vld [vmem:[#allocation28 + $0xe08] sm:$0xf]  ;;  %6857 = vmatpush.bf16.msrb.mxu1 %v10461_v43  ;;  %v10110_v63 = vld [vmem:[#allocation28 + $0x968] sm:$0xf0] }
 0x709   : > { %v11715_v17 = vld [vmem:[#allocation28 + $0xe24] sm:$0xf0]  ;;  %v11631_v20 = vld [vmem:[#allocation28 + $0xb8c] sm:$0xf]  ;;  %v10113_v26 = vor.u32 %v11559_v19, %v10110_v63  ;;  %v3966_v63 = vperm.slane %v13268_v0, 0 }
 0x70a   : > { %6870 = vmatpush.bf16.msra.mxu2 %v10749_v50  ;;  %v10717_v3 = vor.u32 %v11715_v17, %v10716_v52  ;;  %6898 = vmatpush.bf16.msra.mxu0 %v9217_v53  ;;  %v10398_v23 = vld [vmem:[#allocation28 + $0xba8] sm:$0xf0] }
 0x70b   : > { %6934 = vmatpush.bf16.msrb.mxu3 %v10177_v55  ;;  %6858 = vmatmul.bf16.vlgmr.msrb.gmra.mxu1 %v13242_v44  ;;  %v11423_v27 = vld [vmem:[#allocation28 + $0x50c] sm:$0xf]  ;;  %v10401_v31 = vor.u32 %v11631_v20, %v10398_v23 }
 0x70c   : > { %6906 = vmatpush.bf16.msra.mxu1 %v9665_v58  ;;  %6886 = vmatmul.bf16.vlgmr.msra.gmra.mxu3 %v13216_v5  ;;  %v9566_v28 = vld [vmem:[#allocation28 + $0x528] sm:$0xf0] }
 0x70d   : > { %v11495_v30 = vld [vmem:[#allocation28 + $0x74c] sm:$0xf]  ;;  %v9569_v37 = vor.u32 %v11423_v27, %v9566_v28 }
 0x70e   : > { %6871 = vmatpush.bf16.msra.mxu2 %v10717_v3  ;;  %6899 = vmatpush.bf16.msra.mxu0 %v9185_v8  ;;  %v9854_v32 = vld [vmem:[#allocation28 + $0x768] sm:$0xf0]  ;;  %v13272_v1 = vpop.f32.mrf.mxu3 }
 0x70f   : > { %6935 = vmatpush.bf16.msrb.mxu3 %v10145_v11  ;;  %v11551_v21 = vld [vmem:[#allocation28 + $0x90c] sm:$0xf]  ;;  %v9857_v38 = vor.u32 %v11495_v30, %v9854_v32 }
 0x710   : > { %6907 = vmatpush.bf16.msra.mxu1 %v9633_v9  ;;  %v10078_v33 = vld [vmem:[#allocation28 + $0x928] sm:$0xf0] }
 0x711   : > { %6872 = vmatmul.bf16.vlgmr.msra.gmra.mxu2 %v13245_v61  ;;  %6900 = vmatmul.bf16.vlgmr.msra.gmra.mxu0 %v13220_v22  ;;  %v11623_v35 = vld [vmem:[#allocation28 + $0xb4c] sm:$0xf]  ;;  %v10081_v40 = vor.u32 %v11551_v21, %v10078_v33 }
 0x712   : > { %6920 = vmatpush.bf16.msrb.mxu2 %v9921_v7  ;;  %6948 = vmatpush.bf16.msrb.mxu0 %v10433_v15  ;;  %v10366_v36 = vld [vmem:[#allocation28 + $0xb68] sm:$0xf0] }
 0x713   : > { %6936 = vmatpush.bf16.msrb.mxu3 %v10113_v26  ;;  %v11415_v41 = vld [vmem:[#allocation28 + $0x4cc] sm:$0xf]  ;;  %v10369_v46 = vor.u32 %v11623_v35, %v10366_v36 }
 0x714   : > { %6908 = vmatpush.bf16.msra.mxu1 %v9601_v24  ;;  %v9534_v42 = vld [vmem:[#allocation28 + $0x4e8] sm:$0xf0]  ;;  %v13275_v24 = vpop.f32.mrf.mxu0 }
 0x715   : > { %v11487_v45 = vld [vmem:[#allocation28 + $0x70c] sm:$0xf]  ;;  %v9537_v51 = vor.u32 %v11415_v41, %v9534_v42  ;;  %v11324_v41 = vld [vmem:[#allocation28 + $0x1ec] sm:$0xf0] }
 0x716   : > { %6921 = vmatpush.bf16.msrb.mxu2 %v9889_v25  ;;  %6949 = vmatpush.bf16.msrb.mxu0 %v10401_v31  ;;  %v9822_v48 = vld [vmem:[#allocation28 + $0x728] sm:$0xf0]  ;;  %v13277_v42 = vpop.f32.mrf.mxu3 }
 0x717   : > { %v11543_v39 = vld [vmem:[#allocation28 + $0x8cc] sm:$0xf]  ;;  %6937 = vmatpush.bf16.msrb.mxu3 %v10081_v40  ;;  %v9825_v52 = vor.u32 %v11487_v45, %v9822_v48  ;;  %v9156_v40 = vld [vmem:[#allocation28 + $0x1d0] sm:$0xf] }
 0x718   : > { %v10046_v43 = vld [vmem:[#allocation28 + $0x8e8] sm:$0xf0]  ;;  %6909 = vmatpush.bf16.msra.mxu1 %v9569_v37 }
 0x719   : > { %v11615_v49 = vld [vmem:[#allocation28 + $0xb0c] sm:$0xf]  ;;  %v10049_v53 = vor.u32 %v11543_v39, %v10046_v43  ;;  %v13279_v39 = vpop.f32.mrf.mxu1  ;;  %v6593_v43 = vpop.f32.mrf.mxu2 }
 0x71a   : > { %v10334_v50 = vld [vmem:[#allocation28 + $0xb28] sm:$0xf0]  ;;  %6922 = vmatpush.bf16.msrb.mxu2 %v9857_v38  ;;  %6950 = vmatpush.bf16.msrb.mxu0 %v10369_v46 }
 0x71b   : > { %v11407_v58 = vld [vmem:[#allocation28 + $0x48c] sm:$0xf]  ;;  %v10337_v10 = vor.u32 %v11615_v49, %v10334_v50  ;;  %6938 = vmatpush.bf16.msrb.mxu3 %v10049_v53 }
 0x71c   : > { %v9502_v17 = vld [vmem:[#allocation28 + $0x4a8] sm:$0xf0]  ;;  %6910 = vmatpush.bf16.msra.mxu1 %v9537_v51 }
 0x71d   : > { %v11479_v54 = vld [vmem:[#allocation28 + $0x6cc] sm:$0xf]  ;;  %v9505_v3 = vor.u32 %v11407_v58, %v9502_v17  ;;  %v6552_v58 = vadd.f32 %v13263_v34, %v3966_v63  ;;  %v9157_v17 = vor.u32 %v11324_v41, %v9156_v40 }
 0x71e   : > { %v9790_v55 = vld [vmem:[#allocation28 + $0x6e8] sm:$0xf0]  ;;  %6923 = vmatpush.bf16.msrb.mxu2 %v9825_v52  ;;  %6951 = vmatpush.bf16.msrb.mxu0 %v10337_v10 }
 0x71f   : > { %v11535_v56 = vld [vmem:[#allocation28 + $0x88c] sm:$0xf]  ;;  %v9793_v6 = vor.u32 %v11479_v54, %v9790_v55  ;;  %v6566_v34 = vadd.f32 %v13266_v47, %v6552_v58  ;;  %v6554_v47 = vadd.f32 %v13272_v1, %v3966_v63  ;;  %v9060_v1 = vld [vmem:[#allocation28 + $0x110] sm:$0xf] }
 0x720   : > { %v10014_v57 = vld [vmem:[#allocation28 + $0x8a8] sm:$0xf0]  ;;  %6911 = vmatpush.bf16.msra.mxu1 %v9505_v3  ;;  %v11300_v63 = vld [vmem:[#allocation28 + $0x12c] sm:$0xf0] }
 0x721   : > { %v11607_v60 = vld [vmem:[#allocation28 + $0xacc] sm:$0xf]  ;;  %v10017_v8 = vor.u32 %v11535_v56, %v10014_v57  ;;  %v9124_v57 = vld [vmem:[#allocation28 + $0x190] sm:$0xf] }
 0x722   : > { %v10302_v62 = vld [vmem:[#allocation28 + $0xae8] sm:$0xf0]  ;;  %6924 = vmatpush.bf16.msrb.mxu2 %v9793_v6  ;;  %v9412_v6 = vld [vmem:[#allocation28 + $0x3d0] sm:$0xf] }
 0x723   : > { %v11399_v9 = vld [vmem:[#allocation28 + $0x44c] sm:$0xf]  ;;  %v10305_v12 = vor.u32 %v11607_v60, %v10302_v62  ;;  %6939 = vmatpush.bf16.msrb.mxu3 %v10017_v8  ;;  %v11316_v60 = vld [vmem:[#allocation28 + $0x1ac] sm:$0xf0]  ;;  %v13284_v62 = vpop.f32.mrf.mxu0 }
 0x724   : > { %v9470_v7 = vld [vmem:[#allocation28 + $0x468] sm:$0xf0]  ;;  %v11388_v8 = vld [vmem:[#allocation28 + $0x3ec] sm:$0xf0] }
 0x725   : > { %v11471_v11 = vld [vmem:[#allocation28 + $0x68c] sm:$0xf]  ;;  %v9473_v20 = vor.u32 %v11399_v9, %v9470_v7  ;;  %6952 = vmatpush.bf16.msrb.mxu0 %v10305_v12  ;;  %v9125_v12 = vor.u32 %v11316_v60, %v9124_v57  ;;  %v11364_v57 = vld [vmem:[#allocation28 + $0x32c] sm:$0xf0] }
 0x726   : > { %v9758_v13 = vld [vmem:[#allocation28 + $0x6a8] sm:$0xf0] }
 0x727   : > { %v11527_v14 = vld [vmem:[#allocation28 + $0x84c] sm:$0xf]  ;;  %v9761_v25 = vor.u32 %v11471_v11, %v9758_v13  ;;  %6912 = vmatpush.bf16.msra.mxu1 %v9473_v20  ;;  %v9092_v20 = vld [vmem:[#allocation28 + $0x150] sm:$0xf] }
 0x728   : > { %v9982_v15 = vld [vmem:[#allocation28 + $0x868] sm:$0xf0] }
 0x729   : > { %v11599_v18 = vld [vmem:[#allocation28 + $0xa8c] sm:$0xf]  ;;  %v9985_v26 = vor.u32 %v11527_v14, %v9982_v15  ;;  %6925 = vmatpush.bf16.msrb.mxu2 %v9761_v25  ;;  %v6580_v25 = vadd.f32 %v13270_v2, %v6566_v34 }
 0x72a   : > { %v10270_v19 = vld [vmem:[#allocation28 + $0xaa8] sm:$0xf0] }
 0x72b   : > { %v11391_v23 = vld [vmem:[#allocation28 + $0x40c] sm:$0xf]  ;;  %v10273_v31 = vor.u32 %v11599_v18, %v10270_v19  ;;  %6940 = vmatpush.bf16.msrb.mxu3 %v9985_v26  ;;  %v9413_v18 = vor.u32 %v11388_v8, %v9412_v6  ;;  %v9380_v26 = vld [vmem:[#allocation28 + $0x390] sm:$0xf] }
 0x72c   : > { %v9438_v27 = vld [vmem:[#allocation28 + $0x428] sm:$0xf0] }
 0x72d   : > { %v11463_v28 = vld [vmem:[#allocation28 + $0x64c] sm:$0xf]  ;;  %v9441_v38 = vor.u32 %v11391_v23, %v9438_v27  ;;  %6953 = vmatpush.bf16.msrb.mxu0 %v10273_v31  ;;  %v11308_v23 = vld [vmem:[#allocation28 + $0x16c] sm:$0xf0]  ;;  %v6594_v31 = vadd.f32 %v6593_v43, %v6580_v25 }
 0x72e   : > { %v9726_v30 = vld [vmem:[#allocation28 + $0x668] sm:$0xf0]  ;;  %v11380_v27 = vld [vmem:[#allocation28 + $0x3ac] sm:$0xf0] }
 0x72f   : > { %v11519_v32 = vld [vmem:[#allocation28 + $0x80c] sm:$0xf]  ;;  %v9729_v45 = vor.u32 %v11463_v28, %v9726_v30  ;;  %6913 = vmatpush.bf16.msra.mxu1 %v9441_v38  ;;  %v6635_v30 = vpop.f32.mrf.mxu1  ;;  %v9381_v38 = vor.u32 %v11380_v27, %v9380_v26  ;;  %v6608_v41 = vadd.f32 %v13277_v42, %v6594_v31  ;;  %v11356_v25 = vld [vmem:[#allocation28 + $0x2ec] sm:$0xf0] }
 0x730   : > { %v9950_v21 = vld [vmem:[#allocation28 + $0x828] sm:$0xf0] }
 0x731   : > { %v11591_v33 = vld [vmem:[#allocation28 + $0xa4c] sm:$0xf]  ;;  %v9953_v46 = vor.u32 %v11519_v32, %v9950_v21  ;;  %6926 = vmatpush.bf16.msrb.mxu2 %v9729_v45  ;;  %v6609_v32 = vpop.f32.mrf.mxu3  ;;  %v9348_v45 = vld [vmem:[#allocation28 + $0x350] sm:$0xf] }
 0x732   : > { %v10238_v35 = vld [vmem:[#allocation28 + $0xa68] sm:$0xf0]  ;;  %6914 = vmatmul.bf16.vlgmr.msra.gmra.mxu1 %v13224_v59 }
 0x733   : > { %v11703_v36 = vld [vmem:[#allocation28 + $0xdcc] sm:$0xf]  ;;  %v10241_v49 = vor.u32 %v11591_v33, %v10238_v35  ;;  %6941 = vmatpush.bf16.msrb.mxu3 %v9953_v46  ;;  %v9093_v33 = vor.u32 %v11308_v23, %v9092_v20  ;;  %v11372_v46 = vld [vmem:[#allocation28 + $0x36c] sm:$0xf0] }
 0x734   : > { %v10686_v37 = vld [vmem:[#allocation28 + $0xde8] sm:$0xf0]  ;;  %v9349_v42 = vor.u32 %v11372_v46, %v9348_v45  ;;  %v9284_v23 = vld [vmem:[#allocation28 + $0x2d0] sm:$0xf] }
 0x735   : > { %v11455_v48 = vld [vmem:[#allocation28 + $0x60c] sm:$0xf]  ;;  %v10689_v50 = vor.u32 %v11703_v36, %v10686_v37  ;;  %6954 = vmatpush.bf16.msrb.mxu0 %v10241_v49  ;;  %v6595_v37 = vpop.f32.mrf.mxu2  ;;  %v6623_v49 = vpop.f32.mrf.mxu0 }
 0x736   : > { %v9694_v51 = vld [vmem:[#allocation28 + $0x628] sm:$0xf0]  ;;  %6942 = vmatmul.bf16.vlgmr.msrb.gmra.mxu3 %v13232_v4 }
 0x737   : > { %v11583_v52 = vld [vmem:[#allocation28 + $0xa0c] sm:$0xf]  ;;  %v9697_v3 = vor.u32 %v11455_v48, %v9694_v51  ;;  %6962 = vmatpush.bf16.msrb.mxu1 %v10689_v50  ;;  %6990 = vmatpush.bf16.msra.mxu3 %v9157_v17  ;;  %v6568_v48 = vadd.f32 %v13275_v24, %v6554_v47  ;;  %v9061_v51 = vor.u32 %v11300_v63, %v9060_v1  ;;  %v9316_v24 = vld [vmem:[#allocation28 + $0x310] sm:$0xf]  ;;  %v6637_v6 = vpop.f32.mrf.mxu1 }
 0x738   : > { %v10206_v53 = vld [vmem:[#allocation28 + $0xa28] sm:$0xf0] }
 0x739   : > { %v11695_v54 = vld [vmem:[#allocation28 + $0xd8c] sm:$0xf]  ;;  %v10209_v9 = vor.u32 %v11583_v52, %v10206_v53  ;;  %6927 = vmatpush.bf16.msrb.mxu2 %v9697_v3  ;;  %v6582_v17 = vadd.f32 %v13279_v39, %v6568_v48 }
 0x73a   : > { %v10654_v10 = vld [vmem:[#allocation28 + $0xda8] sm:$0xf0] }
 0x73b   : > { %v11767_v55 = vld [vmem:[#allocation28 + $0xfcc] sm:$0xf]  ;;  %v10657_v7 = vor.u32 %v11695_v54, %v10654_v10  ;;  %6955 = vmatpush.bf16.msrb.mxu0 %v10209_v9  ;;  %6991 = vmatpush.bf16.msra.mxu3 %v9125_v12  ;;  %v9028_v10 = vld [vmem:[#allocation28 + $0xd0] sm:$0xf]  ;;  %v6596_v60 = vadd.f32 %v6595_v37, %v6582_v17  ;;  %v9317_v12 = vor.u32 %v11364_v57, %v9316_v24 }
 0x73c   : > { %v10942_v56 = vld [vmem:[#allocation28 + $0xfe8] sm:$0xf0]  ;;  %6928 = vmatmul.bf16.vlgmr.msrb.gmra.mxu2 %v13228_v16  ;;  %v9252_v37 = vld [vmem:[#allocation28 + $0x290] sm:$0xf] }
 0x73d   : > { %v10945_v11 = vor.u32 %v11767_v55, %v10942_v56  ;;  %v11687_v13 = vld [vmem:[#allocation28 + $0xd4c] sm:$0xf]  ;;  %6963 = vmatpush.bf16.msrb.mxu1 %v10657_v7  ;;  %v11292_v55 = vld [vmem:[#allocation28 + $0xec] sm:$0xf0]  ;;  %v6622_v56 = vadd.f32 %v13284_v62, %v6608_v41 }
 0x73e   : > { %v10622_v14 = vld [vmem:[#allocation28 + $0xd68] sm:$0xf0]  ;;  %6956 = vmatmul.bf16.vlgmr.msrb.gmra.mxu0 %v13235_v29  ;;  %v9029_v7 = vor.u32 %v11292_v55, %v9028_v10  ;;  %v8996_v62 = vld [vmem:[#allocation28 + $0x90] sm:$0xf] }
 0x73f   : > { %v11759_v15 = vld [vmem:[#allocation28 + $0xf8c] sm:$0xf]  ;;  %v10625_v28 = vor.u32 %v11687_v13, %v10622_v14  ;;  %6976 = vmatpush.bf16.msra.mxu2 %v10945_v11  ;;  %7004 = vmatpush.bf16.msra.mxu0 %v9413_v18  ;;  %v6636_v8 = vadd.f32 %v6635_v30, %v6622_v56  ;;  %v6649_v13 = vpop.f32.mrf.mxu2  ;;  %v6610_v18 = vadd.f32 %v6609_v32, %v6596_v60  ;;  %v6691_v46 = vpop.f32.mrf.mxu1  ;;  %v9220_v17 = vld [vmem:[#allocation28 + $0x250] sm:$0xf] }
 0x740   : > { %v10910_v19 = vld [vmem:[#allocation28 + $0xfa8] sm:$0xf0]  ;;  %6992 = vmatpush.bf16.msra.mxu3 %v9093_v33  ;;  %v9285_v32 = vor.u32 %v11356_v25, %v9284_v23  ;;  %v8964_v33 = vld [vmem:[#allocation28 + $0x50] sm:$0xf] }
 0x741   : > { %v10913_v21 = vor.u32 %v11759_v15, %v10910_v19  ;;  %v11679_v35 = vld [vmem:[#allocation28 + $0xd0c] sm:$0xf]  ;;  %6964 = vmatpush.bf16.msrb.mxu1 %v10625_v28  ;;  %v11284_v15 = vld [vmem:[#allocation28 + $0xac] sm:$0xf0]  ;;  %v6663_v19 = vpop.f32.mrf.mxu3  ;;  %v6650_v20 = vadd.f32 %v6649_v13, %v6636_v8 }
 0x742   : > { %v10590_v36 = vld [vmem:[#allocation28 + $0xd28] sm:$0xf0]  ;;  %v8997_v47 = vor.u32 %v11284_v15, %v8996_v62  ;;  %v9668_v10 = vld [vmem:[#allocation28 + $0x5d0] sm:$0xf] }
 0x743   : > { %v11751_v2 = vld [vmem:[#allocation28 + $0xf4c] sm:$0xf]  ;;  %v10593_v43 = vor.u32 %v11679_v35, %v10590_v36  ;;  %6977 = vmatpush.bf16.msra.mxu2 %v10913_v21  ;;  %7005 = vmatpush.bf16.msra.mxu0 %v9381_v38  ;;  %7438 = vst [vmem:[%s13301_s22] sm:$0xff] %v6650_v20  ;;  %v11276_v35 = vld [vmem:[#allocation28 + $0x6c] sm:$0xf0]  ;;  %v6677_v36 = vpop.f32.mrf.mxu0 }
 0x744   : > { %v10878_v40 = vld [vmem:[#allocation28 + $0xf68] sm:$0xf0]  ;;  %6993 = vmatpush.bf16.msra.mxu3 %v9061_v51  ;;  %v11348_v38 = vld [vmem:[#allocation28 + $0x2ac] sm:$0xf0]  ;;  %v8965_v48 = vor.u32 %v11276_v35, %v8964_v33 }
 0x745   : > { %v10881_v50 = vor.u32 %v11751_v2, %v10878_v40  ;;  %v11671_v52 = vld [vmem:[#allocation28 + $0xccc] sm:$0xf]  ;;  %6965 = vmatpush.bf16.msrb.mxu1 %v10593_v43  ;;  %v6624_v2 = vadd.f32 %v6623_v49, %v6610_v18  ;;  %v3967_v40 = vperm.slane %v13268_v0, 1  ;;  %v11452_v55 = vld [vmem:[#allocation28 + $0x5ec] sm:$0xf0] }
 0x746   : > { %v10558_v53 = vld [vmem:[#allocation28 + $0xce8] sm:$0xf0]  ;;  %v10180_v24 = vld [vmem:[#allocation28 + $0x9d0] sm:$0xf] }
 0x747   : > { %v11743_v58 = vld [vmem:[#allocation28 + $0xf0c] sm:$0xf]  ;;  %v10561_v3 = vor.u32 %v11671_v52, %v10558_v53  ;;  %6978 = vmatpush.bf16.msra.mxu2 %v10881_v50  ;;  %7006 = vmatpush.bf16.msra.mxu0 %v9349_v42  ;;  %v6638_v41 = vadd.f32 %v6637_v6, %v6624_v2  ;;  %v9253_v52 = vor.u32 %v11348_v38, %v9252_v37  ;;  %v6651_v49 = vpop.f32.mrf.mxu2  ;;  %v8932_v53 = vld [vmem:[#allocation28 + $0x10] sm:$0xf] }
 0x748   : > { %v10846_v54 = vld [vmem:[#allocation28 + $0xf28] sm:$0xf0]  ;;  %6994 = vmatpush.bf16.msra.mxu3 %v9029_v7  ;;  %v11580_v57 = vld [vmem:[#allocation28 + $0x9ec] sm:$0xf0] }
 0x749   : > { %v10849_v9 = vor.u32 %v11743_v58, %v10846_v54  ;;  %v11663_v34 = vld [vmem:[#allocation28 + $0xc8c] sm:$0xf]  ;;  %6966 = vmatpush.bf16.msrb.mxu1 %v10561_v3  ;;  %v11268_v58 = vld [vmem:[#allocation28 + $0x2c] sm:$0xf0]  ;;  %v6652_v42 = vadd.f32 %v6651_v49, %v6638_v41  ;;  %v6665_v60 = vpop.f32.mrf.mxu3  ;;  %v10181_v13 = vor.u32 %v11580_v57, %v10180_v24 }
 0x74a   : > { %v10526_v39 = vld [vmem:[#allocation28 + $0xca8] sm:$0xf0]  ;;  %v11340_v54 = vld [vmem:[#allocation28 + $0x26c] sm:$0xf0]  ;;  %v8933_v6 = vor.u32 %v11268_v58, %v8932_v53 }
 0x74b   : > { %v11735_v11 = vld [vmem:[#allocation28 + $0xecc] sm:$0xf]  ;;  %v10529_v26 = vor.u32 %v11663_v34, %v10526_v39  ;;  %6979 = vmatpush.bf16.msra.mxu2 %v10849_v9  ;;  %7007 = vmatpush.bf16.msra.mxu0 %v9317_v12  ;;  %7446 = vst [vmem:[%s13301_s22 + $0x40] sm:$0xff] %v6652_v42  ;;  %v6664_v9 = vadd.f32 %v6663_v19, %v3967_v40  ;;  %v11332_v12 = vld [vmem:[#allocation28 + $0x22c] sm:$0xf0]  ;;  %v6679_v25 = vpop.f32.mrf.mxu0 }
 0x74c   : > { %v10814_v14 = vld [vmem:[#allocation28 + $0xee8] sm:$0xf0]  ;;  %6995 = vmatpush.bf16.msra.mxu3 %v8997_v47  ;;  %v9221_v7 = vor.u32 %v11340_v54, %v9220_v17  ;;  %v9669_v34 = vor.u32 %v11452_v55, %v9668_v10  ;;  %v11444_v62 = vld [vmem:[#allocation28 + $0x5ac] sm:$0xf0] }
 0x74d   : > { %v10817_v27 = vor.u32 %v11735_v11, %v10814_v14  ;;  %v11655_v28 = vld [vmem:[#allocation28 + $0xc4c] sm:$0xf]  ;;  %6967 = vmatpush.bf16.msrb.mxu1 %v10529_v26  ;;  %v9188_v11 = vld [vmem:[#allocation28 + $0x210] sm:$0xf]  ;;  %v6678_v47 = vadd.f32 %v6677_v36, %v6664_v9 }
 0x74e   : > { %v10494_v30 = vld [vmem:[#allocation28 + $0xc68] sm:$0xf0]  ;;  %v9636_v14 = vld [vmem:[#allocation28 + $0x590] sm:$0xf] }
 0x74f   : > { %v11727_v31 = vld [vmem:[#allocation28 + $0xe8c] sm:$0xf]  ;;  %v10497_v1 = vor.u32 %v11655_v28, %v10494_v30  ;;  %6980 = vmatpush.bf16.msra.mxu2 %v10817_v27  ;;  %7008 = vmatpush.bf16.msra.mxu0 %v9285_v32  ;;  %v9924_v15 = vld [vmem:[#allocation28 + $0x7d0] sm:$0xf]  ;;  %v9189_v28 = vor.u32 %v11332_v12, %v9188_v11  ;;  %v9637_v30 = vor.u32 %v11444_v62, %v9636_v14  ;;  %v6693_v32 = vpop.f32.mrf.mxu1 }
 0x750   : > { %v10782_v21 = vld [vmem:[#allocation28 + $0xea8] sm:$0xf0]  ;;  %6996 = vmatpush.bf16.msra.mxu3 %v8965_v48  ;;  %v11516_v18 = vld [vmem:[#allocation28 + $0x7ec] sm:$0xf0]  ;;  %v6692_v38 = vadd.f32 %v6691_v46, %v6678_v47 }
 0x751   : > { %v11647_v63 = vld [vmem:[#allocation28 + $0xc0c] sm:$0xf]  ;;  %v10785_v45 = vor.u32 %v11727_v31, %v10782_v21  ;;  %6968 = vmatpush.bf16.msrb.mxu1 %v10497_v1  ;;  %v10148_v20 = vld [vmem:[#allocation28 + $0x990] sm:$0xf]  ;;  %v6705_v31 = vpop.f32.mrf.mxu2  ;;  %v9925_v21 = vor.u32 %v11516_v18, %v9924_v15 }
 0x752   : > { %v10462_v43 = vld [vmem:[#allocation28 + $0xc28] sm:$0xf0]  ;;  %v11572_v23 = vld [vmem:[#allocation28 + $0x9ac] sm:$0xf0] }
 0x753   : > { %v11719_v50 = vld [vmem:[#allocation28 + $0xe4c] sm:$0xf]  ;;  %v10465_v56 = vor.u32 %v11647_v63, %v10462_v43  ;;  %6981 = vmatpush.bf16.msra.mxu2 %v10785_v45  ;;  %7009 = vmatpush.bf16.msra.mxu0 %v9253_v52  ;;  %v10436_v27 = vld [vmem:[#allocation28 + $0xbd0] sm:$0xf]  ;;  %v10149_v33 = vor.u32 %v11572_v23, %v10148_v20  ;;  %v6666_v43 = vadd.f32 %v6665_v60, %v3967_v40  ;;  %v6719_v52 = vpop.f32.mrf.mxu3 }
 0x754   : > { %v10750_v51 = vld [vmem:[#allocation28 + $0xe68] sm:$0xf0]  ;;  %6997 = vmatpush.bf16.msra.mxu3 %v8933_v6  ;;  %v11644_v19 = vld [vmem:[#allocation28 + $0xbec] sm:$0xf0]  ;;  %v6733_v6 = vpop.f32.mrf.mxu0 }
 0x755   : > { %v10753_v3 = vor.u32 %v11719_v50, %v10750_v51  ;;  %v11711_v8 = vld [vmem:[#allocation28 + $0xe0c] sm:$0xf]  ;;  %6969 = vmatpush.bf16.msrb.mxu1 %v10465_v56  ;;  %v9604_v35 = vld [vmem:[#allocation28 + $0x550] sm:$0xf]  ;;  %v10437_v1 = vor.u32 %v11644_v19, %v10436_v27  ;;  %v6706_v50 = vadd.f32 %v6705_v31, %v6692_v38  ;;  %v6680_v24 = vadd.f32 %v6679_v25, %v6666_v43 }
 0x756   : > { %v10718_v39 = vld [vmem:[#allocation28 + $0xe28] sm:$0xf0]  ;;  %v11436_v2 = vld [vmem:[#allocation28 + $0x56c] sm:$0xf0] }
 0x757   : > { %6982 = vmatpush.bf16.msra.mxu2 %v10753_v3  ;;  %v10721_v26 = vor.u32 %v11711_v8, %v10718_v39  ;;  %7010 = vmatpush.bf16.msra.mxu0 %v9221_v7  ;;  %v9892_v37 = vld [vmem:[#allocation28 + $0x790] sm:$0xf]  ;;  %v9605_v51 = vor.u32 %v11436_v2, %v9604_v35  ;;  %v6720_v57 = vadd.f32 %v6719_v52, %v6706_v50  ;;  %v6747_v15 = vpop.f32.mrf.mxu1 }
 0x758   : > { %7046 = vmatpush.bf16.msrb.mxu3 %v10181_v13  ;;  %6970 = vmatmul.bf16.vlgmr.msrb.gmra.mxu1 %v13242_v44  ;;  %v11508_v63 = vld [vmem:[#allocation28 + $0x7ac] sm:$0xf0]  ;;  %v6694_v11 = vadd.f32 %v6693_v32, %v6680_v24 }
 0x759   : > { %7018 = vmatpush.bf16.msra.mxu1 %v9669_v34  ;;  %6998 = vmatmul.bf16.vlgmr.msra.gmra.mxu3 %v13216_v5  ;;  %v10116_v36 = vld [vmem:[#allocation28 + $0x950] sm:$0xf]  ;;  %v9893_v46 = vor.u32 %v11508_v63, %v9892_v37  ;;  %v6707_v3 = vpop.f32.mrf.mxu2  ;;  %v6734_v23 = vadd.f32 %v6733_v6, %v6720_v57 }
 0x75a   : > { %v11564_v41 = vld [vmem:[#allocation28 + $0x96c] sm:$0xf0]  ;;  %v6708_v25 = vadd.f32 %v6707_v3, %v6694_v11 }
 0x75b   : > { %6983 = vmatpush.bf16.msra.mxu2 %v10721_v26  ;;  %v10404_v45 = vld [vmem:[#allocation28 + $0xb90] sm:$0xf]  ;;  %7011 = vmatpush.bf16.msra.mxu0 %v9189_v28  ;;  %v10117_v49 = vor.u32 %v11564_v41, %v10116_v36  ;;  %v6721_v35 = vpop.f32.mrf.mxu3  ;;  %v6748_v38 = vadd.f32 %v6747_v15, %v6734_v23 }
 0x75c   : > { %v11636_v48 = vld [vmem:[#allocation28 + $0xbac] sm:$0xf0]  ;;  %7047 = vmatpush.bf16.msrb.mxu3 %v10149_v33 }
 0x75d   : > { %7019 = vmatpush.bf16.msra.mxu1 %v9637_v30  ;;  %v9572_v53 = vld [vmem:[#allocation28 + $0x510] sm:$0xf]  ;;  %v10405_v42 = vor.u32 %v11636_v48, %v10404_v45 }
 0x75e   : > { %v11428_v58 = vld [vmem:[#allocation28 + $0x52c] sm:$0xf0]  ;;  %6984 = vmatmul.bf16.vlgmr.msra.gmra.mxu2 %v13245_v61  ;;  %7012 = vmatmul.bf16.vlgmr.msra.gmra.mxu0 %v13220_v22 }
 0x75f   : > { %7032 = vmatpush.bf16.msrb.mxu2 %v9925_v21  ;;  %v9860_v17 = vld [vmem:[#allocation28 + $0x750] sm:$0xf]  ;;  %7060 = vmatpush.bf16.msrb.mxu0 %v10437_v1  ;;  %v9573_v60 = vor.u32 %v11428_v58, %v9572_v53  ;;  %v6722_v1 = vadd.f32 %v6721_v35, %v6708_v25  ;;  %v6735_v58 = vpop.f32.mrf.mxu0  ;;  %v11312_v35 = vld [vmem:[#allocation28 + $0x194] sm:$0xf] }
 0x760   : > { %v11500_v54 = vld [vmem:[#allocation28 + $0x76c] sm:$0xf0]  ;;  %7048 = vmatpush.bf16.msrb.mxu3 %v10117_v49 }
 0x761   : > { %v10084_v10 = vld [vmem:[#allocation28 + $0x910] sm:$0xf]  ;;  %7020 = vmatpush.bf16.msra.mxu1 %v9605_v51  ;;  %v9861_v8 = vor.u32 %v11500_v54, %v9860_v17  ;;  %v6761_v45 = vpop.f32.mrf.mxu2  ;;  %v6736_v54 = vadd.f32 %v6735_v58, %v6722_v1  ;;  %v9414_v1 = vld [vmem:[#allocation28 + $0x3f0] sm:$0xf0] }
 0x762   : > { %v11556_v55 = vld [vmem:[#allocation28 + $0x92c] sm:$0xf0]  ;;  %v6762_v52 = vadd.f32 %v6761_v45, %v6748_v38  ;;  %v11384_v38 = vld [vmem:[#allocation28 + $0x3d4] sm:$0xf] }
 0x763   : > { %v10372_v40 = vld [vmem:[#allocation28 + $0xb50] sm:$0xf]  ;;  %7033 = vmatpush.bf16.msrb.mxu2 %v9893_v46  ;;  %v10085_v9 = vor.u32 %v11556_v55, %v10084_v10  ;;  %7061 = vmatpush.bf16.msrb.mxu0 %v10405_v42  ;;  %v9382_v58 = vld [vmem:[#allocation28 + $0x3b0] sm:$0xf0] }
 0x764   : > { %v11628_v56 = vld [vmem:[#allocation28 + $0xb6c] sm:$0xf0]  ;;  %7439 = vst [vmem:[%s13301_s22 + $0x8] sm:$0xff] %v6762_v52 }
 0x765   : > { %v9540_v7 = vld [vmem:[#allocation28 + $0x4d0] sm:$0xf]  ;;  %v10373_v12 = vor.u32 %v11628_v56, %v10372_v40  ;;  %7021 = vmatpush.bf16.msra.mxu1 %v9573_v60  ;;  %7049 = vmatpush.bf16.msrb.mxu3 %v10085_v9  ;;  %v6749_v40 = vpop.f32.mrf.mxu1 }
 0x766   : > { %v11420_v34 = vld [vmem:[#allocation28 + $0x4ec] sm:$0xf0] }
 0x767   : > { %v9828_v39 = vld [vmem:[#allocation28 + $0x710] sm:$0xf]  ;;  %v9541_v26 = vor.u32 %v11420_v34, %v9540_v7  ;;  %7034 = vmatpush.bf16.msrb.mxu2 %v9861_v8  ;;  %7062 = vmatpush.bf16.msrb.mxu0 %v10373_v12  ;;  %v6750_v12 = vadd.f32 %v6749_v40, %v6736_v54 }
 0x768   : > { %v11492_v13 = vld [vmem:[#allocation28 + $0x72c] sm:$0xf0] }
 0x769   : > { %v10052_v14 = vld [vmem:[#allocation28 + $0x8d0] sm:$0xf]  ;;  %v9829_v27 = vor.u32 %v11492_v13, %v9828_v39  ;;  %7022 = vmatpush.bf16.msra.mxu1 %v9541_v26 }
 0x76a   : > { %v11548_v62 = vld [vmem:[#allocation28 + $0x8ec] sm:$0xf0] }
 0x76b   : > { %v10340_v18 = vld [vmem:[#allocation28 + $0xb10] sm:$0xf]  ;;  %v10053_v19 = vor.u32 %v11548_v62, %v10052_v14  ;;  %7035 = vmatpush.bf16.msrb.mxu2 %v9829_v27  ;;  %v11320_v14 = vld [vmem:[#allocation28 + $0x1d4] sm:$0xf] }
 0x76c   : > { %v11620_v20 = vld [vmem:[#allocation28 + $0xb2c] sm:$0xf0]  ;;  %v9158_v62 = vld [vmem:[#allocation28 + $0x1f0] sm:$0xf0] }
 0x76d   : > { %v9508_v47 = vld [vmem:[#allocation28 + $0x490] sm:$0xf]  ;;  %v10341_v31 = vor.u32 %v11620_v20, %v10340_v18  ;;  %7050 = vmatpush.bf16.msrb.mxu3 %v10053_v19  ;;  %v6763_v20 = vpop.f32.mrf.mxu2 }
 0x76e   : > { %v11412_v28 = vld [vmem:[#allocation28 + $0x4ac] sm:$0xf0]  ;;  %v6764_v19 = vadd.f32 %v6763_v20, %v6750_v12 }
 0x76f   : > { %v9796_v30 = vld [vmem:[#allocation28 + $0x6d0] sm:$0xf]  ;;  %v9509_v63 = vor.u32 %v11412_v28, %v9508_v47  ;;  %7063 = vmatpush.bf16.msrb.mxu0 %v10341_v31  ;;  %v9161_v31 = vor.u32 %v11320_v14, %v9158_v62  ;;  %v11288_v14 = vld [vmem:[#allocation28 + $0xd4] sm:$0xf] }
 0x770   : > { %v11484_v32 = vld [vmem:[#allocation28 + $0x6ec] sm:$0xf0]  ;;  %7447 = vst [vmem:[%s13301_s22 + $0x48] sm:$0xff] %v6764_v19  ;;  %v9030_v62 = vld [vmem:[#allocation28 + $0xf0] sm:$0xf0] }
 0x771   : > { %v10020_v21 = vld [vmem:[#allocation28 + $0x890] sm:$0xf]  ;;  %v9797_v36 = vor.u32 %v11484_v32, %v9796_v30  ;;  %7023 = vmatpush.bf16.msra.mxu1 %v9509_v63 }
 0x772   : > { %v11540_v33 = vld [vmem:[#allocation28 + $0x8ac] sm:$0xf0] }
 0x773   : > { %v10308_v2 = vld [vmem:[#allocation28 + $0xad0] sm:$0xf]  ;;  %v10021_v41 = vor.u32 %v11540_v33, %v10020_v21  ;;  %7036 = vmatpush.bf16.msrb.mxu2 %v9797_v36 }
 0x774   : > { %v11612_v37 = vld [vmem:[#allocation28 + $0xaec] sm:$0xf0] }
 0x775   : > { %v9476_v48 = vld [vmem:[#allocation28 + $0x450] sm:$0xf]  ;;  %v10309_v51 = vor.u32 %v11612_v37, %v10308_v2  ;;  %7051 = vmatpush.bf16.msrb.mxu3 %v10021_v41  ;;  %v9126_v2 = vld [vmem:[#allocation28 + $0x1b0] sm:$0xf0] }
 0x776   : > { %v11404_v43 = vld [vmem:[#allocation28 + $0x46c] sm:$0xf0]  ;;  %v9129_v45 = vor.u32 %v11312_v35, %v9126_v2 }
 0x777   : > { %v9764_v50 = vld [vmem:[#allocation28 + $0x690] sm:$0xf]  ;;  %v9477_v10 = vor.u32 %v11404_v43, %v9476_v48  ;;  %7064 = vmatpush.bf16.msrb.mxu0 %v10309_v51  ;;  %v9417_v51 = vor.u32 %v11384_v38, %v9414_v1 }
 0x778   : > { %v11476_v46 = vld [vmem:[#allocation28 + $0x6ac] sm:$0xf0] }
 0x779   : > { %v9988_v49 = vld [vmem:[#allocation28 + $0x850] sm:$0xf]  ;;  %v9765_v56 = vor.u32 %v11476_v46, %v9764_v50  ;;  %7024 = vmatpush.bf16.msra.mxu1 %v9477_v10  ;;  %v11304_v46 = vld [vmem:[#allocation28 + $0x154] sm:$0xf] }
 0x77a   : > { %v11532_v53 = vld [vmem:[#allocation28 + $0x86c] sm:$0xf0] }
 0x77b   : > { %v10276_v17 = vld [vmem:[#allocation28 + $0xa90] sm:$0xf]  ;;  %v9989_v24 = vor.u32 %v11532_v53, %v9988_v49  ;;  %7037 = vmatpush.bf16.msrb.mxu2 %v9765_v56  ;;  %v9094_v49 = vld [vmem:[#allocation28 + $0x170] sm:$0xf0] }
 0x77c   : > { %v11604_v42 = vld [vmem:[#allocation28 + $0xaac] sm:$0xf0]  ;;  %v11376_v53 = vld [vmem:[#allocation28 + $0x394] sm:$0xf]  ;;  %v9097_v54 = vor.u32 %v11304_v46, %v9094_v49 }
 0x77d   : > { %v9444_v55 = vld [vmem:[#allocation28 + $0x410] sm:$0xf]  ;;  %v10277_v6 = vor.u32 %v11604_v42, %v10276_v17  ;;  %7052 = vmatpush.bf16.msrb.mxu3 %v9989_v24  ;;  %v9385_v56 = vor.u32 %v11376_v53, %v9382_v58 }
 0x77e   : > { %v11396_v57 = vld [vmem:[#allocation28 + $0x42c] sm:$0xf0] }
 0x77f   : > { %v9732_v60 = vld [vmem:[#allocation28 + $0x650] sm:$0xf]  ;;  %v9445_v13 = vor.u32 %v11396_v57, %v9444_v55  ;;  %7065 = vmatpush.bf16.msrb.mxu0 %v10277_v6  ;;  %v11296_v57 = vld [vmem:[#allocation28 + $0x114] sm:$0xf] }
 0x780   : > { %v11468_v3 = vld [vmem:[#allocation28 + $0x66c] sm:$0xf0]  ;;  %v9350_v6 = vld [vmem:[#allocation28 + $0x370] sm:$0xf0] }
 0x781   : > { %v9956_v8 = vld [vmem:[#allocation28 + $0x810] sm:$0xf]  ;;  %v9733_v15 = vor.u32 %v11468_v3, %v9732_v60  ;;  %7025 = vmatpush.bf16.msra.mxu1 %v9445_v13  ;;  %v9062_v60 = vld [vmem:[#allocation28 + $0x130] sm:$0xf0] }
 0x782   : > { %v11524_v9 = vld [vmem:[#allocation28 + $0x82c] sm:$0xf0]  ;;  %v11368_v3 = vld [vmem:[#allocation28 + $0x354] sm:$0xf] }
 0x783   : > { %v10244_v7 = vld [vmem:[#allocation28 + $0xa50] sm:$0xf]  ;;  %v9957_v18 = vor.u32 %v11524_v9, %v9956_v8  ;;  %7038 = vmatpush.bf16.msrb.mxu2 %v9733_v15  ;;  %v9353_v12 = vor.u32 %v11368_v3, %v9350_v6  ;;  %v11360_v15 = vld [vmem:[#allocation28 + $0x314] sm:$0xf]  ;;  %v3968_v3 = vperm.slane %v13268_v0, 2 }
 0x784   : > { %v11596_v34 = vld [vmem:[#allocation28 + $0xa6c] sm:$0xf0]  ;;  %7026 = vmatmul.bf16.vlgmr.msra.gmra.mxu1 %v13224_v59 }
 0x785   : > { %v10692_v39 = vld [vmem:[#allocation28 + $0xdd0] sm:$0xf]  ;;  %v10245_v26 = vor.u32 %v11596_v34, %v10244_v7  ;;  %7053 = vmatpush.bf16.msrb.mxu3 %v9957_v18  ;;  %v9065_v7 = vor.u32 %v11296_v57, %v9062_v60  ;;  %v9318_v18 = vld [vmem:[#allocation28 + $0x330] sm:$0xf0] }
 0x786   : > { %v11708_v11 = vld [vmem:[#allocation28 + $0xdec] sm:$0xf0]  ;;  %v11448_v57 = vld [vmem:[#allocation28 + $0x5d4] sm:$0xf] }
 0x787   : > { %v9700_v23 = vld [vmem:[#allocation28 + $0x610] sm:$0xf]  ;;  %v10693_v27 = vor.u32 %v11708_v11, %v10692_v39  ;;  %7066 = vmatpush.bf16.msrb.mxu0 %v10245_v26  ;;  %v9670_v60 = vld [vmem:[#allocation28 + $0x5f0] sm:$0xf0] }
 0x788   : > { %v11460_v25 = vld [vmem:[#allocation28 + $0x62c] sm:$0xf0]  ;;  %7054 = vmatmul.bf16.vlgmr.msrb.gmra.mxu3 %v13232_v4 }
 0x789   : > { %v10212_v47 = vld [vmem:[#allocation28 + $0xa10] sm:$0xf]  ;;  %v9701_v37 = vor.u32 %v11460_v25, %v9700_v23  ;;  %7074 = vmatpush.bf16.msrb.mxu1 %v10693_v27  ;;  %7102 = vmatpush.bf16.msra.mxu3 %v9161_v31  ;;  %v9033_v25 = vor.u32 %v11288_v14, %v9030_v62  ;;  %v8998_v31 = vld [vmem:[#allocation28 + $0xb0] sm:$0xf0] }
 0x78a   : > { %v11588_v28 = vld [vmem:[#allocation28 + $0xa2c] sm:$0xf0]  ;;  %v11328_v14 = vld [vmem:[#allocation28 + $0x214] sm:$0xf] }
 0x78b   : > { %v10660_v30 = vld [vmem:[#allocation28 + $0xd90] sm:$0xf]  ;;  %v10213_v63 = vor.u32 %v11588_v28, %v10212_v47  ;;  %7039 = vmatpush.bf16.msrb.mxu2 %v9701_v37  ;;  %v9321_v47 = vor.u32 %v11360_v15, %v9318_v18  ;;  %v9190_v62 = vld [vmem:[#allocation28 + $0x230] sm:$0xf0] }
 0x78c   : > { %v11700_v32 = vld [vmem:[#allocation28 + $0xdac] sm:$0xf0]  ;;  %v11440_v18 = vld [vmem:[#allocation28 + $0x594] sm:$0xf] }
 0x78d   : > { %v10948_v21 = vld [vmem:[#allocation28 + $0xfd0] sm:$0xf]  ;;  %v10661_v36 = vor.u32 %v11700_v32, %v10660_v30  ;;  %7067 = vmatpush.bf16.msrb.mxu0 %v10213_v63  ;;  %7103 = vmatpush.bf16.msra.mxu3 %v9129_v45  ;;  %v11280_v30 = vld [vmem:[#allocation28 + $0x94] sm:$0xf] }
 0x78e   : > { %v11772_v33 = vld [vmem:[#allocation28 + $0xfec] sm:$0xf0]  ;;  %7040 = vmatmul.bf16.vlgmr.msrb.gmra.mxu2 %v13228_v16  ;;  %v11352_v32 = vld [vmem:[#allocation28 + $0x2d4] sm:$0xf]  ;;  %v9001_v2 = vor.u32 %v11280_v30, %v8998_v31 }
 0x78f   : > { %v10949_v41 = vor.u32 %v11772_v33, %v10948_v21  ;;  %v10628_v48 = vld [vmem:[#allocation28 + $0xd50] sm:$0xf]  ;;  %7075 = vmatpush.bf16.msrb.mxu1 %v10661_v36  ;;  %v9286_v21 = vld [vmem:[#allocation28 + $0x2f0] sm:$0xf0] }
 0x790   : > { %v11692_v43 = vld [vmem:[#allocation28 + $0xd6c] sm:$0xf0]  ;;  %7068 = vmatmul.bf16.vlgmr.msrb.gmra.mxu0 %v13235_v29  ;;  %v9289_v63 = vor.u32 %v11352_v32, %v9286_v21  ;;  %v8966_v45 = vld [vmem:[#allocation28 + $0x70] sm:$0xf0]  ;;  %v9193_v21 = vor.u32 %v11328_v14, %v9190_v62 }
 0x791   : > { %v10916_v50 = vld [vmem:[#allocation28 + $0xf90] sm:$0xf]  ;;  %v10629_v17 = vor.u32 %v11692_v43, %v10628_v48  ;;  %7088 = vmatpush.bf16.msra.mxu2 %v10949_v41  ;;  %7116 = vmatpush.bf16.msra.mxu0 %v9417_v51  ;;  %v11272_v41 = vld [vmem:[#allocation28 + $0x54] sm:$0xf]  ;;  %v6775_v48 = vpop.f32.mrf.mxu3 }
 0x792   : > { %v11764_v52 = vld [vmem:[#allocation28 + $0xfac] sm:$0xf0]  ;;  %7104 = vmatpush.bf16.msra.mxu3 %v9097_v54  ;;  %v11344_v43 = vld [vmem:[#allocation28 + $0x294] sm:$0xf]  ;;  %v8969_v49 = vor.u32 %v11272_v41, %v8966_v45 }
 0x793   : > { %v10917_v42 = vor.u32 %v11764_v52, %v10916_v50  ;;  %v10596_v10 = vld [vmem:[#allocation28 + $0xd10] sm:$0xf]  ;;  %7076 = vmatpush.bf16.msrb.mxu1 %v10629_v17  ;;  %v9254_v50 = vld [vmem:[#allocation28 + $0x2b0] sm:$0xf0] }
 0x794   : > { %v11684_v55 = vld [vmem:[#allocation28 + $0xd2c] sm:$0xf0]  ;;  %v11264_v54 = vld [vmem:[#allocation28 + $0x14] sm:$0xf] }
 0x795   : > { %v10884_v40 = vld [vmem:[#allocation28 + $0xf50] sm:$0xf]  ;;  %v10597_v8 = vor.u32 %v11684_v55, %v10596_v10  ;;  %7089 = vmatpush.bf16.msra.mxu2 %v10917_v42  ;;  %7117 = vmatpush.bf16.msra.mxu0 %v9385_v56  ;;  %v9257_v42 = vor.u32 %v11344_v43, %v9254_v50  ;;  %v8934_v10 = vld [vmem:[#allocation28 + $0x30] sm:$0xf0]  ;;  %v6803_v56 = vpop.f32.mrf.mxu1 }
 0x796   : > { %v11756_v24 = vld [vmem:[#allocation28 + $0xf6c] sm:$0xf0]  ;;  %7105 = vmatpush.bf16.msra.mxu3 %v9065_v7  ;;  %v11336_v55 = vld [vmem:[#allocation28 + $0x254] sm:$0xf] }
 0x797   : > { %v10885_v9 = vor.u32 %v11756_v24, %v10884_v40  ;;  %v10564_v34 = vld [vmem:[#allocation28 + $0xcd0] sm:$0xf]  ;;  %7077 = vmatpush.bf16.msrb.mxu1 %v10597_v8  ;;  %v6789_v40 = vpop.f32.mrf.mxu0  ;;  %v9222_v24 = vld [vmem:[#allocation28 + $0x270] sm:$0xf0] }
 0x798   : > { %v11676_v39 = vld [vmem:[#allocation28 + $0xcec] sm:$0xf0]  ;;  %v11576_v8 = vld [vmem:[#allocation28 + $0x9d4] sm:$0xf] }
 0x799   : > { %v10852_v11 = vld [vmem:[#allocation28 + $0xf10] sm:$0xf]  ;;  %v10565_v20 = vor.u32 %v11676_v39, %v10564_v34  ;;  %7090 = vmatpush.bf16.msra.mxu2 %v10885_v9  ;;  %7118 = vmatpush.bf16.msra.mxu0 %v9353_v12  ;;  %v10182_v9 = vld [vmem:[#allocation28 + $0x9f0] sm:$0xf0]  ;;  %v8937_v34 = vor.u32 %v11264_v54, %v8934_v10  ;;  %v9673_v12 = vor.u32 %v11448_v57, %v9670_v60 }
 0x79a   : > { %v11748_v13 = vld [vmem:[#allocation28 + $0xf2c] sm:$0xf0]  ;;  %7106 = vmatpush.bf16.msra.mxu3 %v9033_v25  ;;  %v10185_v15 = vor.u32 %v11576_v8, %v10182_v9  ;;  %v6776_v25 = vadd.f32 %v6775_v48, %v3968_v3  ;;  %v11640_v31 = vld [vmem:[#allocation28 + $0xbd4] sm:$0xf] }
 0x79b   : > { %v10853_v23 = vor.u32 %v11748_v13, %v10852_v11  ;;  %v10532_v26 = vld [vmem:[#allocation28 + $0xc90] sm:$0xf]  ;;  %7078 = vmatpush.bf16.msrb.mxu1 %v10565_v20  ;;  %v9225_v11 = vor.u32 %v11336_v55, %v9222_v24  ;;  %v9638_v20 = vld [vmem:[#allocation28 + $0x5b0] sm:$0xf0] }
 0x79c   : > { %v11668_v27 = vld [vmem:[#allocation28 + $0xcac] sm:$0xf0]  ;;  %v10438_v32 = vld [vmem:[#allocation28 + $0xbf0] sm:$0xf0] }
 0x79d   : > { %v10820_v19 = vld [vmem:[#allocation28 + $0xed0] sm:$0xf]  ;;  %v10533_v33 = vor.u32 %v11668_v27, %v10532_v26  ;;  %7091 = vmatpush.bf16.msra.mxu2 %v10853_v23  ;;  %7119 = vmatpush.bf16.msra.mxu0 %v9321_v47  ;;  %v11512_v23 = vld [vmem:[#allocation28 + $0x7d4] sm:$0xf]  ;;  %v6777_v47 = vpop.f32.mrf.mxu3  ;;  %v6805_v50 = vpop.f32.mrf.mxu1 }
 0x79e   : > { %v11740_v28 = vld [vmem:[#allocation28 + $0xeec] sm:$0xf0]  ;;  %7107 = vmatpush.bf16.msra.mxu3 %v9001_v2  ;;  %v9926_v26 = vld [vmem:[#allocation28 + $0x7f0] sm:$0xf0]  ;;  %v6778_v10 = vadd.f32 %v6777_v47, %v3968_v3 }
 0x79f   : > { %v10821_v35 = vor.u32 %v11740_v28, %v10820_v19  ;;  %v10500_v37 = vld [vmem:[#allocation28 + $0xc50] sm:$0xf]  ;;  %7079 = vmatpush.bf16.msrb.mxu1 %v10533_v33  ;;  %v11568_v27 = vld [vmem:[#allocation28 + $0x994] sm:$0xf]  ;;  %v6817_v28 = vpop.f32.mrf.mxu2  ;;  %v9641_v33 = vor.u32 %v11440_v18, %v9638_v20  ;;  %v6791_v43 = vpop.f32.mrf.mxu0 }
 0x7a0   : > { %v11660_v38 = vld [vmem:[#allocation28 + $0xc6c] sm:$0xf0]  ;;  %v10150_v19 = vld [vmem:[#allocation28 + $0x9b0] sm:$0xf0] }
 0x7a1   : > { %v10788_v1 = vld [vmem:[#allocation28 + $0xe90] sm:$0xf]  ;;  %v10501_v51 = vor.u32 %v11660_v38, %v10500_v37  ;;  %7092 = vmatpush.bf16.msra.mxu2 %v10821_v35  ;;  %7120 = vmatpush.bf16.msra.mxu0 %v9289_v63  ;;  %v9929_v35 = vor.u32 %v11512_v23, %v9926_v26  ;;  %v10153_v2 = vor.u32 %v11568_v27, %v10150_v19  ;;  %v11432_v37 = vld [vmem:[#allocation28 + $0x554] sm:$0xf] }
 0x7a2   : > { %v11732_v36 = vld [vmem:[#allocation28 + $0xeac] sm:$0xf0]  ;;  %7108 = vmatpush.bf16.msra.mxu3 %v8969_v49  ;;  %v9606_v38 = vld [vmem:[#allocation28 + $0x570] sm:$0xf0]  ;;  %v6790_v63 = vadd.f32 %v6789_v40, %v6776_v25 }
 0x7a3   : > { %v10468_v52 = vld [vmem:[#allocation28 + $0xc10] sm:$0xf]  ;;  %v10789_v46 = vor.u32 %v11732_v36, %v10788_v1  ;;  %7080 = vmatpush.bf16.msrb.mxu1 %v10501_v51  ;;  %v11504_v1 = vld [vmem:[#allocation28 + $0x794] sm:$0xf]  ;;  %v10441_v36 = vor.u32 %v11640_v31, %v10438_v32  ;;  %v9609_v49 = vor.u32 %v11432_v37, %v9606_v38 }
 0x7a4   : > { %v11652_v53 = vld [vmem:[#allocation28 + $0xc2c] sm:$0xf0]  ;;  %v9894_v41 = vld [vmem:[#allocation28 + $0x7b0] sm:$0xf0] }
 0x7a5   : > { %v10756_v58 = vld [vmem:[#allocation28 + $0xe50] sm:$0xf]  ;;  %v10469_v6 = vor.u32 %v11652_v53, %v10468_v52  ;;  %7093 = vmatpush.bf16.msra.mxu2 %v10789_v46  ;;  %7121 = vmatpush.bf16.msra.mxu0 %v9257_v42  ;;  %v11560_v45 = vld [vmem:[#allocation28 + $0x954] sm:$0xf]  ;;  %v6804_v46 = vadd.f32 %v6803_v56, %v6790_v63  ;;  %v9897_v53 = vor.u32 %v11504_v1, %v9894_v41  ;;  %v6831_v60 = vpop.f32.mrf.mxu3  ;;  %v6859_v23 = vpop.f32.mrf.mxu1 }
 0x7a6   : > { %v11724_v17 = vld [vmem:[#allocation28 + $0xe6c] sm:$0xf0]  ;;  %7109 = vmatpush.bf16.msra.mxu3 %v8937_v34  ;;  %v10118_v48 = vld [vmem:[#allocation28 + $0x970] sm:$0xf0] }
 0x7a7   : > { %v10757_v7 = vor.u32 %v11724_v17, %v10756_v58  ;;  %v10724_v39 = vld [vmem:[#allocation28 + $0xe10] sm:$0xf]  ;;  %7081 = vmatpush.bf16.msrb.mxu1 %v10469_v6  ;;  %v11632_v51 = vld [vmem:[#allocation28 + $0xb94] sm:$0xf]  ;;  %v10121_v58 = vor.u32 %v11560_v45, %v10118_v48  ;;  %v6818_v55 = vadd.f32 %v6817_v28, %v6804_v46  ;;  %v6845_v20 = vpop.f32.mrf.mxu0 }
 0x7a8   : > { %v11716_v13 = vld [vmem:[#allocation28 + $0xe2c] sm:$0xf0]  ;;  %v10406_v52 = vld [vmem:[#allocation28 + $0xbb0] sm:$0xf0] }
 0x7a9   : > { %7094 = vmatpush.bf16.msra.mxu2 %v10757_v7  ;;  %v10725_v30 = vor.u32 %v11716_v13, %v10724_v39  ;;  %7122 = vmatpush.bf16.msra.mxu0 %v9225_v11  ;;  %v11424_v17 = vld [vmem:[#allocation28 + $0x514] sm:$0xf]  ;;  %v10409_v40 = vor.u32 %v11632_v51, %v10406_v52  ;;  %v6819_v7 = vpop.f32.mrf.mxu2  ;;  %v6832_v13 = vadd.f32 %v6831_v60, %v6818_v55 }
 0x7aa   : > { %7158 = vmatpush.bf16.msrb.mxu3 %v10185_v15  ;;  %7082 = vmatmul.bf16.vlgmr.msrb.gmra.mxu1 %v13242_v44  ;;  %v9574_v42 = vld [vmem:[#allocation28 + $0x530] sm:$0xf0] }
 0x7ab   : > { %7130 = vmatpush.bf16.msra.mxu1 %v9673_v12  ;;  %7110 = vmatmul.bf16.vlgmr.msra.gmra.mxu3 %v13216_v5  ;;  %v11496_v54 = vld [vmem:[#allocation28 + $0x754] sm:$0xf]  ;;  %v9577_v9 = vor.u32 %v11424_v17, %v9574_v42  ;;  %v6792_v12 = vadd.f32 %v6791_v43, %v6778_v10 }
 0x7ac   : > { %v9862_v24 = vld [vmem:[#allocation28 + $0x770] sm:$0xf0] }
 0x7ad   : > { %7095 = vmatpush.bf16.msra.mxu2 %v10725_v30  ;;  %7123 = vmatpush.bf16.msra.mxu0 %v9193_v21  ;;  %v11552_v56 = vld [vmem:[#allocation28 + $0x914] sm:$0xf]  ;;  %v9865_v0 = vor.u32 %v11496_v54, %v9862_v24  ;;  %v6806_v27 = vadd.f32 %v6805_v50, %v6792_v12  ;;  %v6833_v45 = vpop.f32.mrf.mxu3 }
 0x7ae   : > { %7159 = vmatpush.bf16.msrb.mxu3 %v10153_v2  ;;  %v10086_v57 = vld [vmem:[#allocation28 + $0x930] sm:$0xf0] }
 0x7af   : > { %7131 = vmatpush.bf16.msra.mxu1 %v9641_v33  ;;  %v11624_v6 = vld [vmem:[#allocation28 + $0xb54] sm:$0xf]  ;;  %v10089_v3 = vor.u32 %v11552_v56, %v10086_v57  ;;  %v6820_v21 = vadd.f32 %v6819_v7, %v6806_v27  ;;  %v6846_v33 = vadd.f32 %v6845_v20, %v6832_v13  ;;  %v6847_v56 = vpop.f32.mrf.mxu0  ;;  %v6861_v57 = vpop.f32.mrf.mxu1  ;;  %v11325_v20 = vld [vmem:[#allocation28 + $0x1f4] sm:$0xf0] }
 0x7b0   : > { %7096 = vmatmul.bf16.vlgmr.msra.gmra.mxu2 %v13245_v61  ;;  %7124 = vmatmul.bf16.vlgmr.msra.gmra.mxu0 %v13220_v22  ;;  %v10374_v8 = vld [vmem:[#allocation28 + $0xb70] sm:$0xf0] }
 0x7b1   : > { %7144 = vmatpush.bf16.msrb.mxu2 %v9929_v35  ;;  %7172 = vmatpush.bf16.msrb.mxu0 %v10441_v36  ;;  %v11416_v34 = vld [vmem:[#allocation28 + $0x4d4] sm:$0xf]  ;;  %v10377_v14 = vor.u32 %v11624_v6, %v10374_v8  ;;  %v6860_v36 = vadd.f32 %v6859_v23, %v6846_v33  ;;  %v6873_v43 = vpop.f32.mrf.mxu2 }
 0x7b2   : > { %7160 = vmatpush.bf16.msrb.mxu3 %v10121_v58  ;;  %v9542_v39 = vld [vmem:[#allocation28 + $0x4f0] sm:$0xf0] }
 0x7b3   : > { %7132 = vmatpush.bf16.msra.mxu1 %v9609_v49  ;;  %v11488_v11 = vld [vmem:[#allocation28 + $0x714] sm:$0xf]  ;;  %v9545_v19 = vor.u32 %v11416_v34, %v9542_v39  ;;  %v6834_v49 = vadd.f32 %v6833_v45, %v6820_v21 }
 0x7b4   : > { %v9830_v62 = vld [vmem:[#allocation28 + $0x730] sm:$0xf0] }
 0x7b5   : > { %7145 = vmatpush.bf16.msrb.mxu2 %v9897_v53  ;;  %7173 = vmatpush.bf16.msrb.mxu0 %v10409_v40  ;;  %v11544_v15 = vld [vmem:[#allocation28 + $0x8d4] sm:$0xf]  ;;  %v9833_v47 = vor.u32 %v11488_v11, %v9830_v62  ;;  %v6874_v53 = vadd.f32 %v6873_v43, %v6860_v36  ;;  %v9420_v36 = vld [vmem:[#allocation28 + $0x3d8] sm:$0xf] }
 0x7b6   : > { %v10054_v18 = vld [vmem:[#allocation28 + $0x8f0] sm:$0xf0]  ;;  %7161 = vmatpush.bf16.msrb.mxu3 %v10089_v3 }
 0x7b7   : > { %v11616_v25 = vld [vmem:[#allocation28 + $0xb14] sm:$0xf]  ;;  %7133 = vmatpush.bf16.msra.mxu1 %v9577_v9  ;;  %v10057_v28 = vor.u32 %v11544_v15, %v10054_v18  ;;  %7440 = vst [vmem:[%s13301_s22 + $0x10] sm:$0xff] %v6874_v53  ;;  %v9164_v18 = vld [vmem:[#allocation28 + $0x1d8] sm:$0xf] }
 0x7b8   : > { %v10342_v26 = vld [vmem:[#allocation28 + $0xb30] sm:$0xf0]  ;;  %v9165_v33 = vor.u32 %v11325_v20, %v9164_v18  ;;  %v11293_v18 = vld [vmem:[#allocation28 + $0xf4] sm:$0xf0] }
 0x7b9   : > { %7146 = vmatpush.bf16.msrb.mxu2 %v9865_v0  ;;  %v11408_v30 = vld [vmem:[#allocation28 + $0x494] sm:$0xf]  ;;  %7174 = vmatpush.bf16.msrb.mxu0 %v10377_v14  ;;  %v10345_v35 = vor.u32 %v11616_v25, %v10342_v26  ;;  %v6848_v0 = vadd.f32 %v6847_v56, %v6834_v49  ;;  %v6875_v25 = vpop.f32.mrf.mxu2  ;;  %v9324_v20 = vld [vmem:[#allocation28 + $0x318] sm:$0xf] }
 0x7ba   : > { %v9510_v31 = vld [vmem:[#allocation28 + $0x4b0] sm:$0xf0]  ;;  %7162 = vmatpush.bf16.msrb.mxu3 %v10057_v28 }
 0x7bb   : > { %v11480_v32 = vld [vmem:[#allocation28 + $0x6d4] sm:$0xf]  ;;  %7134 = vmatpush.bf16.msra.mxu1 %v9545_v19  ;;  %v9513_v41 = vor.u32 %v11408_v30, %v9510_v31  ;;  %v6862_v62 = vadd.f32 %v6861_v57, %v6848_v0  ;;  %v11373_v0 = vld [vmem:[#allocation28 + $0x374] sm:$0xf0] }
 0x7bc   : > { %v9798_v2 = vld [vmem:[#allocation28 + $0x6f0] sm:$0xf0] }
 0x7bd   : > { %v11536_v37 = vld [vmem:[#allocation28 + $0x894] sm:$0xf]  ;;  %7147 = vmatpush.bf16.msrb.mxu2 %v9833_v47  ;;  %v9801_v48 = vor.u32 %v11480_v32, %v9798_v2  ;;  %7175 = vmatpush.bf16.msrb.mxu0 %v10345_v35  ;;  %v6876_v47 = vadd.f32 %v6875_v25, %v6862_v62 }
 0x7be   : > { %v10022_v38 = vld [vmem:[#allocation28 + $0x8b0] sm:$0xf0] }
 0x7bf   : > { %v11608_v1 = vld [vmem:[#allocation28 + $0xad4] sm:$0xf]  ;;  %v10025_v50 = vor.u32 %v11536_v37, %v10022_v38  ;;  %7135 = vmatpush.bf16.msra.mxu1 %v9513_v41  ;;  %7448 = vst [vmem:[%s13301_s22 + $0x50] sm:$0xff] %v6876_v47  ;;  %v9132_v38 = vld [vmem:[#allocation28 + $0x198] sm:$0xf] }
 0x7c0   : > { %v10310_v63 = vld [vmem:[#allocation28 + $0xaf0] sm:$0xf0]  ;;  %v11389_v41 = vld [vmem:[#allocation28 + $0x3f4] sm:$0xf0] }
 0x7c1   : > { %v11400_v51 = vld [vmem:[#allocation28 + $0x454] sm:$0xf]  ;;  %v10313_v58 = vor.u32 %v11608_v1, %v10310_v63  ;;  %7148 = vmatpush.bf16.msrb.mxu2 %v9801_v48  ;;  %7163 = vmatpush.bf16.msrb.mxu3 %v10025_v50  ;;  %v11317_v1 = vld [vmem:[#allocation28 + $0x1b4] sm:$0xf0]  ;;  %v9421_v49 = vor.u32 %v11389_v41, %v9420_v36 }
 0x7c2   : > { %v9478_v52 = vld [vmem:[#allocation28 + $0x470] sm:$0xf0]  ;;  %v9133_v50 = vor.u32 %v11317_v1, %v9132_v38 }
 0x7c3   : > { %v11472_v46 = vld [vmem:[#allocation28 + $0x694] sm:$0xf]  ;;  %v9481_v40 = vor.u32 %v11400_v51, %v9478_v52  ;;  %7176 = vmatpush.bf16.msrb.mxu0 %v10313_v58  ;;  %v9100_v58 = vld [vmem:[#allocation28 + $0x158] sm:$0xf] }
 0x7c4   : > { %v9766_v17 = vld [vmem:[#allocation28 + $0x6b0] sm:$0xf0] }
 0x7c5   : > { %v11528_v42 = vld [vmem:[#allocation28 + $0x854] sm:$0xf]  ;;  %v9769_v60 = vor.u32 %v11472_v46, %v9766_v17  ;;  %7136 = vmatpush.bf16.msra.mxu1 %v9481_v40  ;;  %v11309_v17 = vld [vmem:[#allocation28 + $0x174] sm:$0xf0] }
 0x7c6   : > { %v9990_v54 = vld [vmem:[#allocation28 + $0x870] sm:$0xf0]  ;;  %v9101_v40 = vor.u32 %v11309_v17, %v9100_v58 }
 0x7c7   : > { %v11600_v10 = vld [vmem:[#allocation28 + $0xa94] sm:$0xf]  ;;  %v9993_v6 = vor.u32 %v11528_v42, %v9990_v54  ;;  %7149 = vmatpush.bf16.msrb.mxu2 %v9769_v60  ;;  %v9388_v42 = vld [vmem:[#allocation28 + $0x398] sm:$0xf] }
 0x7c8   : > { %v10278_v55 = vld [vmem:[#allocation28 + $0xab0] sm:$0xf0]  ;;  %v11381_v54 = vld [vmem:[#allocation28 + $0x3b4] sm:$0xf0] }
 0x7c9   : > { %v11392_v24 = vld [vmem:[#allocation28 + $0x414] sm:$0xf]  ;;  %v10281_v3 = vor.u32 %v11600_v10, %v10278_v55  ;;  %7164 = vmatpush.bf16.msrb.mxu3 %v9993_v6  ;;  %v9389_v60 = vor.u32 %v11381_v54, %v9388_v42 }
 0x7ca   : > { %v9446_v8 = vld [vmem:[#allocation28 + $0x430] sm:$0xf0] }
 0x7cb   : > { %v11464_v9 = vld [vmem:[#allocation28 + $0x654] sm:$0xf]  ;;  %v9449_v15 = vor.u32 %v11392_v24, %v9446_v8  ;;  %7177 = vmatpush.bf16.msrb.mxu0 %v10281_v3  ;;  %v9068_v8 = vld [vmem:[#allocation28 + $0x118] sm:$0xf] }
 0x7cc   : > { %v9734_v7 = vld [vmem:[#allocation28 + $0x670] sm:$0xf0] }
 0x7cd   : > { %v11520_v34 = vld [vmem:[#allocation28 + $0x814] sm:$0xf]  ;;  %v9737_v23 = vor.u32 %v11464_v9, %v9734_v7  ;;  %7137 = vmatpush.bf16.msra.mxu1 %v9449_v15  ;;  %v11301_v9 = vld [vmem:[#allocation28 + $0x134] sm:$0xf0] }
 0x7ce   : > { %v9958_v39 = vld [vmem:[#allocation28 + $0x830] sm:$0xf0]  ;;  %v9356_v7 = vld [vmem:[#allocation28 + $0x358] sm:$0xf] }
 0x7cf   : > { %v11592_v11 = vld [vmem:[#allocation28 + $0xa54] sm:$0xf]  ;;  %v9961_v26 = vor.u32 %v11520_v34, %v9958_v39  ;;  %7150 = vmatpush.bf16.msrb.mxu2 %v9737_v23  ;;  %v9069_v39 = vor.u32 %v11301_v9, %v9068_v8  ;;  %v9036_v15 = vld [vmem:[#allocation28 + $0xd8] sm:$0xf]  ;;  %v13335_v9 = vld [vmem:[#allocation29] sm:$0xff] }
 0x7d0   : > { %v10246_v12 = vld [vmem:[#allocation28 + $0xa70] sm:$0xf0]  ;;  %7138 = vmatmul.bf16.vlgmr.msra.gmra.mxu1 %v13224_v59  ;;  %v11365_v23 = vld [vmem:[#allocation28 + $0x334] sm:$0xf0] }
 0x7d1   : > { %v11704_v13 = vld [vmem:[#allocation28 + $0xdd4] sm:$0xf]  ;;  %v10249_v28 = vor.u32 %v11592_v11, %v10246_v12  ;;  %7165 = vmatpush.bf16.msrb.mxu3 %v9961_v26  ;;  %v11453_v8 = vld [vmem:[#allocation28 + $0x5f4] sm:$0xf0] }
 0x7d2   : > { %v10694_v14 = vld [vmem:[#allocation28 + $0xdf0] sm:$0xf0] }
 0x7d3   : > { %v11456_v27 = vld [vmem:[#allocation28 + $0x614] sm:$0xf]  ;;  %v10697_v30 = vor.u32 %v11704_v13, %v10694_v14  ;;  %7178 = vmatpush.bf16.msrb.mxu0 %v10249_v28  ;;  %v9357_v14 = vor.u32 %v11373_v0, %v9356_v7  ;;  %v3969_v7 = vperm.slane %v13335_v9, 3 }
 0x7d4   : > { %v9702_v19 = vld [vmem:[#allocation28 + $0x630] sm:$0xf0]  ;;  %7166 = vmatmul.bf16.vlgmr.msrb.gmra.mxu3 %v13232_v4 }
 0x7d5   : > { %v11584_v31 = vld [vmem:[#allocation28 + $0xa14] sm:$0xf]  ;;  %v9705_v63 = vor.u32 %v11456_v27, %v9702_v19  ;;  %7186 = vmatpush.bf16.msrb.mxu1 %v10697_v30  ;;  %7214 = vmatpush.bf16.msra.mxu3 %v9165_v33  ;;  %v9037_v27 = vor.u32 %v11293_v18, %v9036_v15  ;;  %v9325_v30 = vor.u32 %v11365_v23, %v9324_v20  ;;  %v9292_v33 = vld [vmem:[#allocation28 + $0x2d8] sm:$0xf] }
 0x7d6   : > { %v10214_v32 = vld [vmem:[#allocation28 + $0xa30] sm:$0xf0]  ;;  %v9196_v15 = vld [vmem:[#allocation28 + $0x218] sm:$0xf] }
 0x7d7   : > { %v11696_v21 = vld [vmem:[#allocation28 + $0xd94] sm:$0xf]  ;;  %v10217_v45 = vor.u32 %v11584_v31, %v10214_v32  ;;  %7151 = vmatpush.bf16.msrb.mxu2 %v9705_v63  ;;  %v9004_v32 = vld [vmem:[#allocation28 + $0x98] sm:$0xf] }
 0x7d8   : > { %v10662_v35 = vld [vmem:[#allocation28 + $0xdb0] sm:$0xf0]  ;;  %v11333_v18 = vld [vmem:[#allocation28 + $0x234] sm:$0xf0] }
 0x7d9   : > { %v11768_v2 = vld [vmem:[#allocation28 + $0xfd4] sm:$0xf]  ;;  %v10665_v48 = vor.u32 %v11696_v21, %v10662_v35  ;;  %7179 = vmatpush.bf16.msrb.mxu0 %v10217_v45  ;;  %7215 = vmatpush.bf16.msra.mxu3 %v9133_v50  ;;  %v11285_v21 = vld [vmem:[#allocation28 + $0xb4] sm:$0xf0]  ;;  %v6887_v50 = vpop.f32.mrf.mxu3 }
 0x7da   : > { %v10950_v37 = vld [vmem:[#allocation28 + $0xff0] sm:$0xf0]  ;;  %7152 = vmatmul.bf16.vlgmr.msrb.gmra.mxu2 %v13228_v16  ;;  %v11357_v35 = vld [vmem:[#allocation28 + $0x2f4] sm:$0xf0]  ;;  %v9005_v38 = vor.u32 %v11285_v21, %v9004_v32 }
 0x7db   : > { %v10953_v43 = vor.u32 %v11768_v2, %v10950_v37  ;;  %v11688_v51 = vld [vmem:[#allocation28 + $0xd54] sm:$0xf]  ;;  %7187 = vmatpush.bf16.msrb.mxu1 %v10665_v48  ;;  %v9293_v41 = vor.u32 %v11357_v35, %v9292_v33  ;;  %v8972_v48 = vld [vmem:[#allocation28 + $0x58] sm:$0xf]  ;;  %v9197_v35 = vor.u32 %v11333_v18, %v9196_v15 }
 0x7dc   : > { %v10630_v52 = vld [vmem:[#allocation28 + $0xd70] sm:$0xf0]  ;;  %7180 = vmatmul.bf16.vlgmr.msrb.gmra.mxu0 %v13235_v29  ;;  %v9644_v23 = vld [vmem:[#allocation28 + $0x598] sm:$0xf] }
 0x7dd   : > { %v11760_v46 = vld [vmem:[#allocation28 + $0xf94] sm:$0xf]  ;;  %v10633_v10 = vor.u32 %v11688_v51, %v10630_v52  ;;  %7200 = vmatpush.bf16.msra.mxu2 %v10953_v43  ;;  %7228 = vmatpush.bf16.msra.mxu0 %v9421_v49  ;;  %v11277_v43 = vld [vmem:[#allocation28 + $0x74] sm:$0xf0] }
 0x7de   : > { %v10918_v53 = vld [vmem:[#allocation28 + $0xfb0] sm:$0xf0]  ;;  %7216 = vmatpush.bf16.msra.mxu3 %v9101_v40  ;;  %v9260_v51 = vld [vmem:[#allocation28 + $0x298] sm:$0xf]  ;;  %v8973_v58 = vor.u32 %v11277_v43, %v8972_v48 }
 0x7df   : > { %v10921_v55 = vor.u32 %v11760_v46, %v10918_v53  ;;  %v11680_v24 = vld [vmem:[#allocation28 + $0xd14] sm:$0xf]  ;;  %7188 = vmatpush.bf16.msrb.mxu1 %v10633_v10  ;;  %v11349_v52 = vld [vmem:[#allocation28 + $0x2b4] sm:$0xf0] }
 0x7e0   : > { %v10598_v56 = vld [vmem:[#allocation28 + $0xd30] sm:$0xf0]  ;;  %v9261_v10 = vor.u32 %v11349_v52, %v9260_v51  ;;  %v11269_v40 = vld [vmem:[#allocation28 + $0x34] sm:$0xf0] }
 0x7e1   : > { %v11752_v57 = vld [vmem:[#allocation28 + $0xf54] sm:$0xf]  ;;  %v10601_v3 = vor.u32 %v11680_v24, %v10598_v56  ;;  %7201 = vmatpush.bf16.msra.mxu2 %v10921_v55  ;;  %7229 = vmatpush.bf16.msra.mxu0 %v9389_v60  ;;  %v8940_v55 = vld [vmem:[#allocation28 + $0x18] sm:$0xf]  ;;  %v6901_v56 = vpop.f32.mrf.mxu0 }
 0x7e2   : > { %v10886_v6 = vld [vmem:[#allocation28 + $0xf70] sm:$0xf0]  ;;  %7217 = vmatpush.bf16.msra.mxu3 %v9069_v39  ;;  %v9228_v24 = vld [vmem:[#allocation28 + $0x258] sm:$0xf] }
 0x7e3   : > { %v10889_v34 = vor.u32 %v11752_v57, %v10886_v6  ;;  %v11672_v11 = vld [vmem:[#allocation28 + $0xcd4] sm:$0xf]  ;;  %7189 = vmatpush.bf16.msrb.mxu1 %v10601_v3  ;;  %v6915_v57 = vpop.f32.mrf.mxu1  ;;  %v11341_v60 = vld [vmem:[#allocation28 + $0x274] sm:$0xf0] }
 0x7e4   : > { %v10566_v12 = vld [vmem:[#allocation28 + $0xcf0] sm:$0xf0]  ;;  %v9676_v6 = vld [vmem:[#allocation28 + $0x5d8] sm:$0xf] }
 0x7e5   : > { %v11744_v13 = vld [vmem:[#allocation28 + $0xf14] sm:$0xf]  ;;  %v10569_v25 = vor.u32 %v11672_v11, %v10566_v12  ;;  %7202 = vmatpush.bf16.msra.mxu2 %v10889_v34  ;;  %7230 = vmatpush.bf16.msra.mxu0 %v9357_v14  ;;  %v10188_v3 = vld [vmem:[#allocation28 + $0x9d8] sm:$0xf]  ;;  %v8941_v11 = vor.u32 %v11269_v40, %v8940_v55  ;;  %v9677_v14 = vor.u32 %v11453_v8, %v9676_v6 }
 0x7e6   : > { %v10854_v62 = vld [vmem:[#allocation28 + $0xf30] sm:$0xf0]  ;;  %7218 = vmatpush.bf16.msra.mxu3 %v9037_v27  ;;  %v11581_v34 = vld [vmem:[#allocation28 + $0x9f4] sm:$0xf0]  ;;  %v6888_v27 = vadd.f32 %v6887_v50, %v3969_v7 }
 0x7e7   : > { %v10857_v26 = vor.u32 %v11744_v13, %v10854_v62  ;;  %v11664_v19 = vld [vmem:[#allocation28 + $0xc94] sm:$0xf]  ;;  %7190 = vmatpush.bf16.msrb.mxu1 %v10569_v25  ;;  %v9229_v13 = vor.u32 %v11341_v60, %v9228_v24  ;;  %v10189_v20 = vor.u32 %v11581_v34, %v10188_v3  ;;  %v11445_v25 = vld [vmem:[#allocation28 + $0x5b4] sm:$0xf0] }
 0x7e8   : > { %v10534_v47 = vld [vmem:[#allocation28 + $0xcb0] sm:$0xf0]  ;;  %v10444_v21 = vld [vmem:[#allocation28 + $0xbd8] sm:$0xf] }
 0x7e9   : > { %v11736_v28 = vld [vmem:[#allocation28 + $0xed4] sm:$0xf]  ;;  %v10537_v2 = vor.u32 %v11664_v19, %v10534_v47  ;;  %7203 = vmatpush.bf16.msra.mxu2 %v10857_v26  ;;  %7231 = vmatpush.bf16.msra.mxu0 %v9325_v30  ;;  %v9932_v26 = vld [vmem:[#allocation28 + $0x7d8] sm:$0xf]  ;;  %v6889_v30 = vpop.f32.mrf.mxu3  ;;  %v6903_v51 = vpop.f32.mrf.mxu0 }
 0x7ea   : > { %v10822_v31 = vld [vmem:[#allocation28 + $0xef0] sm:$0xf0]  ;;  %7219 = vmatpush.bf16.msra.mxu3 %v9005_v38  ;;  %v11517_v19 = vld [vmem:[#allocation28 + $0x7f4] sm:$0xf0]  ;;  %v6890_v40 = vadd.f32 %v6889_v30, %v3969_v7 }
 0x7eb   : > { %v10825_v37 = vor.u32 %v11736_v28, %v10822_v31  ;;  %v11656_v1 = vld [vmem:[#allocation28 + $0xc54] sm:$0xf]  ;;  %7191 = vmatpush.bf16.msrb.mxu1 %v10537_v2  ;;  %v10156_v47 = vld [vmem:[#allocation28 + $0x998] sm:$0xf]  ;;  %v6929_v31 = vpop.f32.mrf.mxu2  ;;  %v9645_v2 = vor.u32 %v11445_v25, %v9644_v23  ;;  %v6917_v52 = vpop.f32.mrf.mxu1 }
 0x7ec   : > { %v10502_v63 = vld [vmem:[#allocation28 + $0xc70] sm:$0xf0]  ;;  %v11573_v28 = vld [vmem:[#allocation28 + $0x9b4] sm:$0xf0] }
 0x7ed   : > { %v11728_v36 = vld [vmem:[#allocation28 + $0xe94] sm:$0xf]  ;;  %v10505_v46 = vor.u32 %v11656_v1, %v10502_v63  ;;  %7204 = vmatpush.bf16.msra.mxu2 %v10825_v37  ;;  %7232 = vmatpush.bf16.msra.mxu0 %v9293_v41  ;;  %v11645_v33 = vld [vmem:[#allocation28 + $0xbf4] sm:$0xf0]  ;;  %v9933_v37 = vor.u32 %v11517_v19, %v9932_v26  ;;  %v10157_v38 = vor.u32 %v11573_v28, %v10156_v47 }
 0x7ee   : > { %v10790_v45 = vld [vmem:[#allocation28 + $0xeb0] sm:$0xf0]  ;;  %7220 = vmatpush.bf16.msra.mxu3 %v8973_v58  ;;  %v9612_v1 = vld [vmem:[#allocation28 + $0x558] sm:$0xf]  ;;  %v6902_v41 = vadd.f32 %v6901_v56, %v6888_v27 }
 0x7ef   : > { %v11648_v49 = vld [vmem:[#allocation28 + $0xc14] sm:$0xf]  ;;  %v10793_v53 = vor.u32 %v11728_v36, %v10790_v45  ;;  %7192 = vmatpush.bf16.msrb.mxu1 %v10505_v46  ;;  %v11437_v63 = vld [vmem:[#allocation28 + $0x574] sm:$0xf0]  ;;  %v10445_v45 = vor.u32 %v11645_v33, %v10444_v21 }
 0x7f0   : > { %v10470_v17 = vld [vmem:[#allocation28 + $0xc30] sm:$0xf0]  ;;  %v9900_v36 = vld [vmem:[#allocation28 + $0x798] sm:$0xf]  ;;  %v9613_v58 = vor.u32 %v11437_v63, %v9612_v1 }
 0x7f1   : > { %v11720_v42 = vld [vmem:[#allocation28 + $0xe54] sm:$0xf]  ;;  %v10473_v0 = vor.u32 %v11648_v49, %v10470_v17  ;;  %7205 = vmatpush.bf16.msra.mxu2 %v10793_v53  ;;  %7233 = vmatpush.bf16.msra.mxu0 %v9261_v10  ;;  %v11509_v48 = vld [vmem:[#allocation28 + $0x7b4] sm:$0xf0]  ;;  %v6916_v53 = vadd.f32 %v6915_v57, %v6902_v41  ;;  %v6943_v8 = vpop.f32.mrf.mxu3  ;;  %v6957_v26 = vpop.f32.mrf.mxu0 }
 0x7f2   : > { %v10758_v54 = vld [vmem:[#allocation28 + $0xe70] sm:$0xf0]  ;;  %7221 = vmatpush.bf16.msra.mxu3 %v8941_v11  ;;  %v10124_v43 = vld [vmem:[#allocation28 + $0x958] sm:$0xf]  ;;  %v9901_v17 = vor.u32 %v11509_v48, %v9900_v36 }
 0x7f3   : > { %v10761_v39 = vor.u32 %v11720_v42, %v10758_v54  ;;  %v11712_v12 = vld [vmem:[#allocation28 + $0xe14] sm:$0xf]  ;;  %7193 = vmatpush.bf16.msrb.mxu1 %v10473_v0  ;;  %v11565_v50 = vld [vmem:[#allocation28 + $0x974] sm:$0xf0]  ;;  %v6930_v24 = vadd.f32 %v6929_v31, %v6916_v53  ;;  %v6971_v27 = vpop.f32.mrf.mxu1 }
 0x7f4   : > { %v10726_v62 = vld [vmem:[#allocation28 + $0xe30] sm:$0xf0]  ;;  %v10412_v46 = vld [vmem:[#allocation28 + $0xb98] sm:$0xf]  ;;  %v10125_v42 = vor.u32 %v11565_v50, %v10124_v43 }
 0x7f5   : > { %7206 = vmatpush.bf16.msra.mxu2 %v10761_v39  ;;  %v10729_v32 = vor.u32 %v11712_v12, %v10726_v62  ;;  %7234 = vmatpush.bf16.msra.mxu0 %v9229_v13  ;;  %v11637_v49 = vld [vmem:[#allocation28 + $0xbb4] sm:$0xf0]  ;;  %v6931_v39 = vpop.f32.mrf.mxu2  ;;  %v6904_v62 = vadd.f32 %v6903_v51, %v6890_v40  ;;  %v6944_v15 = vadd.f32 %v6943_v8, %v6930_v24 }
 0x7f6   : > { %7270 = vmatpush.bf16.msrb.mxu3 %v10189_v20  ;;  %7194 = vmatmul.bf16.vlgmr.msrb.gmra.mxu1 %v13242_v44  ;;  %v9580_v54 = vld [vmem:[#allocation28 + $0x518] sm:$0xf]  ;;  %v10413_v56 = vor.u32 %v11637_v49, %v10412_v46 }
 0x7f7   : > { %7242 = vmatpush.bf16.msra.mxu1 %v9677_v14  ;;  %7222 = vmatmul.bf16.vlgmr.msra.gmra.mxu3 %v13216_v5  ;;  %v11429_v10 = vld [vmem:[#allocation28 + $0x534] sm:$0xf0]  ;;  %v6918_v28 = vadd.f32 %v6917_v52, %v6904_v62 }
 0x7f8   : > { %v9868_v55 = vld [vmem:[#allocation28 + $0x758] sm:$0xf]  ;;  %v9581_v34 = vor.u32 %v11429_v10, %v9580_v54 }
 0x7f9   : > { %7207 = vmatpush.bf16.msra.mxu2 %v10729_v32  ;;  %7235 = vmatpush.bf16.msra.mxu0 %v9197_v35  ;;  %v11501_v60 = vld [vmem:[#allocation28 + $0x774] sm:$0xf0]  ;;  %v6945_v50 = vpop.f32.mrf.mxu3 }
 0x7fa   : > { %7271 = vmatpush.bf16.msrb.mxu3 %v10157_v38  ;;  %v10092_v57 = vld [vmem:[#allocation28 + $0x918] sm:$0xf]  ;;  %v9869_v11 = vor.u32 %v11501_v60, %v9868_v55 }
 0x7fb   : > { %7243 = vmatpush.bf16.msra.mxu1 %v9645_v2  ;;  %v11557_v6 = vld [vmem:[#allocation28 + $0x934] sm:$0xf0]  ;;  %v6932_v2 = vadd.f32 %v6931_v39, %v6918_v28  ;;  %v6973_v8 = vpop.f32.mrf.mxu1 }
 0x7fc   : > { %7208 = vmatmul.bf16.vlgmr.msra.gmra.mxu2 %v13245_v61  ;;  %7236 = vmatmul.bf16.vlgmr.msra.gmra.mxu0 %v13220_v22  ;;  %v10380_v0 = vld [vmem:[#allocation28 + $0xb58] sm:$0xf]  ;;  %v10093_v7 = vor.u32 %v11557_v6, %v10092_v57  ;;  %v6959_v6 = vpop.f32.mrf.mxu0 }
 0x7fd   : > { %7256 = vmatpush.bf16.msrb.mxu2 %v9933_v37  ;;  %7284 = vmatpush.bf16.msrb.mxu0 %v10445_v45  ;;  %v11629_v3 = vld [vmem:[#allocation28 + $0xb74] sm:$0xf0]  ;;  %v6958_v37 = vadd.f32 %v6957_v26, %v6944_v15  ;;  %v6985_v52 = vpop.f32.mrf.mxu2  ;;  %v11321_v26 = vld [vmem:[#allocation28 + $0x1dc] sm:$0xf] }
 0x7fe   : > { %7272 = vmatpush.bf16.msrb.mxu3 %v10125_v42  ;;  %v9548_v12 = vld [vmem:[#allocation28 + $0x4d8] sm:$0xf]  ;;  %v10381_v18 = vor.u32 %v11629_v3, %v10380_v0 }
 0x7ff   : > { %7244 = vmatpush.bf16.msra.mxu1 %v9613_v58  ;;  %v11421_v13 = vld [vmem:[#allocation28 + $0x4f4] sm:$0xf0]  ;;  %v6972_v48 = vadd.f32 %v6971_v27, %v6958_v37  ;;  %v9166_v27 = vld [vmem:[#allocation28 + $0x1f8] sm:$0xf0] }
 0x800   : > { %v9836_v14 = vld [vmem:[#allocation28 + $0x718] sm:$0xf]  ;;  %v9549_v30 = vor.u32 %v11421_v13, %v9548_v12 }
 0x801   : > { %7257 = vmatpush.bf16.msrb.mxu2 %v9901_v17  ;;  %7285 = vmatpush.bf16.msrb.mxu0 %v10413_v56  ;;  %v11493_v20 = vld [vmem:[#allocation28 + $0x734] sm:$0xf0]  ;;  %v6946_v17 = vadd.f32 %v6945_v50, %v6932_v2  ;;  %v6986_v42 = vadd.f32 %v6985_v52, %v6972_v48  ;;  %v9422_v50 = vld [vmem:[#allocation28 + $0x3f8] sm:$0xf0] }
 0x802   : > { %v10060_v23 = vld [vmem:[#allocation28 + $0x8d8] sm:$0xf]  ;;  %7273 = vmatpush.bf16.msrb.mxu3 %v10093_v7  ;;  %v9837_v31 = vor.u32 %v11493_v20, %v9836_v14 }
 0x803   : > { %v11549_v25 = vld [vmem:[#allocation28 + $0x8f4] sm:$0xf0]  ;;  %7245 = vmatpush.bf16.msra.mxu1 %v9581_v34  ;;  %7441 = vst [vmem:[%s13301_s22 + $0x18] sm:$0xff] %v6986_v42  ;;  %v6960_v7 = vadd.f32 %v6959_v6, %v6946_v17 }
 0x804   : > { %v10348_v19 = vld [vmem:[#allocation28 + $0xb18] sm:$0xf]  ;;  %v10061_v32 = vor.u32 %v11549_v25, %v10060_v23 }
 0x805   : > { %v11621_v47 = vld [vmem:[#allocation28 + $0xb34] sm:$0xf0]  ;;  %7258 = vmatpush.bf16.msrb.mxu2 %v9869_v11  ;;  %7286 = vmatpush.bf16.msrb.mxu0 %v10381_v18  ;;  %v6974_v23 = vadd.f32 %v6973_v8, %v6960_v7  ;;  %v11369_v7 = vld [vmem:[#allocation28 + $0x35c] sm:$0xf] }
 0x806   : > { %v9516_v21 = vld [vmem:[#allocation28 + $0x498] sm:$0xf]  ;;  %v10349_v38 = vor.u32 %v11621_v47, %v10348_v19  ;;  %7274 = vmatpush.bf16.msrb.mxu3 %v10061_v32  ;;  %v6987_v47 = vpop.f32.mrf.mxu2 }
 0x807   : > { %v11413_v33 = vld [vmem:[#allocation28 + $0x4b4] sm:$0xf0]  ;;  %7246 = vmatpush.bf16.msra.mxu1 %v9549_v30  ;;  %v6988_v32 = vadd.f32 %v6987_v47, %v6974_v23  ;;  %v9326_v47 = vld [vmem:[#allocation28 + $0x338] sm:$0xf0] }
 0x808   : > { %v9804_v35 = vld [vmem:[#allocation28 + $0x6d8] sm:$0xf]  ;;  %v9517_v43 = vor.u32 %v11413_v33, %v9516_v21 }
 0x809   : > { %v11485_v1 = vld [vmem:[#allocation28 + $0x6f4] sm:$0xf0]  ;;  %7259 = vmatpush.bf16.msrb.mxu2 %v9837_v31  ;;  %7287 = vmatpush.bf16.msrb.mxu0 %v10349_v38  ;;  %v9169_v38 = vor.u32 %v11321_v26, %v9166_v27  ;;  %7449 = vst [vmem:[%s13301_s22 + $0x58] sm:$0xff] %v6988_v32  ;;  %v11289_v26 = vld [vmem:[#allocation28 + $0xdc] sm:$0xf] }
 0x80a   : > { %v10028_v63 = vld [vmem:[#allocation28 + $0x898] sm:$0xf]  ;;  %v9805_v51 = vor.u32 %v11485_v1, %v9804_v35  ;;  %v9038_v27 = vld [vmem:[#allocation28 + $0xf8] sm:$0xf0] }
 0x80b   : > { %v11541_v36 = vld [vmem:[#allocation28 + $0x8b4] sm:$0xf0]  ;;  %7247 = vmatpush.bf16.msra.mxu1 %v9517_v43  ;;  %v11385_v43 = vld [vmem:[#allocation28 + $0x3dc] sm:$0xf] }
 0x80c   : > { %v10316_v41 = vld [vmem:[#allocation28 + $0xad8] sm:$0xf]  ;;  %v10029_v46 = vor.u32 %v11541_v36, %v10028_v63  ;;  %v9425_v42 = vor.u32 %v11385_v43, %v9422_v50 }
 0x80d   : > { %v11613_v45 = vld [vmem:[#allocation28 + $0xaf4] sm:$0xf0]  ;;  %7260 = vmatpush.bf16.msrb.mxu2 %v9805_v51 }
 0x80e   : > { %v9484_v49 = vld [vmem:[#allocation28 + $0x458] sm:$0xf]  ;;  %v10317_v54 = vor.u32 %v11613_v45, %v10316_v41  ;;  %7275 = vmatpush.bf16.msrb.mxu3 %v10029_v46  ;;  %v11313_v41 = vld [vmem:[#allocation28 + $0x19c] sm:$0xf] }
 0x80f   : > { %v11405_v53 = vld [vmem:[#allocation28 + $0x474] sm:$0xf0]  ;;  %v9134_v45 = vld [vmem:[#allocation28 + $0x1b8] sm:$0xf0] }
 0x810   : > { %v9772_v58 = vld [vmem:[#allocation28 + $0x698] sm:$0xf]  ;;  %v9485_v60 = vor.u32 %v11405_v53, %v9484_v49  ;;  %7288 = vmatpush.bf16.msrb.mxu0 %v10317_v54  ;;  %v9137_v49 = vor.u32 %v11313_v41, %v9134_v45 }
 0x811   : > { %v11477_v10 = vld [vmem:[#allocation28 + $0x6b4] sm:$0xf0] }
 0x812   : > { %v9996_v55 = vld [vmem:[#allocation28 + $0x858] sm:$0xf]  ;;  %v9773_v0 = vor.u32 %v11477_v10, %v9772_v58  ;;  %7248 = vmatpush.bf16.msra.mxu1 %v9485_v60  ;;  %v11305_v10 = vld [vmem:[#allocation28 + $0x15c] sm:$0xf] }
 0x813   : > { %v11533_v40 = vld [vmem:[#allocation28 + $0x874] sm:$0xf0] }
 0x814   : > { %v10284_v24 = vld [vmem:[#allocation28 + $0xa98] sm:$0xf]  ;;  %v9997_v3 = vor.u32 %v11533_v40, %v9996_v55  ;;  %7261 = vmatpush.bf16.msrb.mxu2 %v9773_v0  ;;  %v9102_v55 = vld [vmem:[#allocation28 + $0x178] sm:$0xf0] }
 0x815   : > { %v11605_v56 = vld [vmem:[#allocation28 + $0xab4] sm:$0xf0]  ;;  %v11377_v40 = vld [vmem:[#allocation28 + $0x39c] sm:$0xf] }
 0x816   : > { %v9452_v57 = vld [vmem:[#allocation28 + $0x418] sm:$0xf]  ;;  %v10285_v12 = vor.u32 %v11605_v56, %v10284_v24  ;;  %7276 = vmatpush.bf16.msrb.mxu3 %v9997_v3  ;;  %v9390_v24 = vld [vmem:[#allocation28 + $0x3b8] sm:$0xf0] }
 0x817   : > { %v11397_v34 = vld [vmem:[#allocation28 + $0x434] sm:$0xf0]  ;;  %v9393_v3 = vor.u32 %v11377_v40, %v9390_v24 }
 0x818   : > { %v9740_v39 = vld [vmem:[#allocation28 + $0x658] sm:$0xf]  ;;  %v9453_v25 = vor.u32 %v11397_v34, %v9452_v57  ;;  %7289 = vmatpush.bf16.msrb.mxu0 %v10285_v12  ;;  %v9105_v57 = vor.u32 %v11305_v10, %v9102_v55  ;;  %v9358_v12 = vld [vmem:[#allocation28 + $0x378] sm:$0xf0] }
 0x819   : > { %v11469_v11 = vld [vmem:[#allocation28 + $0x674] sm:$0xf0]  ;;  %v9361_v23 = vor.u32 %v11369_v7, %v9358_v12  ;;  %v3970_v7 = vperm.slane %v13335_v9, 4 }
 0x81a   : > { %v9964_v13 = vld [vmem:[#allocation28 + $0x818] sm:$0xf]  ;;  %v9741_v19 = vor.u32 %v11469_v11, %v9740_v39  ;;  %7249 = vmatpush.bf16.msra.mxu1 %v9453_v25  ;;  %v11297_v39 = vld [vmem:[#allocation28 + $0x11c] sm:$0xf] }
 0x81b   : > { %v11525_v14 = vld [vmem:[#allocation28 + $0x834] sm:$0xf0]  ;;  %v9070_v11 = vld [vmem:[#allocation28 + $0x138] sm:$0xf0] }
 0x81c   : > { %v10252_v62 = vld [vmem:[#allocation28 + $0xa58] sm:$0xf]  ;;  %v9965_v28 = vor.u32 %v11525_v14, %v9964_v13  ;;  %7262 = vmatpush.bf16.msrb.mxu2 %v9741_v19  ;;  %v11361_v19 = vld [vmem:[#allocation28 + $0x31c] sm:$0xf] }
 0x81d   : > { %v11597_v15 = vld [vmem:[#allocation28 + $0xa74] sm:$0xf0]  ;;  %7250 = vmatmul.bf16.vlgmr.msra.gmra.mxu1 %v13224_v59 }
 0x81e   : > { %v10700_v18 = vld [vmem:[#allocation28 + $0xdd8] sm:$0xf]  ;;  %v10253_v21 = vor.u32 %v11597_v15, %v10252_v62  ;;  %7277 = vmatpush.bf16.msrb.mxu3 %v9965_v28  ;;  %v9073_v62 = vor.u32 %v11297_v39, %v9070_v11  ;;  %v11449_v39 = vld [vmem:[#allocation28 + $0x5dc] sm:$0xf] }
 0x81f   : > { %v11709_v20 = vld [vmem:[#allocation28 + $0xdf4] sm:$0xf0]  ;;  %v9678_v11 = vld [vmem:[#allocation28 + $0x5f8] sm:$0xf0] }
 0x820   : > { %v9708_v30 = vld [vmem:[#allocation28 + $0x618] sm:$0xf]  ;;  %v10701_v33 = vor.u32 %v11709_v20, %v10700_v18  ;;  %7290 = vmatpush.bf16.msrb.mxu0 %v10253_v21 }
 0x821   : > { %v11461_v31 = vld [vmem:[#allocation28 + $0x634] sm:$0xf0]  ;;  %7278 = vmatmul.bf16.vlgmr.msrb.gmra.mxu3 %v13232_v4 }
 0x822   : > { %v10220_v35 = vld [vmem:[#allocation28 + $0xa18] sm:$0xf]  ;;  %v9709_v48 = vor.u32 %v11461_v31, %v9708_v30  ;;  %7298 = vmatpush.bf16.msrb.mxu1 %v10701_v33  ;;  %7326 = vmatpush.bf16.msra.mxu3 %v9169_v38  ;;  %v9041_v31 = vor.u32 %v11289_v26, %v9038_v27  ;;  %v9006_v38 = vld [vmem:[#allocation28 + $0xb8] sm:$0xf0] }
 0x823   : > { %v11589_v2 = vld [vmem:[#allocation28 + $0xa34] sm:$0xf0]  ;;  %v11329_v26 = vld [vmem:[#allocation28 + $0x21c] sm:$0xf] }
 0x824   : > { %v10668_v37 = vld [vmem:[#allocation28 + $0xd98] sm:$0xf]  ;;  %v10221_v51 = vor.u32 %v11589_v2, %v10220_v35  ;;  %7263 = vmatpush.bf16.msrb.mxu2 %v9709_v48  ;;  %v9329_v35 = vor.u32 %v11361_v19, %v9326_v47  ;;  %v9198_v27 = vld [vmem:[#allocation28 + $0x238] sm:$0xf0] }
 0x825   : > { %v11701_v1 = vld [vmem:[#allocation28 + $0xdb4] sm:$0xf0]  ;;  %v11441_v47 = vld [vmem:[#allocation28 + $0x59c] sm:$0xf] }
 0x826   : > { %v10956_v63 = vld [vmem:[#allocation28 + $0xfd8] sm:$0xf]  ;;  %v10669_v52 = vor.u32 %v11701_v1, %v10668_v37  ;;  %7291 = vmatpush.bf16.msrb.mxu0 %v10221_v51  ;;  %7327 = vmatpush.bf16.msra.mxu3 %v9137_v49  ;;  %v11281_v37 = vld [vmem:[#allocation28 + $0x9c] sm:$0xf] }
 0x827   : > { %v11773_v36 = vld [vmem:[#allocation28 + $0xff4] sm:$0xf0]  ;;  %7264 = vmatmul.bf16.vlgmr.msrb.gmra.mxu2 %v13228_v16  ;;  %v11353_v1 = vld [vmem:[#allocation28 + $0x2dc] sm:$0xf]  ;;  %v9009_v45 = vor.u32 %v11281_v37, %v9006_v38 }
 0x828   : > { %v10957_v46 = vor.u32 %v11773_v36, %v10956_v63  ;;  %v10636_v53 = vld [vmem:[#allocation28 + $0xd58] sm:$0xf]  ;;  %7299 = vmatpush.bf16.msrb.mxu1 %v10669_v52  ;;  %v9294_v63 = vld [vmem:[#allocation28 + $0x2f8] sm:$0xf0] }
 0x829   : > { %v11693_v58 = vld [vmem:[#allocation28 + $0xd74] sm:$0xf0]  ;;  %7292 = vmatmul.bf16.vlgmr.msrb.gmra.mxu0 %v13235_v29  ;;  %v9297_v51 = vor.u32 %v11353_v1, %v9294_v63  ;;  %v8974_v49 = vld [vmem:[#allocation28 + $0x78] sm:$0xf0]  ;;  %v9201_v63 = vor.u32 %v11329_v26, %v9198_v27 }
 0x82a   : > { %v10924_v17 = vld [vmem:[#allocation28 + $0xf98] sm:$0xf]  ;;  %v10637_v56 = vor.u32 %v11693_v58, %v10636_v53  ;;  %7312 = vmatpush.bf16.msra.mxu2 %v10957_v46  ;;  %7340 = vmatpush.bf16.msra.mxu0 %v9425_v42  ;;  %v11273_v46 = vld [vmem:[#allocation28 + $0x5c] sm:$0xf]  ;;  %v6999_v53 = vpop.f32.mrf.mxu3 }
 0x82b   : > { %v11765_v54 = vld [vmem:[#allocation28 + $0xfb4] sm:$0xf0]  ;;  %7328 = vmatpush.bf16.msra.mxu3 %v9105_v57  ;;  %v11345_v58 = vld [vmem:[#allocation28 + $0x29c] sm:$0xf]  ;;  %v8977_v55 = vor.u32 %v11273_v46, %v8974_v49 }
 0x82c   : > { %v10925_v60 = vor.u32 %v11765_v54, %v10924_v17  ;;  %v10604_v6 = vld [vmem:[#allocation28 + $0xd18] sm:$0xf]  ;;  %7300 = vmatpush.bf16.msrb.mxu1 %v10637_v56  ;;  %v9262_v17 = vld [vmem:[#allocation28 + $0x2b8] sm:$0xf0] }
 0x82d   : > { %v11685_v8 = vld [vmem:[#allocation28 + $0xd34] sm:$0xf0]  ;;  %v11265_v57 = vld [vmem:[#allocation28 + $0x1c] sm:$0xf] }
 0x82e   : > { %v10892_v0 = vld [vmem:[#allocation28 + $0xf58] sm:$0xf]  ;;  %v10605_v13 = vor.u32 %v11685_v8, %v10604_v6  ;;  %7313 = vmatpush.bf16.msra.mxu2 %v10925_v60  ;;  %7341 = vmatpush.bf16.msra.mxu0 %v9393_v3  ;;  %v9265_v60 = vor.u32 %v11345_v58, %v9262_v17  ;;  %v8942_v6 = vld [vmem:[#allocation28 + $0x38] sm:$0xf0]  ;;  %v7027_v3 = vpop.f32.mrf.mxu1 }
 0x82f   : > { %v11757_v34 = vld [vmem:[#allocation28 + $0xf74] sm:$0xf0]  ;;  %7329 = vmatpush.bf16.msra.mxu3 %v9073_v62  ;;  %v11337_v8 = vld [vmem:[#allocation28 + $0x25c] sm:$0xf] }
 0x830   : > { %v10893_v14 = vor.u32 %v11757_v34, %v10892_v0  ;;  %v10572_v15 = vld [vmem:[#allocation28 + $0xcd8] sm:$0xf]  ;;  %7301 = vmatpush.bf16.msrb.mxu1 %v10605_v13  ;;  %v7013_v0 = vpop.f32.mrf.mxu0  ;;  %v9230_v34 = vld [vmem:[#allocation28 + $0x278] sm:$0xf0] }
 0x831   : > { %v11677_v18 = vld [vmem:[#allocation28 + $0xcf4] sm:$0xf0]  ;;  %v11577_v13 = vld [vmem:[#allocation28 + $0x9dc] sm:$0xf] }
 0x832   : > { %v10860_v20 = vld [vmem:[#allocation28 + $0xf18] sm:$0xf]  ;;  %v10573_v28 = vor.u32 %v11677_v18, %v10572_v15  ;;  %7314 = vmatpush.bf16.msra.mxu2 %v10893_v14  ;;  %7342 = vmatpush.bf16.msra.mxu0 %v9361_v23  ;;  %v10190_v14 = vld [vmem:[#allocation28 + $0x9f8] sm:$0xf0]  ;;  %v8945_v15 = vor.u32 %v11265_v57, %v8942_v6  ;;  %v9681_v23 = vor.u32 %v11449_v39, %v9678_v11 }
 0x833   : > { %v11749_v25 = vld [vmem:[#allocation28 + $0xf34] sm:$0xf0]  ;;  %7330 = vmatpush.bf16.msra.mxu3 %v9041_v31  ;;  %v10193_v19 = vor.u32 %v11577_v13, %v10190_v14  ;;  %v7000_v31 = vadd.f32 %v6999_v53, %v3970_v7  ;;  %v11641_v38 = vld [vmem:[#allocation28 + $0xbdc] sm:$0xf] }
 0x834   : > { %v10861_v30 = vor.u32 %v11749_v25, %v10860_v20  ;;  %v10540_v32 = vld [vmem:[#allocation28 + $0xc98] sm:$0xf]  ;;  %7302 = vmatpush.bf16.msrb.mxu1 %v10573_v28  ;;  %v9233_v20 = vor.u32 %v11337_v8, %v9230_v34  ;;  %v9646_v28 = vld [vmem:[#allocation28 + $0x5b8] sm:$0xf0] }
 0x835   : > { %v11669_v21 = vld [vmem:[#allocation28 + $0xcb4] sm:$0xf0]  ;;  %v10446_v1 = vld [vmem:[#allocation28 + $0xbf8] sm:$0xf0] }
 0x836   : > { %v10828_v33 = vld [vmem:[#allocation28 + $0xed8] sm:$0xf]  ;;  %v10541_v36 = vor.u32 %v11669_v21, %v10540_v32  ;;  %7315 = vmatpush.bf16.msra.mxu2 %v10861_v30  ;;  %7343 = vmatpush.bf16.msra.mxu0 %v9329_v35  ;;  %v11513_v30 = vld [vmem:[#allocation28 + $0x7dc] sm:$0xf]  ;;  %v7001_v35 = vpop.f32.mrf.mxu3  ;;  %v7029_v17 = vpop.f32.mrf.mxu1 }
 0x837   : > { %v11741_v2 = vld [vmem:[#allocation28 + $0xef4] sm:$0xf0]  ;;  %7331 = vmatpush.bf16.msra.mxu3 %v9009_v45  ;;  %v9934_v32 = vld [vmem:[#allocation28 + $0x7f8] sm:$0xf0]  ;;  %v7002_v57 = vadd.f32 %v7001_v35, %v3970_v7 }
 0x838   : > { %v10829_v41 = vor.u32 %v11741_v2, %v10828_v33  ;;  %v10508_v48 = vld [vmem:[#allocation28 + $0xc58] sm:$0xf]  ;;  %7303 = vmatpush.bf16.msrb.mxu1 %v10541_v36  ;;  %v11569_v21 = vld [vmem:[#allocation28 + $0x99c] sm:$0xf]  ;;  %v7041_v2 = vpop.f32.mrf.mxu2  ;;  %v9649_v36 = vor.u32 %v11441_v47, %v9646_v28  ;;  %v7015_v58 = vpop.f32.mrf.mxu0 }
 0x839   : > { %v11661_v43 = vld [vmem:[#allocation28 + $0xc74] sm:$0xf0]  ;;  %v10158_v33 = vld [vmem:[#allocation28 + $0x9b8] sm:$0xf0] }
 0x83a   : > { %v10796_v50 = vld [vmem:[#allocation28 + $0xe98] sm:$0xf]  ;;  %v10509_v42 = vor.u32 %v11661_v43, %v10508_v48  ;;  %7316 = vmatpush.bf16.msra.mxu2 %v10829_v41  ;;  %7344 = vmatpush.bf16.msra.mxu0 %v9297_v51  ;;  %v9937_v41 = vor.u32 %v11513_v30, %v9934_v32  ;;  %v10161_v45 = vor.u32 %v11569_v21, %v10158_v33  ;;  %v11433_v48 = vld [vmem:[#allocation28 + $0x55c] sm:$0xf] }
 0x83b   : > { %v11733_v52 = vld [vmem:[#allocation28 + $0xeb4] sm:$0xf0]  ;;  %7332 = vmatpush.bf16.msra.mxu3 %v8977_v55  ;;  %v9614_v43 = vld [vmem:[#allocation28 + $0x578] sm:$0xf0]  ;;  %v7014_v51 = vadd.f32 %v7013_v0, %v7000_v31 }
 0x83c   : > { %v10476_v54 = vld [vmem:[#allocation28 + $0xc18] sm:$0xf]  ;;  %v10797_v10 = vor.u32 %v11733_v52, %v10796_v50  ;;  %7304 = vmatpush.bf16.msrb.mxu1 %v10509_v42  ;;  %v11505_v50 = vld [vmem:[#allocation28 + $0x79c] sm:$0xf]  ;;  %v10449_v52 = vor.u32 %v11641_v38, %v10446_v1  ;;  %v9617_v55 = vor.u32 %v11433_v48, %v9614_v43 }
 0x83d   : > { %v11653_v40 = vld [vmem:[#allocation28 + $0xc34] sm:$0xf0]  ;;  %v9902_v46 = vld [vmem:[#allocation28 + $0x7b8] sm:$0xf0] }
 0x83e   : > { %v10764_v24 = vld [vmem:[#allocation28 + $0xe58] sm:$0xf]  ;;  %v10477_v12 = vor.u32 %v11653_v40, %v10476_v54  ;;  %7317 = vmatpush.bf16.msra.mxu2 %v10797_v10  ;;  %7345 = vmatpush.bf16.msra.mxu0 %v9265_v60  ;;  %v11561_v49 = vld [vmem:[#allocation28 + $0x95c] sm:$0xf]  ;;  %v7028_v10 = vadd.f32 %v7027_v3, %v7014_v51  ;;  %v9905_v40 = vor.u32 %v11505_v50, %v9902_v46  ;;  %v7055_v39 = vpop.f32.mrf.mxu3  ;;  %v7083_v47 = vpop.f32.mrf.mxu1 }
 0x83f   : > { %v11725_v56 = vld [vmem:[#allocation28 + $0xe74] sm:$0xf0]  ;;  %7333 = vmatpush.bf16.msra.mxu3 %v8945_v15  ;;  %v10126_v53 = vld [vmem:[#allocation28 + $0x978] sm:$0xf0] }
 0x840   : > { %v10765_v62 = vor.u32 %v11725_v56, %v10764_v24  ;;  %v10732_v18 = vld [vmem:[#allocation28 + $0xe18] sm:$0xf]  ;;  %7305 = vmatpush.bf16.msrb.mxu1 %v10477_v12  ;;  %v11633_v42 = vld [vmem:[#allocation28 + $0xb9c] sm:$0xf]  ;;  %v10129_v24 = vor.u32 %v11561_v49, %v10126_v53  ;;  %v7042_v6 = vadd.f32 %v7041_v2, %v7028_v10  ;;  %v7043_v14 = vpop.f32.mrf.mxu2 }
 0x841   : > { %v11717_v25 = vld [vmem:[#allocation28 + $0xe34] sm:$0xf0]  ;;  %v10414_v54 = vld [vmem:[#allocation28 + $0xbb8] sm:$0xf0] }
 0x842   : > { %7318 = vmatpush.bf16.msra.mxu2 %v10765_v62  ;;  %v10733_v37 = vor.u32 %v11717_v25, %v10732_v18  ;;  %7346 = vmatpush.bf16.msra.mxu0 %v9233_v20  ;;  %v11425_v56 = vld [vmem:[#allocation28 + $0x51c] sm:$0xf]  ;;  %v10417_v8 = vor.u32 %v11633_v42, %v10414_v54  ;;  %v7016_v20 = vadd.f32 %v7015_v58, %v7002_v57 }
 0x843   : > { %7382 = vmatpush.bf16.msrb.mxu3 %v10193_v19  ;;  %7306 = vmatmul.bf16.vlgmr.msrb.gmra.mxu1 %v13242_v44  ;;  %v9582_v60 = vld [vmem:[#allocation28 + $0x538] sm:$0xf0] }
 0x844   : > { %7354 = vmatpush.bf16.msra.mxu1 %v9681_v23  ;;  %7334 = vmatmul.bf16.vlgmr.msra.gmra.mxu3 %v13216_v5  ;;  %v11497_v5 = vld [vmem:[#allocation28 + $0x75c] sm:$0xf]  ;;  %v9585_v13 = vor.u32 %v11425_v56, %v9582_v60  ;;  %v7056_v23 = vadd.f32 %v7055_v39, %v7042_v6  ;;  %v7030_v31 = vadd.f32 %v7029_v17, %v7016_v20 }
 0x845   : > { %v9870_v0 = vld [vmem:[#allocation28 + $0x778] sm:$0xf0] }
 0x846   : > { %7319 = vmatpush.bf16.msra.mxu2 %v10733_v37  ;;  %7347 = vmatpush.bf16.msra.mxu0 %v9201_v63  ;;  %v11553_v3 = vld [vmem:[#allocation28 + $0x91c] sm:$0xf]  ;;  %v9873_v9 = vor.u32 %v11497_v5, %v9870_v0  ;;  %v7044_v38 = vadd.f32 %v7043_v14, %v7030_v31  ;;  %v7085_v0 = vpop.f32.mrf.mxu1 }
 0x847   : > { %7383 = vmatpush.bf16.msrb.mxu3 %v10161_v45  ;;  %v10094_v34 = vld [vmem:[#allocation28 + $0x938] sm:$0xf0] }
 0x848   : > { %7355 = vmatpush.bf16.msra.mxu1 %v9649_v36  ;;  %v11625_v11 = vld [vmem:[#allocation28 + $0xb5c] sm:$0xf]  ;;  %v10097_v7 = vor.u32 %v11553_v3, %v10094_v34  ;;  %v7097_v49 = vpop.f32.mrf.mxu2 }
 0x849   : > { %7320 = vmatmul.bf16.vlgmr.msra.gmra.mxu2 %v13245_v61  ;;  %7348 = vmatmul.bf16.vlgmr.msra.gmra.mxu0 %v13220_v22  ;;  %v10382_v12 = vld [vmem:[#allocation28 + $0xb78] sm:$0xf0]  ;;  %v7069_v22 = vpop.f32.mrf.mxu0 }
 0x84a   : > { %7368 = vmatpush.bf16.msrb.mxu2 %v9937_v41  ;;  %7396 = vmatpush.bf16.msrb.mxu0 %v10449_v52  ;;  %v11417_v62 = vld [vmem:[#allocation28 + $0x4dc] sm:$0xf]  ;;  %v10385_v25 = vor.u32 %v11625_v11, %v10382_v12  ;;  %v7070_v1 = vadd.f32 %v7069_v22, %v7056_v23  ;;  %v7057_v52 = vpop.f32.mrf.mxu3 }
 0x84b   : > { %7384 = vmatpush.bf16.msrb.mxu3 %v10129_v24  ;;  %v9550_v15 = vld [vmem:[#allocation28 + $0x4f8] sm:$0xf0]  ;;  %v7058_v54 = vadd.f32 %v7057_v52, %v7044_v38 }
 0x84c   : > { %7356 = vmatpush.bf16.msra.mxu1 %v9617_v55  ;;  %v11489_v18 = vld [vmem:[#allocation28 + $0x71c] sm:$0xf]  ;;  %v9553_v32 = vor.u32 %v11417_v62, %v9550_v15  ;;  %v7084_v50 = vadd.f32 %v7083_v47, %v7070_v1 }
 0x84d   : > { %v9838_v26 = vld [vmem:[#allocation28 + $0x738] sm:$0xf0] }
 0x84e   : > { %7369 = vmatpush.bf16.msrb.mxu2 %v9905_v40  ;;  %7397 = vmatpush.bf16.msrb.mxu0 %v10417_v8  ;;  %v11545_v27 = vld [vmem:[#allocation28 + $0x8dc] sm:$0xf]  ;;  %v9841_v21 = vor.u32 %v11489_v18, %v9838_v26  ;;  %v7098_v10 = vadd.f32 %v7097_v49, %v7084_v50 }
 0x84f   : > { %v10062_v19 = vld [vmem:[#allocation28 + $0x8f8] sm:$0xf0]  ;;  %7385 = vmatpush.bf16.msrb.mxu3 %v10097_v7 }
 0x850   : > { %v11617_v28 = vld [vmem:[#allocation28 + $0xb1c] sm:$0xf]  ;;  %7357 = vmatpush.bf16.msra.mxu1 %v9585_v13  ;;  %v10065_v33 = vor.u32 %v11545_v27, %v10062_v19  ;;  %7442 = vst [vmem:[%s13301_s22 + $0x20] sm:$0xff] %v7098_v10  ;;  %v7099_v27 = vpop.f32.mrf.mxu2 }
 0x851   : > { %v10350_v30 = vld [vmem:[#allocation28 + $0xb38] sm:$0xf0]  ;;  %v7071_v8 = vpop.f32.mrf.mxu0 }
 0x852   : > { %7370 = vmatpush.bf16.msrb.mxu2 %v9873_v9  ;;  %v11409_v35 = vld [vmem:[#allocation28 + $0x49c] sm:$0xf]  ;;  %7398 = vmatpush.bf16.msrb.mxu0 %v10385_v25  ;;  %v10353_v63 = vor.u32 %v11617_v28, %v10350_v30  ;;  %v7072_v13 = vadd.f32 %v7071_v8, %v7058_v54 }
 0x853   : > { %v9518_v2 = vld [vmem:[#allocation28 + $0x4b8] sm:$0xf0]  ;;  %7386 = vmatpush.bf16.msrb.mxu3 %v10065_v33 }
 0x854   : > { %v11481_v37 = vld [vmem:[#allocation28 + $0x6dc] sm:$0xf]  ;;  %7358 = vmatpush.bf16.msra.mxu1 %v9553_v32  ;;  %v9521_v51 = vor.u32 %v11409_v35, %v9518_v2  ;;  %v7086_v23 = vadd.f32 %v7085_v0, %v7072_v13  ;;  %v7111_v0 = vpop.f32.mrf.mxu3 }
 0x855   : > { %v9806_v36 = vld [vmem:[#allocation28 + $0x6f8] sm:$0xf0] }
 0x856   : > { %v11537_v41 = vld [vmem:[#allocation28 + $0x89c] sm:$0xf]  ;;  %7371 = vmatpush.bf16.msrb.mxu2 %v9841_v21  ;;  %v9809_v46 = vor.u32 %v11481_v37, %v9806_v36  ;;  %7399 = vmatpush.bf16.msrb.mxu0 %v10353_v63  ;;  %v7100_v22 = vadd.f32 %v7099_v27, %v7086_v23 }
 0x857   : > { %v10030_v45 = vld [vmem:[#allocation28 + $0x8b8] sm:$0xf0] }
 0x858   : > { %v11609_v48 = vld [vmem:[#allocation28 + $0xadc] sm:$0xf]  ;;  %v10033_v53 = vor.u32 %v11537_v41, %v10030_v45  ;;  %7359 = vmatpush.bf16.msra.mxu1 %v9521_v51  ;;  %7450 = vst [vmem:[%s13301_s22 + $0x60] sm:$0xff] %v7100_v22 }
 0x859   : > { %v10318_v43 = vld [vmem:[#allocation28 + $0xaf8] sm:$0xf0] }
 0x85a   : > { %v11401_v58 = vld [vmem:[#allocation28 + $0x45c] sm:$0xf]  ;;  %v10321_v55 = vor.u32 %v11609_v48, %v10318_v43  ;;  %7372 = vmatpush.bf16.msrb.mxu2 %v9809_v46  ;;  %7387 = vmatpush.bf16.msrb.mxu3 %v10033_v53 }
 0x85b   : > { %v9486_v17 = vld [vmem:[#allocation28 + $0x478] sm:$0xf0] }
 0x85c   : > { %v11473_v42 = vld [vmem:[#allocation28 + $0x69c] sm:$0xf]  ;;  %v9489_v57 = vor.u32 %v11401_v58, %v9486_v17  ;;  %7400 = vmatpush.bf16.msrb.mxu0 %v10321_v55 }
 0x85d   : > { %v9774_v40 = vld [vmem:[#allocation28 + $0x6b8] sm:$0xf0]  ;;  %v7153_v27 = vpop.f32.mrf.mxu2 }
 0x85e   : > { %v11529_v24 = vld [vmem:[#allocation28 + $0x85c] sm:$0xf]  ;;  %v9777_v3 = vor.u32 %v11473_v42, %v9774_v40  ;;  %7360 = vmatpush.bf16.msra.mxu1 %v9489_v57 }
 0x85f   : > { %v9998_v56 = vld [vmem:[#allocation28 + $0x878] sm:$0xf0] }
 0x860   : > { %v11601_v60 = vld [vmem:[#allocation28 + $0xa9c] sm:$0xf]  ;;  %v10001_v34 = vor.u32 %v11529_v24, %v9998_v56  ;;  %7373 = vmatpush.bf16.msrb.mxu2 %v9777_v3 }
 0x861   : > { %v10286_v5 = vld [vmem:[#allocation28 + $0xab8] sm:$0xf0] }
 0x862   : > { %v11393_v6 = vld [vmem:[#allocation28 + $0x41c] sm:$0xf]  ;;  %v10289_v14 = vor.u32 %v11601_v60, %v10286_v5  ;;  %7388 = vmatpush.bf16.msrb.mxu3 %v10001_v34 }
 0x863   : > { %v9454_v39 = vld [vmem:[#allocation28 + $0x438] sm:$0xf0] }
 0x864   : > { %v11465_v11 = vld [vmem:[#allocation28 + $0x65c] sm:$0xf]  ;;  %v9457_v25 = vor.u32 %v11393_v6, %v9454_v39  ;;  %7401 = vmatpush.bf16.msrb.mxu0 %v10289_v14  ;;  %v7125_v14 = vpop.f32.mrf.mxu0 }
 0x865   : > { %v9742_v12 = vld [vmem:[#allocation28 + $0x678] sm:$0xf0] }
 0x866   : > { %v11521_v9 = vld [vmem:[#allocation28 + $0x81c] sm:$0xf]  ;;  %v9745_v26 = vor.u32 %v11465_v11, %v9742_v12  ;;  %7361 = vmatpush.bf16.msra.mxu1 %v9457_v25 }
 0x867   : > { %v9966_v7 = vld [vmem:[#allocation28 + $0x838] sm:$0xf0] }
 0x868   : > { %v11593_v62 = vld [vmem:[#allocation28 + $0xa5c] sm:$0xf]  ;;  %v9969_v19 = vor.u32 %v11521_v9, %v9966_v7  ;;  %7374 = vmatpush.bf16.msrb.mxu2 %v9745_v26  ;;  %v7139_v9 = vpop.f32.mrf.mxu1  ;;  %v13367_v7 = vld [vmem:[#allocation29] sm:$0xff]  ;;  %v7113_v26 = vpop.f32.mrf.mxu3 }
 0x869   : > { %v10254_v15 = vld [vmem:[#allocation28 + $0xa78] sm:$0xf0]  ;;  %7362 = vmatmul.bf16.vlgmr.msra.gmra.mxu1 %v13224_v59 }
 0x86a   : > { %v11705_v18 = vld [vmem:[#allocation28 + $0xddc] sm:$0xf]  ;;  %v10257_v47 = vor.u32 %v11593_v62, %v10254_v15  ;;  %7389 = vmatpush.bf16.msrb.mxu3 %v9969_v19  ;;  %v3971_v62 = vperm.slane %v13367_v7, 5 }
 0x86b   : > { %v10702_v20 = vld [vmem:[#allocation28 + $0xdf8] sm:$0xf0] }
 0x86c   : > { %v10705_v28 = vor.u32 %v11705_v18, %v10702_v20  ;;  %v11457_v30 = vld [vmem:[#allocation28 + $0x61c] sm:$0xf]  ;;  %7402 = vmatpush.bf16.msrb.mxu0 %v10257_v47  ;;  %v7112_v25 = vadd.f32 %v7111_v0, %v3971_v62  ;;  %v7127_v47 = vpop.f32.mrf.mxu0 }
 0x86d   : > { %v9710_v31 = vld [vmem:[#allocation28 + $0x638] sm:$0xf0]  ;;  %7390 = vmatmul.bf16.vlgmr.msrb.gmra.mxu3 %v13232_v4 }
 0x86e   : > { %v11585_v32 = vld [vmem:[#allocation28 + $0xa1c] sm:$0xf]  ;;  %v9713_v38 = vor.u32 %v11457_v30, %v9710_v31  ;;  %7410 = vmatpush.bf16.msrb.mxu1 %v10705_v28  ;;  %v7126_v22 = vadd.f32 %v7125_v14, %v7112_v25  ;;  %v7114_v31 = vadd.f32 %v7113_v26, %v3971_v62 }
 0x86f   : > { %v10222_v21 = vld [vmem:[#allocation28 + $0xa38] sm:$0xf0] }
 0x870   : > { %v11697_v33 = vld [vmem:[#allocation28 + $0xd9c] sm:$0xf]  ;;  %v10225_v1 = vor.u32 %v11585_v32, %v10222_v21  ;;  %7375 = vmatpush.bf16.msrb.mxu2 %v9713_v38  ;;  %v7141_v28 = vpop.f32.mrf.mxu1  ;;  %v7140_v30 = vadd.f32 %v7139_v9, %v7126_v22  ;;  %v7167_v21 = vpop.f32.mrf.mxu3 }
 0x871   : > { %v10670_v35 = vld [vmem:[#allocation28 + $0xdb8] sm:$0xf0] }
 0x872   : > { %v11769_v2 = vld [vmem:[#allocation28 + $0xfdc] sm:$0xf]  ;;  %v10673_v63 = vor.u32 %v11697_v33, %v10670_v35  ;;  %7403 = vmatpush.bf16.msrb.mxu0 %v10225_v1  ;;  %v7154_v32 = vadd.f32 %v7153_v27, %v7140_v30  ;;  %v7155_v33 = vpop.f32.mrf.mxu2  ;;  %v7128_v35 = vadd.f32 %v7127_v47, %v7114_v31 }
 0x873   : > { %v10958_v37 = vld [vmem:[#allocation28 + $0xff8] sm:$0xf0]  ;;  %7376 = vmatmul.bf16.vlgmr.msrb.gmra.mxu2 %v13228_v16 }
 0x874   : > { %v10961_v36 = vor.u32 %v11769_v2, %v10958_v37  ;;  %v11689_v41 = vld [vmem:[#allocation28 + $0xd5c] sm:$0xf]  ;;  %7411 = vmatpush.bf16.msrb.mxu1 %v10673_v63  ;;  %v7168_v2 = vadd.f32 %v7167_v21, %v7154_v32  ;;  %v7181_v37 = vpop.f32.mrf.mxu0  ;;  %v7142_v1 = vadd.f32 %v7141_v28, %v7128_v35 }
 0x875   : > { %v10638_v45 = vld [vmem:[#allocation28 + $0xd78] sm:$0xf0]  ;;  %7404 = vmatmul.bf16.vlgmr.msrb.gmra.mxu0 %v13235_v29 }
 0x876   : > { %v11761_v48 = vld [vmem:[#allocation28 + $0xf9c] sm:$0xf]  ;;  %v10641_v50 = vor.u32 %v11689_v41, %v10638_v45  ;;  %7424 = vmatpush.bf16.msra.mxu2 %v10961_v36  ;;  %v7156_v63 = vadd.f32 %v7155_v33, %v7142_v1 }
 0x877   : > { %v10926_v43 = vld [vmem:[#allocation28 + $0xfb8] sm:$0xf0] }
 0x878   : > { %v10929_v51 = vor.u32 %v11761_v48, %v10926_v43  ;;  %v11681_v52 = vld [vmem:[#allocation28 + $0xd1c] sm:$0xf]  ;;  %7412 = vmatpush.bf16.msrb.mxu1 %v10641_v50  ;;  %v7195_v38 = vpop.f32.mrf.mxu1  ;;  %v7169_v41 = vpop.f32.mrf.mxu3 }
 0x879   : > { %v10606_v46 = vld [vmem:[#allocation28 + $0xd38] sm:$0xf0]  ;;  %v7170_v48 = vadd.f32 %v7169_v41, %v7156_v63 }
 0x87a   : > { %v11753_v49 = vld [vmem:[#allocation28 + $0xf5c] sm:$0xf]  ;;  %v10609_v59 = vor.u32 %v11681_v52, %v10606_v46  ;;  %7425 = vmatpush.bf16.msra.mxu2 %v10929_v51 }
 0x87b   : > { %v10894_v53 = vld [vmem:[#allocation28 + $0xf78] sm:$0xf0] }
 0x87c   : > { %v10897_v4 = vor.u32 %v11753_v49, %v10894_v53  ;;  %v11673_v58 = vld [vmem:[#allocation28 + $0xcdc] sm:$0xf]  ;;  %7413 = vmatpush.bf16.msrb.mxu1 %v10609_v59  ;;  %v7183_v50 = vpop.f32.mrf.mxu0 }
 0x87d   : > { %v10574_v17 = vld [vmem:[#allocation28 + $0xcf8] sm:$0xf0]  ;;  %v7184_v52 = vadd.f32 %v7183_v50, %v7170_v48 }
 0x87e   : > { %v11745_v42 = vld [vmem:[#allocation28 + $0xf1c] sm:$0xf]  ;;  %v10577_v10 = vor.u32 %v11673_v58, %v10574_v17  ;;  %7426 = vmatpush.bf16.msra.mxu2 %v10897_v4  ;;  %v3972_v58 = vperm.slane %v13367_v7, 6 }
 0x87f   : > { %v10862_v54 = vld [vmem:[#allocation28 + $0xf38] sm:$0xf0]  ;;  %v7209_v45 = vpop.f32.mrf.mxu2 }
 0x880   : > { %v10865_v55 = vor.u32 %v11745_v42, %v10862_v54  ;;  %v11665_v40 = vld [vmem:[#allocation28 + $0xc9c] sm:$0xf]  ;;  %7414 = vmatpush.bf16.msrb.mxu1 %v10577_v10  ;;  %v7197_v51 = vpop.f32.mrf.mxu1  ;;  %v7223_v53 = vpop.f32.mrf.mxu3 }
 0x881   : > { %v10542_v24 = vld [vmem:[#allocation28 + $0xcb8] sm:$0xf0]  ;;  %v7224_v17 = vadd.f32 %v7223_v53, %v3972_v58 }
 0x882   : > { %v11737_v56 = vld [vmem:[#allocation28 + $0xedc] sm:$0xf]  ;;  %v10545_v60 = vor.u32 %v11665_v40, %v10542_v24  ;;  %7427 = vmatpush.bf16.msra.mxu2 %v10865_v55 }
 0x883   : > { %v10830_v16 = vld [vmem:[#allocation28 + $0xef8] sm:$0xf0] }
 0x884   : > { %v10833_v29 = vor.u32 %v11737_v56, %v10830_v16  ;;  %v11657_v5 = vld [vmem:[#allocation28 + $0xc5c] sm:$0xf]  ;;  %7415 = vmatpush.bf16.msrb.mxu1 %v10545_v60  ;;  %v7237_v59 = vpop.f32.mrf.mxu0 }
 0x885   : > { %v10510_v57 = vld [vmem:[#allocation28 + $0xc78] sm:$0xf0]  ;;  %v7238_v10 = vadd.f32 %v7237_v59, %v7224_v17 }
 0x886   : > { %v11729_v6 = vld [vmem:[#allocation28 + $0xe9c] sm:$0xf]  ;;  %v10513_v3 = vor.u32 %v11657_v5, %v10510_v57  ;;  %7428 = vmatpush.bf16.msra.mxu2 %v10833_v29 }
 0x887   : > { %v10798_v8 = vld [vmem:[#allocation28 + $0xeb8] sm:$0xf0]  ;;  %v7211_v46 = vpop.f32.mrf.mxu2 }
 0x888   : > { %v10801_v34 = vor.u32 %v11729_v6, %v10798_v8  ;;  %v11649_v39 = vld [vmem:[#allocation28 + $0xc1c] sm:$0xf]  ;;  %7416 = vmatpush.bf16.msrb.mxu1 %v10513_v3  ;;  %v7225_v42 = vpop.f32.mrf.mxu3 }
 0x889   : > { %v10478_v11 = vld [vmem:[#allocation28 + $0xc38] sm:$0xf0]  ;;  %v7226_v56 = vadd.f32 %v7225_v42, %v3972_v58 }
 0x88a   : > { %v11721_v12 = vld [vmem:[#allocation28 + $0xe5c] sm:$0xf]  ;;  %v10481_v15 = vor.u32 %v11649_v39, %v10478_v11  ;;  %7429 = vmatpush.bf16.msra.mxu2 %v10801_v34 }
 0x88b   : > { %v10766_v13 = vld [vmem:[#allocation28 + $0xe78] sm:$0xf0] }
 0x88c   : > { %v10769_v18 = vor.u32 %v11721_v12, %v10766_v13  ;;  %v11713_v20 = vld [vmem:[#allocation28 + $0xe1c] sm:$0xf]  ;;  %7417 = vmatpush.bf16.msrb.mxu1 %v10481_v15  ;;  %v7239_v55 = vpop.f32.mrf.mxu0 }
 0x88d   : > { %v10734_v23 = vld [vmem:[#allocation28 + $0xe38] sm:$0xf0]  ;;  %v7240_v5 = vadd.f32 %v7239_v55, %v7226_v56 }
 0x88e   : > { %7430 = vmatpush.bf16.msra.mxu2 %v10769_v18  ;;  %v10737_v19 = vor.u32 %v11713_v20, %v10734_v23 }
 0x88f   : > { %7418 = vmatmul.bf16.vlgmr.msrb.gmra.mxu1 %v13242_v44  ;;  %v7182_v44 = vadd.f32 %v7181_v37, %v7168_v2 }
 0x891   : > { %v7196_v36 = vadd.f32 %v7195_v38, %v7182_v44 }
 0x892   : > { %7431 = vmatpush.bf16.msra.mxu2 %v10737_v19  ;;  %v3973_v19 = vperm.slane %v13367_v7, 7 }
 0x893   : > { %v7210_v43 = vadd.f32 %v7209_v45, %v7196_v36 }
 0x895   : > { %7432 = vmatmul.bf16.vlgmr.msra.gmra.mxu2 %v13245_v61  ;;  %7443 = vst [vmem:[%s13301_s22 + $0x28] sm:$0xff] %v7210_v43  ;;  %v7198_v61 = vadd.f32 %v7197_v51, %v7184_v52 }
 0x897   : > { %v7212_v49 = vadd.f32 %v7211_v46, %v7198_v61 }
 0x899   : > { %7451 = vst [vmem:[%s13301_s22 + $0x68] sm:$0xff] %v7212_v49 }
 0x89a   : > { %v7251_v4 = vpop.f32.mrf.mxu1 }
 0x89b   : > { %v7252_v24 = vadd.f32 %v7251_v4, %v7238_v10 }
 0x8a2   : > { %v7253_v40 = vpop.f32.mrf.mxu1 }
 0x8a3   : > { %v7254_v0 = vadd.f32 %v7253_v40, %v7240_v5 }
 0x8a4   : > { %v7279_v60 = vpop.f32.mrf.mxu3 }
 0x8a6   : > { %v7293_v6 = vpop.f32.mrf.mxu0 }
 0x8aa   : > { %v7265_v54 = vpop.f32.mrf.mxu2 }
 0x8ab   : > { %v7266_v16 = vadd.f32 %v7265_v54, %v7252_v24 }
 0x8ac   : > { %v7281_v11 = vpop.f32.mrf.mxu3 }
 0x8ad   : > { %v7280_v57 = vadd.f32 %v7279_v60, %v7266_v16 }
 0x8ae   : > { %v7295_v9 = vpop.f32.mrf.mxu0 }
 0x8af   : > { %v7294_v34 = vadd.f32 %v7293_v6, %v7280_v57 }
 0x8b2   : > { %v7267_v29 = vpop.f32.mrf.mxu2 }
 0x8b3   : > { %v7268_v3 = vadd.f32 %v7267_v29, %v7254_v0 }
 0x8b5   : > { %v7282_v13 = vadd.f32 %v7281_v11, %v7268_v3 }
 0x8b7   : > { %v7296_v15 = vadd.f32 %v7295_v9, %v7282_v13 }
 0x8c0   : > { %v7307_v8 = vpop.f32.mrf.mxu1 }
 0x8c1   : > { %v7308_v39 = vadd.f32 %v7307_v8, %v7294_v34 }
 0x8c6   : > { %v7349_v26 = vpop.f32.mrf.mxu0 }
 0x8c7   : > { %v7335_v25 = vpop.f32.mrf.mxu3 }
 0x8c8   : > { %v7309_v62 = vpop.f32.mrf.mxu1  ;;  %v7336_v22 = vadd.f32 %v7335_v25, %v3973_v19 }
 0x8c9   : > { %v7310_v18 = vadd.f32 %v7309_v62, %v7296_v15 }
 0x8ca   : > { %v7350_v30 = vadd.f32 %v7349_v26, %v7336_v22 }
 0x8cc   : > { %v7321_v12 = vpop.f32.mrf.mxu2 }
 0x8cd   : > { %v7322_v14 = vadd.f32 %v7321_v12, %v7308_v39 }
 0x8ce   : > { %v7351_v31 = vpop.f32.mrf.mxu0 }
 0x8cf   : > { %7444 = vst [vmem:[%s13301_s22 + $0x30] sm:$0xff] %v7322_v14  ;;  %v7337_v47 = vpop.f32.mrf.mxu3 }
 0x8d0   : > { %v7338_v33 = vadd.f32 %v7337_v47, %v3973_v19 }
 0x8d2   : > { %v7352_v38 = vadd.f32 %v7351_v31, %v7338_v33 }
 0x8d4   : > { %v7323_v20 = vpop.f32.mrf.mxu2 }
 0x8d5   : > { %v7324_v23 = vadd.f32 %v7323_v20, %v7310_v18 }
 0x8d7   : > { %7452 = vst [vmem:[%s13301_s22 + $0x70] sm:$0xff] %v7324_v23 }
 0x8e6   : > { %v7363_v27 = vpop.f32.mrf.mxu1 }
 0x8e7   : > { %v7364_v21 = vadd.f32 %v7363_v27, %v7350_v30 }
 0x8ee   : > { %v7365_v32 = vpop.f32.mrf.mxu1 }
 0x8ef   : > { %v7366_v36 = vadd.f32 %v7365_v32, %v7352_v38 }
 0x8f0   : > { %v7391_v2 = vpop.f32.mrf.mxu3 }
 0x8f2   : > { %v7405_v63 = vpop.f32.mrf.mxu0 }
 0x8f6   : > { %v7377_v28 = vpop.f32.mrf.mxu2 }
 0x8f7   : > { %v7378_v35 = vadd.f32 %v7377_v28, %v7364_v21 }
 0x8f8   : > { %v7393_v48 = vpop.f32.mrf.mxu3 }
 0x8f9   : > { %v7392_v1 = vadd.f32 %v7391_v2, %v7378_v35 }
 0x8fa   : > { %v7407_v52 = vpop.f32.mrf.mxu0 }
 0x8fb   : > { %v7406_v41 = vadd.f32 %v7405_v63, %v7392_v1 }
 0x8fe   : > { %v7379_v37 = vpop.f32.mrf.mxu2 }
 0x8ff   : > { %v7380_v7 = vadd.f32 %v7379_v37, %v7366_v36 }
 0x901   : > { %v7394_v50 = vadd.f32 %v7393_v48, %v7380_v7 }
 0x903   : > { %v7408_v46 = vadd.f32 %v7407_v52, %v7394_v50 }
 0x90c   : > { %v7419_v44 = vpop.f32.mrf.mxu1 }
 0x90d   : > { %v7420_v45 = vadd.f32 %v7419_v44, %v7406_v41 }
 0x914   : > { %v7421_v61 = vpop.f32.mrf.mxu1 }
 0x915   : > { %v7422_v49 = vadd.f32 %v7421_v61, %v7408_v46 }
 0x918   : > { %v7433_v43 = vpop.f32.mrf.mxu2 }
 0x919   : > { %v7434_v51 = vadd.f32 %v7433_v43, %v7420_v45 }
 0x91b   : > { %7445 = vst [vmem:[%s13301_s22 + $0x38] sm:$0xff] %v7434_v51 }
 0x91f   : > { %7461 = sbr.rel (!%p12860_p11) target bundleno = 2372 (0x944), region = 180 }
 0x920   : > { %v7435_v53 = vpop.f32.mrf.mxu2 }
 0x921   : > { %v7436_v59 = vadd.f32 %v7435_v53, %v7422_v49 }
 0x923   : > { %7453 = vst [vmem:[%s13301_s22 + $0x78] sm:$0xff] %v7436_v59 }
 0x924   : > { %s13569_s23 = smov (!%p7464_p9, %s7463_s23), 2 }
 0x925   : > { %s11774_s3 = sshll.u32 %s13569_s23, 6 }
 0x926   : > { %s7468_s24 = ssub.s32 128, %s11774_s3 }
 0x927   : > { %s7469_s4 = sshll.u32 %s7468_s24, 4 }
 0x928   : > { %7470 = vsyncadd %s13487_s0, %s7469_s4  ;;  %p13389_p6 = scmp.ne.s32.totalorder %s11774_s3, 0  ;;  %s11776_s28 = sshll.u32 %s13553_s26, 7 }
 0x929   : > { %s13555_s21 = sld [smem:[#allocation63_spill]]  ;;  %s7476_s5 = sshll.u32 %s13301_s22, 4  ;;  %s13398_s5 = int_to_ptr.vmem [resolvable:$true] %s7476_s5 }
 0x92a   : > { %s13489_s4 = sshll.u32 %s13569_s23, 10  ;;  %s12554_s0 = sshra.s32 %s13398_s5, 4  ;;  %s12555_s0 = int_to_ptr.vmem [resolvable:$true] %s12554_s0 }
 0x92b   : > { %s12556_s3 = sshrl.u32 %s13489_s4, 4  ;;  %s12695_s26 = smov [#allocation31]  }
 0x92c   : > { %s12561_s7 = scalar_lea.vmem %s12555_s0, %s12556_s3  ;;  %s12565_s6 = scalar_lea.vmem %s12695_s26, 256 }
 0x92d   : > { %p12562_p11 = scmp.ne.s32.totalorder %s12555_s0, %s12561_s7  ;;  %p12567_p0 = scmp.lt.s32.totalorder %s12565_s6, %s12561_s7 }
 0x92f   : > { %s7474_s25 = scalar_lea.hbm %s13555_s21, %s11776_s28  ;;  %p12563_p10 = pnand %p12562_p11, %p13389_p6 }
 0x930   : > { %s7478_s24 = sshll.u32 %s7474_s25, 4  ;;  %s13400_s24 = int_to_ptr.hbm [resolvable:$true] %s7478_s24 }
 0x931   : > { %p12564_p1 = pneg %p12563_p10 }
 0x933   : > { %p12569_p3 = pnand %p12567_p0, %p12564_p1 }
 0x935   : > { %12572 = shalt.err (!%p12569_p3)
}
 0x936   : > { %s12573_s22 = sshra.s32 %s13400_s24, 4  ;;  %s12584_s0 = scalar_lea.hbm %s13555_s21, 192  ;;  %s12574_s22 = int_to_ptr.hbm [resolvable:$true] %s12573_s22 }
 0x937   : > { %s12580_s28 = scalar_lea.hbm %s12574_s22, %s12556_s3  ;;  %p12585_p12 = scmp.lt.s32.totalorder %s12574_s22, %s13555_s21 }
 0x938   : > { %p12581_p7 = scmp.ne.s32.totalorder %s12574_s22, %s12580_s28  ;;  %p12586_p13 = scmp.lt.s32.totalorder %s12584_s0, %s12580_s28 }
 0x93a   : > { %p12582_p8 = pnand %p12581_p7, %p13389_p6  ;;  %p12587_p2 = por %p12586_p13, %p12585_p12 }
 0x93c   : > { %p12583_p4 = pneg %p12582_p8 }
 0x93e   : > { %p12588_p5 = pnand %p12587_p2, %p12583_p4 }
 0x940   : > { %12591 = shalt.err (!%p12588_p5)
}
 0x941   : > { %s12696_s7 = smov 1024   ;;  %s12697_s3 = smov 64  }
 0x942   : > { %s13556_s26 = scalar_lea.sflag [#allocation4], %s13024_s2  ;;  %s13557_s6 = sshll.u32 %s13569_s23, 10 }
 0x943   : > { %7484 = dma.vmem_to_hbm [thread:$0]  (%p13389_p6), %s13398_s5, %s13557_s6, %s13400_s24, %s13556_s26, %s12696_s7, %s12696_s7, %s12697_s3  }
 0x944 PF: > { %s13558_s30 = sld [smem:[#allocation43_spill]]  ;;  %p13561_p11 = scmp.ge.s32.totalorder %s12667_s27, 2 }
 0x945   : > { %s13559_s8 = sld [smem:[#allocation52_spill]] }
 0x94a   : > { %s7493_s4 = sand.u32 1, %s13558_s30  }
 0x94b   : > { %p13560_p9 = scmp.ne.s32.totalorder %s13559_s8, 0  ;;  %s7494_s22 = scalar_lea.sflag [#allocation4], %s7493_s4 }
 0x94d   : > { %p11900_p10 = pnand %p13561_p11, %p13560_p9 }
 0x94f   : > { %p11901_p1 = pneg %p11900_p10 }
 0x951   : > { %12650 = dma.done.wait (%p11901_p1), %s7494_s22, 2048  }
 0x952   : > { %12652 = vsyncadd (%p11901_p1), %s7494_s22, 4294965248  ;;  %s13562_s27 = sld [smem:[#allocation47_spill]] }
 0x953   : > { %s13563_s2 = sld [smem:[#allocation44_spill]] }
 0x954   : > { %s13564_s25 = sld [smem:[#allocation45_spill]] }
 0x955   : > { %s13565_s26 = sld [smem:[#allocation48_spill]] }
 0x958   : > { %p43_p0 = scmp.ge.s32.totalorder %s13562_s27, 4  }
 0x95a   :  { %45 = sbr.rel (!%p43_p0) target bundleno = 25 (0x19), region = 217 }
 0x95f   :  { %7500 = vsyncpa [#allocation3], 1 }
 0x960   :  { %7502 = vsyncpa [#allocation3 + $0x1], 1 }
 0x961   :  { %7503 = vsyncpa [#allocation6], 1 }
 0x962   :  { %7504 = vsyncpa [#allocation9], 1 }
 0x963   :  { %7505 = vsyncpa [#allocation12], 1 }
 0x964   :  { %7506 = vsyncpa [#allocation15], 1 }
 0x965   :  { %7507 = vsyncpa [#allocation18], 1 }
 0x966   :  { %7508 = vsyncpa [#allocation21], 1 }
 0x967   :  { %7509 = vsyncpa [#allocation24], 1 }
 0x968   :  { %7510 = vsyncpa [#allocation27], 1 }
 0x969   :  { %7511 = vsyncpa [#allocation30], 1 }
 0x96a   :  { %7512 = vsyncpa [#allocation4], 1 }
 0x96b   :  { %7514 = vsyncpa [#allocation4 + $0x1], 1 }

</bundles_post_ra>
